<compile_context>
chip_gen: v6e
topology: v6e:2x2x1
jax: 0.10.0
libtpu: 0.0.40
codegen_flags: <defaults>
</compile_context>

<pallas_src>
import functools

import jax
import jax.numpy as jnp
from jax.experimental import pallas as pl
from jax.experimental.pallas import tpu as pltpu

EPS = 1e-5                     # PyTorch BatchNorm default eps
BF16 = jnp.bfloat16
VMEM_LIMIT = 40 * 1024 * 1024  # safe on v5e/v6e (128 MiB) and v7x (64 MiB physical)


# ----------------------------------------------------------------------------
# small helpers
# ----------------------------------------------------------------------------
def _round_up(x, m):
    return (x + m - 1) // m * m


def _pad_to(x, m, axis):
    r = (-x.shape[axis]) % m
    if r == 0:
        return x
    pads = [(0, 0)] * x.ndim
    pads[axis] = (0, r)
    return jnp.pad(x, pads)


def _row_tile(M, max_t=2048):
    """Row tile for (M, C) elementwise kernels (divisor of M, sublane aligned)."""
    if M <= 4096:
        return M
    top = min(M, max_t)
    for cand in range(top, 0, -1):
        if M % cand == 0 and cand % 16 == 0:
            return cand
    for cand in range(top, 0, -1):
        if M % cand == 0 and cand % 8 == 0:
            return cand
    return M


def _fold_lanes(x2d):
    """Lane-dense view for narrow channel counts: (M, 64) -> (M/2, 128)."""
    M, C = x2d.shape
    if C < 128 and 128 % C == 0 and M % (128 // C) == 0:
        g = 128 // C
        return x2d.reshape(M // g, C * g), g
    return x2d, 1


def _tile_param(v, g):
    return jnp.tile(v.astype(jnp.float32).reshape(1, -1), (1, g))


def _pick_th(Ho, Wcols, cap=1024):
    """Largest divisor of Ho whose row block keeps M = th*Wcols <= cap."""
    best = 1
    for cand in range(1, Ho + 1):
        if Ho % cand == 0 and cand * Wcols <= cap:
            best = cand
    return best


def bn_params(sums, sqs, count, gamma, beta):
    """Training-mode BN scale/shift from per-channel sum / sum-of-squares."""
    mean = sums / count
    var = jnp.maximum(sqs / count - mean * mean, 0.0)   # cancellation guard
    scale = gamma / jnp.sqrt(var + EPS)
    shift = beta - mean * scale
    return scale, shift


# ----------------------------------------------------------------------------
# Pallas kernel: tiled bf16 matmul (input-conv im2col and the final Linear)
# ----------------------------------------------------------------------------
def _matmul_kernel(a_ref, b_ref, o_ref, acc_ref):
    @pl.when(pl.program_id(2) == 0)
    def _():
        acc_ref[...] = jnp.zeros_like(acc_ref)

    acc_ref[...] += jnp.dot(a_ref[...], b_ref[...],
                            preferred_element_type=jnp.float32)

    @pl.when(pl.program_id(2) == pl.num_programs(2) - 1)
    def _():
        o_ref[...] = acc_ref[...].astype(o_ref.dtype)


def matmul(a, b, *, tm=256, tn=256, out_dtype=BF16):
    """(M,K) @ (K,N): bf16 operands on the MXU, f32 accumulator."""
    M, K = a.shape
    K2, N = b.shape
    assert K == K2
    a = a.astype(BF16)
    b = b.astype(BF16)
    tm = min(tm, _round_up(M, 16))          # don't pad tiny M (e.g. the Linear, M=2)
    if N <= 256:
        tn = N
    if K <= 8192:
        tk = K                               # weight fully resident along K
    elif K % 6272 == 0:
        tk = 6272                            # 25088-wide Linear reduction: 4 K-steps
    elif K % 3584 == 0:
        tk = 3584
    else:
        tk = 512
    ap = _pad_to(_pad_to(a, tm, 0), tk, 1)
    bp = _pad_to(_pad_to(b, tk, 0), tn, 1)
    Mp, Kp = ap.shape
    Np = bp.shape[1]
    out = pl.pallas_call(
        _matmul_kernel,
        out_shape=jax.ShapeDtypeStruct((Mp, Np), out_dtype),
        grid_spec=pltpu.PrefetchScalarGridSpec(
            num_scalar_prefetch=0,
            grid=(Mp // tm, Np // tn, Kp // tk),
            in_specs=[pl.BlockSpec((tm, tk), lambda i, j, k: (i, k)),
                      pl.BlockSpec((tk, tn), lambda i, j, k: (k, j))],
            out_specs=pl.BlockSpec((tm, tn), lambda i, j, k: (i, j)),
            scratch_shapes=[pltpu.VMEM((tm, tn), jnp.float32)]),
        compiler_params=pltpu.CompilerParams(
            dimension_semantics=("parallel", "parallel", "arbitrary"),
            vmem_limit_bytes=VMEM_LIMIT),
    )(ap, bp)
    return out[:M, :N]


# ----------------------------------------------------------------------------
# Pallas kernel: fused 3x3 conv (stride 1 and 2, no HBM im2col).
# The whole padded image stays resident in VMEM; `taps` is a static list of
# (row_off, col_off, lane_off, lane_len, w_row_start, w_rows) descriptors, each
# becoming one row-batched MXU dot of shape (th*Wcols, lane_len) x (lane_len, tn).
# Optional fused PReLU and per-channel (sum, sumsq) statistics in the epilogue.
# ----------------------------------------------------------------------------
def _make_conv_kernel(taps, th, Wcols, tn, has_alpha, want_stats):
    M = th * Wcols

    def kernel(*refs):
        i = 0
        x_ref = refs[i]; i += 1            # (1, Hv, Wv, Cv) bf16 (full image view)
        w_ref = refs[i]; i += 1            # (Kw, tn) bf16
        a_ref = None
        if has_alpha:
            a_ref = refs[i]; i += 1        # (1, tn) f32
        o_ref = refs[i]; i += 1            # (1, th, Wcols, tn) bf16
        if want_stats:
            s_ref, q_ref = refs[i], refs[i + 1]

        row0 = pl.program_id(1) * th
        acc = jnp.zeros((M, tn), jnp.float32)
        for (ro, co, lo, ll, ws, wl) in taps:
            slab = x_ref[0, pl.ds(row0 + ro, th), pl.ds(co, Wcols), pl.ds(lo, ll)]
            acc = acc + jnp.dot(slab.reshape(M, ll),
                                w_ref[pl.ds(ws, wl), :],
                                preferred_element_type=jnp.float32)

        if has_alpha:                      # fused PReLU (after conv1)
            alpha = a_ref[...]
            acc = jnp.where(acc >= 0.0, acc, acc * alpha)
        if want_stats:                     # fused BN batch statistics (after conv2)
            s_ref[...] = jnp.sum(acc, axis=0, keepdims=True).reshape(1, 1, tn)
            q_ref[...] = jnp.sum(acc * acc, axis=0, keepdims=True).reshape(1, 1, tn)
        o_ref[...] = acc.astype(o_ref.dtype).reshape(1, th, Wcols, tn)

    return kernel


def conv3x3_fused(x, w, stride, *, alpha=None, want_stats=False,
                  pre_scale=None, pre_shift=None):
    """3x3 conv, padding 1, stride 1 or 2, Cin >= 8.
    Optionally folds a per-channel affine (BN1) into the padded input, fuses a
    per-channel PReLU, and/or emits per-channel (sum, sumsq) of the output."""
    N, H, W, Cin = x.shape
    Cout = w.shape[-1]
    Ho, Wo = H // stride, W // stride

    xf = x.astype(jnp.float32)
    if pre_scale is not None:              # BN1 folded into the pad step (fused in XLA)
        xf = xf * pre_scale.astype(jnp.float32) + pre_shift.astype(jnp.float32)
    xp = jnp.pad(xf.astype(BF16), ((0, 0), (1, 1), (1, 1), (0, 0)))

    fold64 = (stride == 1 and Cin == 64 and W % 2 == 0)

    if stride == 2:
        # fold padded row pairs into channels (free bitcast): every tap is contiguous.
        xv = xp.reshape(N, (H + 2) // 2, W + 2, 2 * Cin)
        w2 = w.reshape(9 * Cin, Cout).astype(BF16)
        Wcols, tn = Wo, Cout
        taps = []
        for dy in range(3):
            base = (dy % 2) * (Wo + 1)
            # dx = 0 and dx = 1 combined (even/odd column phases share one dot)
            taps.append((dy // 2, base, 0, 2 * Cin, 3 * dy * Cin, 2 * Cin))
            # dx = 2 (even phase of the next folded column)
            taps.append((dy // 2, base + 1, 0, Cin, (3 * dy + 2) * Cin, Cin))
    elif fold64:
        # fold padded column pairs into channels: K,N double and stores are lane-dense.
        xv = xp.reshape(N, H + 2, (W + 2) // 2, 2 * Cin)
        z = jnp.zeros((Cin, Cout), w.dtype)
        blocks = []
        for dy in range(3):
            w0, w1, w2_ = w[dy, 0], w[dy, 1], w[dy, 2]
            A = jnp.concatenate([jnp.concatenate([w0, z], axis=1),
                                 jnp.concatenate([w1, w0], axis=1)], axis=0)
            B = jnp.concatenate([jnp.concatenate([w2_, w1], axis=1),
                                 jnp.concatenate([z, w2_], axis=1)], axis=0)
            blocks += [A, B]
        w2 = jnp.concatenate(blocks, axis=0).astype(BF16)       # (12*Cin, 2*Cout)
        Wcols, tn = Wo // 2, 2 * Cout
        taps = []
        for dy in range(3):
            taps.append((dy, 0, 0, 2 * Cin, dy * 4 * Cin, 2 * Cin))
            taps.append((dy, 1, 0, 2 * Cin, dy * 4 * Cin + 2 * Cin, 2 * Cin))
    else:
        xv = xp
        w2 = w.reshape(9 * Cin, Cout).astype(BF16)
        Wcols, tn = Wo, Cout
        taps = [(dy, dx, 0, Cin, (3 * dy + dx) * Cin, Cin)
                for dy in range(3) for dx in range(3)]

    th = _pick_th(Ho, Wcols)
    R = Ho // th
    has_alpha = alpha is not None
    if has_alpha:
        a_eff = alpha.astype(jnp.float32).reshape(1, Cout)
        if fold64:
            a_eff = jnp.concatenate([a_eff, a_eff], axis=1)

    in_specs = [
        pl.BlockSpec((1,) + xv.shape[1:], lambda n, r: (n, 0, 0, 0)),
        pl.BlockSpec(w2.shape, lambda n, r: (0, 0)),       # weight resident, DMA once
    ]
    inputs = [xv, w2]
    if has_alpha:
        in_specs.append(pl.BlockSpec((1, tn), lambda n, r: (0, 0)))
        inputs.append(a_eff)

    out_spec = pl.BlockSpec((1, th, Wcols, tn), lambda n, r: (n, r, 0, 0))
    kernel = _make_conv_kernel(taps, th, Wcols, tn, has_alpha, want_stats)

    if want_stats:
        stat_spec = pl.BlockSpec((1, 1, tn), lambda n, r: (n * R + r, 0, 0))
        out_shape = (jax.ShapeDtypeStruct((N, Ho, Wcols, tn), BF16),
                     jax.ShapeDtypeStruct((N * R, 1, tn), jnp.float32),
                     jax.ShapeDtypeStruct((N * R, 1, tn), jnp.float32))
        out_specs = [out_spec, stat_spec, stat_spec]
    else:
        out_shape = jax.ShapeDtypeStruct((N, Ho, Wcols, tn), BF16)
        out_specs = out_spec

    res = pl.pallas_call(
        kernel,
        out_shape=out_shape,
        grid_spec=pltpu.PrefetchScalarGridSpec(
            num_scalar_prefetch=0,
            grid=(N, R),
            in_specs=in_specs,
            out_specs=out_specs),
        compiler_params=pltpu.CompilerParams(
            dimension_semantics=("parallel", "parallel"),
            vmem_limit_bytes=VMEM_LIMIT),
    )(*inputs)

    if want_stats:
        y, s, q = res
    else:
        y = res
    y = y.reshape(N, Ho, Wo, Cout)              # free bitcast (unfold lanes)
    if not want_stats:
        return y, None
    ssum = jnp.sum(s[:, 0, :], axis=0)
    qsum = jnp.sum(q[:, 0, :], axis=0)
    if fold64:                                  # merge even/odd column phases
        ssum = ssum.reshape(2, Cout).sum(axis=0)
        qsum = qsum.reshape(2, Cout).sum(axis=0)
    return y, (ssum, qsum)


# ----------------------------------------------------------------------------
# Pallas kernel: 1x1 shortcut conv with fused per-channel statistics
# ----------------------------------------------------------------------------
def _conv1x1_stats_kernel(x_ref, w_ref, o_ref, s_ref, q_ref):
    y = jnp.dot(x_ref[...], w_ref[...], preferred_element_type=jnp.float32)
    o_ref[...] = y.astype(o_ref.dtype)
    s_ref[...] = jnp.sum(y, axis=0, keepdims=True)
    q_ref[...] = jnp.sum(y * y, axis=0, keepdims=True)


def conv1x1_stats(x2d, w):
    M, K = x2d.shape
    N = w.shape[1]
    y, s, q = pl.pallas_call(
        _conv1x1_stats_kernel,
        out_shape=(jax.ShapeDtypeStruct((M, N), BF16),
                   jax.ShapeDtypeStruct((1, N), jnp.float32),
                   jax.ShapeDtypeStruct((1, N), jnp.float32)),
        grid_spec=pltpu.PrefetchScalarGridSpec(
            num_scalar_prefetch=0, grid=(1,),
            in_specs=[pl.BlockSpec((M, K), lambda i: (0, 0)),
                      pl.BlockSpec((K, N), lambda i: (0, 0))],
            out_specs=[pl.BlockSpec((M, N), lambda i: (0, 0)),
                       pl.BlockSpec((1, N), lambda i: (0, 0)),
                       pl.BlockSpec((1, N), lambda i: (0, 0))]),
        compiler_params=pltpu.CompilerParams(
            dimension_semantics=("arbitrary",),
            vmem_limit_bytes=VMEM_LIMIT),
    )(x2d.astype(BF16), w.astype(BF16))
    return y, (s[0], q[0])


# ----------------------------------------------------------------------------
# Pallas kernels: BN-affine (+PReLU), BN-affine residual add, channel stats
# ----------------------------------------------------------------------------
def _affine_act_kernel_factory(has_alpha, want_stats):
    def kernel(*refs):
        i = 0
        x_ref = refs[i]; i += 1
        sc_ref = refs[i]; i += 1
        sh_ref = refs[i]; i += 1
        if has_alpha:
            a_ref = refs[i]; i += 1
        o_ref = refs[i]; i += 1
        x = x_ref[...].astype(jnp.float32)
        y = x * sc_ref[...] + sh_ref[...]
        if has_alpha:
            y = jnp.where(y >= 0.0, y, y * a_ref[...])
        o_ref[...] = y.astype(o_ref.dtype)
        if want_stats:
            s_ref = refs[i]
            q_ref = refs[i + 1]
            s_ref[...] = jnp.sum(y, axis=0, keepdims=True).reshape(1, 1, -1)
            q_ref[...] = jnp.sum(y * y, axis=0, keepdims=True).reshape(1, 1, -1)
    return kernel


def affine_act(x2d, scale, shift, alpha=None, *, want_stats=False, out_dtype=BF16):
    M, C = x2d.shape
    xf, g = _fold_lanes(x2d)
    Mf, Cf = xf.shape
    t = _row_tile(Mf)
    nb = Mf // t
    has_alpha = alpha is not None

    inputs = [xf, _tile_param(scale, g), _tile_param(shift, g)]
    in_specs = [pl.BlockSpec((t, Cf), lambda i: (i, 0)),
                pl.BlockSpec((1, Cf), lambda i: (0, 0)),
                pl.BlockSpec((1, Cf), lambda i: (0, 0))]
    if has_alpha:
        inputs.append(_tile_param(alpha, g))
        in_specs.append(pl.BlockSpec((1, Cf), lambda i: (0, 0)))

    main_spec = pl.BlockSpec((t, Cf), lambda i: (i, 0))
    kernel = _affine_act_kernel_factory(has_alpha, want_stats)

    if want_stats:
        sspec = pl.BlockSpec((1, 1, Cf), lambda i: (i, 0, 0))
        out_shape = (jax.ShapeDtypeStruct((Mf, Cf), out_dtype),
                     jax.ShapeDtypeStruct((nb, 1, Cf), jnp.float32),
                     jax.ShapeDtypeStruct((nb, 1, Cf), jnp.float32))
        out_specs = [main_spec, sspec, sspec]
    else:
        out_shape = jax.ShapeDtypeStruct((Mf, Cf), out_dtype)
        out_specs = main_spec

    res = pl.pallas_call(
        kernel,
        out_shape=out_shape,
        grid_spec=pltpu.PrefetchScalarGridSpec(
            num_scalar_prefetch=0, grid=(nb,),
            in_specs=in_specs, out_specs=out_specs),
        compiler_params=pltpu.CompilerParams(
            dimension_semantics=("parallel",),
            vmem_limit_bytes=VMEM_LIMIT),
    )(*inputs)

    if want_stats:
        yf, s, q = res
        ss = jnp.sum(s[:, 0, :], axis=0).reshape(g, C).sum(axis=0)
        qq = jnp.sum(q[:, 0, :], axis=0).reshape(g, C).sum(axis=0)
        return yf.reshape(M, C), (ss, qq)
    return res.reshape(M, C), None


def _affine_add_kernel(x_ref, r_ref, sx_ref, bx_ref, sr_ref, br_ref,
                       o_ref, s_ref, q_ref):
    x = x_ref[...].astype(jnp.float32)
    r = r_ref[...].astype(jnp.float32)
    y = x * sx_ref[...] + bx_ref[...] + r * sr_ref[...] + br_ref[...]
    o_ref[...] = y.astype(o_ref.dtype)
    s_ref[...] = jnp.sum(y, axis=0, keepdims=True).reshape(1, 1, -1)
    q_ref[...] = jnp.sum(y * y, axis=0, keepdims=True).reshape(1, 1, -1)


def affine_add(x2d, r2d, sx, bx, sr, br):
    """y = (x*sx + bx) + (r*sr + br); also returns per-channel (sum, sumsq) of y."""
    M, C = x2d.shape
    xf, g = _fold_lanes(x2d)
    rf, _ = _fold_lanes(r2d)
    Mf, Cf = xf.shape
    t = _row_tile(Mf)
    nb = Mf // t
    main_spec = pl.BlockSpec((t, Cf), lambda i: (i, 0))
    par_spec = pl.BlockSpec((1, Cf), lambda i: (0, 0))
    sspec = pl.BlockSpec((1, 1, Cf), lambda i: (i, 0, 0))
    yf, s, q = pl.pallas_call(
        _affine_add_kernel,
        out_shape=(jax.ShapeDtypeStruct((Mf, Cf), BF16),
                   jax.ShapeDtypeStruct((nb, 1, Cf), jnp.float32),
                   jax.ShapeDtypeStruct((nb, 1, Cf), jnp.float32)),
        grid_spec=pltpu.PrefetchScalarGridSpec(
            num_scalar_prefetch=0, grid=(nb,),
            in_specs=[main_spec, main_spec, par_spec, par_spec, par_spec, par_spec],
            out_specs=[main_spec, sspec, sspec]),
        compiler_params=pltpu.CompilerParams(
            dimension_semantics=("parallel",),
            vmem_limit_bytes=VMEM_LIMIT),
    )(xf, rf, _tile_param(sx, g), _tile_param(bx, g),
      _tile_param(sr, g), _tile_param(br, g))
    ss = jnp.sum(s[:, 0, :], axis=0).reshape(g, C).sum(axis=0)
    qq = jnp.sum(q[:, 0, :], axis=0).reshape(g, C).sum(axis=0)
    return yf.reshape(M, C), (ss, qq)


def _stats_kernel(x_ref, sum_ref, sq_ref):
    @pl.when(pl.program_id(0) == 0)
    def _():
        sum_ref[...] = jnp.zeros_like(sum_ref)
        sq_ref[...] = jnp.zeros_like(sq_ref)

    x = x_ref[...].astype(jnp.float32)
    sum_ref[...] += jnp.sum(x, axis=0, keepdims=True)
    sq_ref[...] += jnp.sum(x * x, axis=0, keepdims=True)


def channel_stats(x2d):
    M, C = x2d.shape
    xf, g = _fold_lanes(x2d)
    Mf, Cf = xf.shape
    t = _row_tile(Mf)
    sums, sqs = pl.pallas_call(
        _stats_kernel,
        out_shape=(jax.ShapeDtypeStruct((1, Cf), jnp.float32),
                   jax.ShapeDtypeStruct((1, Cf), jnp.float32)),
        grid_spec=pltpu.PrefetchScalarGridSpec(
            num_scalar_prefetch=0, grid=(Mf // t,),
            in_specs=[pl.BlockSpec((t, Cf), lambda i: (i, 0))],
            out_specs=[pl.BlockSpec((1, Cf), lambda i: (0, 0)),
                       pl.BlockSpec((1, Cf), lambda i: (0, 0))]),
        compiler_params=pltpu.CompilerParams(
            dimension_semantics=("arbitrary",),
            vmem_limit_bytes=VMEM_LIMIT),
    )(xf)
    s = sums[0].reshape(g, C).sum(axis=0)
    q = sqs[0].reshape(g, C).sum(axis=0)
    return s, q


# ----------------------------------------------------------------------------
# conv glue
# ----------------------------------------------------------------------------
def im2col_3x3(x, stride):
    """bf16 patches (used only for the Cin=3 input conv)."""
    N, H, W, C = x.shape
    Ho = (H + 2 - 3) // stride + 1
    Wo = (W + 2 - 3) // stride + 1
    xp = jnp.pad(x.astype(BF16), ((0, 0), (1, 1), (1, 1), (0, 0)))
    cols = []
    for dy in range(3):
        for dx in range(3):
            cols.append(xp[:, dy:dy + stride * (Ho - 1) + 1:stride,
                              dx:dx + stride * (Wo - 1) + 1:stride, :])
    patches = jnp.concatenate(cols, axis=-1)        # order (kh, kw, cin)
    return patches.reshape(N * Ho * Wo, 9 * C), (N, Ho, Wo)


def conv3x3(x, w, stride, *, alpha=None, want_stats=False,
            pre_scale=None, pre_shift=None):
    """3x3 conv, padding 1.  Returns (y_nhwc_bf16, (sum, sumsq) or None)."""
    Cin = x.shape[-1]
    if Cin >= 8:
        return conv3x3_fused(x, w, stride, alpha=alpha, want_stats=want_stats,
                             pre_scale=pre_scale, pre_shift=pre_shift)
    # input conv (Cin = 3): tiny -> bf16 im2col + tiled matmul
    N, H, W, _ = x.shape
    Cout = w.shape[-1]
    patches, (N2, Ho, Wo) = im2col_3x3(x, stride)
    out2d = matmul(patches, w.reshape(9 * Cin, Cout))
    stats = channel_stats(out2d) if want_stats else None
    return out2d.reshape(N2, Ho, Wo, Cout), stats


# ----------------------------------------------------------------------------
# Backbone forward
# ----------------------------------------------------------------------------
@functools.partial(jax.jit, static_argnums=(4, 5, 6))
def block_forward(x, x_sum, x_sq, p, in_ch, depth, stride):
    N, H, W, _ = x.shape
    M_in = N * H * W
    ones_d = jnp.ones((depth,), jnp.float32)
    zeros_d = jnp.zeros((depth,), jnp.float32)

    # BN1 params (folded into conv1's padded input below)
    s1, b1 = bn_params(x_sum, x_sq, M_in, p['bn1_g'], p['bn1_b'])

    # ---- shortcut -------------------------------------------------------
    xs = x if stride == 1 else x[:, ::stride, ::stride, :]   # MaxPool2d(1, stride)
    if in_ch == depth:
        sc2d = xs.reshape(-1, depth)
        s_sc, b_sc = ones_d, zeros_d
    else:
        sc2d, (ssum, ssq) = conv1x1_stats(xs.reshape(-1, in_ch), p['sc_w'])
        s_sc, b_sc = bn_params(ssum, ssq, sc2d.shape[0], p['sc_bn_g'], p['sc_bn_b'])

    # ---- residual branch: [BN1 ->] conv3x3(s1)+PReLU -> conv3x3(stride)+BN2 stats
    c1, _ = conv3x3(x, p['conv1_w'], 1, alpha=p['prelu_a'],
                    pre_scale=s1, pre_shift=b1)
    c2, (c2sum, c2sq) = conv3x3(c1, p['conv2_w'], stride, want_stats=True)
    c2d = c2.reshape(-1, depth)
    s2, b2 = bn_params(c2sum, c2sq, c2d.shape[0], p['bn2_g'], p['bn2_b'])

    # BN2 affine + shortcut BN affine + residual add (+ stats for the next BN1)
    out2d, (osum, osq) = affine_add(c2d, sc2d, s2, b2, s_sc, b_sc)
    Ho, Wo = H // stride, W // stride
    return out2d.reshape(N, Ho, Wo, depth), osum, osq


@jax.jit
def input_layer(x_nchw, p):
    x = jnp.transpose(x_nchw, (0, 2, 3, 1)).astype(BF16)        # NCHW -> NHWC
    y, (csum, csq) = conv3x3(x, p['conv_w'], 1, want_stats=True)
    N, H, W, C = y.shape
    y2d = y.reshape(-1, C)
    s, b = bn_params(csum, csq, y2d.shape[0], p['bn_g'], p['bn_b'])
    y2d, (osum, osq) = affine_act(y2d, s, b, p['prelu_a'], want_stats=True)
    return y2d.reshape(N, H, W, C), osum, osq


@jax.jit
def output_layer(x, x_sum, x_sq, p):
    N, H, W, C = x.shape
    x2d = x.reshape(-1, C)
    s, b = bn_params(x_sum, x_sq, x2d.shape[0], p['bn2d_g'], p['bn2d_b'])
    x2d, _ = affine_act(x2d, s, b)                               # BN2d affine
    x = x2d.reshape(N, H, W, C)
    # TODO(synk): Dropout(p=0.5) applied as identity (eval semantics).
    flat = jnp.transpose(x, (0, 3, 1, 2)).reshape(N, -1)         # PyTorch flatten order
    y = matmul(flat, p['lin_w'], tm=16, out_dtype=jnp.float32)   # Linear (bias = 0)
    ysum, ysq = channel_stats(y)
    s, b = bn_params(ysum, ysq, y.shape[0], p['bn1d_g'], p['bn1d_b'])
    out, _ = affine_act(y, s, b, out_dtype=jnp.float32)          # BN1d
    return out


def backbone_forward(x_nchw, params):
    x, s, q = input_layer(x_nchw, params['input'])
    for (in_ch, depth, stride), bp in zip(params['cfg'], params['blocks']):
        x, s, q = block_forward(x, s, q, bp, in_ch, depth, stride)
    return output_layer(x, s, q, params['output'])


# ----------------------------------------------------------------------------
# Deterministic parameter construction (synthetic xavier-uniform init)
# ----------------------------------------------------------------------------
def get_block_cfg(in_channel, depth, num_units, stride=2):
    return [(in_channel, depth, stride)] + [(depth, depth, 1)] * (num_units - 1)


def get_blocks_cfg(num_layers):
    assert num_layers == 50
    return (get_block_cfg(64, 64, 3) + get_block_cfg(64, 128, 4)
            + get_block_cfg(128, 256, 14) + get_block_cfg(256, 512, 3))


def xavier(key, shape, fan_in, fan_out):
    bound = (6.0 / (fan_in + fan_out)) ** 0.5
    return jax.random.uniform(key, shape, jnp.float32, -bound, bound)


def init_params(key, input_size=112, num_layers=50):
    cfg = get_blocks_cfg(num_layers)
    keys = iter(jax.random.split(key, 4 * len(cfg) + 8))
    params = {'cfg': cfg}
    params['input'] = {
        'conv_w': xavier(next(keys), (3, 3, 3, 64), 3 * 9, 64 * 9).astype(BF16),
        'bn_g': jnp.ones((64,), jnp.float32), 'bn_b': jnp.zeros((64,), jnp.float32),
        'prelu_a': jnp.full((64,), 0.25, jnp.float32),
    }
    blocks = []
    for (in_ch, depth, stride) in cfg:
        bp = {
            'bn1_g': jnp.ones((in_ch,), jnp.float32),
            'bn1_b': jnp.zeros((in_ch,), jnp.float32),
            'conv1_w': xavier(next(keys), (3, 3, in_ch, depth),
                              in_ch * 9, depth * 9).astype(BF16),
            'prelu_a': jnp.full((depth,), 0.25, jnp.float32),
            'conv2_w': xavier(next(keys), (3, 3, depth, depth),
                              depth * 9, depth * 9).astype(BF16),
            'bn2_g': jnp.ones((depth,), jnp.float32),
            'bn2_b': jnp.zeros((depth,), jnp.float32),
        }
        if in_ch != depth:
            bp['sc_w'] = xavier(next(keys), (in_ch, depth), in_ch, depth).astype(BF16)
            bp['sc_bn_g'] = jnp.ones((depth,), jnp.float32)
            bp['sc_bn_b'] = jnp.zeros((depth,), jnp.float32)
        blocks.append(bp)
    params['blocks'] = blocks
    feat = 7 if input_size == 112 else 14
    lin_in = 512 * feat * feat
    params['output'] = {
        'bn2d_g': jnp.ones((512,), jnp.float32), 'bn2d_b': jnp.zeros((512,), jnp.float32),
        'lin_w': xavier(next(keys), (lin_in, 512), lin_in, 512).astype(BF16),
        'bn1d_g': jnp.ones((512,), jnp.float32), 'bn1d_b': jnp.zeros((512,), jnp.float32),
    }
    return params


# ----------------------------------------------------------------------------
if __name__ == "__main__":
    key = jax.random.PRNGKey(0)
    pkey, xkey = jax.random.split(key)
    params = init_params(pkey, input_size=112, num_layers=50)

    # batch=2, NCHW input as in the PyTorch module (112x112 required by its asserts)
    x = jax.random.normal(xkey, (2, 3, 112, 112), dtype=jnp.float32)

    y = backbone_forward(x, params)
    y = jax.block_until_ready(y)
    assert y.shape == (2, 512) and bool(jnp.all(jnp.isfinite(y)))
    print("KERNEL_OK")
</pallas_src>

<mosaic_0001>
module attributes {stable_mosaic.version = 11 : i64} {
  func.func @_matmul_kernel(%arg0: i32, %arg1: i32, %arg2: i32, %arg3: memref<256x27xbf16, #tpu.memory_space<vmem>>, %arg4: memref<27x64xbf16, #tpu.memory_space<vmem>>, %arg5: memref<256x64xbf16, #tpu.memory_space<vmem>>, %arg6: memref<256x64xf32, #tpu.memory_space<vmem>>) attributes {dimension_semantics = [#tpu.dimension_semantics<parallel>, #tpu.dimension_semantics<parallel>, #tpu.dimension_semantics<arbitrary>], iteration_bounds = array<i64: 98, 1, 1>, scalar_prefetch = 0 : i64, scratch_operands = 1 : i64, tpu.core_type = #tpu.core_type<tc>, window_params = [{transform_indices = @transform_0, window_bounds = array<i64: 256, 27>}, {transform_indices = @transform_1, window_bounds = array<i64: 27, 64>}, {transform_indices = @transform_2, window_bounds = array<i64: 256, 64>}]} {
    %c0_i32 = arith.constant 0 : i32
    %0 = arith.cmpi eq, %arg2, %c0_i32 : i32
    %1 = arith.extui %0 : i1 to i32
    %c0_i32_0 = arith.constant 0 : i32
    %2 = arith.cmpi ne, %1, %c0_i32_0 : i32
    scf.if %2 {
      %cst_10 = arith.constant 0.000000e+00 : f32
      %12 = vector.broadcast %cst_10 : f32 to vector<256x64xf32>
      %c0_11 = arith.constant 0 : index
      %c0_12 = arith.constant 0 : index
      %13 = vector.load %arg6[%c0_11, %c0_12] : memref<256x64xf32, #tpu.memory_space<vmem>>, vector<256x64xf32>
      tpu.vector_store %arg6[%c0_11, %c0_12], %12 {strides = array<i32>} : memref<256x64xf32, #tpu.memory_space<vmem>>, vector<256x64xf32>,
    } else {
    }
    %c0 = arith.constant 0 : index
    %c0_1 = arith.constant 0 : index
    %3 = vector.load %arg6[%c0, %c0_1] : memref<256x64xf32, #tpu.memory_space<vmem>>, vector<256x64xf32>
    %c0_2 = arith.constant 0 : index
    %c0_3 = arith.constant 0 : index
    %4 = vector.load %arg3[%c0_2, %c0_3] : memref<256x27xbf16, #tpu.memory_space<vmem>>, vector<256x27xbf16>
    %c0_4 = arith.constant 0 : index
    %c0_5 = arith.constant 0 : index
    %5 = vector.load %arg4[%c0_4, %c0_5] : memref<27x64xbf16, #tpu.memory_space<vmem>>, vector<27x64xbf16>
    %cst = arith.constant dense<0.000000e+00> : vector<256x64xf32>
    %6 = tpu.matmul %4, %5, %cst {dimension_numbers = #tpu.dot_dimension_numbers<[1], [0], [0], [1], [0, 0, 1, 1], [], []>} : vector<256x27xbf16>, vector<27x64xbf16>, vector<256x64xf32> -> vector<256x64xf32>
    %7 = arith.addf %3, %6 : vector<256x64xf32>
    %c0_6 = arith.constant 0 : index
    %c0_7 = arith.constant 0 : index
    %8 = vector.load %arg6[%c0_6, %c0_7] : memref<256x64xf32, #tpu.memory_space<vmem>>, vector<256x64xf32>
    tpu.vector_store %arg6[%c0_6, %c0_7], %7 {strides = array<i32>} : memref<256x64xf32, #tpu.memory_space<vmem>>, vector<256x64xf32>,
    %c0_i32_8 = arith.constant 0 : i32
    %9 = arith.cmpi eq, %arg2, %c0_i32_8 : i32
    %10 = arith.extui %9 : i1 to i32
    %c0_i32_9 = arith.constant 0 : i32
    %11 = arith.cmpi ne, %10, %c0_i32_9 : i32
    scf.if %11 {
      %c0_10 = arith.constant 0 : index
      %c0_11 = arith.constant 0 : index
      %12 = vector.load %arg6[%c0_10, %c0_11] : memref<256x64xf32, #tpu.memory_space<vmem>>, vector<256x64xf32>
      %13 = arith.truncf %12 : vector<256x64xf32> to vector<256x64xbf16>
      %c0_12 = arith.constant 0 : index
      %c0_13 = arith.constant 0 : index
      %14 = vector.load %arg5[%c0_12, %c0_13] : memref<256x64xbf16, #tpu.memory_space<vmem>>, vector<256x64xbf16>
      tpu.vector_store %arg5[%c0_12, %c0_13], %13 {strides = array<i32>} : memref<256x64xbf16, #tpu.memory_space<vmem>>, vector<256x64xbf16>,
    } else {
    }
    return
  }
  func.func @transform_0(%arg0: i32, %arg1: i32, %arg2: i32) -> (i32, i32) {
    %c0_i32 = arith.constant 0 : i32
    return %arg0, %arg2 : i32, i32
  }
  func.func @transform_1(%arg0: i32, %arg1: i32, %arg2: i32) -> (i32, i32) {
    %c0_i32 = arith.constant 0 : i32
    return %arg2, %arg1 : i32, i32
  }
  func.func @transform_2(%arg0: i32, %arg1: i32, %arg2: i32) -> (i32, i32) {
    %c0_i32 = arith.constant 0 : i32
    return %arg0, %arg1 : i32, i32
  }
}

module attributes {stable_mosaic.version = 11 : i64} {
  func.func @_stats_kernel(%arg0: i32, %arg1: memref<1792x128xbf16, #tpu.memory_space<vmem>>, %arg2: memref<1x128xf32, #tpu.memory_space<vmem>>, %arg3: memref<1x128xf32, #tpu.memory_space<vmem>>) attributes {dimension_semantics = [#tpu.dimension_semantics<arbitrary>], iteration_bounds = array<i64: 7>, scalar_prefetch = 0 : i64, scratch_operands = 0 : i64, tpu.core_type = #tpu.core_type<tc>, window_params = [{transform_indices = @transform_0, window_bounds = array<i64: 1792, 128>}, {pipeline_mode = #tpu.pipeline_mode<synchronous>, transform_indices = @transform_1, window_bounds = array<i64: 1, 128>}, {pipeline_mode = #tpu.pipeline_mode<synchronous>, transform_indices = @transform_2, window_bounds = array<i64: 1, 128>}]} {
    %c0_i32 = arith.constant 0 : i32
    %0 = arith.cmpi eq, %arg0, %c0_i32 : i32
    %1 = arith.extui %0 : i1 to i32
    %c0_i32_0 = arith.constant 0 : i32
    %2 = arith.cmpi ne, %1, %c0_i32_0 : i32
    scf.if %2 {
      %cst_11 = arith.constant 0.000000e+00 : f32
      %16 = vector.broadcast %cst_11 : f32 to vector<1x128xf32>
      %c0_12 = arith.constant 0 : index
      %c0_13 = arith.constant 0 : index
      %17 = vector.load %arg2[%c0_12, %c0_13] : memref<1x128xf32, #tpu.memory_space<vmem>>, vector<1x128xf32>
      tpu.vector_store %arg2[%c0_12, %c0_13], %16 {strides = array<i32>} : memref<1x128xf32, #tpu.memory_space<vmem>>, vector<1x128xf32>,
      %cst_14 = arith.constant 0.000000e+00 : f32
      %18 = vector.broadcast %cst_14 : f32 to vector<1x128xf32>
      %c0_15 = arith.constant 0 : index
      %c0_16 = arith.constant 0 : index
      %19 = vector.load %arg3[%c0_15, %c0_16] : memref<1x128xf32, #tpu.memory_space<vmem>>, vector<1x128xf32>
      tpu.vector_store %arg3[%c0_15, %c0_16], %18 {strides = array<i32>} : memref<1x128xf32, #tpu.memory_space<vmem>>, vector<1x128xf32>,
    } else {
    }
    %c0 = arith.constant 0 : index
    %c0_1 = arith.constant 0 : index
    %3 = vector.load %arg1[%c0, %c0_1] : memref<1792x128xbf16, #tpu.memory_space<vmem>>, vector<1792x128xbf16>
    %4 = arith.extf %3 : vector<1792x128xbf16> to vector<1792x128xf32>
    %c0_2 = arith.constant 0 : index
    %c0_3 = arith.constant 0 : index
    %5 = vector.load %arg2[%c0_2, %c0_3] : memref<1x128xf32, #tpu.memory_space<vmem>>, vector<1x128xf32>
    %cst = arith.constant dense<0.000000e+00> : vector<128xf32>
    %6 = vector.multi_reduction <add>, %4, %cst [0] : vector<1792x128xf32> to vector<128xf32>
    %7 = vector.shape_cast %6 : vector<128xf32> to vector<1x128xf32>
    %8 = arith.addf %5, %7 : vector<1x128xf32>
    %c0_4 = arith.constant 0 : index
    %c0_5 = arith.constant 0 : index
    %9 = vector.load %arg2[%c0_4, %c0_5] : memref<1x128xf32, #tpu.memory_space<vmem>>, vector<1x128xf32>
    tpu.vector_store %arg2[%c0_4, %c0_5], %8 {strides = array<i32>} : memref<1x128xf32, #tpu.memory_space<vmem>>, vector<1x128xf32>,
    %c0_6 = arith.constant 0 : index
    %c0_7 = arith.constant 0 : index
    %10 = vector.load %arg3[%c0_6, %c0_7] : memref<1x128xf32, #tpu.memory_space<vmem>>, vector<1x128xf32>
    %11 = arith.mulf %4, %4 : vector<1792x128xf32>
    %cst_8 = arith.constant dense<0.000000e+00> : vector<128xf32>
    %12 = vector.multi_reduction <add>, %11, %cst_8 [0] : vector<1792x128xf32> to vector<128xf32>
    %13 = vector.shape_cast %12 : vector<128xf32> to vector<1x128xf32>
    %14 = arith.addf %10, %13 : vector<1x128xf32>
    %c0_9 = arith.constant 0 : index
    %c0_10 = arith.constant 0 : index
    %15 = vector.load %arg3[%c0_9, %c0_10] : memref<1x128xf32, #tpu.memory_space<vmem>>, vector<1x128xf32>
    tpu.vector_store %arg3[%c0_9, %c0_10], %14 {strides = array<i32>} : memref<1x128xf32, #tpu.memory_space<vmem>>, vector<1x128xf32>,
    return
  }
  func.func @transform_0(%arg0: i32) -> (i32, i32) {
    %c0_i32 = arith.constant 0 : i32
    %c0_i32_0 = arith.constant 0 : i32
    return %arg0, %c0_i32 : i32, i32
  }
  func.func @transform_1(%arg0: i32) -> (i32, i32) {
    %c0_i32 = arith.constant 0 : i32
    %c0_i32_0 = arith.constant 0 : i32
    %c0_i32_1 = arith.constant 0 : i32
    return %c0_i32, %c0_i32_0 : i32, i32
  }
  func.func @transform_2(%arg0: i32) -> (i32, i32) {
    %c0_i32 = arith.constant 0 : i32
    %c0_i32_0 = arith.constant 0 : i32
    %c0_i32_1 = arith.constant 0 : i32
    return %c0_i32, %c0_i32_0 : i32, i32
  }
}

module attributes {stable_mosaic.version = 11 : i64} {
  func.func @kernel(%arg0: i32, %arg1: memref<1792x128xbf16, #tpu.memory_space<vmem>>, %arg2: memref<1x128xf32, #tpu.memory_space<vmem>>, %arg3: memref<1x128xf32, #tpu.memory_space<vmem>>, %arg4: memref<1x128xf32, #tpu.memory_space<vmem>>, %arg5: memref<1792x128xbf16, #tpu.memory_space<vmem>>, %arg6: memref<1x1x128xf32, #tpu.memory_space<vmem>>, %arg7: memref<1x1x128xf32, #tpu.memory_space<vmem>>) attributes {dimension_semantics = [#tpu.dimension_semantics<parallel>], iteration_bounds = array<i64: 7>, scalar_prefetch = 0 : i64, scratch_operands = 0 : i64, tpu.core_type = #tpu.core_type<tc>, window_params = [{transform_indices = @transform_0, window_bounds = array<i64: 1792, 128>}, {pipeline_mode = #tpu.pipeline_mode<synchronous>, transform_indices = @transform_1, window_bounds = array<i64: 1, 128>}, {pipeline_mode = #tpu.pipeline_mode<synchronous>, transform_indices = @transform_2, window_bounds = array<i64: 1, 128>}, {pipeline_mode = #tpu.pipeline_mode<synchronous>, transform_indices = @transform_3, window_bounds = array<i64: 1, 128>}, {transform_indices = @transform_4, window_bounds = array<i64: 1792, 128>}, {transform_indices = @transform_5, window_bounds = array<i64: 1, 1, 128>}, {transform_indices = @transform_6, window_bounds = array<i64: 1, 1, 128>}]} {
    %c0 = arith.constant 0 : index
    %c0_0 = arith.constant 0 : index
    %0 = vector.load %arg1[%c0, %c0_0] : memref<1792x128xbf16, #tpu.memory_space<vmem>>, vector<1792x128xbf16>
    %1 = arith.extf %0 : vector<1792x128xbf16> to vector<1792x128xf32>
    %c0_1 = arith.constant 0 : index
    %c0_2 = arith.constant 0 : index
    %2 = vector.load %arg2[%c0_1, %c0_2] : memref<1x128xf32, #tpu.memory_space<vmem>>, vector<1x128xf32>
    %3 = vector.broadcast %2 : vector<1x128xf32> to vector<1792x128xf32>
    %4 = arith.mulf %1, %3 : vector<1792x128xf32>
    %c0_3 = arith.constant 0 : index
    %c0_4 = arith.constant 0 : index
    %5 = vector.load %arg3[%c0_3, %c0_4] : memref<1x128xf32, #tpu.memory_space<vmem>>, vector<1x128xf32>
    %6 = vector.broadcast %5 : vector<1x128xf32> to vector<1792x128xf32>
    %7 = arith.addf %4, %6 : vector<1792x128xf32>
    %cst = arith.constant 0.000000e+00 : f32
    %8 = vector.broadcast %cst : f32 to vector<1792x128xf32>
    %9 = arith.cmpf oge, %7, %8 : vector<1792x128xf32>
    %c0_5 = arith.constant 0 : index
    %c0_6 = arith.constant 0 : index
    %10 = vector.load %arg4[%c0_5, %c0_6] : memref<1x128xf32, #tpu.memory_space<vmem>>, vector<1x128xf32>
    %11 = vector.broadcast %10 : vector<1x128xf32> to vector<1792x128xf32>
    %12 = arith.mulf %7, %11 : vector<1792x128xf32>
    %13 = arith.select %9, %7, %12 : vector<1792x128xi1>, vector<1792x128xf32>
    %14 = arith.truncf %13 : vector<1792x128xf32> to vector<1792x128xbf16>
    %c0_7 = arith.constant 0 : index
    %c0_8 = arith.constant 0 : index
    %15 = vector.load %arg5[%c0_7, %c0_8] : memref<1792x128xbf16, #tpu.memory_space<vmem>>, vector<1792x128xbf16>
    tpu.vector_store %arg5[%c0_7, %c0_8], %14 {strides = array<i32>} : memref<1792x128xbf16, #tpu.memory_space<vmem>>, vector<1792x128xbf16>,
    %cst_9 = arith.constant dense<0.000000e+00> : vector<128xf32>
    %16 = vector.multi_reduction <add>, %13, %cst_9 [0] : vector<1792x128xf32> to vector<128xf32>
    %17 = vector.shape_cast %16 : vector<128xf32> to vector<1x128xf32>
    %18 = vector.shape_cast %17 : vector<1x128xf32> to vector<1x1x128xf32>
    %c0_10 = arith.constant 0 : index
    %c0_11 = arith.constant 0 : index
    %c0_12 = arith.constant 0 : index
    %19 = vector.load %arg6[%c0_10, %c0_11, %c0_12] : memref<1x1x128xf32, #tpu.memory_space<vmem>>, vector<1x1x128xf32>
    tpu.vector_store %arg6[%c0_10, %c0_11, %c0_12], %18 {strides = array<i32>} : memref<1x1x128xf32, #tpu.memory_space<vmem>>, vector<1x1x128xf32>,
    %20 = arith.mulf %13, %13 : vector<1792x128xf32>
    %cst_13 = arith.constant dense<0.000000e+00> : vector<128xf32>
    %21 = vector.multi_reduction <add>, %20, %cst_13 [0] : vector<1792x128xf32> to vector<128xf32>
    %22 = vector.shape_cast %21 : vector<128xf32> to vector<1x128xf32>
    %23 = vector.shape_cast %22 : vector<1x128xf32> to vector<1x1x128xf32>
    %c0_14 = arith.constant 0 : index
    %c0_15 = arith.constant 0 : index
    %c0_16 = arith.constant 0 : index
    %24 = vector.load %arg7[%c0_14, %c0_15, %c0_16] : memref<1x1x128xf32, #tpu.memory_space<vmem>>, vector<1x1x128xf32>
    tpu.vector_store %arg7[%c0_14, %c0_15, %c0_16], %23 {strides = array<i32>} : memref<1x1x128xf32, #tpu.memory_space<vmem>>, vector<1x1x128xf32>,
    return
  }
  func.func @transform_0(%arg0: i32) -> (i32, i32) {
    %c0_i32 = arith.constant 0 : i32
    %c0_i32_0 = arith.constant 0 : i32
    return %arg0, %c0_i32 : i32, i32
  }
  func.func @transform_1(%arg0: i32) -> (i32, i32) {
    %c0_i32 = arith.constant 0 : i32
    %c0_i32_0 = arith.constant 0 : i32
    %c0_i32_1 = arith.constant 0 : i32
    return %c0_i32, %c0_i32_0 : i32, i32
  }
  func.func @transform_2(%arg0: i32) -> (i32, i32) {
    %c0_i32 = arith.constant 0 : i32
    %c0_i32_0 = arith.constant 0 : i32
    %c0_i32_1 = arith.constant 0 : i32
    return %c0_i32, %c0_i32_0 : i32, i32
  }
  func.func @transform_3(%arg0: i32) -> (i32, i32) {
    %c0_i32 = arith.constant 0 : i32
    %c0_i32_0 = arith.constant 0 : i32
    %c0_i32_1 = arith.constant 0 : i32
    return %c0_i32, %c0_i32_0 : i32, i32
  }
  func.func @transform_4(%arg0: i32) -> (i32, i32) {
    %c0_i32 = arith.constant 0 : i32
    %c0_i32_0 = arith.constant 0 : i32
    return %arg0, %c0_i32 : i32, i32
  }
  func.func @transform_5(%arg0: i32) -> (i32, i32, i32) {
    %c0_i32 = arith.constant 0 : i32
    %c0_i32_0 = arith.constant 0 : i32
    %c0_i32_1 = arith.constant 0 : i32
    return %arg0, %c0_i32, %c0_i32_0 : i32, i32, i32
  }
  func.func @transform_6(%arg0: i32) -> (i32, i32, i32) {
    %c0_i32 = arith.constant 0 : i32
    %c0_i32_0 = arith.constant 0 : i32
    %c0_i32_1 = arith.constant 0 : i32
    return %arg0, %c0_i32, %c0_i32_0 : i32, i32, i32
  }
}

</mosaic_0001>

<bundles_post_ra>
// kernel: input_layer.3
= control target key start
LH: loop header
LB: loop body
LE: loop exit
PB: predicated region body
PF: predicated region fallthrough
CT: control target
= control target key end

     0   :  { %s1245_s9 = smov 0   ;;  %s1247_s10 = smov 0   ;;  %s1468_s0 = inlined_call_operand.vmem [shape: bf16[25088,27], index: 0, kind: input, shape index: {}]   ;;  %s1469_s1 = inlined_call_operand.vmem [shape: bf16[27,64], index: 1, kind: input, shape index: {}]   ;;  %s1470_s2 = inlined_call_operand.vmem [shape: bf16[25088,64], index: 2, kind: output, shape index: {}]  }
   0x1   :  { %s1249_s11 = smov 0  }
   0x2 LB: > { %s31_s12 = sadd.s32 1, %s1222_s10  ;;  %p997_p0 = scmp.ge.s32.totalorder %s1226_s11, 1  ;;  %s1226_s11 = sphi %s1249_s11, %s12_s11   ;;  %s1222_s10 = sphi %s1247_s10, %s1473_s10   ;;  %s1218_s9 = sphi %s1245_s9, %s1472_s9  }
   0x3   : > { %p33_p1 = scmp.ge.s32.totalorder %s31_s12, 98  ;;  %p155_p2 = scmp.lt.s32.totalorder %s1226_s11, 99 }
   0x5   : > { %s1475_s12 = smov (%p33_p1, %s31_s12), 0  ;;  %p156_p3 = pnand %p997_p0, %p155_p2 }
   0x6   : > { %s998_s15 = sshll.u32 (!%p156_p3), %s1218_s9, 5 }
   0x7   : > { %159 = sbr.rel (%p156_p3) target bundleno = 266 (0x10a), region = 28  ;;  %p1271_p4 = scmp.lt.s32.totalorder (!%p156_p3), %s998_s15, 3135 }
   0xc   : > { %v1186_v0 = vld [vmem:[%s1469_s1 + $0x8] sm:$0x3f]   ;;  %vm464_vm0 = vcmask 1044480   ;;  %vm465_vm1 = vcmask 1045504   ;;  %v1228_v1 = vmov 65535   ;;  %vm223_vm2 = vcmask 523264  }
   0xd   : > { %v466_v2 = vsel %vm464_vm0, 4294967295, %v1228_v1  ;;  %v1187_v5 = vld [vmem:[%s1469_s1] sm:$0xff]   ;;  %v1229_v6 = vmov 0.0   ;;  %s1477_s15 = smov (!%p1271_p4, %s998_s15), 3135  ;;  %vm415_vm3 = vcmask 220160   ;;  %vm860_vm4 = vcmask 519168  }
   0xe   : > { %v467_v3 = vsel %vm465_vm1, %v466_v2, 0  ;;  %226 = vst.msk [vmem:[#allocation2 + $0x10] sm:$0xff] %vm223_vm2, %v1229_v6  ;;  %224 = vst.msk [vmem:[#allocation2] sm:$0xff] %vm223_vm2, %v1229_v6  ;;  %s999_s19 = sshll.u32 %s1477_s15, 2 }
   0xf   : > { %v469_v4 = vand.u32 %v1186_v0, %v467_v3  ;;  %225 = vst.msk [vmem:[#allocation2 + $0x8] sm:$0xff] %vm223_vm2, %v1229_v6  ;;  %227 = vst.msk [vmem:[#allocation2 + $0x18] sm:$0xff] %vm223_vm2, %v1229_v6  ;;  %s1322_s22 = scalar_lea.vmem %s1468_s0, %s999_s19  ;;  %s1369_s25 = scalar_lea.vmem %s1470_s2, %s999_s19 }
  0x10   : > { %228 = vst.msk [vmem:[#allocation2 + $0x20] sm:$0xff] %vm223_vm2, %v1229_v6  ;;  %229 = vst.msk [vmem:[#allocation2 + $0x28] sm:$0xff] %vm223_vm2, %v1229_v6  ;;  %v1188_v7 = vld [vmem:[%s1322_s22] sm:$0xff]   ;;  %v1190_v9 = vld [vmem:[%s1322_s22 + $0x8] sm:$0xff]  }
  0x11   : > { %230 = vst.msk [vmem:[#allocation2 + $0x30] sm:$0xff] %vm223_vm2, %v1229_v6  ;;  %231 = vst.msk [vmem:[#allocation2 + $0x38] sm:$0xff] %vm223_vm2, %v1229_v6  ;;  %1120 = vmatprep.subr.bf16.mxu0 %v469_v4  ;;  %1156 = vmatprep.subr.bf16.mxu1 %v469_v4  ;;  %v1189_v8 = vld [vmem:[%s1322_s22 + $0x40] sm:$0xff]   ;;  %v1191_v10 = vld [vmem:[%s1322_s22 + $0x48] sm:$0xff]  }
  0x12   : > { %232 = vst.msk [vmem:[#allocation2 + $0x40] sm:$0xff] %vm223_vm2, %v1229_v6  ;;  %233 = vst.msk [vmem:[#allocation2 + $0x48] sm:$0xff] %vm223_vm2, %v1229_v6  ;;  %1121 = vmatpush3.bf16.msra.mxu0 %v469_v4  ;;  %1158 = vmatpush3.bf16.msra.mxu1 %v469_v4  ;;  %v1192_v11 = vld [vmem:[%s1322_s22 + $0x10] sm:$0xff]   ;;  %v1194_v13 = vld [vmem:[%s1322_s22 + $0x18] sm:$0xff]  }
  0x13   : > { %234 = vst.msk [vmem:[#allocation2 + $0x50] sm:$0xff] %vm223_vm2, %v1229_v6  ;;  %235 = vst.msk [vmem:[#allocation2 + $0x58] sm:$0xff] %vm223_vm2, %v1229_v6  ;;  %1122 = vmatprep.subr.bf16.mxu0 %v1187_v5  ;;  %1157 = vmatprep.subr.bf16.mxu1 %v1187_v5  ;;  %v1193_v12 = vld [vmem:[%s1322_s22 + $0x50] sm:$0xff]   ;;  %v1195_v14 = vld [vmem:[%s1322_s22 + $0x58] sm:$0xff]  }
  0x14   : > { %236 = vst.msk [vmem:[#allocation2 + $0x60] sm:$0xff] %vm223_vm2, %v1229_v6  ;;  %237 = vst.msk [vmem:[#allocation2 + $0x68] sm:$0xff] %vm223_vm2, %v1229_v6  ;;  %1124 = vmatprep.mubr.msk.bf16.mxu0 %vm415_vm3, %v1188_v7  ;;  %1140 = vmatprep.mubr.msk.bf16.mxu1 %vm415_vm3, %v1189_v8  ;;  %v1196_v15 = vld [vmem:[%s1322_s22 + $0x20] sm:$0xff]   ;;  %v1198_v17 = vld [vmem:[%s1322_s22 + $0x28] sm:$0xff]  }
  0x15   : > { %238 = vst.msk [vmem:[#allocation2 + $0x70] sm:$0xff] %vm223_vm2, %v1229_v6  ;;  %239 = vst.msk [vmem:[#allocation2 + $0x78] sm:$0xff] %vm223_vm2, %v1229_v6  ;;  %v1197_v16 = vld [vmem:[%s1322_s22 + $0x60] sm:$0xff]   ;;  %v1199_v18 = vld [vmem:[%s1322_s22 + $0x68] sm:$0xff]  }
  0x16   : > { %240 = vst.msk [vmem:[#allocation2 + $0x80] sm:$0xff] %vm223_vm2, %v1229_v6  ;;  %241 = vst.msk [vmem:[#allocation2 + $0x88] sm:$0xff] %vm223_vm2, %v1229_v6  ;;  %1123 = vmatpush3.bf16.msra.mxu0 %v1187_v5  ;;  %1159 = vmatpush3.bf16.msra.mxu1 %v1187_v5  ;;  %v1200_v19 = vld [vmem:[%s1322_s22 + $0x30] sm:$0xff]   ;;  %v1202_v21 = vld [vmem:[%s1322_s22 + $0x38] sm:$0xff]  }
  0x17   : > { %242 = vst.msk [vmem:[#allocation2 + $0x90] sm:$0xff] %vm223_vm2, %v1229_v6  ;;  %243 = vst.msk [vmem:[#allocation2 + $0x98] sm:$0xff] %vm223_vm2, %v1229_v6  ;;  %v1201_v20 = vld [vmem:[%s1322_s22 + $0x70] sm:$0xff]   ;;  %v1203_v22 = vld [vmem:[%s1322_s22 + $0x78] sm:$0xff]  }
  0x18   : > { %244 = vst.msk [vmem:[#allocation2 + $0xa0] sm:$0xff] %vm223_vm2, %v1229_v6  ;;  %245 = vst.msk [vmem:[#allocation2 + $0xa8] sm:$0xff] %vm223_vm2, %v1229_v6  ;;  %v258_v23 = vld [vmem:[#allocation2 + $0x10] sm:$0xff]  ;;  %v256_v27 = vld [vmem:[#allocation2] sm:$0xff] }
  0x19   : > { %246 = vst.msk [vmem:[#allocation2 + $0xb0] sm:$0xff] %vm223_vm2, %v1229_v6  ;;  %247 = vst.msk [vmem:[#allocation2 + $0xb8] sm:$0xff] %vm223_vm2, %v1229_v6  ;;  %1125 = vmatmul.mubr.msk.bf16.vlgmr.msra.gmra.mxu0 %vm415_vm3, %v1190_v9  ;;  %1141 = vmatmul.mubr.msk.bf16.vlgmr.msra.gmra.mxu1 %vm415_vm3, %v1191_v10  ;;  %v259_v33 = vld [vmem:[#allocation2 + $0x18] sm:$0xff]  ;;  %v257_v39 = vld [vmem:[#allocation2 + $0x8] sm:$0xff] }
  0x1a   : > { %248 = vst.msk [vmem:[#allocation2 + $0xc0] sm:$0xff] %vm223_vm2, %v1229_v6  ;;  %249 = vst.msk [vmem:[#allocation2 + $0xc8] sm:$0xff] %vm223_vm2, %v1229_v6  ;;  %1128 = vmatprep.mubr.msk.bf16.mxu0 %vm415_vm3, %v1192_v11  ;;  %1144 = vmatprep.mubr.msk.bf16.mxu1 %vm415_vm3, %v1193_v12  ;;  %v262_v45 = vld [vmem:[#allocation2 + $0x30] sm:$0xff]  ;;  %v260_v51 = vld [vmem:[#allocation2 + $0x20] sm:$0xff] }
  0x1b   : > { %250 = vst.msk [vmem:[#allocation2 + $0xd0] sm:$0xff] %vm223_vm2, %v1229_v6  ;;  %251 = vst.msk [vmem:[#allocation2 + $0xd8] sm:$0xff] %vm223_vm2, %v1229_v6  ;;  %v263_v55 = vld [vmem:[#allocation2 + $0x38] sm:$0xff]  ;;  %v261_v1 = vld [vmem:[#allocation2 + $0x28] sm:$0xff] }
  0x1c   : > { %252 = vst.msk [vmem:[#allocation2 + $0xe0] sm:$0xff] %vm223_vm2, %v1229_v6  ;;  %253 = vst.msk [vmem:[#allocation2 + $0xe8] sm:$0xff] %vm223_vm2, %v1229_v6  ;;  %v266_v11 = vld [vmem:[#allocation2 + $0x50] sm:$0xff] }
  0x1d   : > { %254 = vst.msk [vmem:[#allocation2 + $0xf0] sm:$0xff] %vm223_vm2, %v1229_v6  ;;  %255 = vst.msk [vmem:[#allocation2 + $0xf8] sm:$0xff] %vm223_vm2, %v1229_v6  ;;  %v272_v28 = vld [vmem:[#allocation2 + $0x80] sm:$0xff]  ;;  %v273_v40 = vld [vmem:[#allocation2 + $0x88] sm:$0xff] }
  0x1e   : > { %v274_v24 = vld [vmem:[#allocation2 + $0x90] sm:$0xff]  ;;  %v275_v34 = vld [vmem:[#allocation2 + $0x98] sm:$0xff] }
  0x1f   : > { %v276_v52 = vld [vmem:[#allocation2 + $0xa0] sm:$0xff]  ;;  %v277_v6 = vld [vmem:[#allocation2 + $0xa8] sm:$0xff] }
  0x20   : > { %v278_v46 = vld [vmem:[#allocation2 + $0xb0] sm:$0xff]  ;;  %v279_v60 = vld [vmem:[#allocation2 + $0xb8] sm:$0xff] }
  0x21   : > { %1129 = vmatmul.mubr.msk.bf16.gmra.mxu0 %vm415_vm3, %v1194_v13  ;;  %1145 = vmatmul.mubr.msk.bf16.gmra.mxu1 %vm415_vm3, %v1195_v14 }
  0x22   : > { %1132 = vmatprep.mubr.msk.bf16.mxu0 %vm415_vm3, %v1196_v15  ;;  %1148 = vmatprep.mubr.msk.bf16.mxu1 %vm415_vm3, %v1197_v16  ;;  %v282_v16 = vld [vmem:[#allocation2 + $0xd0] sm:$0xff] }
  0x29   : > { %1133 = vmatmul.mubr.msk.bf16.gmra.mxu0 %vm415_vm3, %v1198_v17  ;;  %1149 = vmatmul.mubr.msk.bf16.gmra.mxu1 %vm415_vm3, %v1199_v18 }
  0x2a   : > { %1136 = vmatprep.mubr.msk.bf16.mxu0 %vm415_vm3, %v1200_v19  ;;  %1152 = vmatprep.mubr.msk.bf16.mxu1 %vm415_vm3, %v1201_v20 }
  0x31   : > { %1137 = vmatmul.mubr.msk.bf16.gmra.mxu0 %vm415_vm3, %v1202_v21  ;;  %1153 = vmatmul.mubr.msk.bf16.gmra.mxu1 %vm415_vm3, %v1203_v22  ;;  %v264_v21 = vld [vmem:[#allocation2 + $0x40] sm:$0xff] }
  0xd9   : > { %v1126_v25 = vpop.f32.mrf.mxu0  ;;  %v1142_v26 = vpop.f32.mrf.mxu1 }
  0xda   : > { %v634_v29 = vadd.f32 %v1126_v25, %v258_v23  ;;  %v650_v30 = vadd.f32 %v1142_v26, %v274_v24  ;;  %v280_v26 = vld [vmem:[#allocation2 + $0xc0] sm:$0xff] }
  0xdb   : > { %v505_v31 = vpop.f32.mrf.mxu0  ;;  %v569_v32 = vpop.f32.mrf.mxu1 }
  0xdc   : > { %667 = vst.msk [vmem:[#allocation2 + $0x10] sm:$0xff] %vm223_vm2, %v634_v29  ;;  %683 = vst.msk [vmem:[#allocation2 + $0x90] sm:$0xff] %vm223_vm2, %v650_v30  ;;  %v632_v35 = vadd.f32 %v505_v31, %v256_v27  ;;  %v648_v36 = vadd.f32 %v569_v32, %v272_v28  ;;  %v267_v31 = vld [vmem:[#allocation2 + $0x58] sm:$0xff] }
  0xdd   : > { %v1127_v37 = vpop.f32.mrf.mxu0  ;;  %v1143_v38 = vpop.f32.mrf.mxu1 }
  0xde   : > { %665 = vst.msk [vmem:[#allocation2] sm:$0xff] %vm223_vm2, %v632_v35  ;;  %681 = vst.msk [vmem:[#allocation2 + $0x80] sm:$0xff] %vm223_vm2, %v648_v36  ;;  %v635_v41 = vadd.f32 %v1127_v37, %v259_v33  ;;  %v651_v42 = vadd.f32 %v1143_v38, %v275_v34  ;;  %v283_v36 = vld [vmem:[#allocation2 + $0xd8] sm:$0xff] }
  0xdf   : > { %v508_v43 = vpop.f32.mrf.mxu0  ;;  %v572_v44 = vpop.f32.mrf.mxu1 }
  0xe0   : > { %668 = vst.msk [vmem:[#allocation2 + $0x18] sm:$0xff] %vm223_vm2, %v635_v41  ;;  %684 = vst.msk [vmem:[#allocation2 + $0x98] sm:$0xff] %vm223_vm2, %v651_v42  ;;  %v633_v47 = vadd.f32 %v508_v43, %v257_v39  ;;  %v649_v48 = vadd.f32 %v572_v44, %v273_v40  ;;  %v265_v41 = vld [vmem:[#allocation2 + $0x48] sm:$0xff] }
  0xe1   : > { %v1130_v49 = vpop.f32.mrf.mxu0  ;;  %v1146_v50 = vpop.f32.mrf.mxu1 }
  0xe2   : > { %666 = vst.msk [vmem:[#allocation2 + $0x8] sm:$0xff] %vm223_vm2, %v633_v47  ;;  %682 = vst.msk [vmem:[#allocation2 + $0x88] sm:$0xff] %vm223_vm2, %v649_v48  ;;  %v638_v53 = vadd.f32 %v1130_v49, %v262_v45  ;;  %v654_v54 = vadd.f32 %v1146_v50, %v278_v46  ;;  %v281_v46 = vld [vmem:[#allocation2 + $0xc8] sm:$0xff] }
  0xe3   : > { %v702_v56 = vld [vmem:[#allocation2 + $0x10] sm:$0xff]  ;;  %v521_v58 = vpop.f32.mrf.mxu0  ;;  %v585_v59 = vpop.f32.mrf.mxu1 }
  0xe4   : > { %v718_v57 = vld [vmem:[#allocation2 + $0x90] sm:$0xff]  ;;  %v1072_v61 = vpack.c.bf16 %v702_v56, %v702_v56  ;;  %671 = vst.msk [vmem:[#allocation2 + $0x30] sm:$0xff] %vm223_vm2, %v638_v53  ;;  %687 = vst.msk [vmem:[#allocation2 + $0xb0] sm:$0xff] %vm223_vm2, %v654_v54  ;;  %v636_v63 = vadd.f32 %v521_v58, %v260_v51  ;;  %v652_v0 = vadd.f32 %v585_v59, %v276_v52 }
  0xe5   : > { %v1088_v62 = vpack.c.bf16 %v718_v57, %v718_v57  ;;  %v700_v2 = vld [vmem:[#allocation2] sm:$0xff]  ;;  %v1131_v4 = vpop.f32.mrf.mxu0  ;;  %v1147_v5 = vpop.f32.mrf.mxu1  ;;  %v270_v51 = vld [vmem:[#allocation2 + $0x70] sm:$0xff] }
  0xe6   : > { %v716_v3 = vld [vmem:[#allocation2 + $0x80] sm:$0xff]  ;;  %863 = vst.msk [vmem:[%s1369_s25 + $0x8] sm:$0xf] %vm860_vm4, %v1072_v61  ;;  %v1070_v7 = vpack.c.bf16 %v700_v2, %v700_v2  ;;  %v639_v9 = vadd.f32 %v1131_v4, %v263_v55  ;;  %v655_v10 = vadd.f32 %v1147_v5, %v279_v60  ;;  %v286_v56 = vld [vmem:[#allocation2 + $0xf0] sm:$0xff] }
  0xe7   : > { %879 = vst.msk [vmem:[%s1369_s25 + $0x48] sm:$0xf] %vm860_vm4, %v1088_v62  ;;  %v1086_v8 = vpack.c.bf16 %v716_v3, %v716_v3  ;;  %v703_v12 = vld [vmem:[#allocation2 + $0x18] sm:$0xff]  ;;  %v524_v14 = vpop.f32.mrf.mxu0  ;;  %v588_v15 = vpop.f32.mrf.mxu1  ;;  %v268_v61 = vld [vmem:[#allocation2 + $0x60] sm:$0xff] }
  0xe8   : > { %669 = vst.msk [vmem:[#allocation2 + $0x20] sm:$0xff] %vm223_vm2, %v636_v63  ;;  %685 = vst.msk [vmem:[#allocation2 + $0xa0] sm:$0xff] %vm223_vm2, %v652_v0  ;;  %v719_v13 = vld [vmem:[#allocation2 + $0x98] sm:$0xff]  ;;  %v1073_v17 = vpack.c.bf16 %v703_v12, %v703_v12  ;;  %v637_v19 = vadd.f32 %v524_v14, %v261_v1  ;;  %v653_v20 = vadd.f32 %v588_v15, %v277_v6  ;;  %v284_v2 = vld [vmem:[#allocation2 + $0xe0] sm:$0xff] }
  0xe9   : > { %861 = vst.msk [vmem:[%s1369_s25] sm:$0xf] %vm860_vm4, %v1070_v7  ;;  %877 = vst.msk [vmem:[%s1369_s25 + $0x40] sm:$0xf] %vm860_vm4, %v1086_v8  ;;  %v1089_v18 = vpack.c.bf16 %v719_v13, %v719_v13  ;;  %v701_v22 = vld [vmem:[#allocation2 + $0x8] sm:$0xff]  ;;  %v1134_v24 = vpop.f32.mrf.mxu0  ;;  %v1150_v25 = vpop.f32.mrf.mxu1  ;;  %v271_v7 = vld [vmem:[#allocation2 + $0x78] sm:$0xff] }
  0xea   : > { %672 = vst.msk [vmem:[#allocation2 + $0x38] sm:$0xff] %vm223_vm2, %v639_v9  ;;  %688 = vst.msk [vmem:[#allocation2 + $0xb8] sm:$0xff] %vm223_vm2, %v655_v10  ;;  %v717_v23 = vld [vmem:[#allocation2 + $0x88] sm:$0xff]  ;;  %v1071_v27 = vpack.c.bf16 %v701_v22, %v701_v22  ;;  %v642_v29 = vadd.f32 %v1134_v24, %v266_v11  ;;  %v658_v30 = vadd.f32 %v1150_v25, %v282_v16  ;;  %v287_v12 = vld [vmem:[#allocation2 + $0xf8] sm:$0xff] }
  0xeb   : > { %864 = vst.msk [vmem:[%s1369_s25 + $0xc] sm:$0xf] %vm860_vm4, %v1073_v17  ;;  %880 = vst.msk [vmem:[%s1369_s25 + $0x4c] sm:$0xf] %vm860_vm4, %v1089_v18  ;;  %v1087_v28 = vpack.c.bf16 %v717_v23, %v717_v23  ;;  %v706_v32 = vld [vmem:[#allocation2 + $0x30] sm:$0xff]  ;;  %v537_v34 = vpop.f32.mrf.mxu0  ;;  %v601_v35 = vpop.f32.mrf.mxu1  ;;  %v269_v17 = vld [vmem:[#allocation2 + $0x68] sm:$0xff] }
  0xec   : > { %670 = vst.msk [vmem:[#allocation2 + $0x28] sm:$0xff] %vm223_vm2, %v637_v19  ;;  %686 = vst.msk [vmem:[#allocation2 + $0xa8] sm:$0xff] %vm223_vm2, %v653_v20  ;;  %v722_v33 = vld [vmem:[#allocation2 + $0xb0] sm:$0xff]  ;;  %v1076_v37 = vpack.c.bf16 %v706_v32, %v706_v32  ;;  %v640_v39 = vadd.f32 %v537_v34, %v264_v21  ;;  %v656_v40 = vadd.f32 %v601_v35, %v280_v26  ;;  %v285_v22 = vld [vmem:[#allocation2 + $0xe8] sm:$0xff] }
  0xed   : > { %862 = vst.msk [vmem:[%s1369_s25 + $0x4] sm:$0xf] %vm860_vm4, %v1071_v27  ;;  %878 = vst.msk [vmem:[%s1369_s25 + $0x44] sm:$0xf] %vm860_vm4, %v1087_v28  ;;  %v1092_v38 = vpack.c.bf16 %v722_v33, %v722_v33  ;;  %v1135_v44 = vpop.f32.mrf.mxu0  ;;  %v1151_v45 = vpop.f32.mrf.mxu1 }
  0xee   : > { %675 = vst.msk [vmem:[#allocation2 + $0x50] sm:$0xff] %vm223_vm2, %v642_v29  ;;  %691 = vst.msk [vmem:[#allocation2 + $0xd0] sm:$0xff] %vm223_vm2, %v658_v30  ;;  %v643_v49 = vadd.f32 %v1135_v44, %v267_v31  ;;  %v659_v50 = vadd.f32 %v1151_v45, %v283_v36 }
  0xef   : > { %v704_v42 = vld [vmem:[#allocation2 + $0x20] sm:$0xff]  ;;  %867 = vst.msk [vmem:[%s1369_s25 + $0x18] sm:$0xf] %vm860_vm4, %v1076_v37  ;;  %883 = vst.msk [vmem:[%s1369_s25 + $0x58] sm:$0xf] %vm860_vm4, %v1092_v38  ;;  %v540_v54 = vpop.f32.mrf.mxu0  ;;  %v604_v55 = vpop.f32.mrf.mxu1 }
  0xf0   : > { %v720_v43 = vld [vmem:[#allocation2 + $0xa0] sm:$0xff]  ;;  %v1074_v47 = vpack.c.bf16 %v704_v42, %v704_v42  ;;  %673 = vst.msk [vmem:[#allocation2 + $0x40] sm:$0xff] %vm223_vm2, %v640_v39  ;;  %689 = vst.msk [vmem:[#allocation2 + $0xc0] sm:$0xff] %vm223_vm2, %v656_v40  ;;  %v641_v59 = vadd.f32 %v540_v54, %v265_v41  ;;  %v657_v60 = vadd.f32 %v604_v55, %v281_v46 }
  0xf1   : > { %v1090_v48 = vpack.c.bf16 %v720_v43, %v720_v43  ;;  %v707_v52 = vld [vmem:[#allocation2 + $0x38] sm:$0xff]  ;;  %676 = vst.msk [vmem:[#allocation2 + $0x58] sm:$0xff] %vm223_vm2, %v643_v49  ;;  %692 = vst.msk [vmem:[#allocation2 + $0xd8] sm:$0xff] %vm223_vm2, %v659_v50  ;;  %v1138_v0 = vpop.f32.mrf.mxu0  ;;  %v1154_v1 = vpop.f32.mrf.mxu1 }
  0xf2   : > { %v723_v53 = vld [vmem:[#allocation2 + $0xb8] sm:$0xff]  ;;  %865 = vst.msk [vmem:[%s1369_s25 + $0x10] sm:$0xf] %vm860_vm4, %v1074_v47  ;;  %v1077_v57 = vpack.c.bf16 %v707_v52, %v707_v52  ;;  %v646_v5 = vadd.f32 %v1138_v0, %v270_v51  ;;  %v662_v6 = vadd.f32 %v1154_v1, %v286_v56 }
  0xf3   : > { %881 = vst.msk [vmem:[%s1369_s25 + $0x50] sm:$0xf] %vm860_vm4, %v1090_v48  ;;  %v1093_v58 = vpack.c.bf16 %v723_v53, %v723_v53  ;;  %v705_v62 = vld [vmem:[#allocation2 + $0x28] sm:$0xff]  ;;  %v553_v10 = vpop.f32.mrf.mxu0  ;;  %v617_v11 = vpop.f32.mrf.mxu1 }
  0xf4   : > { %v721_v63 = vld [vmem:[#allocation2 + $0xa8] sm:$0xff]  ;;  %868 = vst.msk [vmem:[%s1369_s25 + $0x1c] sm:$0xf] %vm860_vm4, %v1077_v57  ;;  %v1075_v3 = vpack.c.bf16 %v705_v62, %v705_v62  ;;  %v644_v15 = vadd.f32 %v553_v10, %v268_v61  ;;  %v660_v16 = vadd.f32 %v617_v11, %v284_v2 }
  0xf5   : > { %884 = vst.msk [vmem:[%s1369_s25 + $0x5c] sm:$0xf] %vm860_vm4, %v1093_v58  ;;  %v1091_v4 = vpack.c.bf16 %v721_v63, %v721_v63  ;;  %v710_v8 = vld [vmem:[#allocation2 + $0x50] sm:$0xff]  ;;  %v1139_v20 = vpop.f32.mrf.mxu0  ;;  %v1155_v21 = vpop.f32.mrf.mxu1 }
  0xf6   : > { %674 = vst.msk [vmem:[#allocation2 + $0x48] sm:$0xff] %vm223_vm2, %v641_v59  ;;  %690 = vst.msk [vmem:[#allocation2 + $0xc8] sm:$0xff] %vm223_vm2, %v657_v60  ;;  %v726_v9 = vld [vmem:[#allocation2 + $0xd0] sm:$0xff]  ;;  %v1080_v13 = vpack.c.bf16 %v710_v8, %v710_v8  ;;  %v647_v25 = vadd.f32 %v1139_v20, %v271_v7  ;;  %v663_v26 = vadd.f32 %v1155_v21, %v287_v12 }
  0xf7   : > { %866 = vst.msk [vmem:[%s1369_s25 + $0x14] sm:$0xf] %vm860_vm4, %v1075_v3  ;;  %882 = vst.msk [vmem:[%s1369_s25 + $0x54] sm:$0xf] %vm860_vm4, %v1091_v4  ;;  %v1096_v14 = vpack.c.bf16 %v726_v9, %v726_v9  ;;  %v708_v18 = vld [vmem:[#allocation2 + $0x40] sm:$0xff]  ;;  %v556_v29 = vpop.f32.mrf.mxu0  ;;  %v620_v30 = vpop.f32.mrf.mxu1 }
  0xf8   : > { %679 = vst.msk [vmem:[#allocation2 + $0x70] sm:$0xff] %vm223_vm2, %v646_v5  ;;  %695 = vst.msk [vmem:[#allocation2 + $0xf0] sm:$0xff] %vm223_vm2, %v662_v6  ;;  %v724_v19 = vld [vmem:[#allocation2 + $0xc0] sm:$0xff]  ;;  %v1078_v23 = vpack.c.bf16 %v708_v18, %v708_v18  ;;  %v711_v27 = vld [vmem:[#allocation2 + $0x58] sm:$0xff]  ;;  %v645_v33 = vadd.f32 %v556_v29, %v269_v17  ;;  %v661_v34 = vadd.f32 %v620_v30, %v285_v22 }
  0xf9   : > { %871 = vst.msk [vmem:[%s1369_s25 + $0x28] sm:$0xf] %vm860_vm4, %v1080_v13  ;;  %887 = vst.msk [vmem:[%s1369_s25 + $0x68] sm:$0xf] %vm860_vm4, %v1096_v14  ;;  %v1094_v24 = vpack.c.bf16 %v724_v19, %v724_v19  ;;  %v727_v28 = vld [vmem:[#allocation2 + $0xd8] sm:$0xff]  ;;  %v1081_v31 = vpack.c.bf16 %v711_v27, %v711_v27 }
  0xfa   : > { %677 = vst.msk [vmem:[#allocation2 + $0x60] sm:$0xff] %vm223_vm2, %v644_v15  ;;  %693 = vst.msk [vmem:[#allocation2 + $0xe0] sm:$0xff] %vm223_vm2, %v660_v16  ;;  %v1097_v32 = vpack.c.bf16 %v727_v28, %v727_v28 }
  0xfb   : > { %869 = vst.msk [vmem:[%s1369_s25 + $0x20] sm:$0xf] %vm860_vm4, %v1078_v23  ;;  %885 = vst.msk [vmem:[%s1369_s25 + $0x60] sm:$0xf] %vm860_vm4, %v1094_v24 }
  0xfc   : > { %680 = vst.msk [vmem:[#allocation2 + $0x78] sm:$0xff] %vm223_vm2, %v647_v25  ;;  %696 = vst.msk [vmem:[#allocation2 + $0xf8] sm:$0xff] %vm223_vm2, %v663_v26 }
  0xfd   : > { %v709_v35 = vld [vmem:[#allocation2 + $0x48] sm:$0xff]  ;;  %872 = vst.msk [vmem:[%s1369_s25 + $0x2c] sm:$0xf] %vm860_vm4, %v1081_v31  ;;  %888 = vst.msk [vmem:[%s1369_s25 + $0x6c] sm:$0xf] %vm860_vm4, %v1097_v32 }
  0xfe   : > { %v725_v36 = vld [vmem:[#allocation2 + $0xc8] sm:$0xff]  ;;  %v1079_v37 = vpack.c.bf16 %v709_v35, %v709_v35  ;;  %678 = vst.msk [vmem:[#allocation2 + $0x68] sm:$0xff] %vm223_vm2, %v645_v33  ;;  %694 = vst.msk [vmem:[#allocation2 + $0xe8] sm:$0xff] %vm223_vm2, %v661_v34 }
  0xff   : > { %v1095_v38 = vpack.c.bf16 %v725_v36, %v725_v36  ;;  %v714_v39 = vld [vmem:[#allocation2 + $0x70] sm:$0xff] }
 0x100   : > { %v730_v40 = vld [vmem:[#allocation2 + $0xf0] sm:$0xff]  ;;  %870 = vst.msk [vmem:[%s1369_s25 + $0x24] sm:$0xf] %vm860_vm4, %v1079_v37  ;;  %v1084_v41 = vpack.c.bf16 %v714_v39, %v714_v39 }
 0x101   : > { %886 = vst.msk [vmem:[%s1369_s25 + $0x64] sm:$0xf] %vm860_vm4, %v1095_v38  ;;  %v1100_v42 = vpack.c.bf16 %v730_v40, %v730_v40  ;;  %v712_v43 = vld [vmem:[#allocation2 + $0x60] sm:$0xff] }
 0x102   : > { %v728_v44 = vld [vmem:[#allocation2 + $0xe0] sm:$0xff]  ;;  %875 = vst.msk [vmem:[%s1369_s25 + $0x38] sm:$0xf] %vm860_vm4, %v1084_v41  ;;  %v1082_v45 = vpack.c.bf16 %v712_v43, %v712_v43 }
 0x103   : > { %891 = vst.msk [vmem:[%s1369_s25 + $0x78] sm:$0xf] %vm860_vm4, %v1100_v42  ;;  %v1098_v46 = vpack.c.bf16 %v728_v44, %v728_v44  ;;  %v715_v47 = vld [vmem:[#allocation2 + $0x78] sm:$0xff] }
 0x104   : > { %v731_v48 = vld [vmem:[#allocation2 + $0xf8] sm:$0xff]  ;;  %873 = vst.msk [vmem:[%s1369_s25 + $0x30] sm:$0xf] %vm860_vm4, %v1082_v45  ;;  %v1085_v49 = vpack.c.bf16 %v715_v47, %v715_v47 }
 0x105   : > { %889 = vst.msk [vmem:[%s1369_s25 + $0x70] sm:$0xf] %vm860_vm4, %v1098_v46  ;;  %v1101_v50 = vpack.c.bf16 %v731_v48, %v731_v48  ;;  %v713_v51 = vld [vmem:[#allocation2 + $0x68] sm:$0xff] }
 0x106   : > { %v729_v52 = vld [vmem:[#allocation2 + $0xe8] sm:$0xff]  ;;  %876 = vst.msk [vmem:[%s1369_s25 + $0x3c] sm:$0xf] %vm860_vm4, %v1085_v49  ;;  %v1083_v53 = vpack.c.bf16 %v713_v51, %v713_v51 }
 0x107   : > { %892 = vst.msk [vmem:[%s1369_s25 + $0x7c] sm:$0xf] %vm860_vm4, %v1101_v50  ;;  %v1099_v54 = vpack.c.bf16 %v729_v52, %v729_v52 }
 0x108   : > { %874 = vst.msk [vmem:[%s1369_s25 + $0x34] sm:$0xf] %vm860_vm4, %v1083_v53 }
 0x109   : > { %890 = vst.msk [vmem:[%s1369_s25 + $0x74] sm:$0xf] %vm860_vm4, %v1099_v54 }
 0x10a PF: > { %s12_s11 = sadd.s32 1, %s1226_s11   ;;  %s1472_s9 = smov %s1222_s10 }
 0x10b   : > { %p9_p5 = scmp.ge.s32.totalorder %s12_s11, 100   ;;  %s1473_s10 = smov %s1475_s12 }
 0x10d   :  { %11 = sbr.rel (!%p9_p5) target bundleno = 2 (0x2), region = 69 }

// kernel: input_layer.4
= control target key start
LH: loop header
LB: loop body
LE: loop exit
PB: predicated region body
PF: predicated region fallthrough
CT: control target
= control target key end

     0   :  { %s1905_s9 = smov 0   ;;  %s2051_s0 = inlined_call_operand.vmem [shape: bf16[12544,128], index: 0, kind: input, shape index: {}]   ;;  %s2052_s1 = inlined_call_operand.vmem [shape: f32[1,128], index: 1, kind: output, shape index: {0}]   ;;  %s2053_s2 = inlined_call_operand.vmem [shape: f32[1,128], index: 2, kind: output, shape index: {1}]  }
   0x1 LB: > { %s1305_s10 = sadd.s32 4294967295, %s1887_s9   ;;  %p1308_p0 = scmp.ge.s32.totalorder %s1887_s9, 1  ;;  %s1887_s9 = sphi %s1905_s9, %s13_s9  }
   0x2   : > { %p106_p1 = scmp.lt.s32.totalorder %s1887_s9, 8 }
   0x4   : > { %p107_p2 = pnand %p1308_p0, %p106_p1 }
   0x5   : > { %s123_s11 = smul.u32 (!%p107_p2), 224, %s1305_s10  ;;  %p1310_p4 = scmp.ne.s32.totalorder (!%p107_p2), %s1305_s10, 0 }
   0x6   : > { %110 = sbr.rel (%p107_p2) target bundleno = 485 (0x1e5), region = 24 }
   0x7   : > { %p124_p3 = scmp.lt.s32.totalorder (!%p107_p2), %s123_s11, 1567 }
   0xb   : > { %s2055_s11 = smov (!%p124_p3, %s123_s11), 1567  ;;  %132 = sbr.rel (%p1310_p4) target bundleno = 18 (0x12), region = 28 }
   0xc   : > { %s1309_s12 = sshll.u32 %s2055_s11, 2 }
   0xd   : > { %s1916_s15 = scalar_lea.vmem %s2051_s0, %s1309_s12 }
  0x10   : > { %v1889_v0 = vmov 0.0  }
  0x11   : > { %133 = vst [vmem:[%s2052_s1] sm:$0x1] %v1889_v0  ;;  %134 = vst [vmem:[%s2053_s2] sm:$0x1] %v1889_v0 }
  0x12 PF: > { %v1314_v1 = vld [vmem:[%s1916_s15] sm:$0xff]   ;;  %v1761_v2 = vld [vmem:[%s1916_s15 + $0x8] sm:$0xff]   ;;  %v1762_v7 = vld [vmem:[%s1916_s15 + $0x10] sm:$0xff]  }
  0x13   : > { %v1315_v3 = vunpack.c.l.bf16 %v1314_v1  ;;  %v1316_v4 = vunpack.c.h.bf16 %v1314_v1  ;;  %v1319_v5 = vunpack.c.l.bf16 %v1761_v2  ;;  %v1320_v8 = vunpack.c.h.bf16 %v1761_v2  ;;  %v1763_v12 = vld [vmem:[%s1916_s15 + $0x18] sm:$0xff]   ;;  %v1764_v17 = vld [vmem:[%s1916_s15 + $0x20] sm:$0xff]   ;;  %v1765_v22 = vld [vmem:[%s1916_s15 + $0x28] sm:$0xff]  }
  0x14   : > { %v1323_v10 = vunpack.c.l.bf16 %v1762_v7  ;;  %v1324_v13 = vunpack.c.h.bf16 %v1762_v7  ;;  %v1327_v15 = vunpack.c.l.bf16 %v1763_v12  ;;  %v1328_v18 = vunpack.c.h.bf16 %v1763_v12  ;;  %v1766_v27 = vld [vmem:[%s1916_s15 + $0x30] sm:$0xff]   ;;  %v1767_v35 = vld [vmem:[%s1916_s15 + $0x38] sm:$0xff]   ;;  %v1768_v44 = vld [vmem:[%s1916_s15 + $0x40] sm:$0xff]  }
  0x15   : > { %v584_v6 = vadd.f32 %v1316_v4, %v1315_v3  ;;  %v1331_v20 = vunpack.c.l.bf16 %v1764_v17  ;;  %v1332_v23 = vunpack.c.h.bf16 %v1764_v17  ;;  %v1335_v25 = vunpack.c.l.bf16 %v1765_v22  ;;  %v1769_v53 = vld [vmem:[%s1916_s15 + $0x48] sm:$0xff]   ;;  %v1770_v62 = vld [vmem:[%s1916_s15 + $0x50] sm:$0xff]   ;;  %v1771_v7 = vld [vmem:[%s1916_s15 + $0x58] sm:$0xff]  }
  0x16   : > { %v816_v28 = vmul.f32 %v1315_v3, %v1315_v3  ;;  %v817_v29 = vmul.f32 %v1316_v4, %v1316_v4  ;;  %v1336_v30 = vunpack.c.h.bf16 %v1765_v22  ;;  %v818_v32 = vmul.f32 %v1319_v5, %v1319_v5 }
  0x17   : > { %v585_v9 = vadd.f32 %v1319_v5, %v584_v6  ;;  %v1339_v33 = vunpack.c.l.bf16 %v1766_v27  ;;  %v819_v36 = vmul.f32 %v1320_v8, %v1320_v8  ;;  %v1340_v38 = vunpack.c.h.bf16 %v1766_v27 }
  0x18   : > { %v1040_v37 = vadd.f32 %v817_v29, %v816_v28  ;;  %v820_v40 = vmul.f32 %v1323_v10, %v1323_v10  ;;  %v1343_v42 = vunpack.c.l.bf16 %v1767_v35  ;;  %v821_v45 = vmul.f32 %v1324_v13, %v1324_v13 }
  0x19   : > { %v586_v11 = vadd.f32 %v1320_v8, %v585_v9  ;;  %v1344_v47 = vunpack.c.h.bf16 %v1767_v35  ;;  %v822_v49 = vmul.f32 %v1327_v15, %v1327_v15  ;;  %v1347_v51 = vunpack.c.l.bf16 %v1768_v44 }
  0x1a   : > { %v1041_v41 = vadd.f32 %v1040_v37, %v818_v32  ;;  %v823_v54 = vmul.f32 %v1328_v18, %v1328_v18  ;;  %v1348_v56 = vunpack.c.h.bf16 %v1768_v44  ;;  %v824_v58 = vmul.f32 %v1331_v20, %v1331_v20 }
  0x1b   : > { %v587_v14 = vadd.f32 %v1323_v10, %v586_v11  ;;  %v1351_v60 = vunpack.c.l.bf16 %v1769_v53  ;;  %v825_v63 = vmul.f32 %v1332_v23, %v1332_v23  ;;  %v1352_v1 = vunpack.c.h.bf16 %v1769_v53 }
  0x1c   : > { %v1042_v46 = vadd.f32 %v1041_v41, %v819_v36  ;;  %v826_v3 = vmul.f32 %v1335_v25, %v1335_v25  ;;  %v1355_v5 = vunpack.c.l.bf16 %v1770_v62  ;;  %v827_v8 = vmul.f32 %v1336_v30, %v1336_v30 }
  0x1d   : > { %v588_v16 = vadd.f32 %v1324_v13, %v587_v14  ;;  %v1356_v10 = vunpack.c.h.bf16 %v1770_v62  ;;  %v828_v12 = vmul.f32 %v1339_v33, %v1339_v33  ;;  %v1359_v14 = vunpack.c.l.bf16 %v1771_v7 }
  0x1e   : > { %v1043_v50 = vadd.f32 %v1042_v46, %v820_v40  ;;  %v829_v17 = vmul.f32 %v1340_v38, %v1340_v38  ;;  %v833_v35 = vmul.f32 %v1348_v56, %v1348_v56  ;;  %v835_v44 = vmul.f32 %v1352_v1, %v1352_v1 }
  0x1f   : > { %v589_v19 = vadd.f32 %v1327_v15, %v588_v16  ;;  %v1772_v16 = vld [vmem:[%s1916_s15 + $0x60] sm:$0xff]   ;;  %v837_v53 = vmul.f32 %v1356_v10, %v1356_v10 }
  0x20   : > { %v1044_v55 = vadd.f32 %v1043_v50, %v821_v45  ;;  %v1364_v28 = vunpack.c.h.bf16 %v1772_v16 }
  0x21   : > { %v590_v21 = vadd.f32 %v1328_v18, %v589_v19  ;;  %v1360_v19 = vunpack.c.h.bf16 %v1771_v7 }
  0x22   : > { %v1045_v59 = vadd.f32 %v1044_v55, %v822_v49  ;;  %v841_v7 = vmul.f32 %v1364_v28, %v1364_v28 }
  0x23   : > { %v591_v24 = vadd.f32 %v1331_v20, %v590_v21  ;;  %v830_v21 = vmul.f32 %v1343_v42, %v1343_v42  ;;  %v839_v62 = vmul.f32 %v1360_v19, %v1360_v19 }
  0x24   : > { %v1046_v0 = vadd.f32 %v1045_v59, %v823_v54 }
  0x25   : > { %v592_v26 = vadd.f32 %v1332_v23, %v591_v24  ;;  %v1363_v23 = vunpack.c.l.bf16 %v1772_v16 }
  0x26   : > { %v1047_v4 = vadd.f32 %v1046_v0, %v824_v58 }
  0x27   : > { %v593_v31 = vadd.f32 %v1335_v25, %v592_v26  ;;  %v1773_v25 = vld [vmem:[%s1916_s15 + $0x68] sm:$0xff]   ;;  %v831_v26 = vmul.f32 %v1344_v47, %v1344_v47 }
  0x28   : > { %v1048_v9 = vadd.f32 %v1047_v4, %v825_v63  ;;  %v1367_v32 = vunpack.c.l.bf16 %v1773_v25  ;;  %v1368_v37 = vunpack.c.h.bf16 %v1773_v25 }
  0x29   : > { %v594_v34 = vadd.f32 %v1336_v30, %v593_v31  ;;  %v832_v30 = vmul.f32 %v1347_v51, %v1347_v51 }
  0x2a   : > { %v1049_v13 = vadd.f32 %v1048_v9, %v826_v3  ;;  %v843_v16 = vmul.f32 %v1368_v37, %v1368_v37 }
  0x2b   : > { %v595_v39 = vadd.f32 %v1339_v33, %v594_v34  ;;  %v1774_v34 = vld [vmem:[%s1916_s15 + $0x70] sm:$0xff]  }
  0x2c   : > { %v1050_v18 = vadd.f32 %v1049_v13, %v827_v8  ;;  %v1371_v41 = vunpack.c.l.bf16 %v1774_v34  ;;  %v1372_v46 = vunpack.c.h.bf16 %v1774_v34 }
  0x2d   : > { %v596_v43 = vadd.f32 %v1340_v38, %v595_v39  ;;  %v834_v39 = vmul.f32 %v1351_v60, %v1351_v60 }
  0x2e   : > { %v1051_v22 = vadd.f32 %v1050_v18, %v828_v12  ;;  %v845_v25 = vmul.f32 %v1372_v46, %v1372_v46 }
  0x2f   : > { %v597_v48 = vadd.f32 %v1343_v42, %v596_v43  ;;  %v1775_v43 = vld [vmem:[%s1916_s15 + $0x78] sm:$0xff]  }
  0x30   : > { %v1052_v27 = vadd.f32 %v1051_v22, %v829_v17  ;;  %v1375_v50 = vunpack.c.l.bf16 %v1775_v43  ;;  %v1376_v55 = vunpack.c.h.bf16 %v1775_v43 }
  0x31   : > { %v598_v52 = vadd.f32 %v1344_v47, %v597_v48  ;;  %v836_v48 = vmul.f32 %v1355_v5, %v1355_v5 }
  0x32   : > { %v1053_v31 = vadd.f32 %v1052_v27, %v830_v21  ;;  %v847_v34 = vmul.f32 %v1376_v55, %v1376_v55 }
  0x33   : > { %v599_v57 = vadd.f32 %v1347_v51, %v598_v52  ;;  %v1776_v52 = vld [vmem:[%s1916_s15 + $0x80] sm:$0xff]  }
  0x34   : > { %v1054_v36 = vadd.f32 %v1053_v31, %v831_v26  ;;  %v1379_v59 = vunpack.c.l.bf16 %v1776_v52  ;;  %v1380_v0 = vunpack.c.h.bf16 %v1776_v52 }
  0x35   : > { %v600_v61 = vadd.f32 %v1348_v56, %v599_v57  ;;  %v838_v57 = vmul.f32 %v1359_v14, %v1359_v14 }
  0x36   : > { %v1055_v40 = vadd.f32 %v1054_v36, %v832_v30  ;;  %v849_v43 = vmul.f32 %v1380_v0, %v1380_v0 }
  0x37   : > { %v601_v2 = vadd.f32 %v1351_v60, %v600_v61  ;;  %v1777_v61 = vld [vmem:[%s1916_s15 + $0x88] sm:$0xff]  }
  0x38   : > { %v1056_v45 = vadd.f32 %v1055_v40, %v833_v35  ;;  %v1383_v4 = vunpack.c.l.bf16 %v1777_v61  ;;  %v1384_v9 = vunpack.c.h.bf16 %v1777_v61 }
  0x39   : > { %v602_v6 = vadd.f32 %v1352_v1, %v601_v2  ;;  %v840_v2 = vmul.f32 %v1363_v23, %v1363_v23 }
  0x3a   : > { %v1057_v49 = vadd.f32 %v1056_v45, %v834_v39  ;;  %v851_v52 = vmul.f32 %v1384_v9, %v1384_v9 }
  0x3b   : > { %v603_v11 = vadd.f32 %v1355_v5, %v602_v6  ;;  %v1778_v6 = vld [vmem:[%s1916_s15 + $0x90] sm:$0xff]  }
  0x3c   : > { %v1058_v54 = vadd.f32 %v1057_v49, %v835_v44  ;;  %v1387_v13 = vunpack.c.l.bf16 %v1778_v6  ;;  %v1388_v18 = vunpack.c.h.bf16 %v1778_v6 }
  0x3d   : > { %v604_v15 = vadd.f32 %v1356_v10, %v603_v11  ;;  %v842_v11 = vmul.f32 %v1367_v32, %v1367_v32 }
  0x3e   : > { %v1059_v58 = vadd.f32 %v1058_v54, %v836_v48  ;;  %v853_v61 = vmul.f32 %v1388_v18, %v1388_v18 }
  0x3f   : > { %v605_v20 = vadd.f32 %v1359_v14, %v604_v15  ;;  %v1779_v15 = vld [vmem:[%s1916_s15 + $0x98] sm:$0xff]  }
  0x40   : > { %v1060_v63 = vadd.f32 %v1059_v58, %v837_v53  ;;  %v1391_v22 = vunpack.c.l.bf16 %v1779_v15  ;;  %v1392_v27 = vunpack.c.h.bf16 %v1779_v15 }
  0x41   : > { %v606_v24 = vadd.f32 %v1360_v19, %v605_v20  ;;  %v844_v20 = vmul.f32 %v1371_v41, %v1371_v41 }
  0x42   : > { %v1061_v3 = vadd.f32 %v1060_v63, %v838_v57  ;;  %v855_v6 = vmul.f32 %v1392_v27, %v1392_v27 }
  0x43   : > { %v607_v29 = vadd.f32 %v1363_v23, %v606_v24  ;;  %v1780_v24 = vld [vmem:[%s1916_s15 + $0xa0] sm:$0xff]  }
  0x44   : > { %v1062_v8 = vadd.f32 %v1061_v3, %v839_v62  ;;  %v1395_v31 = vunpack.c.l.bf16 %v1780_v24  ;;  %v1396_v36 = vunpack.c.h.bf16 %v1780_v24 }
  0x45   : > { %v608_v33 = vadd.f32 %v1364_v28, %v607_v29  ;;  %v846_v29 = vmul.f32 %v1375_v50, %v1375_v50 }
  0x46   : > { %v1063_v12 = vadd.f32 %v1062_v8, %v840_v2  ;;  %v857_v15 = vmul.f32 %v1396_v36, %v1396_v36 }
  0x47   : > { %v609_v38 = vadd.f32 %v1367_v32, %v608_v33  ;;  %v1781_v33 = vld [vmem:[%s1916_s15 + $0xa8] sm:$0xff]  }
  0x48   : > { %v1064_v17 = vadd.f32 %v1063_v12, %v841_v7  ;;  %v1399_v40 = vunpack.c.l.bf16 %v1781_v33  ;;  %v1400_v45 = vunpack.c.h.bf16 %v1781_v33 }
  0x49   : > { %v610_v42 = vadd.f32 %v1368_v37, %v609_v38  ;;  %v848_v38 = vmul.f32 %v1379_v59, %v1379_v59 }
  0x4a   : > { %v1065_v21 = vadd.f32 %v1064_v17, %v842_v11  ;;  %v859_v24 = vmul.f32 %v1400_v45, %v1400_v45 }
  0x4b   : > { %v611_v47 = vadd.f32 %v1371_v41, %v610_v42  ;;  %v1782_v42 = vld [vmem:[%s1916_s15 + $0xb0] sm:$0xff]  }
  0x4c   : > { %v1066_v26 = vadd.f32 %v1065_v21, %v843_v16  ;;  %v1403_v49 = vunpack.c.l.bf16 %v1782_v42  ;;  %v1404_v54 = vunpack.c.h.bf16 %v1782_v42 }
  0x4d   : > { %v612_v51 = vadd.f32 %v1372_v46, %v611_v47  ;;  %v850_v47 = vmul.f32 %v1383_v4, %v1383_v4 }
  0x4e   : > { %v1067_v30 = vadd.f32 %v1066_v26, %v844_v20  ;;  %v861_v33 = vmul.f32 %v1404_v54, %v1404_v54 }
  0x4f   : > { %v613_v56 = vadd.f32 %v1375_v50, %v612_v51  ;;  %v1783_v51 = vld [vmem:[%s1916_s15 + $0xb8] sm:$0xff]  }
  0x50   : > { %v1068_v35 = vadd.f32 %v1067_v30, %v845_v25  ;;  %v1407_v58 = vunpack.c.l.bf16 %v1783_v51  ;;  %v1408_v63 = vunpack.c.h.bf16 %v1783_v51 }
  0x51   : > { %v614_v60 = vadd.f32 %v1376_v55, %v613_v56  ;;  %v852_v56 = vmul.f32 %v1387_v13, %v1387_v13 }
  0x52   : > { %v1069_v39 = vadd.f32 %v1068_v35, %v846_v29  ;;  %v863_v42 = vmul.f32 %v1408_v63, %v1408_v63 }
  0x53   : > { %v615_v1 = vadd.f32 %v1379_v59, %v614_v60  ;;  %v1784_v60 = vld [vmem:[%s1916_s15 + $0xc0] sm:$0xff]  }
  0x54   : > { %v1070_v44 = vadd.f32 %v1069_v39, %v847_v34  ;;  %v1411_v3 = vunpack.c.l.bf16 %v1784_v60  ;;  %v1412_v8 = vunpack.c.h.bf16 %v1784_v60 }
  0x55   : > { %v616_v5 = vadd.f32 %v1380_v0, %v615_v1  ;;  %v854_v1 = vmul.f32 %v1391_v22, %v1391_v22 }
  0x56   : > { %v1071_v48 = vadd.f32 %v1070_v44, %v848_v38  ;;  %v865_v51 = vmul.f32 %v1412_v8, %v1412_v8 }
  0x57   : > { %v617_v10 = vadd.f32 %v1383_v4, %v616_v5  ;;  %v1785_v5 = vld [vmem:[%s1916_s15 + $0xc8] sm:$0xff]  }
  0x58   : > { %v1072_v53 = vadd.f32 %v1071_v48, %v849_v43  ;;  %v1415_v12 = vunpack.c.l.bf16 %v1785_v5  ;;  %v1416_v17 = vunpack.c.h.bf16 %v1785_v5 }
  0x59   : > { %v618_v14 = vadd.f32 %v1384_v9, %v617_v10  ;;  %v856_v10 = vmul.f32 %v1395_v31, %v1395_v31 }
  0x5a   : > { %v1073_v57 = vadd.f32 %v1072_v53, %v850_v47  ;;  %v867_v60 = vmul.f32 %v1416_v17, %v1416_v17 }
  0x5b   : > { %v619_v19 = vadd.f32 %v1387_v13, %v618_v14  ;;  %v1786_v14 = vld [vmem:[%s1916_s15 + $0xd0] sm:$0xff]  }
  0x5c   : > { %v1074_v62 = vadd.f32 %v1073_v57, %v851_v52  ;;  %v1419_v21 = vunpack.c.l.bf16 %v1786_v14  ;;  %v1420_v26 = vunpack.c.h.bf16 %v1786_v14 }
  0x5d   : > { %v620_v23 = vadd.f32 %v1388_v18, %v619_v19  ;;  %v858_v19 = vmul.f32 %v1399_v40, %v1399_v40 }
  0x5e   : > { %v1075_v2 = vadd.f32 %v1074_v62, %v852_v56  ;;  %v869_v5 = vmul.f32 %v1420_v26, %v1420_v26 }
  0x5f   : > { %v621_v28 = vadd.f32 %v1391_v22, %v620_v23  ;;  %v1787_v23 = vld [vmem:[%s1916_s15 + $0xd8] sm:$0xff]  }
  0x60   : > { %v1076_v7 = vadd.f32 %v1075_v2, %v853_v61  ;;  %v1423_v30 = vunpack.c.l.bf16 %v1787_v23  ;;  %v1424_v35 = vunpack.c.h.bf16 %v1787_v23 }
  0x61   : > { %v622_v32 = vadd.f32 %v1392_v27, %v621_v28  ;;  %v860_v28 = vmul.f32 %v1403_v49, %v1403_v49 }
  0x62   : > { %v1077_v11 = vadd.f32 %v1076_v7, %v854_v1  ;;  %v871_v14 = vmul.f32 %v1424_v35, %v1424_v35 }
  0x63   : > { %v623_v37 = vadd.f32 %v1395_v31, %v622_v32  ;;  %v1788_v32 = vld [vmem:[%s1916_s15 + $0xe0] sm:$0xff]  }
  0x64   : > { %v1078_v16 = vadd.f32 %v1077_v11, %v855_v6  ;;  %v1427_v39 = vunpack.c.l.bf16 %v1788_v32  ;;  %v1428_v44 = vunpack.c.h.bf16 %v1788_v32 }
  0x65   : > { %v624_v41 = vadd.f32 %v1396_v36, %v623_v37  ;;  %v862_v37 = vmul.f32 %v1407_v58, %v1407_v58 }
  0x66   : > { %v1079_v20 = vadd.f32 %v1078_v16, %v856_v10  ;;  %v873_v23 = vmul.f32 %v1428_v44, %v1428_v44 }
  0x67   : > { %v625_v46 = vadd.f32 %v1399_v40, %v624_v41  ;;  %v1789_v41 = vld [vmem:[%s1916_s15 + $0xe8] sm:$0xff]  }
  0x68   : > { %v1080_v25 = vadd.f32 %v1079_v20, %v857_v15  ;;  %v1431_v48 = vunpack.c.l.bf16 %v1789_v41  ;;  %v1432_v53 = vunpack.c.h.bf16 %v1789_v41 }
  0x69   : > { %v626_v50 = vadd.f32 %v1400_v45, %v625_v46  ;;  %v864_v46 = vmul.f32 %v1411_v3, %v1411_v3 }
  0x6a   : > { %v1081_v29 = vadd.f32 %v1080_v25, %v858_v19  ;;  %v875_v32 = vmul.f32 %v1432_v53, %v1432_v53 }
  0x6b   : > { %v627_v55 = vadd.f32 %v1403_v49, %v626_v50  ;;  %v1790_v50 = vld [vmem:[%s1916_s15 + $0xf0] sm:$0xff]  }
  0x6c   : > { %v1082_v34 = vadd.f32 %v1081_v29, %v859_v24  ;;  %v1435_v57 = vunpack.c.l.bf16 %v1790_v50  ;;  %v1436_v62 = vunpack.c.h.bf16 %v1790_v50 }
  0x6d   : > { %v628_v59 = vadd.f32 %v1404_v54, %v627_v55  ;;  %v866_v55 = vmul.f32 %v1415_v12, %v1415_v12 }
  0x6e   : > { %v1083_v38 = vadd.f32 %v1082_v34, %v860_v28  ;;  %v877_v41 = vmul.f32 %v1436_v62, %v1436_v62 }
  0x6f   : > { %v629_v0 = vadd.f32 %v1407_v58, %v628_v59  ;;  %v1791_v59 = vld [vmem:[%s1916_s15 + $0xf8] sm:$0xff]  }
  0x70   : > { %v1084_v43 = vadd.f32 %v1083_v38, %v861_v33  ;;  %v1439_v2 = vunpack.c.l.bf16 %v1791_v59  ;;  %v1440_v7 = vunpack.c.h.bf16 %v1791_v59 }
  0x71   : > { %v630_v4 = vadd.f32 %v1408_v63, %v629_v0  ;;  %v868_v0 = vmul.f32 %v1419_v21, %v1419_v21 }
  0x72   : > { %v1085_v47 = vadd.f32 %v1084_v43, %v862_v37  ;;  %v879_v50 = vmul.f32 %v1440_v7, %v1440_v7 }
  0x73   : > { %v631_v9 = vadd.f32 %v1411_v3, %v630_v4  ;;  %v1792_v4 = vld [vmem:[%s1916_s15 + $0x100] sm:$0xff]  }
  0x74   : > { %v1086_v52 = vadd.f32 %v1085_v47, %v863_v42  ;;  %v1443_v11 = vunpack.c.l.bf16 %v1792_v4  ;;  %v1444_v16 = vunpack.c.h.bf16 %v1792_v4 }
  0x75   : > { %v632_v13 = vadd.f32 %v1412_v8, %v631_v9  ;;  %v870_v9 = vmul.f32 %v1423_v30, %v1423_v30 }
  0x76   : > { %v1087_v56 = vadd.f32 %v1086_v52, %v864_v46  ;;  %v881_v59 = vmul.f32 %v1444_v16, %v1444_v16 }
  0x77   : > { %v633_v18 = vadd.f32 %v1415_v12, %v632_v13  ;;  %v1793_v13 = vld [vmem:[%s1916_s15 + $0x108] sm:$0xff]  }
  0x78   : > { %v1088_v61 = vadd.f32 %v1087_v56, %v865_v51  ;;  %v1447_v20 = vunpack.c.l.bf16 %v1793_v13  ;;  %v1448_v25 = vunpack.c.h.bf16 %v1793_v13 }
  0x79   : > { %v634_v22 = vadd.f32 %v1416_v17, %v633_v18  ;;  %v872_v18 = vmul.f32 %v1427_v39, %v1427_v39 }
  0x7a   : > { %v1089_v1 = vadd.f32 %v1088_v61, %v866_v55  ;;  %v883_v4 = vmul.f32 %v1448_v25, %v1448_v25 }
  0x7b   : > { %v635_v27 = vadd.f32 %v1419_v21, %v634_v22  ;;  %v1794_v22 = vld [vmem:[%s1916_s15 + $0x110] sm:$0xff]  }
  0x7c   : > { %v1090_v6 = vadd.f32 %v1089_v1, %v867_v60  ;;  %v1451_v29 = vunpack.c.l.bf16 %v1794_v22  ;;  %v1452_v34 = vunpack.c.h.bf16 %v1794_v22 }
  0x7d   : > { %v636_v31 = vadd.f32 %v1420_v26, %v635_v27  ;;  %v874_v27 = vmul.f32 %v1431_v48, %v1431_v48 }
  0x7e   : > { %v1091_v10 = vadd.f32 %v1090_v6, %v868_v0  ;;  %v885_v13 = vmul.f32 %v1452_v34, %v1452_v34 }
  0x7f   : > { %v637_v36 = vadd.f32 %v1423_v30, %v636_v31  ;;  %v1795_v31 = vld [vmem:[%s1916_s15 + $0x118] sm:$0xff]  }
  0x80   : > { %v1092_v15 = vadd.f32 %v1091_v10, %v869_v5  ;;  %v1455_v38 = vunpack.c.l.bf16 %v1795_v31  ;;  %v1456_v43 = vunpack.c.h.bf16 %v1795_v31 }
  0x81   : > { %v638_v40 = vadd.f32 %v1424_v35, %v637_v36  ;;  %v876_v36 = vmul.f32 %v1435_v57, %v1435_v57 }
  0x82   : > { %v1093_v19 = vadd.f32 %v1092_v15, %v870_v9  ;;  %v887_v22 = vmul.f32 %v1456_v43, %v1456_v43 }
  0x83   : > { %v639_v45 = vadd.f32 %v1427_v39, %v638_v40  ;;  %v1796_v40 = vld [vmem:[%s1916_s15 + $0x120] sm:$0xff]  }
  0x84   : > { %v1094_v24 = vadd.f32 %v1093_v19, %v871_v14  ;;  %v1459_v47 = vunpack.c.l.bf16 %v1796_v40  ;;  %v1460_v52 = vunpack.c.h.bf16 %v1796_v40 }
  0x85   : > { %v640_v49 = vadd.f32 %v1428_v44, %v639_v45  ;;  %v878_v45 = vmul.f32 %v1439_v2, %v1439_v2 }
  0x86   : > { %v1095_v28 = vadd.f32 %v1094_v24, %v872_v18  ;;  %v889_v31 = vmul.f32 %v1460_v52, %v1460_v52 }
  0x87   : > { %v641_v54 = vadd.f32 %v1431_v48, %v640_v49  ;;  %v1797_v49 = vld [vmem:[%s1916_s15 + $0x128] sm:$0xff]  }
  0x88   : > { %v1096_v33 = vadd.f32 %v1095_v28, %v873_v23  ;;  %v1463_v56 = vunpack.c.l.bf16 %v1797_v49  ;;  %v1464_v61 = vunpack.c.h.bf16 %v1797_v49 }
  0x89   : > { %v642_v58 = vadd.f32 %v1432_v53, %v641_v54  ;;  %v880_v54 = vmul.f32 %v1443_v11, %v1443_v11 }
  0x8a   : > { %v1097_v37 = vadd.f32 %v1096_v33, %v874_v27  ;;  %v891_v40 = vmul.f32 %v1464_v61, %v1464_v61 }
  0x8b   : > { %v643_v63 = vadd.f32 %v1435_v57, %v642_v58  ;;  %v1798_v58 = vld [vmem:[%s1916_s15 + $0x130] sm:$0xff]  }
  0x8c   : > { %v1098_v42 = vadd.f32 %v1097_v37, %v875_v32  ;;  %v1467_v1 = vunpack.c.l.bf16 %v1798_v58  ;;  %v1468_v6 = vunpack.c.h.bf16 %v1798_v58 }
  0x8d   : > { %v644_v3 = vadd.f32 %v1436_v62, %v643_v63  ;;  %v882_v63 = vmul.f32 %v1447_v20, %v1447_v20 }
  0x8e   : > { %v1099_v46 = vadd.f32 %v1098_v42, %v876_v36  ;;  %v893_v49 = vmul.f32 %v1468_v6, %v1468_v6 }
  0x8f   : > { %v645_v8 = vadd.f32 %v1439_v2, %v644_v3  ;;  %v1799_v3 = vld [vmem:[%s1916_s15 + $0x138] sm:$0xff]  }
  0x90   : > { %v1100_v51 = vadd.f32 %v1099_v46, %v877_v41  ;;  %v1471_v10 = vunpack.c.l.bf16 %v1799_v3  ;;  %v1472_v15 = vunpack.c.h.bf16 %v1799_v3 }
  0x91   : > { %v646_v12 = vadd.f32 %v1440_v7, %v645_v8  ;;  %v884_v8 = vmul.f32 %v1451_v29, %v1451_v29 }
  0x92   : > { %v1101_v55 = vadd.f32 %v1100_v51, %v878_v45  ;;  %v895_v58 = vmul.f32 %v1472_v15, %v1472_v15 }
  0x93   : > { %v647_v17 = vadd.f32 %v1443_v11, %v646_v12  ;;  %v1800_v12 = vld [vmem:[%s1916_s15 + $0x140] sm:$0xff]  }
  0x94   : > { %v1102_v60 = vadd.f32 %v1101_v55, %v879_v50  ;;  %v1475_v19 = vunpack.c.l.bf16 %v1800_v12  ;;  %v1476_v24 = vunpack.c.h.bf16 %v1800_v12 }
  0x95   : > { %v648_v21 = vadd.f32 %v1444_v16, %v647_v17  ;;  %v886_v17 = vmul.f32 %v1455_v38, %v1455_v38 }
  0x96   : > { %v1103_v0 = vadd.f32 %v1102_v60, %v880_v54  ;;  %v897_v3 = vmul.f32 %v1476_v24, %v1476_v24 }
  0x97   : > { %v649_v26 = vadd.f32 %v1447_v20, %v648_v21  ;;  %v1801_v21 = vld [vmem:[%s1916_s15 + $0x148] sm:$0xff]  }
  0x98   : > { %v1104_v5 = vadd.f32 %v1103_v0, %v881_v59  ;;  %v1479_v28 = vunpack.c.l.bf16 %v1801_v21  ;;  %v1480_v33 = vunpack.c.h.bf16 %v1801_v21 }
  0x99   : > { %v650_v30 = vadd.f32 %v1448_v25, %v649_v26  ;;  %v888_v26 = vmul.f32 %v1459_v47, %v1459_v47 }
  0x9a   : > { %v1105_v9 = vadd.f32 %v1104_v5, %v882_v63  ;;  %v899_v12 = vmul.f32 %v1480_v33, %v1480_v33 }
  0x9b   : > { %v651_v35 = vadd.f32 %v1451_v29, %v650_v30  ;;  %v1802_v30 = vld [vmem:[%s1916_s15 + $0x150] sm:$0xff]  }
  0x9c   : > { %v1106_v14 = vadd.f32 %v1105_v9, %v883_v4  ;;  %v1483_v37 = vunpack.c.l.bf16 %v1802_v30  ;;  %v1484_v42 = vunpack.c.h.bf16 %v1802_v30 }
  0x9d   : > { %v652_v39 = vadd.f32 %v1452_v34, %v651_v35  ;;  %v890_v35 = vmul.f32 %v1463_v56, %v1463_v56 }
  0x9e   : > { %v1107_v18 = vadd.f32 %v1106_v14, %v884_v8  ;;  %v901_v21 = vmul.f32 %v1484_v42, %v1484_v42 }
  0x9f   : > { %v653_v44 = vadd.f32 %v1455_v38, %v652_v39  ;;  %v1803_v39 = vld [vmem:[%s1916_s15 + $0x158] sm:$0xff]  }
  0xa0   : > { %v1108_v23 = vadd.f32 %v1107_v18, %v885_v13  ;;  %v1487_v46 = vunpack.c.l.bf16 %v1803_v39  ;;  %v1488_v51 = vunpack.c.h.bf16 %v1803_v39 }
  0xa1   : > { %v654_v48 = vadd.f32 %v1456_v43, %v653_v44  ;;  %v892_v44 = vmul.f32 %v1467_v1, %v1467_v1 }
  0xa2   : > { %v1109_v27 = vadd.f32 %v1108_v23, %v886_v17  ;;  %v903_v30 = vmul.f32 %v1488_v51, %v1488_v51 }
  0xa3   : > { %v655_v53 = vadd.f32 %v1459_v47, %v654_v48  ;;  %v1804_v48 = vld [vmem:[%s1916_s15 + $0x160] sm:$0xff]  }
  0xa4   : > { %v1110_v32 = vadd.f32 %v1109_v27, %v887_v22  ;;  %v1491_v55 = vunpack.c.l.bf16 %v1804_v48  ;;  %v1492_v60 = vunpack.c.h.bf16 %v1804_v48 }
  0xa5   : > { %v656_v57 = vadd.f32 %v1460_v52, %v655_v53  ;;  %v894_v53 = vmul.f32 %v1471_v10, %v1471_v10 }
  0xa6   : > { %v1111_v36 = vadd.f32 %v1110_v32, %v888_v26  ;;  %v905_v39 = vmul.f32 %v1492_v60, %v1492_v60 }
  0xa7   : > { %v657_v62 = vadd.f32 %v1463_v56, %v656_v57  ;;  %v1805_v57 = vld [vmem:[%s1916_s15 + $0x168] sm:$0xff]  }
  0xa8   : > { %v1112_v41 = vadd.f32 %v1111_v36, %v889_v31  ;;  %v1495_v0 = vunpack.c.l.bf16 %v1805_v57  ;;  %v1496_v5 = vunpack.c.h.bf16 %v1805_v57 }
  0xa9   : > { %v658_v2 = vadd.f32 %v1464_v61, %v657_v62  ;;  %v896_v62 = vmul.f32 %v1475_v19, %v1475_v19 }
  0xaa   : > { %v1113_v45 = vadd.f32 %v1112_v41, %v890_v35  ;;  %v907_v48 = vmul.f32 %v1496_v5, %v1496_v5 }
  0xab   : > { %v659_v7 = vadd.f32 %v1467_v1, %v658_v2  ;;  %v1806_v2 = vld [vmem:[%s1916_s15 + $0x170] sm:$0xff]  }
  0xac   : > { %v1114_v50 = vadd.f32 %v1113_v45, %v891_v40  ;;  %v1499_v9 = vunpack.c.l.bf16 %v1806_v2  ;;  %v1500_v14 = vunpack.c.h.bf16 %v1806_v2 }
  0xad   : > { %v660_v11 = vadd.f32 %v1468_v6, %v659_v7  ;;  %v898_v7 = vmul.f32 %v1479_v28, %v1479_v28 }
  0xae   : > { %v1115_v54 = vadd.f32 %v1114_v50, %v892_v44  ;;  %v909_v57 = vmul.f32 %v1500_v14, %v1500_v14 }
  0xaf   : > { %v661_v16 = vadd.f32 %v1471_v10, %v660_v11  ;;  %v1807_v11 = vld [vmem:[%s1916_s15 + $0x178] sm:$0xff]  }
  0xb0   : > { %v1116_v59 = vadd.f32 %v1115_v54, %v893_v49  ;;  %v1503_v18 = vunpack.c.l.bf16 %v1807_v11  ;;  %v1504_v23 = vunpack.c.h.bf16 %v1807_v11 }
  0xb1   : > { %v662_v20 = vadd.f32 %v1472_v15, %v661_v16  ;;  %v900_v16 = vmul.f32 %v1483_v37, %v1483_v37 }
  0xb2   : > { %v1117_v63 = vadd.f32 %v1116_v59, %v894_v53  ;;  %v911_v2 = vmul.f32 %v1504_v23, %v1504_v23 }
  0xb3   : > { %v663_v25 = vadd.f32 %v1475_v19, %v662_v20  ;;  %v1808_v20 = vld [vmem:[%s1916_s15 + $0x180] sm:$0xff]  }
  0xb4   : > { %v1118_v4 = vadd.f32 %v1117_v63, %v895_v58  ;;  %v1507_v27 = vunpack.c.l.bf16 %v1808_v20  ;;  %v1508_v32 = vunpack.c.h.bf16 %v1808_v20 }
  0xb5   : > { %v664_v29 = vadd.f32 %v1476_v24, %v663_v25  ;;  %v902_v25 = vmul.f32 %v1487_v46, %v1487_v46 }
  0xb6   : > { %v1119_v8 = vadd.f32 %v1118_v4, %v896_v62  ;;  %v913_v11 = vmul.f32 %v1508_v32, %v1508_v32 }
  0xb7   : > { %v665_v34 = vadd.f32 %v1479_v28, %v664_v29  ;;  %v1809_v29 = vld [vmem:[%s1916_s15 + $0x188] sm:$0xff]  }
  0xb8   : > { %v1120_v13 = vadd.f32 %v1119_v8, %v897_v3  ;;  %v1511_v36 = vunpack.c.l.bf16 %v1809_v29  ;;  %v1512_v41 = vunpack.c.h.bf16 %v1809_v29 }
  0xb9   : > { %v666_v38 = vadd.f32 %v1480_v33, %v665_v34  ;;  %v904_v34 = vmul.f32 %v1491_v55, %v1491_v55 }
  0xba   : > { %v1121_v17 = vadd.f32 %v1120_v13, %v898_v7  ;;  %v915_v20 = vmul.f32 %v1512_v41, %v1512_v41 }
  0xbb   : > { %v667_v43 = vadd.f32 %v1483_v37, %v666_v38  ;;  %v1810_v38 = vld [vmem:[%s1916_s15 + $0x190] sm:$0xff]  }
  0xbc   : > { %v1122_v22 = vadd.f32 %v1121_v17, %v899_v12  ;;  %v1515_v45 = vunpack.c.l.bf16 %v1810_v38  ;;  %v1516_v50 = vunpack.c.h.bf16 %v1810_v38 }
  0xbd   : > { %v668_v47 = vadd.f32 %v1484_v42, %v667_v43  ;;  %v906_v43 = vmul.f32 %v1495_v0, %v1495_v0 }
  0xbe   : > { %v1123_v26 = vadd.f32 %v1122_v22, %v900_v16  ;;  %v917_v29 = vmul.f32 %v1516_v50, %v1516_v50 }
  0xbf   : > { %v669_v52 = vadd.f32 %v1487_v46, %v668_v47  ;;  %v1811_v47 = vld [vmem:[%s1916_s15 + $0x198] sm:$0xff]  }
  0xc0   : > { %v1124_v31 = vadd.f32 %v1123_v26, %v901_v21  ;;  %v1519_v54 = vunpack.c.l.bf16 %v1811_v47  ;;  %v1520_v59 = vunpack.c.h.bf16 %v1811_v47 }
  0xc1   : > { %v670_v56 = vadd.f32 %v1488_v51, %v669_v52  ;;  %v908_v52 = vmul.f32 %v1499_v9, %v1499_v9 }
  0xc2   : > { %v1125_v35 = vadd.f32 %v1124_v31, %v902_v25  ;;  %v919_v38 = vmul.f32 %v1520_v59, %v1520_v59 }
  0xc3   : > { %v671_v61 = vadd.f32 %v1491_v55, %v670_v56  ;;  %v1812_v56 = vld [vmem:[%s1916_s15 + $0x1a0] sm:$0xff]  }
  0xc4   : > { %v1126_v40 = vadd.f32 %v1125_v35, %v903_v30  ;;  %v1523_v63 = vunpack.c.l.bf16 %v1812_v56  ;;  %v1524_v4 = vunpack.c.h.bf16 %v1812_v56 }
  0xc5   : > { %v672_v1 = vadd.f32 %v1492_v60, %v671_v61  ;;  %v910_v61 = vmul.f32 %v1503_v18, %v1503_v18 }
  0xc6   : > { %v1127_v44 = vadd.f32 %v1126_v40, %v904_v34  ;;  %v921_v47 = vmul.f32 %v1524_v4, %v1524_v4 }
  0xc7   : > { %v673_v6 = vadd.f32 %v1495_v0, %v672_v1  ;;  %v1813_v1 = vld [vmem:[%s1916_s15 + $0x1a8] sm:$0xff]  }
  0xc8   : > { %v1128_v49 = vadd.f32 %v1127_v44, %v905_v39  ;;  %v1527_v8 = vunpack.c.l.bf16 %v1813_v1  ;;  %v1528_v13 = vunpack.c.h.bf16 %v1813_v1 }
  0xc9   : > { %v674_v10 = vadd.f32 %v1496_v5, %v673_v6  ;;  %v912_v6 = vmul.f32 %v1507_v27, %v1507_v27 }
  0xca   : > { %v1129_v53 = vadd.f32 %v1128_v49, %v906_v43  ;;  %v923_v56 = vmul.f32 %v1528_v13, %v1528_v13 }
  0xcb   : > { %v675_v15 = vadd.f32 %v1499_v9, %v674_v10  ;;  %v1814_v10 = vld [vmem:[%s1916_s15 + $0x1b0] sm:$0xff]  }
  0xcc   : > { %v1130_v58 = vadd.f32 %v1129_v53, %v907_v48  ;;  %v1531_v17 = vunpack.c.l.bf16 %v1814_v10  ;;  %v1532_v22 = vunpack.c.h.bf16 %v1814_v10 }
  0xcd   : > { %v676_v19 = vadd.f32 %v1500_v14, %v675_v15  ;;  %v914_v15 = vmul.f32 %v1511_v36, %v1511_v36 }
  0xce   : > { %v1131_v62 = vadd.f32 %v1130_v58, %v908_v52  ;;  %v925_v1 = vmul.f32 %v1532_v22, %v1532_v22 }
  0xcf   : > { %v677_v24 = vadd.f32 %v1503_v18, %v676_v19  ;;  %v1815_v19 = vld [vmem:[%s1916_s15 + $0x1b8] sm:$0xff]  }
  0xd0   : > { %v1132_v3 = vadd.f32 %v1131_v62, %v909_v57  ;;  %v1535_v26 = vunpack.c.l.bf16 %v1815_v19  ;;  %v1536_v31 = vunpack.c.h.bf16 %v1815_v19 }
  0xd1   : > { %v678_v28 = vadd.f32 %v1504_v23, %v677_v24  ;;  %v916_v24 = vmul.f32 %v1515_v45, %v1515_v45 }
  0xd2   : > { %v1133_v7 = vadd.f32 %v1132_v3, %v910_v61  ;;  %v927_v10 = vmul.f32 %v1536_v31, %v1536_v31 }
  0xd3   : > { %v679_v33 = vadd.f32 %v1507_v27, %v678_v28  ;;  %v1816_v28 = vld [vmem:[%s1916_s15 + $0x1c0] sm:$0xff]  }
  0xd4   : > { %v1134_v12 = vadd.f32 %v1133_v7, %v911_v2  ;;  %v1539_v35 = vunpack.c.l.bf16 %v1816_v28  ;;  %v1540_v40 = vunpack.c.h.bf16 %v1816_v28 }
  0xd5   : > { %v680_v37 = vadd.f32 %v1508_v32, %v679_v33  ;;  %v918_v33 = vmul.f32 %v1519_v54, %v1519_v54 }
  0xd6   : > { %v1135_v16 = vadd.f32 %v1134_v12, %v912_v6  ;;  %v929_v19 = vmul.f32 %v1540_v40, %v1540_v40 }
  0xd7   : > { %v681_v42 = vadd.f32 %v1511_v36, %v680_v37  ;;  %v1817_v37 = vld [vmem:[%s1916_s15 + $0x1c8] sm:$0xff]  }
  0xd8   : > { %v1136_v21 = vadd.f32 %v1135_v16, %v913_v11  ;;  %v1543_v44 = vunpack.c.l.bf16 %v1817_v37  ;;  %v1544_v49 = vunpack.c.h.bf16 %v1817_v37 }
  0xd9   : > { %v682_v46 = vadd.f32 %v1512_v41, %v681_v42  ;;  %v920_v42 = vmul.f32 %v1523_v63, %v1523_v63 }
  0xda   : > { %v1137_v25 = vadd.f32 %v1136_v21, %v914_v15  ;;  %v931_v28 = vmul.f32 %v1544_v49, %v1544_v49 }
  0xdb   : > { %v683_v51 = vadd.f32 %v1515_v45, %v682_v46  ;;  %v1818_v46 = vld [vmem:[%s1916_s15 + $0x1d0] sm:$0xff]  }
  0xdc   : > { %v1138_v30 = vadd.f32 %v1137_v25, %v915_v20  ;;  %v1547_v53 = vunpack.c.l.bf16 %v1818_v46  ;;  %v1548_v58 = vunpack.c.h.bf16 %v1818_v46 }
  0xdd   : > { %v684_v55 = vadd.f32 %v1516_v50, %v683_v51  ;;  %v922_v51 = vmul.f32 %v1527_v8, %v1527_v8 }
  0xde   : > { %v1139_v34 = vadd.f32 %v1138_v30, %v916_v24  ;;  %v933_v37 = vmul.f32 %v1548_v58, %v1548_v58 }
  0xdf   : > { %v685_v60 = vadd.f32 %v1519_v54, %v684_v55  ;;  %v1819_v55 = vld [vmem:[%s1916_s15 + $0x1d8] sm:$0xff]  }
  0xe0   : > { %v1140_v39 = vadd.f32 %v1139_v34, %v917_v29  ;;  %v1551_v62 = vunpack.c.l.bf16 %v1819_v55  ;;  %v1552_v3 = vunpack.c.h.bf16 %v1819_v55 }
  0xe1   : > { %v686_v0 = vadd.f32 %v1520_v59, %v685_v60  ;;  %v924_v60 = vmul.f32 %v1531_v17, %v1531_v17 }
  0xe2   : > { %v1141_v43 = vadd.f32 %v1140_v39, %v918_v33  ;;  %v935_v46 = vmul.f32 %v1552_v3, %v1552_v3 }
  0xe3   : > { %v687_v5 = vadd.f32 %v1523_v63, %v686_v0  ;;  %v1820_v0 = vld [vmem:[%s1916_s15 + $0x1e0] sm:$0xff]  }
  0xe4   : > { %v1142_v48 = vadd.f32 %v1141_v43, %v919_v38  ;;  %v1555_v7 = vunpack.c.l.bf16 %v1820_v0  ;;  %v1556_v12 = vunpack.c.h.bf16 %v1820_v0 }
  0xe5   : > { %v688_v9 = vadd.f32 %v1524_v4, %v687_v5  ;;  %v926_v5 = vmul.f32 %v1535_v26, %v1535_v26 }
  0xe6   : > { %v1143_v52 = vadd.f32 %v1142_v48, %v920_v42  ;;  %v937_v55 = vmul.f32 %v1556_v12, %v1556_v12 }
  0xe7   : > { %v689_v14 = vadd.f32 %v1527_v8, %v688_v9  ;;  %v1821_v9 = vld [vmem:[%s1916_s15 + $0x1e8] sm:$0xff]  }
  0xe8   : > { %v1144_v57 = vadd.f32 %v1143_v52, %v921_v47  ;;  %v1559_v16 = vunpack.c.l.bf16 %v1821_v9  ;;  %v1560_v21 = vunpack.c.h.bf16 %v1821_v9 }
  0xe9   : > { %v690_v18 = vadd.f32 %v1528_v13, %v689_v14  ;;  %v928_v14 = vmul.f32 %v1539_v35, %v1539_v35 }
  0xea   : > { %v1145_v61 = vadd.f32 %v1144_v57, %v922_v51  ;;  %v939_v0 = vmul.f32 %v1560_v21, %v1560_v21 }
  0xeb   : > { %v691_v23 = vadd.f32 %v1531_v17, %v690_v18  ;;  %v1822_v18 = vld [vmem:[%s1916_s15 + $0x1f0] sm:$0xff]  }
  0xec   : > { %v1146_v2 = vadd.f32 %v1145_v61, %v923_v56  ;;  %v1563_v25 = vunpack.c.l.bf16 %v1822_v18  ;;  %v1564_v30 = vunpack.c.h.bf16 %v1822_v18 }
  0xed   : > { %v692_v27 = vadd.f32 %v1532_v22, %v691_v23  ;;  %v930_v23 = vmul.f32 %v1543_v44, %v1543_v44 }
  0xee   : > { %v1147_v6 = vadd.f32 %v1146_v2, %v924_v60  ;;  %v941_v9 = vmul.f32 %v1564_v30, %v1564_v30 }
  0xef   : > { %v693_v32 = vadd.f32 %v1535_v26, %v692_v27  ;;  %v1823_v27 = vld [vmem:[%s1916_s15 + $0x1f8] sm:$0xff]  }
  0xf0   : > { %v1148_v11 = vadd.f32 %v1147_v6, %v925_v1  ;;  %v1567_v34 = vunpack.c.l.bf16 %v1823_v27  ;;  %v1568_v39 = vunpack.c.h.bf16 %v1823_v27 }
  0xf1   : > { %v694_v36 = vadd.f32 %v1536_v31, %v693_v32  ;;  %v932_v32 = vmul.f32 %v1547_v53, %v1547_v53 }
  0xf2   : > { %v1149_v15 = vadd.f32 %v1148_v11, %v926_v5  ;;  %v943_v18 = vmul.f32 %v1568_v39, %v1568_v39 }
  0xf3   : > { %v695_v41 = vadd.f32 %v1539_v35, %v694_v36  ;;  %v1824_v36 = vld [vmem:[%s1916_s15 + $0x200] sm:$0xff]  }
  0xf4   : > { %v1150_v20 = vadd.f32 %v1149_v15, %v927_v10  ;;  %v1571_v43 = vunpack.c.l.bf16 %v1824_v36  ;;  %v1572_v48 = vunpack.c.h.bf16 %v1824_v36 }
  0xf5   : > { %v696_v45 = vadd.f32 %v1540_v40, %v695_v41  ;;  %v934_v41 = vmul.f32 %v1551_v62, %v1551_v62 }
  0xf6   : > { %v1151_v24 = vadd.f32 %v1150_v20, %v928_v14  ;;  %v945_v27 = vmul.f32 %v1572_v48, %v1572_v48 }
  0xf7   : > { %v697_v50 = vadd.f32 %v1543_v44, %v696_v45  ;;  %v1825_v45 = vld [vmem:[%s1916_s15 + $0x208] sm:$0xff]  }
  0xf8   : > { %v1152_v29 = vadd.f32 %v1151_v24, %v929_v19  ;;  %v1575_v52 = vunpack.c.l.bf16 %v1825_v45  ;;  %v1576_v57 = vunpack.c.h.bf16 %v1825_v45 }
  0xf9   : > { %v698_v54 = vadd.f32 %v1544_v49, %v697_v50  ;;  %v936_v50 = vmul.f32 %v1555_v7, %v1555_v7 }
  0xfa   : > { %v1153_v33 = vadd.f32 %v1152_v29, %v930_v23  ;;  %v947_v36 = vmul.f32 %v1576_v57, %v1576_v57 }
  0xfb   : > { %v699_v59 = vadd.f32 %v1547_v53, %v698_v54  ;;  %v1826_v54 = vld [vmem:[%s1916_s15 + $0x210] sm:$0xff]  }
  0xfc   : > { %v1154_v38 = vadd.f32 %v1153_v33, %v931_v28  ;;  %v1579_v61 = vunpack.c.l.bf16 %v1826_v54  ;;  %v1580_v2 = vunpack.c.h.bf16 %v1826_v54 }
  0xfd   : > { %v700_v63 = vadd.f32 %v1548_v58, %v699_v59  ;;  %v938_v59 = vmul.f32 %v1559_v16, %v1559_v16 }
  0xfe   : > { %v1155_v42 = vadd.f32 %v1154_v38, %v932_v32  ;;  %v949_v45 = vmul.f32 %v1580_v2, %v1580_v2 }
  0xff   : > { %v701_v4 = vadd.f32 %v1551_v62, %v700_v63  ;;  %v1827_v63 = vld [vmem:[%s1916_s15 + $0x218] sm:$0xff]  }
 0x100   : > { %v1156_v47 = vadd.f32 %v1155_v42, %v933_v37  ;;  %v1583_v6 = vunpack.c.l.bf16 %v1827_v63  ;;  %v1584_v11 = vunpack.c.h.bf16 %v1827_v63 }
 0x101   : > { %v702_v8 = vadd.f32 %v1552_v3, %v701_v4  ;;  %v940_v4 = vmul.f32 %v1563_v25, %v1563_v25 }
 0x102   : > { %v1157_v51 = vadd.f32 %v1156_v47, %v934_v41  ;;  %v951_v54 = vmul.f32 %v1584_v11, %v1584_v11 }
 0x103   : > { %v703_v13 = vadd.f32 %v1555_v7, %v702_v8  ;;  %v1828_v8 = vld [vmem:[%s1916_s15 + $0x220] sm:$0xff]  }
 0x104   : > { %v1158_v56 = vadd.f32 %v1157_v51, %v935_v46  ;;  %v1587_v15 = vunpack.c.l.bf16 %v1828_v8  ;;  %v1588_v20 = vunpack.c.h.bf16 %v1828_v8 }
 0x105   : > { %v704_v17 = vadd.f32 %v1556_v12, %v703_v13  ;;  %v942_v13 = vmul.f32 %v1567_v34, %v1567_v34 }
 0x106   : > { %v1159_v60 = vadd.f32 %v1158_v56, %v936_v50  ;;  %v953_v63 = vmul.f32 %v1588_v20, %v1588_v20 }
 0x107   : > { %v705_v22 = vadd.f32 %v1559_v16, %v704_v17  ;;  %v1829_v17 = vld [vmem:[%s1916_s15 + $0x228] sm:$0xff]  }
 0x108   : > { %v1160_v1 = vadd.f32 %v1159_v60, %v937_v55  ;;  %v1591_v24 = vunpack.c.l.bf16 %v1829_v17  ;;  %v1592_v29 = vunpack.c.h.bf16 %v1829_v17 }
 0x109   : > { %v706_v26 = vadd.f32 %v1560_v21, %v705_v22  ;;  %v944_v22 = vmul.f32 %v1571_v43, %v1571_v43 }
 0x10a   : > { %v1161_v5 = vadd.f32 %v1160_v1, %v938_v59  ;;  %v955_v8 = vmul.f32 %v1592_v29, %v1592_v29 }
 0x10b   : > { %v707_v31 = vadd.f32 %v1563_v25, %v706_v26  ;;  %v1830_v26 = vld [vmem:[%s1916_s15 + $0x230] sm:$0xff]  }
 0x10c   : > { %v1162_v10 = vadd.f32 %v1161_v5, %v939_v0  ;;  %v1595_v33 = vunpack.c.l.bf16 %v1830_v26  ;;  %v1596_v38 = vunpack.c.h.bf16 %v1830_v26 }
 0x10d   : > { %v708_v35 = vadd.f32 %v1564_v30, %v707_v31  ;;  %v946_v31 = vmul.f32 %v1575_v52, %v1575_v52 }
 0x10e   : > { %v1163_v14 = vadd.f32 %v1162_v10, %v940_v4  ;;  %v957_v17 = vmul.f32 %v1596_v38, %v1596_v38 }
 0x10f   : > { %v709_v40 = vadd.f32 %v1567_v34, %v708_v35  ;;  %v1831_v35 = vld [vmem:[%s1916_s15 + $0x238] sm:$0xff]  }
 0x110   : > { %v1164_v19 = vadd.f32 %v1163_v14, %v941_v9  ;;  %v1599_v42 = vunpack.c.l.bf16 %v1831_v35  ;;  %v1600_v47 = vunpack.c.h.bf16 %v1831_v35 }
 0x111   : > { %v710_v44 = vadd.f32 %v1568_v39, %v709_v40  ;;  %v948_v40 = vmul.f32 %v1579_v61, %v1579_v61 }
 0x112   : > { %v1165_v23 = vadd.f32 %v1164_v19, %v942_v13  ;;  %v959_v26 = vmul.f32 %v1600_v47, %v1600_v47 }
 0x113   : > { %v711_v49 = vadd.f32 %v1571_v43, %v710_v44  ;;  %v1832_v44 = vld [vmem:[%s1916_s15 + $0x240] sm:$0xff]  }
 0x114   : > { %v1166_v28 = vadd.f32 %v1165_v23, %v943_v18  ;;  %v1603_v51 = vunpack.c.l.bf16 %v1832_v44  ;;  %v1604_v56 = vunpack.c.h.bf16 %v1832_v44 }
 0x115   : > { %v712_v53 = vadd.f32 %v1572_v48, %v711_v49  ;;  %v950_v49 = vmul.f32 %v1583_v6, %v1583_v6 }
 0x116   : > { %v1167_v32 = vadd.f32 %v1166_v28, %v944_v22  ;;  %v961_v35 = vmul.f32 %v1604_v56, %v1604_v56 }
 0x117   : > { %v713_v58 = vadd.f32 %v1575_v52, %v712_v53  ;;  %v1833_v53 = vld [vmem:[%s1916_s15 + $0x248] sm:$0xff]  }
 0x118   : > { %v1168_v37 = vadd.f32 %v1167_v32, %v945_v27  ;;  %v1607_v60 = vunpack.c.l.bf16 %v1833_v53  ;;  %v1608_v1 = vunpack.c.h.bf16 %v1833_v53 }
 0x119   : > { %v714_v62 = vadd.f32 %v1576_v57, %v713_v58  ;;  %v952_v58 = vmul.f32 %v1587_v15, %v1587_v15 }
 0x11a   : > { %v1169_v41 = vadd.f32 %v1168_v37, %v946_v31  ;;  %v963_v44 = vmul.f32 %v1608_v1, %v1608_v1 }
 0x11b   : > { %v715_v3 = vadd.f32 %v1579_v61, %v714_v62  ;;  %v1834_v62 = vld [vmem:[%s1916_s15 + $0x250] sm:$0xff]  }
 0x11c   : > { %v1170_v46 = vadd.f32 %v1169_v41, %v947_v36  ;;  %v1611_v5 = vunpack.c.l.bf16 %v1834_v62  ;;  %v1612_v10 = vunpack.c.h.bf16 %v1834_v62 }
 0x11d   : > { %v716_v7 = vadd.f32 %v1580_v2, %v715_v3  ;;  %v954_v3 = vmul.f32 %v1591_v24, %v1591_v24 }
 0x11e   : > { %v1171_v50 = vadd.f32 %v1170_v46, %v948_v40  ;;  %v965_v53 = vmul.f32 %v1612_v10, %v1612_v10 }
 0x11f   : > { %v717_v12 = vadd.f32 %v1583_v6, %v716_v7  ;;  %v1835_v7 = vld [vmem:[%s1916_s15 + $0x258] sm:$0xff]  }
 0x120   : > { %v1172_v55 = vadd.f32 %v1171_v50, %v949_v45  ;;  %v1615_v14 = vunpack.c.l.bf16 %v1835_v7  ;;  %v1616_v19 = vunpack.c.h.bf16 %v1835_v7 }
 0x121   : > { %v718_v16 = vadd.f32 %v1584_v11, %v717_v12  ;;  %v956_v12 = vmul.f32 %v1595_v33, %v1595_v33 }
 0x122   : > { %v1173_v59 = vadd.f32 %v1172_v55, %v950_v49  ;;  %v967_v62 = vmul.f32 %v1616_v19, %v1616_v19 }
 0x123   : > { %v719_v21 = vadd.f32 %v1587_v15, %v718_v16  ;;  %v1836_v16 = vld [vmem:[%s1916_s15 + $0x260] sm:$0xff]  }
 0x124   : > { %v1174_v0 = vadd.f32 %v1173_v59, %v951_v54  ;;  %v1619_v23 = vunpack.c.l.bf16 %v1836_v16  ;;  %v1620_v28 = vunpack.c.h.bf16 %v1836_v16 }
 0x125   : > { %v720_v25 = vadd.f32 %v1588_v20, %v719_v21  ;;  %v958_v21 = vmul.f32 %v1599_v42, %v1599_v42 }
 0x126   : > { %v1175_v4 = vadd.f32 %v1174_v0, %v952_v58  ;;  %v969_v7 = vmul.f32 %v1620_v28, %v1620_v28 }
 0x127   : > { %v721_v30 = vadd.f32 %v1591_v24, %v720_v25  ;;  %v1837_v25 = vld [vmem:[%s1916_s15 + $0x268] sm:$0xff]  }
 0x128   : > { %v1176_v9 = vadd.f32 %v1175_v4, %v953_v63  ;;  %v1623_v32 = vunpack.c.l.bf16 %v1837_v25  ;;  %v1624_v37 = vunpack.c.h.bf16 %v1837_v25 }
 0x129   : > { %v722_v34 = vadd.f32 %v1592_v29, %v721_v30  ;;  %v960_v30 = vmul.f32 %v1603_v51, %v1603_v51 }
 0x12a   : > { %v1177_v13 = vadd.f32 %v1176_v9, %v954_v3  ;;  %v971_v16 = vmul.f32 %v1624_v37, %v1624_v37 }
 0x12b   : > { %v723_v39 = vadd.f32 %v1595_v33, %v722_v34  ;;  %v1838_v34 = vld [vmem:[%s1916_s15 + $0x270] sm:$0xff]  }
 0x12c   : > { %v1178_v18 = vadd.f32 %v1177_v13, %v955_v8  ;;  %v1627_v41 = vunpack.c.l.bf16 %v1838_v34  ;;  %v1628_v46 = vunpack.c.h.bf16 %v1838_v34 }
 0x12d   : > { %v724_v43 = vadd.f32 %v1596_v38, %v723_v39  ;;  %v962_v39 = vmul.f32 %v1607_v60, %v1607_v60 }
 0x12e   : > { %v1179_v22 = vadd.f32 %v1178_v18, %v956_v12  ;;  %v973_v25 = vmul.f32 %v1628_v46, %v1628_v46 }
 0x12f   : > { %v725_v48 = vadd.f32 %v1599_v42, %v724_v43  ;;  %v1839_v43 = vld [vmem:[%s1916_s15 + $0x278] sm:$0xff]  }
 0x130   : > { %v1180_v27 = vadd.f32 %v1179_v22, %v957_v17  ;;  %v1631_v50 = vunpack.c.l.bf16 %v1839_v43  ;;  %v1632_v55 = vunpack.c.h.bf16 %v1839_v43 }
 0x131   : > { %v726_v52 = vadd.f32 %v1600_v47, %v725_v48  ;;  %v964_v48 = vmul.f32 %v1611_v5, %v1611_v5 }
 0x132   : > { %v1181_v31 = vadd.f32 %v1180_v27, %v958_v21  ;;  %v975_v34 = vmul.f32 %v1632_v55, %v1632_v55 }
 0x133   : > { %v727_v57 = vadd.f32 %v1603_v51, %v726_v52  ;;  %v1840_v52 = vld [vmem:[%s1916_s15 + $0x280] sm:$0xff]  }
 0x134   : > { %v1182_v36 = vadd.f32 %v1181_v31, %v959_v26  ;;  %v1635_v59 = vunpack.c.l.bf16 %v1840_v52  ;;  %v1636_v0 = vunpack.c.h.bf16 %v1840_v52 }
 0x135   : > { %v728_v61 = vadd.f32 %v1604_v56, %v727_v57  ;;  %v966_v57 = vmul.f32 %v1615_v14, %v1615_v14 }
 0x136   : > { %v1183_v40 = vadd.f32 %v1182_v36, %v960_v30  ;;  %v977_v43 = vmul.f32 %v1636_v0, %v1636_v0 }
 0x137   : > { %v729_v2 = vadd.f32 %v1607_v60, %v728_v61  ;;  %v1841_v61 = vld [vmem:[%s1916_s15 + $0x288] sm:$0xff]  }
 0x138   : > { %v1184_v45 = vadd.f32 %v1183_v40, %v961_v35  ;;  %v1639_v4 = vunpack.c.l.bf16 %v1841_v61  ;;  %v1640_v9 = vunpack.c.h.bf16 %v1841_v61 }
 0x139   : > { %v730_v6 = vadd.f32 %v1608_v1, %v729_v2  ;;  %v968_v2 = vmul.f32 %v1619_v23, %v1619_v23 }
 0x13a   : > { %v1185_v49 = vadd.f32 %v1184_v45, %v962_v39  ;;  %v979_v52 = vmul.f32 %v1640_v9, %v1640_v9 }
 0x13b   : > { %v731_v11 = vadd.f32 %v1611_v5, %v730_v6  ;;  %v1842_v6 = vld [vmem:[%s1916_s15 + $0x290] sm:$0xff]  }
 0x13c   : > { %v1186_v54 = vadd.f32 %v1185_v49, %v963_v44  ;;  %v1643_v13 = vunpack.c.l.bf16 %v1842_v6  ;;  %v1644_v18 = vunpack.c.h.bf16 %v1842_v6 }
 0x13d   : > { %v732_v15 = vadd.f32 %v1612_v10, %v731_v11  ;;  %v970_v11 = vmul.f32 %v1623_v32, %v1623_v32 }
 0x13e   : > { %v1187_v58 = vadd.f32 %v1186_v54, %v964_v48  ;;  %v981_v61 = vmul.f32 %v1644_v18, %v1644_v18 }
 0x13f   : > { %v733_v20 = vadd.f32 %v1615_v14, %v732_v15  ;;  %v1843_v15 = vld [vmem:[%s1916_s15 + $0x298] sm:$0xff]  }
 0x140   : > { %v1188_v63 = vadd.f32 %v1187_v58, %v965_v53  ;;  %v1647_v22 = vunpack.c.l.bf16 %v1843_v15  ;;  %v1648_v27 = vunpack.c.h.bf16 %v1843_v15 }
 0x141   : > { %v734_v24 = vadd.f32 %v1616_v19, %v733_v20  ;;  %v972_v20 = vmul.f32 %v1627_v41, %v1627_v41 }
 0x142   : > { %v1189_v3 = vadd.f32 %v1188_v63, %v966_v57  ;;  %v983_v6 = vmul.f32 %v1648_v27, %v1648_v27 }
 0x143   : > { %v735_v29 = vadd.f32 %v1619_v23, %v734_v24  ;;  %v1844_v24 = vld [vmem:[%s1916_s15 + $0x2a0] sm:$0xff]  }
 0x144   : > { %v1190_v8 = vadd.f32 %v1189_v3, %v967_v62  ;;  %v1651_v31 = vunpack.c.l.bf16 %v1844_v24  ;;  %v1652_v36 = vunpack.c.h.bf16 %v1844_v24 }
 0x145   : > { %v736_v33 = vadd.f32 %v1620_v28, %v735_v29  ;;  %v974_v29 = vmul.f32 %v1631_v50, %v1631_v50 }
 0x146   : > { %v1191_v12 = vadd.f32 %v1190_v8, %v968_v2  ;;  %v985_v15 = vmul.f32 %v1652_v36, %v1652_v36 }
 0x147   : > { %v737_v38 = vadd.f32 %v1623_v32, %v736_v33  ;;  %v1845_v33 = vld [vmem:[%s1916_s15 + $0x2a8] sm:$0xff]  }
 0x148   : > { %v1192_v17 = vadd.f32 %v1191_v12, %v969_v7  ;;  %v1655_v40 = vunpack.c.l.bf16 %v1845_v33  ;;  %v1656_v45 = vunpack.c.h.bf16 %v1845_v33 }
 0x149   : > { %v738_v42 = vadd.f32 %v1624_v37, %v737_v38  ;;  %v976_v38 = vmul.f32 %v1635_v59, %v1635_v59 }
 0x14a   : > { %v1193_v21 = vadd.f32 %v1192_v17, %v970_v11  ;;  %v987_v24 = vmul.f32 %v1656_v45, %v1656_v45 }
 0x14b   : > { %v739_v47 = vadd.f32 %v1627_v41, %v738_v42  ;;  %v1846_v42 = vld [vmem:[%s1916_s15 + $0x2b0] sm:$0xff]  }
 0x14c   : > { %v1194_v26 = vadd.f32 %v1193_v21, %v971_v16  ;;  %v1659_v49 = vunpack.c.l.bf16 %v1846_v42  ;;  %v1660_v54 = vunpack.c.h.bf16 %v1846_v42 }
 0x14d   : > { %v740_v51 = vadd.f32 %v1628_v46, %v739_v47  ;;  %v978_v47 = vmul.f32 %v1639_v4, %v1639_v4 }
 0x14e   : > { %v1195_v30 = vadd.f32 %v1194_v26, %v972_v20  ;;  %v989_v33 = vmul.f32 %v1660_v54, %v1660_v54 }
 0x14f   : > { %v741_v56 = vadd.f32 %v1631_v50, %v740_v51  ;;  %v1847_v51 = vld [vmem:[%s1916_s15 + $0x2b8] sm:$0xff]  }
 0x150   : > { %v1196_v35 = vadd.f32 %v1195_v30, %v973_v25  ;;  %v1663_v58 = vunpack.c.l.bf16 %v1847_v51  ;;  %v1664_v63 = vunpack.c.h.bf16 %v1847_v51 }
 0x151   : > { %v742_v60 = vadd.f32 %v1632_v55, %v741_v56  ;;  %v980_v56 = vmul.f32 %v1643_v13, %v1643_v13 }
 0x152   : > { %v1197_v39 = vadd.f32 %v1196_v35, %v974_v29  ;;  %v991_v42 = vmul.f32 %v1664_v63, %v1664_v63 }
 0x153   : > { %v743_v1 = vadd.f32 %v1635_v59, %v742_v60  ;;  %v1848_v60 = vld [vmem:[%s1916_s15 + $0x2c0] sm:$0xff]  }
 0x154   : > { %v1198_v44 = vadd.f32 %v1197_v39, %v975_v34  ;;  %v1667_v3 = vunpack.c.l.bf16 %v1848_v60  ;;  %v1668_v8 = vunpack.c.h.bf16 %v1848_v60 }
 0x155   : > { %v744_v5 = vadd.f32 %v1636_v0, %v743_v1  ;;  %v982_v1 = vmul.f32 %v1647_v22, %v1647_v22 }
 0x156   : > { %v1199_v48 = vadd.f32 %v1198_v44, %v976_v38  ;;  %v993_v51 = vmul.f32 %v1668_v8, %v1668_v8 }
 0x157   : > { %v745_v10 = vadd.f32 %v1639_v4, %v744_v5  ;;  %v1849_v5 = vld [vmem:[%s1916_s15 + $0x2c8] sm:$0xff]  }
 0x158   : > { %v1200_v53 = vadd.f32 %v1199_v48, %v977_v43  ;;  %v1671_v12 = vunpack.c.l.bf16 %v1849_v5  ;;  %v1672_v17 = vunpack.c.h.bf16 %v1849_v5 }
 0x159   : > { %v746_v14 = vadd.f32 %v1640_v9, %v745_v10  ;;  %v984_v10 = vmul.f32 %v1651_v31, %v1651_v31 }
 0x15a   : > { %v1201_v57 = vadd.f32 %v1200_v53, %v978_v47  ;;  %v995_v60 = vmul.f32 %v1672_v17, %v1672_v17 }
 0x15b   : > { %v747_v19 = vadd.f32 %v1643_v13, %v746_v14  ;;  %v1850_v14 = vld [vmem:[%s1916_s15 + $0x2d0] sm:$0xff]  }
 0x15c   : > { %v1202_v62 = vadd.f32 %v1201_v57, %v979_v52  ;;  %v1675_v21 = vunpack.c.l.bf16 %v1850_v14  ;;  %v1676_v26 = vunpack.c.h.bf16 %v1850_v14 }
 0x15d   : > { %v748_v23 = vadd.f32 %v1644_v18, %v747_v19  ;;  %v986_v19 = vmul.f32 %v1655_v40, %v1655_v40 }
 0x15e   : > { %v1203_v2 = vadd.f32 %v1202_v62, %v980_v56  ;;  %v997_v5 = vmul.f32 %v1676_v26, %v1676_v26 }
 0x15f   : > { %v749_v28 = vadd.f32 %v1647_v22, %v748_v23  ;;  %v1851_v23 = vld [vmem:[%s1916_s15 + $0x2d8] sm:$0xff]  }
 0x160   : > { %v1204_v7 = vadd.f32 %v1203_v2, %v981_v61  ;;  %v1679_v30 = vunpack.c.l.bf16 %v1851_v23  ;;  %v1680_v35 = vunpack.c.h.bf16 %v1851_v23 }
 0x161   : > { %v750_v32 = vadd.f32 %v1648_v27, %v749_v28  ;;  %v988_v28 = vmul.f32 %v1659_v49, %v1659_v49 }
 0x162   : > { %v1205_v11 = vadd.f32 %v1204_v7, %v982_v1  ;;  %v999_v14 = vmul.f32 %v1680_v35, %v1680_v35 }
 0x163   : > { %v751_v37 = vadd.f32 %v1651_v31, %v750_v32  ;;  %v1852_v32 = vld [vmem:[%s1916_s15 + $0x2e0] sm:$0xff]  }
 0x164   : > { %v1206_v16 = vadd.f32 %v1205_v11, %v983_v6  ;;  %v1683_v39 = vunpack.c.l.bf16 %v1852_v32  ;;  %v1684_v44 = vunpack.c.h.bf16 %v1852_v32 }
 0x165   : > { %v752_v41 = vadd.f32 %v1652_v36, %v751_v37  ;;  %v990_v37 = vmul.f32 %v1663_v58, %v1663_v58 }
 0x166   : > { %v1207_v20 = vadd.f32 %v1206_v16, %v984_v10  ;;  %v1001_v23 = vmul.f32 %v1684_v44, %v1684_v44 }
 0x167   : > { %v753_v46 = vadd.f32 %v1655_v40, %v752_v41  ;;  %v1853_v41 = vld [vmem:[%s1916_s15 + $0x2e8] sm:$0xff]  }
 0x168   : > { %v1208_v25 = vadd.f32 %v1207_v20, %v985_v15  ;;  %v1687_v48 = vunpack.c.l.bf16 %v1853_v41  ;;  %v1688_v53 = vunpack.c.h.bf16 %v1853_v41 }
 0x169   : > { %v754_v50 = vadd.f32 %v1656_v45, %v753_v46  ;;  %v992_v46 = vmul.f32 %v1667_v3, %v1667_v3 }
 0x16a   : > { %v1209_v29 = vadd.f32 %v1208_v25, %v986_v19  ;;  %v1003_v32 = vmul.f32 %v1688_v53, %v1688_v53 }
 0x16b   : > { %v755_v55 = vadd.f32 %v1659_v49, %v754_v50  ;;  %v1854_v50 = vld [vmem:[%s1916_s15 + $0x2f0] sm:$0xff]  }
 0x16c   : > { %v1210_v34 = vadd.f32 %v1209_v29, %v987_v24  ;;  %v1691_v57 = vunpack.c.l.bf16 %v1854_v50  ;;  %v1692_v62 = vunpack.c.h.bf16 %v1854_v50 }
 0x16d   : > { %v756_v59 = vadd.f32 %v1660_v54, %v755_v55  ;;  %v994_v55 = vmul.f32 %v1671_v12, %v1671_v12 }
 0x16e   : > { %v1211_v38 = vadd.f32 %v1210_v34, %v988_v28  ;;  %v1005_v41 = vmul.f32 %v1692_v62, %v1692_v62 }
 0x16f   : > { %v757_v0 = vadd.f32 %v1663_v58, %v756_v59  ;;  %v1855_v59 = vld [vmem:[%s1916_s15 + $0x2f8] sm:$0xff]  }
 0x170   : > { %v1212_v43 = vadd.f32 %v1211_v38, %v989_v33  ;;  %v1695_v2 = vunpack.c.l.bf16 %v1855_v59  ;;  %v1696_v7 = vunpack.c.h.bf16 %v1855_v59 }
 0x171   : > { %v758_v4 = vadd.f32 %v1664_v63, %v757_v0  ;;  %v996_v0 = vmul.f32 %v1675_v21, %v1675_v21 }
 0x172   : > { %v1213_v47 = vadd.f32 %v1212_v43, %v990_v37  ;;  %v1007_v50 = vmul.f32 %v1696_v7, %v1696_v7 }
 0x173   : > { %v759_v9 = vadd.f32 %v1667_v3, %v758_v4  ;;  %v1856_v4 = vld [vmem:[%s1916_s15 + $0x300] sm:$0xff]  }
 0x174   : > { %v1214_v52 = vadd.f32 %v1213_v47, %v991_v42  ;;  %v1699_v11 = vunpack.c.l.bf16 %v1856_v4  ;;  %v1700_v16 = vunpack.c.h.bf16 %v1856_v4 }
 0x175   : > { %v760_v13 = vadd.f32 %v1668_v8, %v759_v9  ;;  %v998_v9 = vmul.f32 %v1679_v30, %v1679_v30 }
 0x176   : > { %v1215_v56 = vadd.f32 %v1214_v52, %v992_v46  ;;  %v1009_v59 = vmul.f32 %v1700_v16, %v1700_v16 }
 0x177   : > { %v761_v18 = vadd.f32 %v1671_v12, %v760_v13  ;;  %v1857_v13 = vld [vmem:[%s1916_s15 + $0x308] sm:$0xff]  }
 0x178   : > { %v1216_v61 = vadd.f32 %v1215_v56, %v993_v51  ;;  %v1703_v20 = vunpack.c.l.bf16 %v1857_v13  ;;  %v1704_v25 = vunpack.c.h.bf16 %v1857_v13 }
 0x179   : > { %v762_v22 = vadd.f32 %v1672_v17, %v761_v18  ;;  %v1000_v18 = vmul.f32 %v1683_v39, %v1683_v39 }
 0x17a   : > { %v1217_v1 = vadd.f32 %v1216_v61, %v994_v55  ;;  %v1011_v4 = vmul.f32 %v1704_v25, %v1704_v25 }
 0x17b   : > { %v763_v27 = vadd.f32 %v1675_v21, %v762_v22  ;;  %v1858_v22 = vld [vmem:[%s1916_s15 + $0x310] sm:$0xff]  }
 0x17c   : > { %v1218_v6 = vadd.f32 %v1217_v1, %v995_v60  ;;  %v1707_v29 = vunpack.c.l.bf16 %v1858_v22  ;;  %v1708_v34 = vunpack.c.h.bf16 %v1858_v22 }
 0x17d   : > { %v764_v31 = vadd.f32 %v1676_v26, %v763_v27  ;;  %v1002_v27 = vmul.f32 %v1687_v48, %v1687_v48 }
 0x17e   : > { %v1219_v10 = vadd.f32 %v1218_v6, %v996_v0  ;;  %v1013_v13 = vmul.f32 %v1708_v34, %v1708_v34 }
 0x17f   : > { %v765_v36 = vadd.f32 %v1679_v30, %v764_v31  ;;  %v1859_v31 = vld [vmem:[%s1916_s15 + $0x318] sm:$0xff]  }
 0x180   : > { %v1220_v15 = vadd.f32 %v1219_v10, %v997_v5  ;;  %v1711_v38 = vunpack.c.l.bf16 %v1859_v31  ;;  %v1712_v43 = vunpack.c.h.bf16 %v1859_v31 }
 0x181   : > { %v766_v40 = vadd.f32 %v1680_v35, %v765_v36  ;;  %v1004_v36 = vmul.f32 %v1691_v57, %v1691_v57 }
 0x182   : > { %v1221_v19 = vadd.f32 %v1220_v15, %v998_v9  ;;  %v1015_v22 = vmul.f32 %v1712_v43, %v1712_v43 }
 0x183   : > { %v767_v45 = vadd.f32 %v1683_v39, %v766_v40  ;;  %v1860_v40 = vld [vmem:[%s1916_s15 + $0x320] sm:$0xff]  }
 0x184   : > { %v1222_v24 = vadd.f32 %v1221_v19, %v999_v14  ;;  %v1715_v47 = vunpack.c.l.bf16 %v1860_v40  ;;  %v1716_v52 = vunpack.c.h.bf16 %v1860_v40 }
 0x185   : > { %v768_v49 = vadd.f32 %v1684_v44, %v767_v45  ;;  %v1006_v45 = vmul.f32 %v1695_v2, %v1695_v2 }
 0x186   : > { %v1223_v28 = vadd.f32 %v1222_v24, %v1000_v18  ;;  %v1017_v31 = vmul.f32 %v1716_v52, %v1716_v52 }
 0x187   : > { %v769_v54 = vadd.f32 %v1687_v48, %v768_v49  ;;  %v1861_v49 = vld [vmem:[%s1916_s15 + $0x328] sm:$0xff]  }
 0x188   : > { %v1224_v33 = vadd.f32 %v1223_v28, %v1001_v23  ;;  %v1719_v56 = vunpack.c.l.bf16 %v1861_v49  ;;  %v1720_v61 = vunpack.c.h.bf16 %v1861_v49 }
 0x189   : > { %v770_v58 = vadd.f32 %v1688_v53, %v769_v54  ;;  %v1008_v54 = vmul.f32 %v1699_v11, %v1699_v11 }
 0x18a   : > { %v1225_v37 = vadd.f32 %v1224_v33, %v1002_v27  ;;  %v1019_v40 = vmul.f32 %v1720_v61, %v1720_v61 }
 0x18b   : > { %v771_v63 = vadd.f32 %v1691_v57, %v770_v58  ;;  %v1862_v58 = vld [vmem:[%s1916_s15 + $0x330] sm:$0xff]  }
 0x18c   : > { %v1226_v42 = vadd.f32 %v1225_v37, %v1003_v32  ;;  %v1723_v1 = vunpack.c.l.bf16 %v1862_v58  ;;  %v1724_v6 = vunpack.c.h.bf16 %v1862_v58 }
 0x18d   : > { %v772_v3 = vadd.f32 %v1692_v62, %v771_v63  ;;  %v1010_v63 = vmul.f32 %v1703_v20, %v1703_v20 }
 0x18e   : > { %v1227_v46 = vadd.f32 %v1226_v42, %v1004_v36  ;;  %v1021_v49 = vmul.f32 %v1724_v6, %v1724_v6 }
 0x18f   : > { %v773_v8 = vadd.f32 %v1695_v2, %v772_v3  ;;  %v1863_v3 = vld [vmem:[%s1916_s15 + $0x338] sm:$0xff]  }
 0x190   : > { %v1228_v51 = vadd.f32 %v1227_v46, %v1005_v41  ;;  %v1727_v10 = vunpack.c.l.bf16 %v1863_v3  ;;  %v1728_v15 = vunpack.c.h.bf16 %v1863_v3 }
 0x191   : > { %v774_v12 = vadd.f32 %v1696_v7, %v773_v8  ;;  %v1012_v8 = vmul.f32 %v1707_v29, %v1707_v29 }
 0x192   : > { %v1229_v55 = vadd.f32 %v1228_v51, %v1006_v45  ;;  %v1023_v58 = vmul.f32 %v1728_v15, %v1728_v15 }
 0x193   : > { %v775_v17 = vadd.f32 %v1699_v11, %v774_v12  ;;  %v1864_v12 = vld [vmem:[%s1916_s15 + $0x340] sm:$0xff]  }
 0x194   : > { %v1230_v60 = vadd.f32 %v1229_v55, %v1007_v50  ;;  %v1731_v19 = vunpack.c.l.bf16 %v1864_v12  ;;  %v1732_v24 = vunpack.c.h.bf16 %v1864_v12 }
 0x195   : > { %v776_v21 = vadd.f32 %v1700_v16, %v775_v17  ;;  %v1014_v17 = vmul.f32 %v1711_v38, %v1711_v38 }
 0x196   : > { %v1231_v0 = vadd.f32 %v1230_v60, %v1008_v54  ;;  %v1025_v3 = vmul.f32 %v1732_v24, %v1732_v24 }
 0x197   : > { %v777_v26 = vadd.f32 %v1703_v20, %v776_v21  ;;  %v1865_v21 = vld [vmem:[%s1916_s15 + $0x348] sm:$0xff]  }
 0x198   : > { %v1232_v5 = vadd.f32 %v1231_v0, %v1009_v59  ;;  %v1735_v28 = vunpack.c.l.bf16 %v1865_v21  ;;  %v1736_v33 = vunpack.c.h.bf16 %v1865_v21 }
 0x199   : > { %v778_v30 = vadd.f32 %v1704_v25, %v777_v26  ;;  %v1016_v26 = vmul.f32 %v1715_v47, %v1715_v47 }
 0x19a   : > { %v1233_v9 = vadd.f32 %v1232_v5, %v1010_v63  ;;  %v1027_v12 = vmul.f32 %v1736_v33, %v1736_v33 }
 0x19b   : > { %v779_v35 = vadd.f32 %v1707_v29, %v778_v30  ;;  %v1866_v30 = vld [vmem:[%s1916_s15 + $0x350] sm:$0xff]  }
 0x19c   : > { %v1234_v14 = vadd.f32 %v1233_v9, %v1011_v4  ;;  %v1739_v37 = vunpack.c.l.bf16 %v1866_v30  ;;  %v1740_v42 = vunpack.c.h.bf16 %v1866_v30 }
 0x19d   : > { %v780_v39 = vadd.f32 %v1708_v34, %v779_v35  ;;  %v1018_v35 = vmul.f32 %v1719_v56, %v1719_v56 }
 0x19e   : > { %v1235_v18 = vadd.f32 %v1234_v14, %v1012_v8 }
 0x19f   : > { %v781_v44 = vadd.f32 %v1711_v38, %v780_v39  ;;  %v1867_v39 = vld [vmem:[%s1916_s15 + $0x358] sm:$0xff]  }
 0x1a0   : > { %v1236_v23 = vadd.f32 %v1235_v18, %v1013_v13  ;;  %v1743_v46 = vunpack.c.l.bf16 %v1867_v39  ;;  %v1744_v51 = vunpack.c.h.bf16 %v1867_v39 }
 0x1a1   : > { %v782_v48 = vadd.f32 %v1712_v43, %v781_v44  ;;  %v1020_v44 = vmul.f32 %v1723_v1, %v1723_v1 }
 0x1a2   : > { %v1237_v27 = vadd.f32 %v1236_v23, %v1014_v17 }
 0x1a3   : > { %v783_v53 = vadd.f32 %v1715_v47, %v782_v48  ;;  %v1868_v48 = vld [vmem:[%s1916_s15 + $0x360] sm:$0xff]  }
 0x1a4   : > { %v1238_v32 = vadd.f32 %v1237_v27, %v1015_v22  ;;  %v1747_v55 = vunpack.c.l.bf16 %v1868_v48  ;;  %v1748_v60 = vunpack.c.h.bf16 %v1868_v48  ;;  %v1031_v27 = vmul.f32 %v1744_v51, %v1744_v51 }
 0x1a5   : > { %v784_v57 = vadd.f32 %v1716_v52, %v783_v53  ;;  %v1022_v53 = vmul.f32 %v1727_v10, %v1727_v10 }
 0x1a6   : > { %v1239_v36 = vadd.f32 %v1238_v32, %v1016_v26  ;;  %v1032_v30 = vmul.f32 %v1747_v55, %v1747_v55 }
 0x1a7   : > { %v785_v62 = vadd.f32 %v1719_v56, %v784_v57  ;;  %v1869_v57 = vld [vmem:[%s1916_s15 + $0x368] sm:$0xff]  }
 0x1a8   : > { %v1240_v41 = vadd.f32 %v1239_v36, %v1017_v31  ;;  %v1751_v0 = vunpack.c.l.bf16 %v1869_v57  ;;  %v1752_v5 = vunpack.c.h.bf16 %v1869_v57 }
 0x1a9   : > { %v786_v2 = vadd.f32 %v1720_v61, %v785_v62  ;;  %v1024_v62 = vmul.f32 %v1731_v19, %v1731_v19 }
 0x1aa   : > { %v1241_v45 = vadd.f32 %v1240_v41, %v1018_v35  ;;  %v1034_v36 = vmul.f32 %v1751_v0, %v1751_v0  ;;  %v1035_v39 = vmul.f32 %v1752_v5, %v1752_v5 }
 0x1ab   : > { %v787_v7 = vadd.f32 %v1723_v1, %v786_v2  ;;  %v1870_v2 = vld [vmem:[%s1916_s15 + $0x370] sm:$0xff]  }
 0x1ac   : > { %v1242_v50 = vadd.f32 %v1241_v45, %v1019_v40  ;;  %v1755_v9 = vunpack.c.l.bf16 %v1870_v2  ;;  %v1756_v14 = vunpack.c.h.bf16 %v1870_v2 }
 0x1ad   : > { %v788_v11 = vadd.f32 %v1724_v6, %v787_v7  ;;  %v1026_v7 = vmul.f32 %v1735_v28, %v1735_v28 }
 0x1ae   : > { %v1243_v54 = vadd.f32 %v1242_v50, %v1020_v44 }
 0x1af   : > { %v789_v16 = vadd.f32 %v1727_v10, %v788_v11  ;;  %v1871_v11 = vld [vmem:[%s1916_s15 + $0x378] sm:$0xff]  }
 0x1b0   : > { %v1244_v59 = vadd.f32 %v1243_v54, %v1021_v49  ;;  %v1759_v18 = vunpack.c.l.bf16 %v1871_v11  ;;  %v1760_v22 = vunpack.c.h.bf16 %v1871_v11 }
 0x1b1   : > { %v790_v20 = vadd.f32 %v1728_v15, %v789_v16  ;;  %v1028_v16 = vmul.f32 %v1739_v37, %v1739_v37 }
 0x1b2   : > { %v1245_v63 = vadd.f32 %v1244_v59, %v1022_v53  ;;  %v1038_v49 = vmul.f32 %v1759_v18, %v1759_v18 }
 0x1b3   : > { %v791_v25 = vadd.f32 %v1731_v19, %v790_v20  ;;  %v1029_v20 = vmul.f32 %v1740_v42, %v1740_v42 }
 0x1b4   : > { %v1246_v4 = vadd.f32 %v1245_v63, %v1023_v58 }
 0x1b5   : > { %v792_v29 = vadd.f32 %v1732_v24, %v791_v25  ;;  %v1030_v24 = vmul.f32 %v1743_v46, %v1743_v46 }
 0x1b6   : > { %v1247_v8 = vadd.f32 %v1246_v4, %v1024_v62 }
 0x1b7   : > { %v793_v34 = vadd.f32 %v1735_v28, %v792_v29 }
 0x1b8   : > { %v1248_v13 = vadd.f32 %v1247_v8, %v1025_v3 }
 0x1b9   : > { %v794_v38 = vadd.f32 %v1736_v33, %v793_v34  ;;  %v1033_v33 = vmul.f32 %v1748_v60, %v1748_v60 }
 0x1ba   : > { %v1249_v17 = vadd.f32 %v1248_v13, %v1026_v7 }
 0x1bb   : > { %v795_v43 = vadd.f32 %v1739_v37, %v794_v38 }
 0x1bc   : > { %v1250_v21 = vadd.f32 %v1249_v17, %v1027_v12 }
 0x1bd   : > { %v796_v47 = vadd.f32 %v1740_v42, %v795_v43  ;;  %v583_v42 = vld [vmem:[%s2052_s1] sm:$0x1]  ;;  %v1036_v43 = vmul.f32 %v1755_v9, %v1755_v9 }
 0x1be   : > { %v1251_v25 = vadd.f32 %v1250_v21, %v1028_v16 }
 0x1bf   : > { %v797_v52 = vadd.f32 %v1743_v46, %v796_v47  ;;  %v1037_v46 = vmul.f32 %v1756_v14, %v1756_v14 }
 0x1c0   : > { %v1252_v28 = vadd.f32 %v1251_v25, %v1029_v20 }
 0x1c1   : > { %v798_v56 = vadd.f32 %v1744_v51, %v797_v52  ;;  %v1039_v51 = vmul.f32 %v1760_v22, %v1760_v22 }
 0x1c2   : > { %v1253_v31 = vadd.f32 %v1252_v28, %v1030_v24 }
 0x1c3   : > { %v799_v61 = vadd.f32 %v1747_v55, %v798_v56 }
 0x1c4   : > { %v1254_v34 = vadd.f32 %v1253_v31, %v1031_v27 }
 0x1c5   : > { %v800_v1 = vadd.f32 %v1748_v60, %v799_v61  ;;  %v815_v60 = vld [vmem:[%s2053_s2] sm:$0x1] }
 0x1c6   : > { %v1255_v37 = vadd.f32 %v1254_v34, %v1032_v30 }
 0x1c7   : > { %v801_v6 = vadd.f32 %v1751_v0, %v800_v1 }
 0x1c8   : > { %v1256_v40 = vadd.f32 %v1255_v37, %v1033_v33 }
 0x1c9   : > { %v802_v10 = vadd.f32 %v1752_v5, %v801_v6 }
 0x1ca   : > { %v1257_v44 = vadd.f32 %v1256_v40, %v1034_v36 }
 0x1cb   : > { %v803_v15 = vadd.f32 %v1755_v9, %v802_v10 }
 0x1cc   : > { %v1258_v47 = vadd.f32 %v1257_v44, %v1035_v39 }
 0x1cd   : > { %v804_v19 = vadd.f32 %v1756_v14, %v803_v15 }
 0x1ce   : > { %v1259_v50 = vadd.f32 %v1258_v47, %v1036_v43 }
 0x1cf   : > { %v805_v23 = vadd.f32 %v1759_v18, %v804_v19 }
 0x1d0   : > { %v1260_v52 = vadd.f32 %v1259_v50, %v1037_v46 }
 0x1d1   : > { %v806_v26 = vadd.f32 %v1760_v22, %v805_v23 }
 0x1d2   : > { %v1261_v53 = vadd.f32 %v1260_v52, %v1038_v49 }
 0x1d3   : > { %v807_v29 = vrot.slane %v806_v26, 4 }
 0x1d4   : > { %v1262_v54 = vadd.f32 %v1261_v53, %v1039_v51 }
 0x1d5   : > { %v808_v32 = vadd.f32 %v807_v29, %v806_v26 }
 0x1d6   : > { %v1263_v55 = vrot.slane %v1262_v54, 4 }
 0x1d7   : > { %v809_v35 = vrot.slane %v808_v32, 2 }
 0x1d8   : > { %v1264_v56 = vadd.f32 %v1263_v55, %v1262_v54 }
 0x1d9   : > { %v810_v38 = vadd.f32 %v809_v35, %v808_v32 }
 0x1da   : > { %v1265_v57 = vrot.slane %v1264_v56, 2 }
 0x1db   : > { %v811_v41 = vrot.slane %v810_v38, 1 }
 0x1dc   : > { %v1266_v58 = vadd.f32 %v1265_v57, %v1264_v56 }
 0x1dd   : > { %v812_v45 = vadd.f32 %v811_v41, %v810_v38 }
 0x1de   : > { %v1267_v59 = vrot.slane %v1266_v58, 1 }
 0x1df   : > { %v813_v48 = vadd.f32 %v812_v45, %v583_v42 }
 0x1e0   : > { %v1268_v61 = vadd.f32 %v1267_v59, %v1266_v58 }
 0x1e1   : > { %814 = vst [vmem:[%s2052_s1] sm:$0x1] %v813_v48 }
 0x1e2   : > { %v1269_v62 = vadd.f32 %v1268_v61, %v815_v60 }
 0x1e4   : > { %1270 = vst [vmem:[%s2053_s2] sm:$0x1] %v1269_v62 }
 0x1e5 PF: > { %s13_s9 = sadd.s32 1, %s1887_s9  }
 0x1e6   : > { %p10_p5 = scmp.ge.s32.totalorder %s13_s9, 9  }
 0x1e8   :  { %12 = sbr.rel (!%p10_p5) target bundleno = 1 (0x1), region = 62 }

// kernel: squeeze.4
= control target key start
LH: loop header
LB: loop body
LE: loop exit
PB: predicated region body
PF: predicated region fallthrough
CT: control target
= control target key end

     0   :  { %vm8_vm0 = vcmask 523264   ;;  %s42_s0 = inlined_call_operand.vmem [shape: f32[128], index: 0, kind: input, shape index: {}]   ;;  %s43_s1 = inlined_call_operand.vmem [shape: f32[2,64], index: 1, kind: output, shape index: {}]  }
   0x1   :  { %v5_v0 = vld [vmem:[%s42_s0] sm:$0x1]  ;;  %s25_s0 = smov 64  }
   0x2   :  { %6 = vst [vmem:[#allocation1] sm:$0x1] %v5_v0 }
   0x9   :  { %v10_v1 = vld [vmem:[#allocation1] sm:$0x1]  }
   0xa   :  { %v7_v2 = vld [vmem:[#allocation1] sm:$0x1]   ;;  %11 = vrot.lane.b32.xlu0 %v10_v1, %s25_s0 }
   0xb   :  { %9 = vst.msk [vmem:[#allocation0] sm:$0x1] %vm8_vm0, %v7_v2  }
  0x7c   :  { %v12_v3 = vpop.permute.xlu0 %11  }
  0x7d   :  { %15 = vst.msk [vmem:[#allocation0 + $0x1] sm:$0x1] %vm8_vm0, %v12_v3  }
  0x84   :  { %v20_v4 = vld [vmem:[#allocation0] sm:$0x3] }
  0x85   :  { %23 = vst [vmem:[%s43_s1] sm:$0x3] %v20_v4 }

// kernel: input_layer.5
= control target key start
LH: loop header
LB: loop body
LE: loop exit
PB: predicated region body
PF: predicated region fallthrough
CT: control target
= control target key end

     0   :  { %s5524_s21 = smov 0   ;;  %s6537_s0 = inlined_call_operand.vmem [shape: bf16[12544,128], index: 0, kind: input, shape index: {}]   ;;  %s6538_s1 = inlined_call_operand.vmem [shape: f32[1,128], index: 1, kind: input, shape index: {}]   ;;  %s6539_s2 = inlined_call_operand.vmem [shape: f32[1,128], index: 2, kind: input, shape index: {}]   ;;  %s6540_s3 = inlined_call_operand.vmem [shape: f32[1,128], index: 3, kind: input, shape index: {}]   ;;  %s6541_s4 = inlined_call_operand.vmem [shape: bf16[12544,128], index: 4, kind: output, shape index: {0}]   ;;  %s6542_s5 = inlined_call_operand.vmem [shape: f32[7,1,128], index: 5, kind: output, shape index: {1}]   ;;  %s6543_s6 = inlined_call_operand.vmem [shape: f32[7,1,128], index: 6, kind: output, shape index: {2}]  }
   0x1 LB: > { %s5530_s22 = sadd.s32 4294967295, %s5487_s21   ;;  %p3775_p0 = scmp.ge.s32.totalorder %s5487_s21, 1  ;;  %s5487_s21 = sphi %s5524_s21, %s17_s21  }
   0x2   : > { %p218_p1 = scmp.lt.s32.totalorder %s5487_s21, 8 }
   0x4   : > { %p219_p2 = pnand %p3775_p0, %p218_p1 }
   0x5   : > { %s254_s23 = smul.u32 (!%p219_p2), 224, %s5530_s22  ;;  %p266_p4 = scmp.lt.s32.totalorder (!%p219_p2), %s5530_s22, 6 }
   0x6   : > { %222 = sbr.rel (%p219_p2) target bundleno = 565 (0x235), region = 36 }
   0x7   : > { %p255_p3 = scmp.lt.s32.totalorder (!%p219_p2), %s254_s23, 1567 }
   0xb   : > { %s6545_s23 = smov (!%p255_p3, %s254_s23), 1567  ;;  %v5548_v0 = vld [vmem:[%s6538_s1] ss:$0 sm:$0xff]  ;;  %s6547_s22 = smov (!%p266_p4, %s5530_s22), 6 }
   0xc   : > { %s3776_s24 = sshll.u32 %s6545_s23, 2  ;;  %v5557_v9 = vld [vmem:[%s6539_s2] ss:$0 sm:$0xff]  ;;  %s268_s18 = scalar_lea.vmem %s6542_s5, %s6547_s22 }
   0xd   : > { %s5543_s27 = scalar_lea.vmem %s6537_s0, %s3776_s24  ;;  %v5566_v18 = vld [vmem:[%s6540_s3] ss:$0 sm:$0xff]  ;;  %s5589_s12 = scalar_lea.vmem %s6541_s4, %s3776_s24 }
   0xe   : > { %v4232_v1 = vld [vmem:[%s5543_s27] sm:$0xff]   ;;  %v5239_v2 = vld [vmem:[%s5543_s27 + $0x8] sm:$0xff]   ;;  %v5240_v3 = vld [vmem:[%s5543_s27 + $0x10] sm:$0xff]   ;;  %s271_s20 = scalar_lea.vmem %s6543_s6, %s6547_s22 }
   0xf   : > { %v4233_v4 = vunpack.c.l.bf16 %v4232_v1  ;;  %v4234_v5 = vunpack.c.h.bf16 %v4232_v1  ;;  %v4237_v6 = vunpack.c.l.bf16 %v5239_v2  ;;  %v4238_v7 = vunpack.c.h.bf16 %v5239_v2  ;;  %v5241_v8 = vld [vmem:[%s5543_s27 + $0x18] sm:$0xff]   ;;  %v5242_v52 = vld [vmem:[%s5543_s27 + $0x20] sm:$0xff]   ;;  %v5243_v57 = vld [vmem:[%s5543_s27 + $0x28] sm:$0xff]  }
  0x10   : > { %v4241_v10 = vunpack.c.l.bf16 %v5240_v3  ;;  %v4242_v11 = vunpack.c.h.bf16 %v5240_v3  ;;  %v4245_v12 = vunpack.c.l.bf16 %v5241_v8  ;;  %v4246_v13 = vunpack.c.h.bf16 %v5241_v8 }
  0x11   : > { %v727_v14 = vmul.f32 %v4233_v4, %v5548_v0  ;;  %v728_v15 = vmul.f32 %v4234_v5, %v5548_v0  ;;  %v729_v16 = vmul.f32 %v4237_v6, %v5548_v0  ;;  %v730_v17 = vmul.f32 %v4238_v7, %v5548_v0  ;;  %v5244_v6 = vld [vmem:[%s5543_s27 + $0x30] sm:$0xff]  }
  0x12   : > { %v731_v19 = vmul.f32 %v4241_v10, %v5548_v0  ;;  %v732_v20 = vmul.f32 %v4242_v11, %v5548_v0  ;;  %v733_v21 = vmul.f32 %v4245_v12, %v5548_v0  ;;  %v734_v22 = vmul.f32 %v4246_v13, %v5548_v0 }
  0x13   : > { %v958_v23 = vadd.f32 %v5557_v9, %v727_v14  ;;  %v959_v24 = vadd.f32 %v5557_v9, %v728_v15  ;;  %v960_v25 = vadd.f32 %v5557_v9, %v729_v16  ;;  %v961_v26 = vadd.f32 %v5557_v9, %v730_v17 }
  0x14   : > { %v962_v27 = vadd.f32 %v5557_v9, %v731_v19  ;;  %v963_v28 = vadd.f32 %v5557_v9, %v732_v20  ;;  %v964_v29 = vadd.f32 %v5557_v9, %v733_v21  ;;  %v965_v30 = vadd.f32 %v5557_v9, %v734_v22 }
  0x15   : > { %vm1182_vm0 = vcmp.ge.f32.partialorder %v958_v23, 0.0  ;;  %vm1183_vm1 = vcmp.ge.f32.partialorder %v959_v24, 0.0  ;;  %v1413_v31 = vmul.f32 %v5566_v18, %v958_v23  ;;  %v1414_v32 = vmul.f32 %v5566_v18, %v959_v24 }
  0x16   : > { %vm1184_vm2 = vcmp.ge.f32.partialorder %v960_v25, 0.0  ;;  %vm1185_vm3 = vcmp.ge.f32.partialorder %v961_v26, 0.0  ;;  %v1415_v33 = vmul.f32 %v5566_v18, %v960_v25  ;;  %v1416_v34 = vmul.f32 %v5566_v18, %v961_v26 }
  0x17   : > { %v1637_v35 = vsel %vm1182_vm0, %v958_v23, %v1413_v31  ;;  %v1638_v36 = vsel %vm1183_vm1, %v959_v24, %v1414_v32  ;;  %vm1186_vm4 = vcmp.ge.f32.partialorder %v962_v27, 0.0  ;;  %vm1187_vm5 = vcmp.ge.f32.partialorder %v963_v28, 0.0 }
  0x18   : > { %v4682_v37 = vpack.c.bf16 %v1638_v36, %v1637_v35  ;;  %v2981_v38 = vadd.f32 %v1638_v36, %v1637_v35  ;;  %v3211_v39 = vmul.f32 %v1637_v35, %v1637_v35  ;;  %v3212_v40 = vmul.f32 %v1638_v36, %v1638_v36 }
  0x19   : > { %v1639_v41 = vsel %vm1184_vm2, %v960_v25, %v1415_v33  ;;  %v1640_v42 = vsel %vm1185_vm3, %v961_v26, %v1416_v34  ;;  %v1417_v43 = vmul.f32 %v5566_v18, %v962_v27  ;;  %v1418_v44 = vmul.f32 %v5566_v18, %v963_v28 }
  0x1a   : > { %4683 = vst [vmem:[%s5589_s12] sm:$0xff] %v4682_v37   ;;  %v3435_v45 = vadd.f32 %v3212_v40, %v3211_v39  ;;  %v4687_v46 = vpack.c.bf16 %v1640_v42, %v1639_v41  ;;  %v2982_v47 = vadd.f32 %v2981_v38, %v1639_v41  ;;  %v3213_v48 = vmul.f32 %v1639_v41, %v1639_v41 }
  0x1b   : > { %v3214_v49 = vmul.f32 %v1640_v42, %v1640_v42  ;;  %v1641_v50 = vsel %vm1186_vm4, %v962_v27, %v1417_v43  ;;  %v1642_v51 = vsel %vm1187_vm5, %v963_v28, %v1418_v44  ;;  %vm1188_vm6 = vcmp.ge.f32.partialorder %v964_v29, 0.0 }
  0x1c   : > { %5350 = vst [vmem:[%s5589_s12 + $0x8] sm:$0xff] %v4687_v46   ;;  %v2983_v53 = vadd.f32 %v2982_v47, %v1640_v42  ;;  %v3436_v54 = vadd.f32 %v3435_v45, %v3213_v48  ;;  %v4692_v55 = vpack.c.bf16 %v1642_v51, %v1641_v50  ;;  %v3215_v56 = vmul.f32 %v1641_v50, %v1641_v50  ;;  %v5245_v45 = vld [vmem:[%s5543_s27 + $0x38] sm:$0xff]  }
  0x1d   : > { %v3216_v58 = vmul.f32 %v1642_v51, %v1642_v51  ;;  %vm1189_vm7 = vcmp.ge.f32.partialorder %v965_v30, 0.0  ;;  %v1419_v59 = vmul.f32 %v5566_v18, %v964_v29  ;;  %v1420_v60 = vmul.f32 %v5566_v18, %v965_v30 }
  0x1e   : > { %v3437_v61 = vadd.f32 %v3436_v54, %v3214_v49  ;;  %5351 = vst [vmem:[%s5589_s12 + $0x10] sm:$0xff] %v4692_v55   ;;  %v2984_v62 = vadd.f32 %v2983_v53, %v1641_v50  ;;  %v4249_v63 = vunpack.c.l.bf16 %v5242_v52  ;;  %v4250_v1 = vunpack.c.h.bf16 %v5242_v52  ;;  %v5246_v50 = vld [vmem:[%s5543_s27 + $0x40] sm:$0xff]  }
  0x1f   : > { %v1643_v2 = vsel %vm1188_vm6, %v964_v29, %v1419_v59  ;;  %v1644_v3 = vsel %vm1189_vm7, %v965_v30, %v1420_v60  ;;  %v4253_v4 = vunpack.c.l.bf16 %v5243_v57  ;;  %v4254_v5 = vunpack.c.h.bf16 %v5243_v57 }
  0x20   : > { %v2985_v7 = vadd.f32 %v2984_v62, %v1642_v51  ;;  %v3438_v8 = vadd.f32 %v3437_v61, %v3215_v56  ;;  %v4697_v10 = vpack.c.bf16 %v1644_v3, %v1643_v2  ;;  %v3217_v11 = vmul.f32 %v1643_v2, %v1643_v2 }
  0x21   : > { %v3218_v12 = vmul.f32 %v1644_v3, %v1644_v3  ;;  %v735_v13 = vmul.f32 %v4249_v63, %v5548_v0  ;;  %v736_v14 = vmul.f32 %v4250_v1, %v5548_v0  ;;  %v737_v15 = vmul.f32 %v4253_v4, %v5548_v0 }
  0x22   : > { %v3439_v16 = vadd.f32 %v3438_v8, %v3216_v58  ;;  %5352 = vst [vmem:[%s5589_s12 + $0x18] sm:$0xff] %v4697_v10   ;;  %v2986_v17 = vadd.f32 %v2985_v7, %v1643_v2  ;;  %v738_v19 = vmul.f32 %v4254_v5, %v5548_v0  ;;  %v4257_v20 = vunpack.c.l.bf16 %v5244_v6  ;;  %v5247_v2 = vld [vmem:[%s5543_s27 + $0x48] sm:$0xff]  }
  0x23   : > { %v966_v21 = vadd.f32 %v5557_v9, %v735_v13  ;;  %v967_v22 = vadd.f32 %v5557_v9, %v736_v14  ;;  %v968_v23 = vadd.f32 %v5557_v9, %v737_v15  ;;  %v4258_v24 = vunpack.c.h.bf16 %v5244_v6 }
  0x24   : > { %v2987_v25 = vadd.f32 %v2986_v17, %v1644_v3  ;;  %v3440_v26 = vadd.f32 %v3439_v16, %v3217_v11  ;;  %v969_v27 = vadd.f32 %v5557_v9, %v738_v19  ;;  %v739_v28 = vmul.f32 %v4257_v20, %v5548_v0 }
  0x25   : > { %vm1190_vm8 = vcmp.ge.f32.partialorder %v966_v21, 0.0  ;;  %vm1191_vm9 = vcmp.ge.f32.partialorder %v967_v22, 0.0  ;;  %v1421_v29 = vmul.f32 %v5566_v18, %v966_v21  ;;  %v1422_v30 = vmul.f32 %v5566_v18, %v967_v22 }
  0x26   : > { %v3441_v31 = vadd.f32 %v3440_v26, %v3218_v12  ;;  %vm1192_vm10 = vcmp.ge.f32.partialorder %v968_v23, 0.0  ;;  %vm1193_vm11 = vcmp.ge.f32.partialorder %v969_v27, 0.0  ;;  %v1423_v32 = vmul.f32 %v5566_v18, %v968_v23 }
  0x27   : > { %v1645_v33 = vsel %vm1190_vm8, %v966_v21, %v1421_v29  ;;  %v1646_v34 = vsel %vm1191_vm9, %v967_v22, %v1422_v30  ;;  %v1424_v35 = vmul.f32 %v5566_v18, %v969_v27  ;;  %v740_v36 = vmul.f32 %v4258_v24, %v5548_v0 }
  0x28   : > { %v4702_v37 = vpack.c.bf16 %v1646_v34, %v1645_v33  ;;  %v2988_v38 = vadd.f32 %v2987_v25, %v1645_v33  ;;  %v3219_v39 = vmul.f32 %v1645_v33, %v1645_v33  ;;  %v3220_v40 = vmul.f32 %v1646_v34, %v1646_v34 }
  0x29   : > { %v1647_v41 = vsel %vm1192_vm10, %v968_v23, %v1423_v32  ;;  %v1648_v42 = vsel %vm1193_vm11, %v969_v27, %v1424_v35  ;;  %v970_v43 = vadd.f32 %v5557_v9, %v739_v28  ;;  %v971_v44 = vadd.f32 %v5557_v9, %v740_v36 }
  0x2a   : > { %5353 = vst [vmem:[%s5589_s12 + $0x20] sm:$0xff] %v4702_v37   ;;  %v2989_v46 = vadd.f32 %v2988_v38, %v1646_v34  ;;  %v3442_v47 = vadd.f32 %v3441_v31, %v3219_v39  ;;  %v4707_v48 = vpack.c.bf16 %v1648_v42, %v1647_v41  ;;  %v3221_v49 = vmul.f32 %v1647_v41, %v1647_v41  ;;  %v5248_v37 = vld [vmem:[%s5543_s27 + $0x50] sm:$0xff]  }
  0x2b   : > { %v3222_v51 = vmul.f32 %v1648_v42, %v1648_v42  ;;  %vm1194_vm12 = vcmp.ge.f32.partialorder %v970_v43, 0.0  ;;  %vm1195_vm13 = vcmp.ge.f32.partialorder %v971_v44, 0.0  ;;  %v1425_v52 = vmul.f32 %v5566_v18, %v970_v43 }
  0x2c   : > { %v3443_v53 = vadd.f32 %v3442_v47, %v3220_v40  ;;  %5354 = vst [vmem:[%s5589_s12 + $0x28] sm:$0xff] %v4707_v48   ;;  %v2990_v54 = vadd.f32 %v2989_v46, %v1647_v41  ;;  %v1426_v55 = vmul.f32 %v5566_v18, %v971_v44  ;;  %v4261_v56 = vunpack.c.l.bf16 %v5245_v45 }
  0x2d   : > { %v1649_v57 = vsel %vm1194_vm12, %v970_v43, %v1425_v52  ;;  %v4262_v58 = vunpack.c.h.bf16 %v5245_v45  ;;  %v4265_v59 = vunpack.c.l.bf16 %v5246_v50  ;;  %v4266_v60 = vunpack.c.h.bf16 %v5246_v50 }
  0x2e   : > { %v2991_v61 = vadd.f32 %v2990_v54, %v1648_v42  ;;  %v3444_v62 = vadd.f32 %v3443_v53, %v3221_v49  ;;  %v1650_v63 = vsel %vm1195_vm13, %v971_v44, %v1426_v55  ;;  %v3223_v1 = vmul.f32 %v1649_v57, %v1649_v57  ;;  %v5249_v42 = vld [vmem:[%s5543_s27 + $0x58] sm:$0xff]  }
  0x2f   : > { %v4712_v3 = vpack.c.bf16 %v1650_v63, %v1649_v57  ;;  %v3224_v4 = vmul.f32 %v1650_v63, %v1650_v63  ;;  %v741_v5 = vmul.f32 %v4261_v56, %v5548_v0  ;;  %v742_v6 = vmul.f32 %v4262_v58, %v5548_v0 }
  0x30   : > { %v3445_v7 = vadd.f32 %v3444_v62, %v3222_v51  ;;  %v2992_v8 = vadd.f32 %v2991_v61, %v1649_v57  ;;  %v743_v10 = vmul.f32 %v4265_v59, %v5548_v0  ;;  %v744_v11 = vmul.f32 %v4266_v60, %v5548_v0  ;;  %v5250_v61 = vld [vmem:[%s5543_s27 + $0x60] sm:$0xff]  }
  0x31   : > { %5355 = vst [vmem:[%s5589_s12 + $0x30] sm:$0xff] %v4712_v3   ;;  %v972_v12 = vadd.f32 %v5557_v9, %v741_v5  ;;  %v973_v13 = vadd.f32 %v5557_v9, %v742_v6  ;;  %v4269_v14 = vunpack.c.l.bf16 %v5247_v2  ;;  %v4270_v15 = vunpack.c.h.bf16 %v5247_v2 }
  0x32   : > { %v2993_v16 = vadd.f32 %v2992_v8, %v1650_v63  ;;  %v3446_v17 = vadd.f32 %v3445_v7, %v3223_v1  ;;  %v974_v19 = vadd.f32 %v5557_v9, %v743_v10  ;;  %v975_v20 = vadd.f32 %v5557_v9, %v744_v11 }
  0x33   : > { %vm1196_vm14 = vcmp.ge.f32.partialorder %v972_v12, 0.0  ;;  %vm1197_vm15 = vcmp.ge.f32.partialorder %v973_v13, 0.0  ;;  %v1427_v21 = vmul.f32 %v5566_v18, %v972_v12  ;;  %v1428_v22 = vmul.f32 %v5566_v18, %v973_v13 }
  0x34   : > { %v3447_v23 = vadd.f32 %v3446_v17, %v3224_v4  ;;  %vm1198_vm0 = vcmp.ge.f32.partialorder %v974_v19, 0.0  ;;  %vm1199_vm1 = vcmp.ge.f32.partialorder %v975_v20, 0.0  ;;  %v1429_v24 = vmul.f32 %v5566_v18, %v974_v19 }
  0x35   : > { %v1651_v25 = vsel %vm1196_vm14, %v972_v12, %v1427_v21  ;;  %v1652_v26 = vsel %vm1197_vm15, %v973_v13, %v1428_v22  ;;  %v1430_v27 = vmul.f32 %v5566_v18, %v975_v20  ;;  %v745_v28 = vmul.f32 %v4269_v14, %v5548_v0 }
  0x36   : > { %v4717_v29 = vpack.c.bf16 %v1652_v26, %v1651_v25  ;;  %v2994_v30 = vadd.f32 %v2993_v16, %v1651_v25  ;;  %v3225_v31 = vmul.f32 %v1651_v25, %v1651_v25  ;;  %v3226_v32 = vmul.f32 %v1652_v26, %v1652_v26 }
  0x37   : > { %v1653_v33 = vsel %vm1198_vm0, %v974_v19, %v1429_v24  ;;  %v1654_v34 = vsel %vm1199_vm1, %v975_v20, %v1430_v27  ;;  %v746_v35 = vmul.f32 %v4270_v15, %v5548_v0  ;;  %v976_v36 = vadd.f32 %v5557_v9, %v745_v28 }
  0x38   : > { %5356 = vst [vmem:[%s5589_s12 + $0x38] sm:$0xff] %v4717_v29   ;;  %v2995_v38 = vadd.f32 %v2994_v30, %v1652_v26  ;;  %v3448_v39 = vadd.f32 %v3447_v23, %v3225_v31  ;;  %v4722_v40 = vpack.c.bf16 %v1654_v34, %v1653_v33  ;;  %v3227_v41 = vmul.f32 %v1653_v33, %v1653_v33  ;;  %v5251_v26 = vld [vmem:[%s5543_s27 + $0x68] sm:$0xff]  }
  0x39   : > { %v3228_v43 = vmul.f32 %v1654_v34, %v1654_v34  ;;  %v977_v44 = vadd.f32 %v5557_v9, %v746_v35  ;;  %vm1200_vm2 = vcmp.ge.f32.partialorder %v976_v36, 0.0  ;;  %v1431_v45 = vmul.f32 %v5566_v18, %v976_v36 }
  0x3a   : > { %v3449_v46 = vadd.f32 %v3448_v39, %v3226_v32  ;;  %5357 = vst [vmem:[%s5589_s12 + $0x40] sm:$0xff] %v4722_v40   ;;  %v2996_v47 = vadd.f32 %v2995_v38, %v1653_v33  ;;  %v4273_v48 = vunpack.c.l.bf16 %v5248_v37  ;;  %v4274_v49 = vunpack.c.h.bf16 %v5248_v37 }
  0x3b   : > { %vm1201_vm3 = vcmp.ge.f32.partialorder %v977_v44, 0.0  ;;  %v1432_v50 = vmul.f32 %v5566_v18, %v977_v44  ;;  %v1655_v51 = vsel %vm1200_vm2, %v976_v36, %v1431_v45  ;;  %v4277_v52 = vunpack.c.l.bf16 %v5249_v42 }
  0x3c   : > { %v2997_v53 = vadd.f32 %v2996_v47, %v1654_v34  ;;  %v3450_v54 = vadd.f32 %v3449_v46, %v3227_v41  ;;  %v3229_v55 = vmul.f32 %v1655_v51, %v1655_v51  ;;  %v747_v56 = vmul.f32 %v4273_v48, %v5548_v0  ;;  %v5252_v41 = vld [vmem:[%s5543_s27 + $0x70] sm:$0xff]  }
  0x3d   : > { %v1656_v57 = vsel %vm1201_vm3, %v977_v44, %v1432_v50  ;;  %v748_v58 = vmul.f32 %v4274_v49, %v5548_v0  ;;  %v4278_v59 = vunpack.c.h.bf16 %v5249_v42  ;;  %v749_v60 = vmul.f32 %v4277_v52, %v5548_v0 }
  0x3e   : > { %v3451_v62 = vadd.f32 %v3450_v54, %v3228_v43  ;;  %v4727_v63 = vpack.c.bf16 %v1656_v57, %v1655_v51  ;;  %v2998_v1 = vadd.f32 %v2997_v53, %v1655_v51  ;;  %v3230_v2 = vmul.f32 %v1656_v57, %v1656_v57  ;;  %v5253_v53 = vld [vmem:[%s5543_s27 + $0x78] sm:$0xff]  }
  0x3f   : > { %v978_v3 = vadd.f32 %v5557_v9, %v747_v56  ;;  %v979_v4 = vadd.f32 %v5557_v9, %v748_v58  ;;  %v750_v5 = vmul.f32 %v4278_v59, %v5548_v0  ;;  %v980_v6 = vadd.f32 %v5557_v9, %v749_v60 }
  0x40   : > { %5358 = vst [vmem:[%s5589_s12 + $0x48] sm:$0xff] %v4727_v63   ;;  %v2999_v7 = vadd.f32 %v2998_v1, %v1656_v57  ;;  %v3452_v8 = vadd.f32 %v3451_v62, %v3229_v55  ;;  %v4281_v10 = vunpack.c.l.bf16 %v5250_v61  ;;  %v4282_v11 = vunpack.c.h.bf16 %v5250_v61 }
  0x41   : > { %vm1202_vm4 = vcmp.ge.f32.partialorder %v978_v3, 0.0  ;;  %vm1203_vm5 = vcmp.ge.f32.partialorder %v979_v4, 0.0  ;;  %v1433_v12 = vmul.f32 %v5566_v18, %v978_v3  ;;  %v1434_v13 = vmul.f32 %v5566_v18, %v979_v4 }
  0x42   : > { %v3453_v14 = vadd.f32 %v3452_v8, %v3230_v2  ;;  %v981_v15 = vadd.f32 %v5557_v9, %v750_v5  ;;  %vm1204_vm6 = vcmp.ge.f32.partialorder %v980_v6, 0.0  ;;  %v1435_v16 = vmul.f32 %v5566_v18, %v980_v6 }
  0x43   : > { %v1657_v17 = vsel %vm1202_vm4, %v978_v3, %v1433_v12  ;;  %v1658_v19 = vsel %vm1203_vm5, %v979_v4, %v1434_v13  ;;  %v751_v20 = vmul.f32 %v4281_v10, %v5548_v0  ;;  %v752_v21 = vmul.f32 %v4282_v11, %v5548_v0  ;;  %v5254_v3 = vld [vmem:[%s5543_s27 + $0x80] sm:$0xff]  }
  0x44   : > { %v4732_v22 = vpack.c.bf16 %v1658_v19, %v1657_v17  ;;  %v3000_v23 = vadd.f32 %v2999_v7, %v1657_v17  ;;  %v3231_v24 = vmul.f32 %v1657_v17, %v1657_v17  ;;  %v3232_v25 = vmul.f32 %v1658_v19, %v1658_v19 }
  0x45   : > { %vm1205_vm7 = vcmp.ge.f32.partialorder %v981_v15, 0.0  ;;  %v1436_v27 = vmul.f32 %v5566_v18, %v981_v15  ;;  %v1659_v28 = vsel %vm1204_vm6, %v980_v6, %v1435_v16  ;;  %v982_v29 = vadd.f32 %v5557_v9, %v751_v20 }
  0x46   : > { %5359 = vst [vmem:[%s5589_s12 + $0x50] sm:$0xff] %v4732_v22   ;;  %v3001_v30 = vadd.f32 %v3000_v23, %v1658_v19  ;;  %v3454_v31 = vadd.f32 %v3453_v14, %v3231_v24  ;;  %v3233_v32 = vmul.f32 %v1659_v28, %v1659_v28  ;;  %v983_v33 = vadd.f32 %v5557_v9, %v752_v21 }
  0x47   : > { %v1660_v34 = vsel %vm1205_vm7, %v981_v15, %v1436_v27  ;;  %vm1206_vm8 = vcmp.ge.f32.partialorder %v982_v29, 0.0  ;;  %v1437_v35 = vmul.f32 %v5566_v18, %v982_v29  ;;  %v4285_v36 = vunpack.c.l.bf16 %v5251_v26 }
  0x48   : > { %v3455_v37 = vadd.f32 %v3454_v31, %v3232_v25  ;;  %v4737_v38 = vpack.c.bf16 %v1660_v34, %v1659_v28  ;;  %v3002_v39 = vadd.f32 %v3001_v30, %v1659_v28  ;;  %v3234_v40 = vmul.f32 %v1660_v34, %v1660_v34 }
  0x49   : > { %vm1207_vm9 = vcmp.ge.f32.partialorder %v983_v33, 0.0  ;;  %v1438_v42 = vmul.f32 %v5566_v18, %v983_v33  ;;  %v1661_v43 = vsel %vm1206_vm8, %v982_v29, %v1437_v35  ;;  %v4286_v44 = vunpack.c.h.bf16 %v5251_v26 }
  0x4a   : > { %5360 = vst [vmem:[%s5589_s12 + $0x58] sm:$0xff] %v4737_v38   ;;  %v3003_v45 = vadd.f32 %v3002_v39, %v1660_v34  ;;  %v3456_v46 = vadd.f32 %v3455_v37, %v3233_v32  ;;  %v3235_v47 = vmul.f32 %v1661_v43, %v1661_v43  ;;  %v753_v48 = vmul.f32 %v4285_v36, %v5548_v0  ;;  %v5255_v34 = vld [vmem:[%s5543_s27 + $0x88] sm:$0xff]  }
  0x4b   : > { %v1662_v49 = vsel %vm1207_vm9, %v983_v33, %v1438_v42  ;;  %v754_v50 = vmul.f32 %v4286_v44, %v5548_v0  ;;  %v4289_v51 = vunpack.c.l.bf16 %v5252_v41  ;;  %v4290_v52 = vunpack.c.h.bf16 %v5252_v41 }
  0x4c   : > { %v3457_v54 = vadd.f32 %v3456_v46, %v3234_v40  ;;  %v4742_v55 = vpack.c.bf16 %v1662_v49, %v1661_v43  ;;  %v3004_v56 = vadd.f32 %v3003_v45, %v1661_v43  ;;  %v3236_v57 = vmul.f32 %v1662_v49, %v1662_v49 }
  0x4d   : > { %v984_v58 = vadd.f32 %v5557_v9, %v753_v48  ;;  %v985_v59 = vadd.f32 %v5557_v9, %v754_v50  ;;  %v755_v60 = vmul.f32 %v4289_v51, %v5548_v0  ;;  %v756_v61 = vmul.f32 %v4290_v52, %v5548_v0 }
  0x4e   : > { %5361 = vst [vmem:[%s5589_s12 + $0x60] sm:$0xff] %v4742_v55   ;;  %v3005_v62 = vadd.f32 %v3004_v56, %v1662_v49  ;;  %v3458_v63 = vadd.f32 %v3457_v54, %v3235_v47  ;;  %v4293_v1 = vunpack.c.l.bf16 %v5253_v53  ;;  %v4294_v2 = vunpack.c.h.bf16 %v5253_v53  ;;  %v5256_v49 = vld [vmem:[%s5543_s27 + $0x90] sm:$0xff]  }
  0x4f   : > { %vm1208_vm10 = vcmp.ge.f32.partialorder %v984_v58, 0.0  ;;  %vm1209_vm11 = vcmp.ge.f32.partialorder %v985_v59, 0.0  ;;  %v1439_v4 = vmul.f32 %v5566_v18, %v984_v58  ;;  %v1440_v5 = vmul.f32 %v5566_v18, %v985_v59 }
  0x50   : > { %v3459_v6 = vadd.f32 %v3458_v63, %v3236_v57  ;;  %v986_v7 = vadd.f32 %v5557_v9, %v755_v60  ;;  %v987_v8 = vadd.f32 %v5557_v9, %v756_v61  ;;  %v757_v10 = vmul.f32 %v4293_v1, %v5548_v0 }
  0x51   : > { %v1663_v11 = vsel %vm1208_vm10, %v984_v58, %v1439_v4  ;;  %v1664_v12 = vsel %vm1209_vm11, %v985_v59, %v1440_v5  ;;  %v758_v13 = vmul.f32 %v4294_v2, %v5548_v0  ;;  %v4297_v14 = vunpack.c.l.bf16 %v5254_v3  ;;  %v5257_v5 = vld [vmem:[%s5543_s27 + $0x98] sm:$0xff]  }
  0x52   : > { %v4747_v15 = vpack.c.bf16 %v1664_v12, %v1663_v11  ;;  %v3006_v16 = vadd.f32 %v3005_v62, %v1663_v11  ;;  %v3237_v17 = vmul.f32 %v1663_v11, %v1663_v11  ;;  %v3238_v19 = vmul.f32 %v1664_v12, %v1664_v12 }
  0x53   : > { %vm1210_vm12 = vcmp.ge.f32.partialorder %v986_v7, 0.0  ;;  %vm1211_vm13 = vcmp.ge.f32.partialorder %v987_v8, 0.0  ;;  %v1441_v20 = vmul.f32 %v5566_v18, %v986_v7  ;;  %v1442_v21 = vmul.f32 %v5566_v18, %v987_v8 }
  0x54   : > { %5362 = vst [vmem:[%s5589_s12 + $0x68] sm:$0xff] %v4747_v15   ;;  %v3007_v22 = vadd.f32 %v3006_v16, %v1664_v12  ;;  %v3460_v23 = vadd.f32 %v3459_v6, %v3237_v17  ;;  %v988_v24 = vadd.f32 %v5557_v9, %v757_v10  ;;  %v989_v25 = vadd.f32 %v5557_v9, %v758_v13 }
  0x55   : > { %v1665_v26 = vsel %vm1210_vm12, %v986_v7, %v1441_v20  ;;  %v1666_v27 = vsel %vm1211_vm13, %v987_v8, %v1442_v21  ;;  %v4298_v28 = vunpack.c.h.bf16 %v5254_v3  ;;  %v759_v29 = vmul.f32 %v4297_v14, %v5548_v0 }
  0x56   : > { %v3461_v30 = vadd.f32 %v3460_v23, %v3238_v19  ;;  %v4752_v31 = vpack.c.bf16 %v1666_v27, %v1665_v26  ;;  %v3008_v32 = vadd.f32 %v3007_v22, %v1665_v26  ;;  %v3239_v33 = vmul.f32 %v1665_v26, %v1665_v26  ;;  %v5258_v26 = vld [vmem:[%s5543_s27 + $0xa0] sm:$0xff]  }
  0x57   : > { %v3240_v35 = vmul.f32 %v1666_v27, %v1666_v27  ;;  %vm1212_vm14 = vcmp.ge.f32.partialorder %v988_v24, 0.0  ;;  %vm1213_vm15 = vcmp.ge.f32.partialorder %v989_v25, 0.0  ;;  %v1443_v36 = vmul.f32 %v5566_v18, %v988_v24 }
  0x58   : > { %5363 = vst [vmem:[%s5589_s12 + $0x70] sm:$0xff] %v4752_v31   ;;  %v3009_v37 = vadd.f32 %v3008_v32, %v1666_v27  ;;  %v3462_v38 = vadd.f32 %v3461_v30, %v3239_v33  ;;  %v1444_v39 = vmul.f32 %v5566_v18, %v989_v25  ;;  %v760_v40 = vmul.f32 %v4298_v28, %v5548_v0  ;;  %v5259_v31 = vld [vmem:[%s5543_s27 + $0xa8] sm:$0xff]  }
  0x59   : > { %v1667_v41 = vsel %vm1212_vm14, %v988_v24, %v1443_v36  ;;  %v990_v42 = vadd.f32 %v5557_v9, %v759_v29  ;;  %v4301_v43 = vunpack.c.l.bf16 %v5255_v34  ;;  %v4302_v44 = vunpack.c.h.bf16 %v5255_v34 }
  0x5a   : > { %v3463_v45 = vadd.f32 %v3462_v38, %v3240_v35  ;;  %v1668_v46 = vsel %vm1213_vm15, %v989_v25, %v1444_v39  ;;  %v3010_v47 = vadd.f32 %v3009_v37, %v1667_v41  ;;  %v3241_v48 = vmul.f32 %v1667_v41, %v1667_v41 }
  0x5b   : > { %v4757_v50 = vpack.c.bf16 %v1668_v46, %v1667_v41  ;;  %v3242_v51 = vmul.f32 %v1668_v46, %v1668_v46  ;;  %v991_v52 = vadd.f32 %v5557_v9, %v760_v40  ;;  %vm1214_vm0 = vcmp.ge.f32.partialorder %v990_v42, 0.0 }
  0x5c   : > { %v3011_v53 = vadd.f32 %v3010_v47, %v1668_v46  ;;  %v3464_v54 = vadd.f32 %v3463_v45, %v3241_v48  ;;  %v1445_v55 = vmul.f32 %v5566_v18, %v990_v42  ;;  %v761_v56 = vmul.f32 %v4301_v43, %v5548_v0 }
  0x5d   : > { %5364 = vst [vmem:[%s5589_s12 + $0x78] sm:$0xff] %v4757_v50   ;;  %vm1215_vm1 = vcmp.ge.f32.partialorder %v991_v52, 0.0  ;;  %v1446_v57 = vmul.f32 %v5566_v18, %v991_v52  ;;  %v762_v58 = vmul.f32 %v4302_v44, %v5548_v0  ;;  %v4305_v59 = vunpack.c.l.bf16 %v5256_v49 }
  0x5e   : > { %v3465_v60 = vadd.f32 %v3464_v54, %v3242_v51  ;;  %v1669_v61 = vsel %vm1214_vm0, %v990_v42, %v1445_v55  ;;  %v992_v62 = vadd.f32 %v5557_v9, %v761_v56  ;;  %v4306_v63 = vunpack.c.h.bf16 %v5256_v49 }
  0x5f   : > { %v1670_v1 = vsel %vm1215_vm1, %v991_v52, %v1446_v57  ;;  %v3012_v2 = vadd.f32 %v3011_v53, %v1669_v61  ;;  %v3243_v3 = vmul.f32 %v1669_v61, %v1669_v61  ;;  %v993_v4 = vadd.f32 %v5557_v9, %v762_v58 }
  0x60   : > { %v4762_v6 = vpack.c.bf16 %v1670_v1, %v1669_v61  ;;  %v3244_v7 = vmul.f32 %v1670_v1, %v1670_v1  ;;  %vm1216_vm2 = vcmp.ge.f32.partialorder %v992_v62, 0.0  ;;  %v1447_v8 = vmul.f32 %v5566_v18, %v992_v62 }
  0x61   : > { %v3013_v10 = vadd.f32 %v3012_v2, %v1670_v1  ;;  %v3466_v11 = vadd.f32 %v3465_v60, %v3243_v3  ;;  %vm1217_vm3 = vcmp.ge.f32.partialorder %v993_v4, 0.0  ;;  %v1448_v12 = vmul.f32 %v5566_v18, %v993_v4 }
  0x62   : > { %5365 = vst [vmem:[%s5589_s12 + $0x80] sm:$0xff] %v4762_v6   ;;  %v1671_v13 = vsel %vm1216_vm2, %v992_v62, %v1447_v8  ;;  %v763_v14 = vmul.f32 %v4305_v59, %v5548_v0  ;;  %v764_v15 = vmul.f32 %v4306_v63, %v5548_v0  ;;  %v4309_v16 = vunpack.c.l.bf16 %v5257_v5 }
  0x63   : > { %v3467_v17 = vadd.f32 %v3466_v11, %v3244_v7  ;;  %v1672_v19 = vsel %vm1217_vm3, %v993_v4, %v1448_v12  ;;  %v3014_v20 = vadd.f32 %v3013_v10, %v1671_v13  ;;  %v3245_v21 = vmul.f32 %v1671_v13, %v1671_v13  ;;  %v5260_v4 = vld [vmem:[%s5543_s27 + $0xb0] sm:$0xff]  }
  0x64   : > { %v4767_v22 = vpack.c.bf16 %v1672_v19, %v1671_v13  ;;  %v3246_v23 = vmul.f32 %v1672_v19, %v1672_v19  ;;  %v994_v24 = vadd.f32 %v5557_v9, %v763_v14  ;;  %v995_v25 = vadd.f32 %v5557_v9, %v764_v15 }
  0x65   : > { %v3015_v27 = vadd.f32 %v3014_v20, %v1672_v19  ;;  %v3468_v28 = vadd.f32 %v3467_v17, %v3245_v21  ;;  %v4310_v29 = vunpack.c.h.bf16 %v5257_v5  ;;  %v765_v30 = vmul.f32 %v4309_v16, %v5548_v0  ;;  %v5261_v17 = vld [vmem:[%s5543_s27 + $0xb8] sm:$0xff]  }
  0x66   : > { %5366 = vst [vmem:[%s5589_s12 + $0x88] sm:$0xff] %v4767_v22   ;;  %vm1218_vm4 = vcmp.ge.f32.partialorder %v994_v24, 0.0  ;;  %vm1219_vm5 = vcmp.ge.f32.partialorder %v995_v25, 0.0  ;;  %v1449_v32 = vmul.f32 %v5566_v18, %v994_v24  ;;  %v1450_v33 = vmul.f32 %v5566_v18, %v995_v25 }
  0x67   : > { %v3469_v34 = vadd.f32 %v3468_v28, %v3246_v23  ;;  %v766_v35 = vmul.f32 %v4310_v29, %v5548_v0  ;;  %v996_v36 = vadd.f32 %v5557_v9, %v765_v30  ;;  %v4313_v37 = vunpack.c.l.bf16 %v5258_v26  ;;  %v5262_v23 = vld [vmem:[%s5543_s27 + $0xc0] sm:$0xff]  }
  0x68   : > { %v1673_v38 = vsel %vm1218_vm4, %v994_v24, %v1449_v32  ;;  %v1674_v39 = vsel %vm1219_vm5, %v995_v25, %v1450_v33  ;;  %v4314_v40 = vunpack.c.h.bf16 %v5258_v26  ;;  %v4317_v41 = vunpack.c.l.bf16 %v5259_v31 }
  0x69   : > { %v4772_v42 = vpack.c.bf16 %v1674_v39, %v1673_v38  ;;  %v3016_v43 = vadd.f32 %v3015_v27, %v1673_v38  ;;  %v3247_v44 = vmul.f32 %v1673_v38, %v1673_v38  ;;  %v3248_v45 = vmul.f32 %v1674_v39, %v1674_v39 }
  0x6a   : > { %v997_v46 = vadd.f32 %v5557_v9, %v766_v35  ;;  %vm1220_vm6 = vcmp.ge.f32.partialorder %v996_v36, 0.0  ;;  %v1451_v47 = vmul.f32 %v5566_v18, %v996_v36  ;;  %v767_v48 = vmul.f32 %v4313_v37, %v5548_v0 }
  0x6b   : > { %5367 = vst [vmem:[%s5589_s12 + $0x90] sm:$0xff] %v4772_v42   ;;  %v3017_v49 = vadd.f32 %v3016_v43, %v1674_v39  ;;  %v3470_v50 = vadd.f32 %v3469_v34, %v3247_v44  ;;  %v768_v51 = vmul.f32 %v4314_v40, %v5548_v0  ;;  %v4318_v52 = vunpack.c.h.bf16 %v5259_v31 }
  0x6c   : > { %vm1221_vm7 = vcmp.ge.f32.partialorder %v997_v46, 0.0  ;;  %v1452_v53 = vmul.f32 %v5566_v18, %v997_v46  ;;  %v1675_v54 = vsel %vm1220_vm6, %v996_v36, %v1451_v47  ;;  %v998_v55 = vadd.f32 %v5557_v9, %v767_v48 }
  0x6d   : > { %v3471_v56 = vadd.f32 %v3470_v50, %v3248_v45  ;;  %v3018_v57 = vadd.f32 %v3017_v49, %v1675_v54  ;;  %v3249_v58 = vmul.f32 %v1675_v54, %v1675_v54  ;;  %v999_v59 = vadd.f32 %v5557_v9, %v768_v51 }
  0x6e   : > { %v1676_v60 = vsel %vm1221_vm7, %v997_v46, %v1452_v53  ;;  %vm1222_vm8 = vcmp.ge.f32.partialorder %v998_v55, 0.0  ;;  %v1453_v61 = vmul.f32 %v5566_v18, %v998_v55  ;;  %v769_v62 = vmul.f32 %v4317_v41, %v5548_v0  ;;  %v5263_v46 = vld [vmem:[%s5543_s27 + $0xc8] sm:$0xff]  }
  0x6f   : > { %v4777_v63 = vpack.c.bf16 %v1676_v60, %v1675_v54  ;;  %v3019_v1 = vadd.f32 %v3018_v57, %v1676_v60  ;;  %v3250_v2 = vmul.f32 %v1676_v60, %v1676_v60  ;;  %v3472_v3 = vadd.f32 %v3471_v56, %v3249_v58 }
  0x70   : > { %vm1223_vm9 = vcmp.ge.f32.partialorder %v999_v59, 0.0  ;;  %v1454_v5 = vmul.f32 %v5566_v18, %v999_v59  ;;  %v1677_v6 = vsel %vm1222_vm8, %v998_v55, %v1453_v61  ;;  %v770_v7 = vmul.f32 %v4318_v52, %v5548_v0 }
  0x71   : > { %5368 = vst [vmem:[%s5589_s12 + $0x98] sm:$0xff] %v4777_v63   ;;  %v3473_v8 = vadd.f32 %v3472_v3, %v3250_v2  ;;  %v3020_v10 = vadd.f32 %v3019_v1, %v1677_v6  ;;  %v3251_v11 = vmul.f32 %v1677_v6, %v1677_v6  ;;  %v1000_v12 = vadd.f32 %v5557_v9, %v769_v62 }
  0x72   : > { %v1678_v13 = vsel %vm1223_vm9, %v999_v59, %v1454_v5  ;;  %v1001_v14 = vadd.f32 %v5557_v9, %v770_v7  ;;  %v4321_v15 = vunpack.c.l.bf16 %v5260_v4  ;;  %v4322_v16 = vunpack.c.h.bf16 %v5260_v4 }
  0x73   : > { %v4782_v19 = vpack.c.bf16 %v1678_v13, %v1677_v6  ;;  %v3021_v20 = vadd.f32 %v3020_v10, %v1678_v13  ;;  %v3252_v21 = vmul.f32 %v1678_v13, %v1678_v13  ;;  %v3474_v22 = vadd.f32 %v3473_v8, %v3251_v11  ;;  %v5264_v11 = vld [vmem:[%s5543_s27 + $0xd0] sm:$0xff]  }
  0x74   : > { %vm1224_vm10 = vcmp.ge.f32.partialorder %v1000_v12, 0.0  ;;  %vm1225_vm11 = vcmp.ge.f32.partialorder %v1001_v14, 0.0  ;;  %v1455_v24 = vmul.f32 %v5566_v18, %v1000_v12  ;;  %v1456_v25 = vmul.f32 %v5566_v18, %v1001_v14 }
  0x75   : > { %5369 = vst [vmem:[%s5589_s12 + $0xa0] sm:$0xff] %v4782_v19   ;;  %v3475_v26 = vadd.f32 %v3474_v22, %v3252_v21  ;;  %v771_v27 = vmul.f32 %v4321_v15, %v5548_v0  ;;  %v772_v28 = vmul.f32 %v4322_v16, %v5548_v0  ;;  %v4325_v29 = vunpack.c.l.bf16 %v5261_v17 }
  0x76   : > { %v1679_v30 = vsel %vm1224_vm10, %v1000_v12, %v1455_v24  ;;  %v1680_v31 = vsel %vm1225_vm11, %v1001_v14, %v1456_v25  ;;  %v4326_v32 = vunpack.c.h.bf16 %v5261_v17  ;;  %v4329_v33 = vunpack.c.l.bf16 %v5262_v23  ;;  %v5774_v17 = vld [vmem:[%s6538_s1] ss:$0 sm:$0xff] }
  0x77   : > { %v4787_v34 = vpack.c.bf16 %v1680_v31, %v1679_v30  ;;  %v3022_v35 = vadd.f32 %v3021_v20, %v1679_v30  ;;  %v3253_v36 = vmul.f32 %v1679_v30, %v1679_v30  ;;  %v3254_v37 = vmul.f32 %v1680_v31, %v1680_v31 }
  0x78   : > { %v1002_v38 = vadd.f32 %v5557_v9, %v771_v27  ;;  %v1003_v39 = vadd.f32 %v5557_v9, %v772_v28  ;;  %v773_v40 = vmul.f32 %v4325_v29, %v5548_v0  ;;  %v774_v41 = vmul.f32 %v4326_v32, %v5548_v0  ;;  %v5782_v28 = vld [vmem:[%s6539_s2] ss:$0 sm:$0xff] }
  0x79   : > { %5370 = vst [vmem:[%s5589_s12 + $0xa8] sm:$0xff] %v4787_v34   ;;  %v3023_v42 = vadd.f32 %v3022_v35, %v1680_v31  ;;  %v3476_v43 = vadd.f32 %v3475_v26, %v3253_v36  ;;  %v4330_v44 = vunpack.c.h.bf16 %v5262_v23  ;;  %v775_v45 = vmul.f32 %v4329_v33, %v5548_v0 }
  0x7a   : > { %vm1226_vm12 = vcmp.ge.f32.partialorder %v1002_v38, 0.0  ;;  %vm1227_vm13 = vcmp.ge.f32.partialorder %v1003_v39, 0.0  ;;  %v1457_v47 = vmul.f32 %v5566_v18, %v1002_v38  ;;  %v1458_v48 = vmul.f32 %v5566_v18, %v1003_v39 }
  0x7b   : > { %v3477_v49 = vadd.f32 %v3476_v43, %v3254_v37  ;;  %v1004_v50 = vadd.f32 %v5557_v9, %v773_v40  ;;  %v1005_v51 = vadd.f32 %v5557_v9, %v774_v41  ;;  %v776_v52 = vmul.f32 %v4330_v44, %v5548_v0  ;;  %v5266_v37 = vld [vmem:[%s5543_s27 + $0xe0] sm:$0xff]  }
  0x7c   : > { %v1681_v53 = vsel %vm1226_vm12, %v1002_v38, %v1457_v47  ;;  %v1682_v54 = vsel %vm1227_vm13, %v1003_v39, %v1458_v48  ;;  %v1006_v55 = vadd.f32 %v5557_v9, %v775_v45  ;;  %v4333_v56 = vunpack.c.l.bf16 %v5263_v46  ;;  %v5793_v38 = vld [vmem:[%s6540_s3] ss:$0 sm:$0xff] }
  0x7d   : > { %v4792_v57 = vpack.c.bf16 %v1682_v54, %v1681_v53  ;;  %v3024_v58 = vadd.f32 %v3023_v42, %v1681_v53  ;;  %v3255_v59 = vmul.f32 %v1681_v53, %v1681_v53  ;;  %v3256_v60 = vmul.f32 %v1682_v54, %v1682_v54 }
  0x7e   : > { %vm1228_vm14 = vcmp.ge.f32.partialorder %v1004_v50, 0.0  ;;  %vm1229_vm15 = vcmp.ge.f32.partialorder %v1005_v51, 0.0  ;;  %v1459_v61 = vmul.f32 %v5566_v18, %v1004_v50  ;;  %v1460_v62 = vmul.f32 %v5566_v18, %v1005_v51 }
  0x7f   : > { %5371 = vst [vmem:[%s5589_s12 + $0xb0] sm:$0xff] %v4792_v57   ;;  %v3025_v63 = vadd.f32 %v3024_v58, %v1682_v54  ;;  %v3478_v1 = vadd.f32 %v3477_v49, %v3255_v59  ;;  %v1007_v0 = vadd.f32 %v5557_v9, %v776_v52  ;;  %vm1230_vm0 = vcmp.ge.f32.partialorder %v1006_v55, 0.0 }
  0x80   : > { %v1683_v2 = vsel %vm1228_vm14, %v1004_v50, %v1459_v61  ;;  %v1684_v3 = vsel %vm1229_vm15, %v1005_v51, %v1460_v62  ;;  %v1461_v4 = vmul.f32 %v5566_v18, %v1006_v55  ;;  %v4334_v5 = vunpack.c.h.bf16 %v5263_v46 }
  0x81   : > { %v3479_v6 = vadd.f32 %v3478_v1, %v3256_v60  ;;  %v4797_v7 = vpack.c.bf16 %v1684_v3, %v1683_v2  ;;  %v3026_v8 = vadd.f32 %v3025_v63, %v1683_v2  ;;  %v3257_v10 = vmul.f32 %v1683_v2, %v1683_v2 }
  0x82   : > { %v3258_v12 = vmul.f32 %v1684_v3, %v1684_v3  ;;  %vm1231_vm1 = vcmp.ge.f32.partialorder %v1007_v0, 0.0  ;;  %v1462_v13 = vmul.f32 %v5566_v18, %v1007_v0  ;;  %v1685_v14 = vsel %vm1230_vm0, %v1006_v55, %v1461_v4  ;;  %v5265_v18 = vld [vmem:[%s5543_s27 + $0xd8] sm:$0xff]  }
  0x83   : > { %5372 = vst [vmem:[%s5589_s12 + $0xb8] sm:$0xff] %v4797_v7   ;;  %v3027_v15 = vadd.f32 %v3026_v8, %v1684_v3  ;;  %v3480_v9 = vadd.f32 %v3479_v6, %v3257_v10  ;;  %v3259_v16 = vmul.f32 %v1685_v14, %v1685_v14  ;;  %v777_v19 = vmul.f32 %v5774_v17, %v4333_v56  ;;  %v5267_v3 = vld [vmem:[%s5543_s27 + $0xe8] sm:$0xff]  }
  0x84   : > { %v1686_v20 = vsel %vm1231_vm1, %v1007_v0, %v1462_v13  ;;  %v778_v21 = vmul.f32 %v5774_v17, %v4334_v5  ;;  %v4337_v22 = vunpack.c.l.bf16 %v5264_v11  ;;  %v4338_v23 = vunpack.c.h.bf16 %v5264_v11 }
  0x85   : > { %v3481_v24 = vadd.f32 %v3480_v9, %v3258_v12  ;;  %v4802_v25 = vpack.c.bf16 %v1686_v20, %v1685_v14  ;;  %v3028_v26 = vadd.f32 %v3027_v15, %v1685_v14  ;;  %v3260_v27 = vmul.f32 %v1686_v20, %v1686_v20 }
  0x86   : > { %v1008_v29 = vadd.f32 %v5782_v28, %v777_v19  ;;  %v1009_v30 = vadd.f32 %v5782_v28, %v778_v21  ;;  %v779_v31 = vmul.f32 %v5774_v17, %v4337_v22  ;;  %v780_v32 = vmul.f32 %v5774_v17, %v4338_v23 }
  0x87   : > { %5373 = vst [vmem:[%s5589_s12 + $0xc0] sm:$0xff] %v4802_v25   ;;  %v3029_v33 = vadd.f32 %v3028_v26, %v1686_v20  ;;  %v3482_v34 = vadd.f32 %v3481_v24, %v3259_v16  ;;  %v4341_v35 = vunpack.c.l.bf16 %v5265_v18  ;;  %v4342_v36 = vunpack.c.h.bf16 %v5265_v18  ;;  %v5268_v20 = vld [vmem:[%s5543_s27 + $0xf0] sm:$0xff]  }
  0x88   : > { %vm1232_vm2 = vcmp.ge.f32.partialorder %v1008_v29, 0.0  ;;  %vm1233_vm3 = vcmp.ge.f32.partialorder %v1009_v30, 0.0  ;;  %v1463_v39 = vmul.f32 %v5793_v38, %v1008_v29  ;;  %v1464_v40 = vmul.f32 %v5793_v38, %v1009_v30 }
  0x89   : > { %v3483_v41 = vadd.f32 %v3482_v34, %v3260_v27  ;;  %v1010_v42 = vadd.f32 %v5782_v28, %v779_v31  ;;  %v1011_v43 = vadd.f32 %v5782_v28, %v780_v32  ;;  %v781_v44 = vmul.f32 %v5774_v17, %v4341_v35 }
  0x8a   : > { %v1687_v45 = vsel %vm1232_vm2, %v1008_v29, %v1463_v39  ;;  %v1688_v46 = vsel %vm1233_vm3, %v1009_v30, %v1464_v40  ;;  %v782_v47 = vmul.f32 %v5774_v17, %v4342_v36  ;;  %v4345_v48 = vunpack.c.l.bf16 %v5266_v37  ;;  %v5269_v40 = vld [vmem:[%s5543_s27 + $0xf8] sm:$0xff]  }
  0x8b   : > { %v4807_v49 = vpack.c.bf16 %v1688_v46, %v1687_v45  ;;  %v3030_v50 = vadd.f32 %v3029_v33, %v1687_v45  ;;  %v3261_v51 = vmul.f32 %v1687_v45, %v1687_v45  ;;  %v3262_v52 = vmul.f32 %v1688_v46, %v1688_v46 }
  0x8c   : > { %vm1234_vm4 = vcmp.ge.f32.partialorder %v1010_v42, 0.0  ;;  %vm1235_vm5 = vcmp.ge.f32.partialorder %v1011_v43, 0.0  ;;  %v1465_v53 = vmul.f32 %v5793_v38, %v1010_v42  ;;  %v1466_v54 = vmul.f32 %v5793_v38, %v1011_v43 }
  0x8d   : > { %5374 = vst [vmem:[%s5589_s12 + $0xc8] sm:$0xff] %v4807_v49   ;;  %v3031_v55 = vadd.f32 %v3030_v50, %v1688_v46  ;;  %v3484_v56 = vadd.f32 %v3483_v41, %v3261_v51  ;;  %v1012_v57 = vadd.f32 %v5782_v28, %v781_v44  ;;  %v1013_v58 = vadd.f32 %v5782_v28, %v782_v47 }
  0x8e   : > { %v1689_v59 = vsel %vm1234_vm4, %v1010_v42, %v1465_v53  ;;  %v1690_v60 = vsel %vm1235_vm5, %v1011_v43, %v1466_v54  ;;  %v4346_v61 = vunpack.c.h.bf16 %v5266_v37  ;;  %v783_v62 = vmul.f32 %v5774_v17, %v4345_v48 }
  0x8f   : > { %v3485_v63 = vadd.f32 %v3484_v56, %v3262_v52  ;;  %v4812_v1 = vpack.c.bf16 %v1690_v60, %v1689_v59  ;;  %v3032_v0 = vadd.f32 %v3031_v55, %v1689_v59  ;;  %v3263_v2 = vmul.f32 %v1689_v59, %v1689_v59  ;;  %v5270_v59 = vld [vmem:[%s5543_s27 + $0x100] sm:$0xff]  }
  0x90   : > { %v3264_v4 = vmul.f32 %v1690_v60, %v1690_v60  ;;  %vm1236_vm6 = vcmp.ge.f32.partialorder %v1012_v57, 0.0  ;;  %vm1237_vm7 = vcmp.ge.f32.partialorder %v1013_v58, 0.0  ;;  %v1467_v5 = vmul.f32 %v5793_v38, %v1012_v57 }
  0x91   : > { %5375 = vst [vmem:[%s5589_s12 + $0xd0] sm:$0xff] %v4812_v1   ;;  %v3033_v6 = vadd.f32 %v3032_v0, %v1690_v60  ;;  %v3486_v7 = vadd.f32 %v3485_v63, %v3263_v2  ;;  %v1468_v8 = vmul.f32 %v5793_v38, %v1013_v58  ;;  %v784_v10 = vmul.f32 %v5774_v17, %v4346_v61  ;;  %v5271_v1 = vld [vmem:[%s5543_s27 + $0x108] sm:$0xff]  }
  0x92   : > { %v1691_v11 = vsel %vm1236_vm6, %v1012_v57, %v1467_v5  ;;  %v1014_v12 = vadd.f32 %v5782_v28, %v783_v62  ;;  %v4349_v13 = vunpack.c.l.bf16 %v5267_v3  ;;  %v4350_v14 = vunpack.c.h.bf16 %v5267_v3 }
  0x93   : > { %v3487_v15 = vadd.f32 %v3486_v7, %v3264_v4  ;;  %v1692_v9 = vsel %vm1237_vm7, %v1013_v58, %v1468_v8  ;;  %v3034_v16 = vadd.f32 %v3033_v6, %v1691_v11  ;;  %v3265_v19 = vmul.f32 %v1691_v11, %v1691_v11 }
  0x94   : > { %v4817_v21 = vpack.c.bf16 %v1692_v9, %v1691_v11  ;;  %v3266_v22 = vmul.f32 %v1692_v9, %v1692_v9  ;;  %v1015_v23 = vadd.f32 %v5782_v28, %v784_v10  ;;  %vm1238_vm8 = vcmp.ge.f32.partialorder %v1014_v12, 0.0 }
  0x95   : > { %v3035_v18 = vadd.f32 %v3034_v16, %v1692_v9  ;;  %v3488_v24 = vadd.f32 %v3487_v15, %v3265_v19  ;;  %v1469_v25 = vmul.f32 %v5793_v38, %v1014_v12  ;;  %v785_v26 = vmul.f32 %v5774_v17, %v4349_v13 }
  0x96   : > { %5376 = vst [vmem:[%s5589_s12 + $0xd8] sm:$0xff] %v4817_v21   ;;  %vm1239_vm9 = vcmp.ge.f32.partialorder %v1015_v23, 0.0  ;;  %v1470_v27 = vmul.f32 %v5793_v38, %v1015_v23  ;;  %v786_v29 = vmul.f32 %v5774_v17, %v4350_v14  ;;  %v4353_v30 = vunpack.c.l.bf16 %v5268_v20 }
  0x97   : > { %v3489_v31 = vadd.f32 %v3488_v24, %v3266_v22  ;;  %v1693_v32 = vsel %vm1238_vm8, %v1014_v12, %v1469_v25  ;;  %v1016_v33 = vadd.f32 %v5782_v28, %v785_v26  ;;  %v4354_v34 = vunpack.c.h.bf16 %v5268_v20 }
  0x98   : > { %v1694_v35 = vsel %vm1239_vm9, %v1015_v23, %v1470_v27  ;;  %v3036_v36 = vadd.f32 %v3035_v18, %v1693_v32  ;;  %v3267_v37 = vmul.f32 %v1693_v32, %v1693_v32  ;;  %v1017_v39 = vadd.f32 %v5782_v28, %v786_v29 }
  0x99   : > { %v4822_v41 = vpack.c.bf16 %v1694_v35, %v1693_v32  ;;  %v3268_v42 = vmul.f32 %v1694_v35, %v1694_v35  ;;  %vm1240_vm10 = vcmp.ge.f32.partialorder %v1016_v33, 0.0  ;;  %v1471_v43 = vmul.f32 %v5793_v38, %v1016_v33 }
  0x9a   : > { %v3037_v44 = vadd.f32 %v3036_v36, %v1694_v35  ;;  %v3490_v45 = vadd.f32 %v3489_v31, %v3267_v37  ;;  %vm1241_vm11 = vcmp.ge.f32.partialorder %v1017_v39, 0.0  ;;  %v1472_v46 = vmul.f32 %v5793_v38, %v1017_v39 }
  0x9b   : > { %5377 = vst [vmem:[%s5589_s12 + $0xe0] sm:$0xff] %v4822_v41   ;;  %v1695_v47 = vsel %vm1240_vm10, %v1016_v33, %v1471_v43  ;;  %v787_v48 = vmul.f32 %v5774_v17, %v4353_v30  ;;  %v788_v49 = vmul.f32 %v5774_v17, %v4354_v34  ;;  %v4357_v50 = vunpack.c.l.bf16 %v5269_v40 }
  0x9c   : > { %v3491_v51 = vadd.f32 %v3490_v45, %v3268_v42  ;;  %v1696_v52 = vsel %vm1241_vm11, %v1017_v39, %v1472_v46  ;;  %v3038_v53 = vadd.f32 %v3037_v44, %v1695_v47  ;;  %v3269_v54 = vmul.f32 %v1695_v47, %v1695_v47  ;;  %v5272_v39 = vld [vmem:[%s5543_s27 + $0x110] sm:$0xff]  }
  0x9d   : > { %v4827_v55 = vpack.c.bf16 %v1696_v52, %v1695_v47  ;;  %v3270_v56 = vmul.f32 %v1696_v52, %v1696_v52  ;;  %v1018_v57 = vadd.f32 %v5782_v28, %v787_v48  ;;  %v1019_v58 = vadd.f32 %v5782_v28, %v788_v49 }
  0x9e   : > { %v3039_v60 = vadd.f32 %v3038_v53, %v1696_v52  ;;  %v3492_v61 = vadd.f32 %v3491_v51, %v3269_v54  ;;  %v4358_v62 = vunpack.c.h.bf16 %v5269_v40  ;;  %v789_v63 = vmul.f32 %v5774_v17, %v4357_v50  ;;  %v5273_v51 = vld [vmem:[%s5543_s27 + $0x118] sm:$0xff]  }
  0x9f   : > { %5378 = vst [vmem:[%s5589_s12 + $0xe8] sm:$0xff] %v4827_v55   ;;  %vm1242_vm12 = vcmp.ge.f32.partialorder %v1018_v57, 0.0  ;;  %vm1243_vm13 = vcmp.ge.f32.partialorder %v1019_v58, 0.0  ;;  %v1473_v0 = vmul.f32 %v5793_v38, %v1018_v57  ;;  %v1474_v2 = vmul.f32 %v5793_v38, %v1019_v58 }
  0xa0   : > { %v3493_v3 = vadd.f32 %v3492_v61, %v3270_v56  ;;  %v790_v4 = vmul.f32 %v5774_v17, %v4358_v62  ;;  %v1020_v5 = vadd.f32 %v5782_v28, %v789_v63  ;;  %v4361_v6 = vunpack.c.l.bf16 %v5270_v59  ;;  %v5274_v56 = vld [vmem:[%s5543_s27 + $0x120] sm:$0xff]  }
  0xa1   : > { %v1697_v7 = vsel %vm1242_vm12, %v1018_v57, %v1473_v0  ;;  %v1698_v8 = vsel %vm1243_vm13, %v1019_v58, %v1474_v2  ;;  %v4362_v10 = vunpack.c.h.bf16 %v5270_v59  ;;  %v4365_v11 = vunpack.c.l.bf16 %v5271_v1 }
  0xa2   : > { %v4832_v12 = vpack.c.bf16 %v1698_v8, %v1697_v7  ;;  %v3040_v13 = vadd.f32 %v3039_v60, %v1697_v7  ;;  %v3271_v14 = vmul.f32 %v1697_v7, %v1697_v7  ;;  %v3272_v15 = vmul.f32 %v1698_v8, %v1698_v8 }
  0xa3   : > { %v1021_v9 = vadd.f32 %v5782_v28, %v790_v4  ;;  %vm1244_vm14 = vcmp.ge.f32.partialorder %v1020_v5, 0.0  ;;  %v1475_v16 = vmul.f32 %v5793_v38, %v1020_v5  ;;  %v791_v19 = vmul.f32 %v5774_v17, %v4361_v6 }
  0xa4   : > { %5379 = vst [vmem:[%s5589_s12 + $0xf0] sm:$0xff] %v4832_v12   ;;  %v3041_v20 = vadd.f32 %v3040_v13, %v1698_v8  ;;  %v3494_v21 = vadd.f32 %v3493_v3, %v3271_v14  ;;  %v792_v22 = vmul.f32 %v5774_v17, %v4362_v10  ;;  %v4366_v23 = vunpack.c.h.bf16 %v5271_v1 }
  0xa5   : > { %vm1245_vm15 = vcmp.ge.f32.partialorder %v1021_v9, 0.0  ;;  %v1476_v18 = vmul.f32 %v5793_v38, %v1021_v9  ;;  %v1699_v24 = vsel %vm1244_vm14, %v1020_v5, %v1475_v16  ;;  %v1022_v25 = vadd.f32 %v5782_v28, %v791_v19 }
  0xa6   : > { %v3495_v26 = vadd.f32 %v3494_v21, %v3272_v15  ;;  %v3042_v27 = vadd.f32 %v3041_v20, %v1699_v24  ;;  %v3273_v29 = vmul.f32 %v1699_v24, %v1699_v24  ;;  %v1023_v30 = vadd.f32 %v5782_v28, %v792_v22 }
  0xa7   : > { %v1700_v31 = vsel %vm1245_vm15, %v1021_v9, %v1476_v18  ;;  %vm1246_vm0 = vcmp.ge.f32.partialorder %v1022_v25, 0.0  ;;  %v1477_v32 = vmul.f32 %v5793_v38, %v1022_v25  ;;  %v793_v33 = vmul.f32 %v5774_v17, %v4365_v11  ;;  %v5275_v9 = vld [vmem:[%s5543_s27 + $0x128] sm:$0xff]  }
  0xa8   : > { %v4837_v34 = vpack.c.bf16 %v1700_v31, %v1699_v24  ;;  %v3043_v35 = vadd.f32 %v3042_v27, %v1700_v31  ;;  %v3274_v36 = vmul.f32 %v1700_v31, %v1700_v31  ;;  %v3496_v37 = vadd.f32 %v3495_v26, %v3273_v29 }
  0xa9   : > { %vm1247_vm1 = vcmp.ge.f32.partialorder %v1023_v30, 0.0  ;;  %v1478_v40 = vmul.f32 %v5793_v38, %v1023_v30  ;;  %v1701_v41 = vsel %vm1246_vm0, %v1022_v25, %v1477_v32  ;;  %v794_v42 = vmul.f32 %v5774_v17, %v4366_v23 }
  0xaa   : > { %5380 = vst [vmem:[%s5589_s12 + $0xf8] sm:$0xff] %v4837_v34   ;;  %v3497_v43 = vadd.f32 %v3496_v37, %v3274_v36  ;;  %v3044_v44 = vadd.f32 %v3043_v35, %v1701_v41  ;;  %v3275_v45 = vmul.f32 %v1701_v41, %v1701_v41  ;;  %v1024_v46 = vadd.f32 %v5782_v28, %v793_v33 }
  0xab   : > { %v1702_v47 = vsel %vm1247_vm1, %v1023_v30, %v1478_v40  ;;  %v1025_v48 = vadd.f32 %v5782_v28, %v794_v42  ;;  %v4369_v49 = vunpack.c.l.bf16 %v5272_v39  ;;  %v4370_v50 = vunpack.c.h.bf16 %v5272_v39 }
  0xac   : > { %v4842_v52 = vpack.c.bf16 %v1702_v47, %v1701_v41  ;;  %v3045_v53 = vadd.f32 %v3044_v44, %v1702_v47  ;;  %v3276_v54 = vmul.f32 %v1702_v47, %v1702_v47  ;;  %v3498_v55 = vadd.f32 %v3497_v43, %v3275_v45 }
  0xad   : > { %vm1248_vm2 = vcmp.ge.f32.partialorder %v1024_v46, 0.0  ;;  %vm1249_vm3 = vcmp.ge.f32.partialorder %v1025_v48, 0.0  ;;  %v1479_v57 = vmul.f32 %v5793_v38, %v1024_v46  ;;  %v1480_v58 = vmul.f32 %v5793_v38, %v1025_v48 }
  0xae   : > { %5381 = vst [vmem:[%s5589_s12 + $0x100] sm:$0xff] %v4842_v52   ;;  %v3499_v59 = vadd.f32 %v3498_v55, %v3276_v54  ;;  %v795_v60 = vmul.f32 %v5774_v17, %v4369_v49  ;;  %v796_v61 = vmul.f32 %v5774_v17, %v4370_v50  ;;  %v4373_v62 = vunpack.c.l.bf16 %v5273_v51 }
  0xaf   : > { %v1703_v63 = vsel %vm1248_vm2, %v1024_v46, %v1479_v57  ;;  %v1704_v1 = vsel %vm1249_vm3, %v1025_v48, %v1480_v58  ;;  %v4374_v0 = vunpack.c.h.bf16 %v5273_v51  ;;  %v4377_v2 = vunpack.c.l.bf16 %v5274_v56  ;;  %v5276_v46 = vld [vmem:[%s5543_s27 + $0x130] sm:$0xff]   ;;  %v5277_v58 = vld [vmem:[%s5543_s27 + $0x138] sm:$0xff]  }
  0xb0   : > { %v4847_v3 = vpack.c.bf16 %v1704_v1, %v1703_v63  ;;  %v3046_v4 = vadd.f32 %v3045_v53, %v1703_v63  ;;  %v3277_v5 = vmul.f32 %v1703_v63, %v1703_v63  ;;  %v3278_v6 = vmul.f32 %v1704_v1, %v1704_v1 }
  0xb1   : > { %v1026_v7 = vadd.f32 %v5782_v28, %v795_v60  ;;  %v1027_v8 = vadd.f32 %v5782_v28, %v796_v61  ;;  %v797_v10 = vmul.f32 %v5774_v17, %v4373_v62  ;;  %v798_v11 = vmul.f32 %v5774_v17, %v4374_v0 }
  0xb2   : > { %5382 = vst [vmem:[%s5589_s12 + $0x108] sm:$0xff] %v4847_v3   ;;  %v3047_v12 = vadd.f32 %v3046_v4, %v1704_v1  ;;  %v3500_v13 = vadd.f32 %v3499_v59, %v3277_v5  ;;  %v4378_v14 = vunpack.c.h.bf16 %v5274_v56  ;;  %v799_v15 = vmul.f32 %v5774_v17, %v4377_v2 }
  0xb3   : > { %vm1250_vm4 = vcmp.ge.f32.partialorder %v1026_v7, 0.0  ;;  %vm1251_vm5 = vcmp.ge.f32.partialorder %v1027_v8, 0.0  ;;  %v1481_v16 = vmul.f32 %v5793_v38, %v1026_v7  ;;  %v1482_v19 = vmul.f32 %v5793_v38, %v1027_v8 }
  0xb4   : > { %v3501_v20 = vadd.f32 %v3500_v13, %v3278_v6  ;;  %v1028_v21 = vadd.f32 %v5782_v28, %v797_v10  ;;  %v1029_v22 = vadd.f32 %v5782_v28, %v798_v11  ;;  %v800_v23 = vmul.f32 %v5774_v17, %v4378_v14 }
  0xb5   : > { %v1705_v18 = vsel %vm1250_vm4, %v1026_v7, %v1481_v16  ;;  %v1706_v24 = vsel %vm1251_vm5, %v1027_v8, %v1482_v19  ;;  %v1030_v25 = vadd.f32 %v5782_v28, %v799_v15  ;;  %v4381_v26 = vunpack.c.l.bf16 %v5275_v9  ;;  %v5278_v7 = vld [vmem:[%s5543_s27 + $0x140] sm:$0xff]  }
  0xb6   : > { %v4852_v27 = vpack.c.bf16 %v1706_v24, %v1705_v18  ;;  %v3048_v29 = vadd.f32 %v3047_v12, %v1705_v18  ;;  %v3279_v30 = vmul.f32 %v1705_v18, %v1705_v18  ;;  %v3280_v31 = vmul.f32 %v1706_v24, %v1706_v24 }
  0xb7   : > { %vm1252_vm6 = vcmp.ge.f32.partialorder %v1028_v21, 0.0  ;;  %vm1253_vm7 = vcmp.ge.f32.partialorder %v1029_v22, 0.0  ;;  %v1483_v32 = vmul.f32 %v5793_v38, %v1028_v21  ;;  %v1484_v33 = vmul.f32 %v5793_v38, %v1029_v22 }
  0xb8   : > { %5383 = vst [vmem:[%s5589_s12 + $0x110] sm:$0xff] %v4852_v27   ;;  %v3049_v34 = vadd.f32 %v3048_v29, %v1706_v24  ;;  %v3502_v35 = vadd.f32 %v3501_v20, %v3279_v30  ;;  %v1031_v36 = vadd.f32 %v5782_v28, %v800_v23  ;;  %vm1254_vm8 = vcmp.ge.f32.partialorder %v1030_v25, 0.0 }
  0xb9   : > { %v1707_v37 = vsel %vm1252_vm6, %v1028_v21, %v1483_v32  ;;  %v1708_v39 = vsel %vm1253_vm7, %v1029_v22, %v1484_v33  ;;  %v1485_v40 = vmul.f32 %v5793_v38, %v1030_v25  ;;  %v4382_v41 = vunpack.c.h.bf16 %v5275_v9 }
  0xba   : > { %v3503_v42 = vadd.f32 %v3502_v35, %v3280_v31  ;;  %v4857_v43 = vpack.c.bf16 %v1708_v39, %v1707_v37  ;;  %v3050_v44 = vadd.f32 %v3049_v34, %v1707_v37  ;;  %v3281_v45 = vmul.f32 %v1707_v37, %v1707_v37 }
  0xbb   : > { %v3282_v47 = vmul.f32 %v1708_v39, %v1708_v39  ;;  %vm1255_vm9 = vcmp.ge.f32.partialorder %v1031_v36, 0.0  ;;  %v1486_v48 = vmul.f32 %v5793_v38, %v1031_v36  ;;  %v1709_v49 = vsel %vm1254_vm8, %v1030_v25, %v1485_v40 }
  0xbc   : > { %5384 = vst [vmem:[%s5589_s12 + $0x118] sm:$0xff] %v4857_v43   ;;  %v3051_v50 = vadd.f32 %v3050_v44, %v1708_v39  ;;  %v3504_v51 = vadd.f32 %v3503_v42, %v3281_v45  ;;  %v3283_v52 = vmul.f32 %v1709_v49, %v1709_v49  ;;  %v801_v53 = vmul.f32 %v5774_v17, %v4381_v26  ;;  %v5279_v39 = vld [vmem:[%s5543_s27 + $0x148] sm:$0xff]  }
  0xbd   : > { %v1710_v54 = vsel %vm1255_vm9, %v1031_v36, %v1486_v48  ;;  %v802_v55 = vmul.f32 %v5774_v17, %v4382_v41  ;;  %v4385_v56 = vunpack.c.l.bf16 %v5276_v46  ;;  %v4386_v57 = vunpack.c.h.bf16 %v5276_v46 }
  0xbe   : > { %v3505_v59 = vadd.f32 %v3504_v51, %v3282_v47  ;;  %v4862_v60 = vpack.c.bf16 %v1710_v54, %v1709_v49  ;;  %v3052_v61 = vadd.f32 %v3051_v50, %v1709_v49  ;;  %v3284_v62 = vmul.f32 %v1710_v54, %v1710_v54 }
  0xbf   : > { %v1032_v63 = vadd.f32 %v5782_v28, %v801_v53  ;;  %v1033_v1 = vadd.f32 %v5782_v28, %v802_v55  ;;  %v803_v0 = vmul.f32 %v5774_v17, %v4385_v56  ;;  %v804_v2 = vmul.f32 %v5774_v17, %v4386_v57 }
  0xc0   : > { %5385 = vst [vmem:[%s5589_s12 + $0x120] sm:$0xff] %v4862_v60   ;;  %v3053_v3 = vadd.f32 %v3052_v61, %v1710_v54  ;;  %v3506_v4 = vadd.f32 %v3505_v59, %v3283_v52  ;;  %v4389_v5 = vunpack.c.l.bf16 %v5277_v58  ;;  %v4390_v6 = vunpack.c.h.bf16 %v5277_v58  ;;  %v5280_v54 = vld [vmem:[%s5543_s27 + $0x150] sm:$0xff]  }
  0xc1   : > { %vm1256_vm10 = vcmp.ge.f32.partialorder %v1032_v63, 0.0  ;;  %vm1257_vm11 = vcmp.ge.f32.partialorder %v1033_v1, 0.0  ;;  %v1487_v8 = vmul.f32 %v5793_v38, %v1032_v63  ;;  %v1488_v10 = vmul.f32 %v5793_v38, %v1033_v1 }
  0xc2   : > { %v3507_v11 = vadd.f32 %v3506_v4, %v3284_v62  ;;  %v1034_v12 = vadd.f32 %v5782_v28, %v803_v0  ;;  %v1035_v13 = vadd.f32 %v5782_v28, %v804_v2  ;;  %v805_v14 = vmul.f32 %v5774_v17, %v4389_v5 }
  0xc3   : > { %v1711_v15 = vsel %vm1256_vm10, %v1032_v63, %v1487_v8  ;;  %v1712_v9 = vsel %vm1257_vm11, %v1033_v1, %v1488_v10  ;;  %v806_v16 = vmul.f32 %v5774_v17, %v4390_v6  ;;  %v4393_v19 = vunpack.c.l.bf16 %v5278_v7  ;;  %v5281_v10 = vld [vmem:[%s5543_s27 + $0x158] sm:$0xff]  }
  0xc4   : > { %v4867_v20 = vpack.c.bf16 %v1712_v9, %v1711_v15  ;;  %v3054_v21 = vadd.f32 %v3053_v3, %v1711_v15  ;;  %v3285_v22 = vmul.f32 %v1711_v15, %v1711_v15  ;;  %v3286_v23 = vmul.f32 %v1712_v9, %v1712_v9 }
  0xc5   : > { %vm1258_vm12 = vcmp.ge.f32.partialorder %v1034_v12, 0.0  ;;  %vm1259_vm13 = vcmp.ge.f32.partialorder %v1035_v13, 0.0  ;;  %v1489_v18 = vmul.f32 %v5793_v38, %v1034_v12  ;;  %v1490_v24 = vmul.f32 %v5793_v38, %v1035_v13 }
  0xc6   : > { %5386 = vst [vmem:[%s5589_s12 + $0x128] sm:$0xff] %v4867_v20   ;;  %v3055_v25 = vadd.f32 %v3054_v21, %v1712_v9  ;;  %v3508_v26 = vadd.f32 %v3507_v11, %v3285_v22  ;;  %v1036_v27 = vadd.f32 %v5782_v28, %v805_v14  ;;  %v1037_v29 = vadd.f32 %v5782_v28, %v806_v16 }
  0xc7   : > { %v1713_v30 = vsel %vm1258_vm12, %v1034_v12, %v1489_v18  ;;  %v1714_v31 = vsel %vm1259_vm13, %v1035_v13, %v1490_v24  ;;  %v4394_v32 = vunpack.c.h.bf16 %v5278_v7  ;;  %v807_v33 = vmul.f32 %v5774_v17, %v4393_v19 }
  0xc8   : > { %v3509_v34 = vadd.f32 %v3508_v26, %v3286_v23  ;;  %v4872_v35 = vpack.c.bf16 %v1714_v31, %v1713_v30  ;;  %v3056_v36 = vadd.f32 %v3055_v25, %v1713_v30  ;;  %v3287_v37 = vmul.f32 %v1713_v30, %v1713_v30  ;;  %v5282_v30 = vld [vmem:[%s5543_s27 + $0x160] sm:$0xff]  }
  0xc9   : > { %v3288_v40 = vmul.f32 %v1714_v31, %v1714_v31  ;;  %vm1260_vm14 = vcmp.ge.f32.partialorder %v1036_v27, 0.0  ;;  %vm1261_vm15 = vcmp.ge.f32.partialorder %v1037_v29, 0.0  ;;  %v1491_v41 = vmul.f32 %v5793_v38, %v1036_v27 }
  0xca   : > { %5387 = vst [vmem:[%s5589_s12 + $0x130] sm:$0xff] %v4872_v35   ;;  %v3057_v42 = vadd.f32 %v3056_v36, %v1714_v31  ;;  %v3510_v43 = vadd.f32 %v3509_v34, %v3287_v37  ;;  %v1492_v44 = vmul.f32 %v5793_v38, %v1037_v29  ;;  %v808_v45 = vmul.f32 %v5774_v17, %v4394_v32  ;;  %v5283_v35 = vld [vmem:[%s5543_s27 + $0x168] sm:$0xff]  }
  0xcb   : > { %v1715_v46 = vsel %vm1260_vm14, %v1036_v27, %v1491_v41  ;;  %v1038_v47 = vadd.f32 %v5782_v28, %v807_v33  ;;  %v4397_v48 = vunpack.c.l.bf16 %v5279_v39  ;;  %v4398_v49 = vunpack.c.h.bf16 %v5279_v39 }
  0xcc   : > { %v3511_v50 = vadd.f32 %v3510_v43, %v3288_v40  ;;  %v1716_v51 = vsel %vm1261_vm15, %v1037_v29, %v1492_v44  ;;  %v3058_v52 = vadd.f32 %v3057_v42, %v1715_v46  ;;  %v3289_v53 = vmul.f32 %v1715_v46, %v1715_v46 }
  0xcd   : > { %v4877_v55 = vpack.c.bf16 %v1716_v51, %v1715_v46  ;;  %v3290_v56 = vmul.f32 %v1716_v51, %v1716_v51  ;;  %v1039_v57 = vadd.f32 %v5782_v28, %v808_v45  ;;  %vm1262_vm0 = vcmp.ge.f32.partialorder %v1038_v47, 0.0 }
  0xce   : > { %v3059_v58 = vadd.f32 %v3058_v52, %v1716_v51  ;;  %v3512_v59 = vadd.f32 %v3511_v50, %v3289_v53  ;;  %v1493_v60 = vmul.f32 %v5793_v38, %v1038_v47  ;;  %v809_v61 = vmul.f32 %v5774_v17, %v4397_v48 }
  0xcf   : > { %5388 = vst [vmem:[%s5589_s12 + $0x138] sm:$0xff] %v4877_v55   ;;  %vm1263_vm1 = vcmp.ge.f32.partialorder %v1039_v57, 0.0  ;;  %v1494_v62 = vmul.f32 %v5793_v38, %v1039_v57  ;;  %v810_v63 = vmul.f32 %v5774_v17, %v4398_v49  ;;  %v4401_v1 = vunpack.c.l.bf16 %v5280_v54 }
  0xd0   : > { %v3513_v0 = vadd.f32 %v3512_v59, %v3290_v56  ;;  %v1717_v2 = vsel %vm1262_vm0, %v1038_v47, %v1493_v60  ;;  %v1040_v3 = vadd.f32 %v5782_v28, %v809_v61  ;;  %v4402_v4 = vunpack.c.h.bf16 %v5280_v54 }
  0xd1   : > { %v1718_v5 = vsel %vm1263_vm1, %v1039_v57, %v1494_v62  ;;  %v3060_v6 = vadd.f32 %v3059_v58, %v1717_v2  ;;  %v3291_v7 = vmul.f32 %v1717_v2, %v1717_v2  ;;  %v1041_v8 = vadd.f32 %v5782_v28, %v810_v63 }
  0xd2   : > { %v4882_v11 = vpack.c.bf16 %v1718_v5, %v1717_v2  ;;  %v3292_v12 = vmul.f32 %v1718_v5, %v1718_v5  ;;  %vm1264_vm2 = vcmp.ge.f32.partialorder %v1040_v3, 0.0  ;;  %v1495_v13 = vmul.f32 %v5793_v38, %v1040_v3 }
  0xd3   : > { %v3061_v14 = vadd.f32 %v3060_v6, %v1718_v5  ;;  %v3514_v15 = vadd.f32 %v3513_v0, %v3291_v7  ;;  %vm1265_vm3 = vcmp.ge.f32.partialorder %v1041_v8, 0.0  ;;  %v1496_v9 = vmul.f32 %v5793_v38, %v1041_v8 }
  0xd4   : > { %5389 = vst [vmem:[%s5589_s12 + $0x140] sm:$0xff] %v4882_v11   ;;  %v1719_v16 = vsel %vm1264_vm2, %v1040_v3, %v1495_v13  ;;  %v811_v19 = vmul.f32 %v5774_v17, %v4401_v1  ;;  %v812_v20 = vmul.f32 %v5774_v17, %v4402_v4  ;;  %v4405_v21 = vunpack.c.l.bf16 %v5281_v10 }
  0xd5   : > { %v3515_v22 = vadd.f32 %v3514_v15, %v3292_v12  ;;  %v1720_v23 = vsel %vm1265_vm3, %v1041_v8, %v1496_v9  ;;  %v3062_v18 = vadd.f32 %v3061_v14, %v1719_v16  ;;  %v3293_v24 = vmul.f32 %v1719_v16, %v1719_v16  ;;  %v5284_v8 = vld [vmem:[%s5543_s27 + $0x170] sm:$0xff]  }
  0xd6   : > { %v4887_v25 = vpack.c.bf16 %v1720_v23, %v1719_v16  ;;  %v3294_v26 = vmul.f32 %v1720_v23, %v1720_v23  ;;  %v1042_v27 = vadd.f32 %v5782_v28, %v811_v19  ;;  %v1043_v29 = vadd.f32 %v5782_v28, %v812_v20 }
  0xd7   : > { %v3063_v31 = vadd.f32 %v3062_v18, %v1720_v23  ;;  %v3516_v32 = vadd.f32 %v3515_v22, %v3293_v24  ;;  %v4406_v33 = vunpack.c.h.bf16 %v5281_v10  ;;  %v813_v34 = vmul.f32 %v5774_v17, %v4405_v21  ;;  %v5285_v22 = vld [vmem:[%s5543_s27 + $0x178] sm:$0xff]  }
  0xd8   : > { %5390 = vst [vmem:[%s5589_s12 + $0x148] sm:$0xff] %v4887_v25   ;;  %vm1266_vm4 = vcmp.ge.f32.partialorder %v1042_v27, 0.0  ;;  %vm1267_vm5 = vcmp.ge.f32.partialorder %v1043_v29, 0.0  ;;  %v1497_v36 = vmul.f32 %v5793_v38, %v1042_v27  ;;  %v1498_v37 = vmul.f32 %v5793_v38, %v1043_v29 }
  0xd9   : > { %v3517_v39 = vadd.f32 %v3516_v32, %v3294_v26  ;;  %v814_v40 = vmul.f32 %v5774_v17, %v4406_v33  ;;  %v1044_v41 = vadd.f32 %v5782_v28, %v813_v34  ;;  %v4409_v42 = vunpack.c.l.bf16 %v5282_v30  ;;  %v5286_v26 = vld [vmem:[%s5543_s27 + $0x180] sm:$0xff]  }
  0xda   : > { %v1721_v43 = vsel %vm1266_vm4, %v1042_v27, %v1497_v36  ;;  %v1722_v44 = vsel %vm1267_vm5, %v1043_v29, %v1498_v37  ;;  %v4410_v45 = vunpack.c.h.bf16 %v5282_v30  ;;  %v4413_v46 = vunpack.c.l.bf16 %v5283_v35 }
  0xdb   : > { %v4892_v47 = vpack.c.bf16 %v1722_v44, %v1721_v43  ;;  %v3064_v48 = vadd.f32 %v3063_v31, %v1721_v43  ;;  %v3295_v49 = vmul.f32 %v1721_v43, %v1721_v43  ;;  %v3296_v50 = vmul.f32 %v1722_v44, %v1722_v44 }
  0xdc   : > { %v1045_v51 = vadd.f32 %v5782_v28, %v814_v40  ;;  %vm1268_vm6 = vcmp.ge.f32.partialorder %v1044_v41, 0.0  ;;  %v1499_v52 = vmul.f32 %v5793_v38, %v1044_v41  ;;  %v815_v53 = vmul.f32 %v5774_v17, %v4409_v42 }
  0xdd   : > { %5391 = vst [vmem:[%s5589_s12 + $0x150] sm:$0xff] %v4892_v47   ;;  %v3065_v54 = vadd.f32 %v3064_v48, %v1722_v44  ;;  %v3518_v55 = vadd.f32 %v3517_v39, %v3295_v49  ;;  %v816_v56 = vmul.f32 %v5774_v17, %v4410_v45  ;;  %v4414_v57 = vunpack.c.h.bf16 %v5283_v35 }
  0xde   : > { %vm1269_vm7 = vcmp.ge.f32.partialorder %v1045_v51, 0.0  ;;  %v1500_v58 = vmul.f32 %v5793_v38, %v1045_v51  ;;  %v1723_v59 = vsel %vm1268_vm6, %v1044_v41, %v1499_v52  ;;  %v1046_v60 = vadd.f32 %v5782_v28, %v815_v53 }
  0xdf   : > { %v3519_v61 = vadd.f32 %v3518_v55, %v3296_v50  ;;  %v3066_v62 = vadd.f32 %v3065_v54, %v1723_v59  ;;  %v3297_v63 = vmul.f32 %v1723_v59, %v1723_v59  ;;  %v1047_v1 = vadd.f32 %v5782_v28, %v816_v56 }
  0xe0   : > { %v1724_v0 = vsel %vm1269_vm7, %v1045_v51, %v1500_v58  ;;  %vm1270_vm8 = vcmp.ge.f32.partialorder %v1046_v60, 0.0  ;;  %v1501_v2 = vmul.f32 %v5793_v38, %v1046_v60  ;;  %v817_v3 = vmul.f32 %v5774_v17, %v4413_v46  ;;  %v5287_v51 = vld [vmem:[%s5543_s27 + $0x188] sm:$0xff]  }
  0xe1   : > { %v4897_v4 = vpack.c.bf16 %v1724_v0, %v1723_v59  ;;  %v3067_v5 = vadd.f32 %v3066_v62, %v1724_v0  ;;  %v3298_v6 = vmul.f32 %v1724_v0, %v1724_v0  ;;  %v3520_v7 = vadd.f32 %v3519_v61, %v3297_v63 }
  0xe2   : > { %vm1271_vm9 = vcmp.ge.f32.partialorder %v1047_v1, 0.0  ;;  %v1502_v10 = vmul.f32 %v5793_v38, %v1047_v1  ;;  %v1725_v11 = vsel %vm1270_vm8, %v1046_v60, %v1501_v2  ;;  %v818_v12 = vmul.f32 %v5774_v17, %v4414_v57 }
  0xe3   : > { %5392 = vst [vmem:[%s5589_s12 + $0x158] sm:$0xff] %v4897_v4   ;;  %v3521_v13 = vadd.f32 %v3520_v7, %v3298_v6  ;;  %v3068_v14 = vadd.f32 %v3067_v5, %v1725_v11  ;;  %v3299_v15 = vmul.f32 %v1725_v11, %v1725_v11  ;;  %v1048_v9 = vadd.f32 %v5782_v28, %v817_v3 }
  0xe4   : > { %v1726_v16 = vsel %vm1271_vm9, %v1047_v1, %v1502_v10  ;;  %v1049_v19 = vadd.f32 %v5782_v28, %v818_v12  ;;  %v4417_v20 = vunpack.c.l.bf16 %v5284_v8  ;;  %v4418_v21 = vunpack.c.h.bf16 %v5284_v8 }
  0xe5   : > { %v4902_v23 = vpack.c.bf16 %v1726_v16, %v1725_v11  ;;  %v3069_v18 = vadd.f32 %v3068_v14, %v1726_v16  ;;  %v3300_v24 = vmul.f32 %v1726_v16, %v1726_v16  ;;  %v3522_v25 = vadd.f32 %v3521_v13, %v3299_v15 }
  0xe6   : > { %vm1272_vm10 = vcmp.ge.f32.partialorder %v1048_v9, 0.0  ;;  %vm1273_vm11 = vcmp.ge.f32.partialorder %v1049_v19, 0.0  ;;  %v1503_v27 = vmul.f32 %v5793_v38, %v1048_v9  ;;  %v1504_v29 = vmul.f32 %v5793_v38, %v1049_v19 }
  0xe7   : > { %5393 = vst [vmem:[%s5589_s12 + $0x160] sm:$0xff] %v4902_v23   ;;  %v3523_v30 = vadd.f32 %v3522_v25, %v3300_v24  ;;  %v819_v31 = vmul.f32 %v5774_v17, %v4417_v20  ;;  %v820_v32 = vmul.f32 %v5774_v17, %v4418_v21  ;;  %v4421_v33 = vunpack.c.l.bf16 %v5285_v22 }
  0xe8   : > { %v1727_v34 = vsel %vm1272_vm10, %v1048_v9, %v1503_v27  ;;  %v1728_v35 = vsel %vm1273_vm11, %v1049_v19, %v1504_v29  ;;  %v4422_v36 = vunpack.c.h.bf16 %v5285_v22  ;;  %v4425_v37 = vunpack.c.l.bf16 %v5286_v26  ;;  %v5288_v9 = vld [vmem:[%s5543_s27 + $0x190] sm:$0xff]   ;;  %v5289_v29 = vld [vmem:[%s5543_s27 + $0x198] sm:$0xff]  }
  0xe9   : > { %v4907_v39 = vpack.c.bf16 %v1728_v35, %v1727_v34  ;;  %v3070_v40 = vadd.f32 %v3069_v18, %v1727_v34  ;;  %v3301_v41 = vmul.f32 %v1727_v34, %v1727_v34  ;;  %v3302_v42 = vmul.f32 %v1728_v35, %v1728_v35 }
  0xea   : > { %v1050_v43 = vadd.f32 %v5782_v28, %v819_v31  ;;  %v1051_v44 = vadd.f32 %v5782_v28, %v820_v32  ;;  %v821_v45 = vmul.f32 %v5774_v17, %v4421_v33  ;;  %v822_v46 = vmul.f32 %v5774_v17, %v4422_v36  ;;  %v5986_v36 = vld [vmem:[%s6538_s1] ss:$0 sm:$0xff] }
  0xeb   : > { %5394 = vst [vmem:[%s5589_s12 + $0x168] sm:$0xff] %v4907_v39   ;;  %v3071_v47 = vadd.f32 %v3070_v40, %v1728_v35  ;;  %v3524_v48 = vadd.f32 %v3523_v30, %v3301_v41  ;;  %v4426_v49 = vunpack.c.h.bf16 %v5286_v26  ;;  %v823_v50 = vmul.f32 %v5774_v17, %v4425_v37 }
  0xec   : > { %vm1274_vm12 = vcmp.ge.f32.partialorder %v1050_v43, 0.0  ;;  %vm1275_vm13 = vcmp.ge.f32.partialorder %v1051_v44, 0.0  ;;  %v1505_v52 = vmul.f32 %v5793_v38, %v1050_v43  ;;  %v1506_v53 = vmul.f32 %v5793_v38, %v1051_v44 }
  0xed   : > { %v3525_v54 = vadd.f32 %v3524_v48, %v3302_v42  ;;  %v1052_v55 = vadd.f32 %v5782_v28, %v821_v45  ;;  %v1053_v56 = vadd.f32 %v5782_v28, %v822_v46  ;;  %v824_v57 = vmul.f32 %v5774_v17, %v4426_v49  ;;  %v5997_v46 = vld [vmem:[%s6539_s2] ss:$0 sm:$0xff] }
  0xee   : > { %v1729_v58 = vsel %vm1274_vm12, %v1050_v43, %v1505_v52  ;;  %v1730_v59 = vsel %vm1275_vm13, %v1051_v44, %v1506_v53  ;;  %v1054_v60 = vadd.f32 %v5782_v28, %v823_v50  ;;  %v4429_v61 = vunpack.c.l.bf16 %v5287_v51  ;;  %v5290_v43 = vld [vmem:[%s5543_s27 + $0x1a0] sm:$0xff]  }
  0xef   : > { %v4912_v62 = vpack.c.bf16 %v1730_v59, %v1729_v58  ;;  %v3072_v63 = vadd.f32 %v3071_v47, %v1729_v58  ;;  %v3303_v1 = vmul.f32 %v1729_v58, %v1729_v58  ;;  %v3304_v0 = vmul.f32 %v1730_v59, %v1730_v59 }
  0xf0   : > { %vm1276_vm14 = vcmp.ge.f32.partialorder %v1052_v55, 0.0  ;;  %vm1277_vm15 = vcmp.ge.f32.partialorder %v1053_v56, 0.0  ;;  %v1507_v2 = vmul.f32 %v5793_v38, %v1052_v55  ;;  %v1508_v3 = vmul.f32 %v5793_v38, %v1053_v56 }
  0xf1   : > { %5395 = vst [vmem:[%s5589_s12 + $0x170] sm:$0xff] %v4912_v62   ;;  %v3073_v4 = vadd.f32 %v3072_v63, %v1730_v59  ;;  %v3526_v5 = vadd.f32 %v3525_v54, %v3303_v1  ;;  %v1055_v6 = vadd.f32 %v5782_v28, %v824_v57  ;;  %vm1278_vm0 = vcmp.ge.f32.partialorder %v1054_v60, 0.0  ;;  %v6006_v57 = vld [vmem:[%s6540_s3] ss:$0 sm:$0xff] }
  0xf2   : > { %v1731_v7 = vsel %vm1276_vm14, %v1052_v55, %v1507_v2  ;;  %v1732_v8 = vsel %vm1277_vm15, %v1053_v56, %v1508_v3  ;;  %v1509_v10 = vmul.f32 %v5793_v38, %v1054_v60  ;;  %v4430_v11 = vunpack.c.h.bf16 %v5287_v51 }
  0xf3   : > { %v3527_v12 = vadd.f32 %v3526_v5, %v3304_v0  ;;  %v4917_v13 = vpack.c.bf16 %v1732_v8, %v1731_v7  ;;  %v3074_v14 = vadd.f32 %v3073_v4, %v1731_v7  ;;  %v3305_v15 = vmul.f32 %v1731_v7, %v1731_v7 }
  0xf4   : > { %v3306_v16 = vmul.f32 %v1732_v8, %v1732_v8  ;;  %vm1279_vm1 = vcmp.ge.f32.partialorder %v1055_v6, 0.0  ;;  %v1510_v19 = vmul.f32 %v5793_v38, %v1055_v6  ;;  %v1733_v20 = vsel %vm1278_vm0, %v1054_v60, %v1509_v10 }
  0xf5   : > { %5396 = vst [vmem:[%s5589_s12 + $0x178] sm:$0xff] %v4917_v13   ;;  %v3075_v21 = vadd.f32 %v3074_v14, %v1732_v8  ;;  %v3528_v22 = vadd.f32 %v3527_v12, %v3305_v15  ;;  %v3307_v23 = vmul.f32 %v1733_v20, %v1733_v20  ;;  %v825_v18 = vmul.f32 %v5774_v17, %v4429_v61  ;;  %v5291_v8 = vld [vmem:[%s5543_s27 + $0x1a8] sm:$0xff]  }
  0xf6   : > { %v1734_v24 = vsel %vm1279_vm1, %v1055_v6, %v1510_v19  ;;  %v826_v25 = vmul.f32 %v5774_v17, %v4430_v11  ;;  %v4433_v26 = vunpack.c.l.bf16 %v5288_v9  ;;  %v4434_v27 = vunpack.c.h.bf16 %v5288_v9 }
  0xf7   : > { %v3529_v30 = vadd.f32 %v3528_v22, %v3306_v16  ;;  %v4922_v31 = vpack.c.bf16 %v1734_v24, %v1733_v20  ;;  %v3076_v32 = vadd.f32 %v3075_v21, %v1733_v20  ;;  %v3308_v33 = vmul.f32 %v1734_v24, %v1734_v24 }
  0xf8   : > { %v1056_v34 = vadd.f32 %v5782_v28, %v825_v18  ;;  %v1057_v35 = vadd.f32 %v5782_v28, %v826_v25  ;;  %v827_v37 = vmul.f32 %v5986_v36, %v4433_v26  ;;  %v828_v17 = vmul.f32 %v5986_v36, %v4434_v27 }
  0xf9   : > { %5397 = vst [vmem:[%s5589_s12 + $0x180] sm:$0xff] %v4922_v31   ;;  %v3077_v39 = vadd.f32 %v3076_v32, %v1734_v24  ;;  %v3530_v40 = vadd.f32 %v3529_v30, %v3307_v23  ;;  %v4437_v41 = vunpack.c.l.bf16 %v5289_v29  ;;  %v4438_v42 = vunpack.c.h.bf16 %v5289_v29  ;;  %v5292_v24 = vld [vmem:[%s5543_s27 + $0x1b0] sm:$0xff]  }
  0xfa   : > { %vm1280_vm2 = vcmp.ge.f32.partialorder %v1056_v34, 0.0  ;;  %vm1281_vm3 = vcmp.ge.f32.partialorder %v1057_v35, 0.0  ;;  %v1511_v44 = vmul.f32 %v5793_v38, %v1056_v34  ;;  %v1512_v28 = vmul.f32 %v5793_v38, %v1057_v35 }
  0xfb   : > { %v3531_v45 = vadd.f32 %v3530_v40, %v3308_v33  ;;  %v1058_v47 = vadd.f32 %v5997_v46, %v827_v37  ;;  %v1059_v48 = vadd.f32 %v5997_v46, %v828_v17  ;;  %v829_v49 = vmul.f32 %v5986_v36, %v4437_v41 }
  0xfc   : > { %v1735_v50 = vsel %vm1280_vm2, %v1056_v34, %v1511_v44  ;;  %v1736_v51 = vsel %vm1281_vm3, %v1057_v35, %v1512_v28  ;;  %v830_v52 = vmul.f32 %v5986_v36, %v4438_v42  ;;  %v4441_v53 = vunpack.c.l.bf16 %v5290_v43  ;;  %v5293_v28 = vld [vmem:[%s5543_s27 + $0x1b8] sm:$0xff]  }
  0xfd   : > { %v4927_v54 = vpack.c.bf16 %v1736_v51, %v1735_v50  ;;  %v3078_v38 = vadd.f32 %v3077_v39, %v1735_v50  ;;  %v3309_v55 = vmul.f32 %v1735_v50, %v1735_v50  ;;  %v3310_v56 = vmul.f32 %v1736_v51, %v1736_v51 }
  0xfe   : > { %vm1282_vm4 = vcmp.ge.f32.partialorder %v1058_v47, 0.0  ;;  %vm1283_vm5 = vcmp.ge.f32.partialorder %v1059_v48, 0.0  ;;  %v1513_v58 = vmul.f32 %v6006_v57, %v1058_v47  ;;  %v1514_v59 = vmul.f32 %v6006_v57, %v1059_v48 }
  0xff   : > { %5398 = vst [vmem:[%s5589_s12 + $0x188] sm:$0xff] %v4927_v54   ;;  %v3079_v60 = vadd.f32 %v3078_v38, %v1736_v51  ;;  %v3532_v61 = vadd.f32 %v3531_v45, %v3309_v55  ;;  %v1060_v62 = vadd.f32 %v5997_v46, %v829_v49  ;;  %v1061_v63 = vadd.f32 %v5997_v46, %v830_v52 }
 0x100   : > { %v1737_v1 = vsel %vm1282_vm4, %v1058_v47, %v1513_v58  ;;  %v1738_v0 = vsel %vm1283_vm5, %v1059_v48, %v1514_v59  ;;  %v4442_v2 = vunpack.c.h.bf16 %v5290_v43  ;;  %v831_v3 = vmul.f32 %v5986_v36, %v4441_v53 }
 0x101   : > { %v3533_v4 = vadd.f32 %v3532_v61, %v3310_v56  ;;  %v4932_v5 = vpack.c.bf16 %v1738_v0, %v1737_v1  ;;  %v3080_v6 = vadd.f32 %v3079_v60, %v1737_v1  ;;  %v3311_v7 = vmul.f32 %v1737_v1, %v1737_v1  ;;  %v5294_v1 = vld [vmem:[%s5543_s27 + $0x1c0] sm:$0xff]  }
 0x102   : > { %v3312_v10 = vmul.f32 %v1738_v0, %v1738_v0  ;;  %vm1284_vm6 = vcmp.ge.f32.partialorder %v1060_v62, 0.0  ;;  %vm1285_vm7 = vcmp.ge.f32.partialorder %v1061_v63, 0.0  ;;  %v1515_v11 = vmul.f32 %v6006_v57, %v1060_v62 }
 0x103   : > { %5399 = vst [vmem:[%s5589_s12 + $0x190] sm:$0xff] %v4932_v5   ;;  %v3081_v12 = vadd.f32 %v3080_v6, %v1738_v0  ;;  %v3534_v13 = vadd.f32 %v3533_v4, %v3311_v7  ;;  %v1516_v14 = vmul.f32 %v6006_v57, %v1061_v63  ;;  %v832_v15 = vmul.f32 %v5986_v36, %v4442_v2  ;;  %v5295_v5 = vld [vmem:[%s5543_s27 + $0x1c8] sm:$0xff]  }
 0x104   : > { %v1739_v9 = vsel %vm1284_vm6, %v1060_v62, %v1515_v11  ;;  %v1062_v16 = vadd.f32 %v5997_v46, %v831_v3  ;;  %v4445_v19 = vunpack.c.l.bf16 %v5291_v8  ;;  %v4446_v20 = vunpack.c.h.bf16 %v5291_v8 }
 0x105   : > { %v3535_v21 = vadd.f32 %v3534_v13, %v3312_v10  ;;  %v1740_v22 = vsel %vm1285_vm7, %v1061_v63, %v1516_v14  ;;  %v3082_v23 = vadd.f32 %v3081_v12, %v1739_v9  ;;  %v3313_v18 = vmul.f32 %v1739_v9, %v1739_v9 }
 0x106   : > { %v4937_v25 = vpack.c.bf16 %v1740_v22, %v1739_v9  ;;  %v3314_v26 = vmul.f32 %v1740_v22, %v1740_v22  ;;  %v1063_v27 = vadd.f32 %v5997_v46, %v832_v15  ;;  %vm1286_vm8 = vcmp.ge.f32.partialorder %v1062_v16, 0.0 }
 0x107   : > { %v3083_v29 = vadd.f32 %v3082_v23, %v1740_v22  ;;  %v3536_v30 = vadd.f32 %v3535_v21, %v3313_v18  ;;  %v1517_v31 = vmul.f32 %v6006_v57, %v1062_v16  ;;  %v833_v32 = vmul.f32 %v5986_v36, %v4445_v19 }
 0x108   : > { %5400 = vst [vmem:[%s5589_s12 + $0x198] sm:$0xff] %v4937_v25   ;;  %vm1287_vm9 = vcmp.ge.f32.partialorder %v1063_v27, 0.0  ;;  %v1518_v33 = vmul.f32 %v6006_v57, %v1063_v27  ;;  %v834_v34 = vmul.f32 %v5986_v36, %v4446_v20  ;;  %v4449_v35 = vunpack.c.l.bf16 %v5292_v24 }
 0x109   : > { %v3537_v37 = vadd.f32 %v3536_v30, %v3314_v26  ;;  %v1741_v17 = vsel %vm1286_vm8, %v1062_v16, %v1517_v31  ;;  %v1064_v39 = vadd.f32 %v5997_v46, %v833_v32  ;;  %v4450_v40 = vunpack.c.h.bf16 %v5292_v24 }
 0x10a   : > { %v1742_v41 = vsel %vm1287_vm9, %v1063_v27, %v1518_v33  ;;  %v3084_v42 = vadd.f32 %v3083_v29, %v1741_v17  ;;  %v3315_v43 = vmul.f32 %v1741_v17, %v1741_v17  ;;  %v1065_v44 = vadd.f32 %v5997_v46, %v834_v34 }
 0x10b   : > { %v4942_v45 = vpack.c.bf16 %v1742_v41, %v1741_v17  ;;  %v3316_v47 = vmul.f32 %v1742_v41, %v1742_v41  ;;  %vm1288_vm10 = vcmp.ge.f32.partialorder %v1064_v39, 0.0  ;;  %v1519_v48 = vmul.f32 %v6006_v57, %v1064_v39 }
 0x10c   : > { %v3085_v49 = vadd.f32 %v3084_v42, %v1742_v41  ;;  %v3538_v50 = vadd.f32 %v3537_v37, %v3315_v43  ;;  %vm1289_vm11 = vcmp.ge.f32.partialorder %v1065_v44, 0.0  ;;  %v1520_v51 = vmul.f32 %v6006_v57, %v1065_v44 }
 0x10d   : > { %5401 = vst [vmem:[%s5589_s12 + $0x1a0] sm:$0xff] %v4942_v45   ;;  %v1743_v52 = vsel %vm1288_vm10, %v1064_v39, %v1519_v48  ;;  %v835_v53 = vmul.f32 %v5986_v36, %v4449_v35  ;;  %v836_v54 = vmul.f32 %v5986_v36, %v4450_v40  ;;  %v4453_v38 = vunpack.c.l.bf16 %v5293_v28 }
 0x10e   : > { %v3539_v55 = vadd.f32 %v3538_v50, %v3316_v47  ;;  %v1744_v56 = vsel %vm1289_vm11, %v1065_v44, %v1520_v51  ;;  %v3086_v58 = vadd.f32 %v3085_v49, %v1743_v52  ;;  %v3317_v59 = vmul.f32 %v1743_v52, %v1743_v52  ;;  %v5296_v44 = vld [vmem:[%s5543_s27 + $0x1d0] sm:$0xff]  }
 0x10f   : > { %v4947_v60 = vpack.c.bf16 %v1744_v56, %v1743_v52  ;;  %v3318_v61 = vmul.f32 %v1744_v56, %v1744_v56  ;;  %v1066_v62 = vadd.f32 %v5997_v46, %v835_v53  ;;  %v1067_v63 = vadd.f32 %v5997_v46, %v836_v54 }
 0x110   : > { %v3087_v0 = vadd.f32 %v3086_v58, %v1744_v56  ;;  %v3540_v2 = vadd.f32 %v3539_v55, %v3317_v59  ;;  %v4454_v3 = vunpack.c.h.bf16 %v5293_v28  ;;  %v837_v4 = vmul.f32 %v5986_v36, %v4453_v38  ;;  %v5297_v55 = vld [vmem:[%s5543_s27 + $0x1d8] sm:$0xff]  }
 0x111   : > { %5402 = vst [vmem:[%s5589_s12 + $0x1a8] sm:$0xff] %v4947_v60   ;;  %vm1290_vm12 = vcmp.ge.f32.partialorder %v1066_v62, 0.0  ;;  %vm1291_vm13 = vcmp.ge.f32.partialorder %v1067_v63, 0.0  ;;  %v1521_v6 = vmul.f32 %v6006_v57, %v1066_v62  ;;  %v1522_v7 = vmul.f32 %v6006_v57, %v1067_v63 }
 0x112   : > { %v3541_v8 = vadd.f32 %v3540_v2, %v3318_v61  ;;  %v838_v10 = vmul.f32 %v5986_v36, %v4454_v3  ;;  %v1068_v11 = vadd.f32 %v5997_v46, %v837_v4  ;;  %v4457_v12 = vunpack.c.l.bf16 %v5294_v1  ;;  %v5298_v61 = vld [vmem:[%s5543_s27 + $0x1e0] sm:$0xff]  }
 0x113   : > { %v1745_v13 = vsel %vm1290_vm12, %v1066_v62, %v1521_v6  ;;  %v1746_v14 = vsel %vm1291_vm13, %v1067_v63, %v1522_v7  ;;  %v4458_v15 = vunpack.c.h.bf16 %v5294_v1  ;;  %v4461_v9 = vunpack.c.l.bf16 %v5295_v5 }
 0x114   : > { %v4952_v16 = vpack.c.bf16 %v1746_v14, %v1745_v13  ;;  %v3088_v19 = vadd.f32 %v3087_v0, %v1745_v13  ;;  %v3319_v20 = vmul.f32 %v1745_v13, %v1745_v13  ;;  %v3320_v21 = vmul.f32 %v1746_v14, %v1746_v14 }
 0x115   : > { %v1069_v22 = vadd.f32 %v5997_v46, %v838_v10  ;;  %vm1292_vm14 = vcmp.ge.f32.partialorder %v1068_v11, 0.0  ;;  %v1523_v23 = vmul.f32 %v6006_v57, %v1068_v11  ;;  %v839_v18 = vmul.f32 %v5986_v36, %v4457_v12 }
 0x116   : > { %5403 = vst [vmem:[%s5589_s12 + $0x1b0] sm:$0xff] %v4952_v16   ;;  %v3089_v24 = vadd.f32 %v3088_v19, %v1746_v14  ;;  %v3542_v25 = vadd.f32 %v3541_v8, %v3319_v20  ;;  %v840_v26 = vmul.f32 %v5986_v36, %v4458_v15  ;;  %v4462_v27 = vunpack.c.h.bf16 %v5295_v5 }
 0x117   : > { %vm1293_vm15 = vcmp.ge.f32.partialorder %v1069_v22, 0.0  ;;  %v1524_v29 = vmul.f32 %v6006_v57, %v1069_v22  ;;  %v1747_v30 = vsel %vm1292_vm14, %v1068_v11, %v1523_v23  ;;  %v1070_v31 = vadd.f32 %v5997_v46, %v839_v18 }
 0x118   : > { %v3543_v32 = vadd.f32 %v3542_v25, %v3320_v21  ;;  %v3090_v33 = vadd.f32 %v3089_v24, %v1747_v30  ;;  %v3321_v34 = vmul.f32 %v1747_v30, %v1747_v30  ;;  %v1071_v35 = vadd.f32 %v5997_v46, %v840_v26 }
 0x119   : > { %v1748_v37 = vsel %vm1293_vm15, %v1069_v22, %v1524_v29  ;;  %vm1294_vm0 = vcmp.ge.f32.partialorder %v1070_v31, 0.0  ;;  %v1525_v17 = vmul.f32 %v6006_v57, %v1070_v31  ;;  %v841_v39 = vmul.f32 %v5986_v36, %v4461_v9  ;;  %v5299_v22 = vld [vmem:[%s5543_s27 + $0x1e8] sm:$0xff]  }
 0x11a   : > { %v4957_v40 = vpack.c.bf16 %v1748_v37, %v1747_v30  ;;  %v3091_v41 = vadd.f32 %v3090_v33, %v1748_v37  ;;  %v3322_v42 = vmul.f32 %v1748_v37, %v1748_v37  ;;  %v3544_v43 = vadd.f32 %v3543_v32, %v3321_v34 }
 0x11b   : > { %vm1295_vm1 = vcmp.ge.f32.partialorder %v1071_v35, 0.0  ;;  %v1526_v28 = vmul.f32 %v6006_v57, %v1071_v35  ;;  %v1749_v45 = vsel %vm1294_vm0, %v1070_v31, %v1525_v17  ;;  %v842_v47 = vmul.f32 %v5986_v36, %v4462_v27 }
 0x11c   : > { %5404 = vst [vmem:[%s5589_s12 + $0x1b8] sm:$0xff] %v4957_v40   ;;  %v3545_v48 = vadd.f32 %v3544_v43, %v3322_v42  ;;  %v3092_v49 = vadd.f32 %v3091_v41, %v1749_v45  ;;  %v3323_v50 = vmul.f32 %v1749_v45, %v1749_v45  ;;  %v1072_v51 = vadd.f32 %v5997_v46, %v841_v39 }
 0x11d   : > { %v1750_v52 = vsel %vm1295_vm1, %v1071_v35, %v1526_v28  ;;  %v1073_v53 = vadd.f32 %v5997_v46, %v842_v47  ;;  %v4465_v54 = vunpack.c.l.bf16 %v5296_v44  ;;  %v4466_v38 = vunpack.c.h.bf16 %v5296_v44 }
 0x11e   : > { %v4962_v56 = vpack.c.bf16 %v1750_v52, %v1749_v45  ;;  %v3093_v58 = vadd.f32 %v3092_v49, %v1750_v52  ;;  %v3324_v59 = vmul.f32 %v1750_v52, %v1750_v52  ;;  %v3546_v60 = vadd.f32 %v3545_v48, %v3323_v50 }
 0x11f   : > { %vm1296_vm2 = vcmp.ge.f32.partialorder %v1072_v51, 0.0  ;;  %vm1297_vm3 = vcmp.ge.f32.partialorder %v1073_v53, 0.0  ;;  %v1527_v62 = vmul.f32 %v6006_v57, %v1072_v51  ;;  %v1528_v63 = vmul.f32 %v6006_v57, %v1073_v53 }
 0x120   : > { %5405 = vst [vmem:[%s5589_s12 + $0x1c0] sm:$0xff] %v4962_v56   ;;  %v3547_v1 = vadd.f32 %v3546_v60, %v3324_v59  ;;  %v843_v0 = vmul.f32 %v5986_v36, %v4465_v54  ;;  %v844_v2 = vmul.f32 %v5986_v36, %v4466_v38  ;;  %v4469_v3 = vunpack.c.l.bf16 %v5297_v55 }
 0x121   : > { %v1751_v4 = vsel %vm1296_vm2, %v1072_v51, %v1527_v62  ;;  %v1752_v5 = vsel %vm1297_vm3, %v1073_v53, %v1528_v63  ;;  %v4470_v6 = vunpack.c.h.bf16 %v5297_v55  ;;  %v4473_v7 = vunpack.c.l.bf16 %v5298_v61  ;;  %v5300_v51 = vld [vmem:[%s5543_s27 + $0x1f0] sm:$0xff]   ;;  %v5301_v63 = vld [vmem:[%s5543_s27 + $0x1f8] sm:$0xff]  }
 0x122   : > { %v4967_v8 = vpack.c.bf16 %v1752_v5, %v1751_v4  ;;  %v3094_v10 = vadd.f32 %v3093_v58, %v1751_v4  ;;  %v3325_v11 = vmul.f32 %v1751_v4, %v1751_v4  ;;  %v3326_v12 = vmul.f32 %v1752_v5, %v1752_v5 }
 0x123   : > { %v1074_v13 = vadd.f32 %v5997_v46, %v843_v0  ;;  %v1075_v14 = vadd.f32 %v5997_v46, %v844_v2  ;;  %v845_v15 = vmul.f32 %v5986_v36, %v4469_v3  ;;  %v846_v9 = vmul.f32 %v5986_v36, %v4470_v6 }
 0x124   : > { %5406 = vst [vmem:[%s5589_s12 + $0x1c8] sm:$0xff] %v4967_v8   ;;  %v3095_v16 = vadd.f32 %v3094_v10, %v1752_v5  ;;  %v3548_v19 = vadd.f32 %v3547_v1, %v3325_v11  ;;  %v4474_v20 = vunpack.c.h.bf16 %v5298_v61  ;;  %v847_v21 = vmul.f32 %v5986_v36, %v4473_v7 }
 0x125   : > { %vm1298_vm4 = vcmp.ge.f32.partialorder %v1074_v13, 0.0  ;;  %vm1299_vm5 = vcmp.ge.f32.partialorder %v1075_v14, 0.0  ;;  %v1529_v23 = vmul.f32 %v6006_v57, %v1074_v13  ;;  %v1530_v18 = vmul.f32 %v6006_v57, %v1075_v14 }
 0x126   : > { %v3549_v24 = vadd.f32 %v3548_v19, %v3326_v12  ;;  %v1076_v25 = vadd.f32 %v5997_v46, %v845_v15  ;;  %v1077_v26 = vadd.f32 %v5997_v46, %v846_v9  ;;  %v848_v27 = vmul.f32 %v5986_v36, %v4474_v20 }
 0x127   : > { %v1753_v29 = vsel %vm1298_vm4, %v1074_v13, %v1529_v23  ;;  %v1754_v30 = vsel %vm1299_vm5, %v1075_v14, %v1530_v18  ;;  %v1078_v31 = vadd.f32 %v5997_v46, %v847_v21  ;;  %v4477_v32 = vunpack.c.l.bf16 %v5299_v22  ;;  %v5302_v13 = vld [vmem:[%s5543_s27 + $0x200] sm:$0xff]  }
 0x128   : > { %v4972_v33 = vpack.c.bf16 %v1754_v30, %v1753_v29  ;;  %v3096_v34 = vadd.f32 %v3095_v16, %v1753_v29  ;;  %v3327_v35 = vmul.f32 %v1753_v29, %v1753_v29  ;;  %v3328_v37 = vmul.f32 %v1754_v30, %v1754_v30 }
 0x129   : > { %vm1300_vm6 = vcmp.ge.f32.partialorder %v1076_v25, 0.0  ;;  %vm1301_vm7 = vcmp.ge.f32.partialorder %v1077_v26, 0.0  ;;  %v1531_v17 = vmul.f32 %v6006_v57, %v1076_v25  ;;  %v1532_v39 = vmul.f32 %v6006_v57, %v1077_v26 }
 0x12a   : > { %5407 = vst [vmem:[%s5589_s12 + $0x1d0] sm:$0xff] %v4972_v33   ;;  %v3097_v40 = vadd.f32 %v3096_v34, %v1754_v30  ;;  %v3550_v41 = vadd.f32 %v3549_v24, %v3327_v35  ;;  %v1079_v42 = vadd.f32 %v5997_v46, %v848_v27  ;;  %vm1302_vm8 = vcmp.ge.f32.partialorder %v1078_v31, 0.0 }
 0x12b   : > { %v1755_v43 = vsel %vm1300_vm6, %v1076_v25, %v1531_v17  ;;  %v1756_v44 = vsel %vm1301_vm7, %v1077_v26, %v1532_v39  ;;  %v1533_v28 = vmul.f32 %v6006_v57, %v1078_v31  ;;  %v4478_v45 = vunpack.c.h.bf16 %v5299_v22 }
 0x12c   : > { %v3551_v47 = vadd.f32 %v3550_v41, %v3328_v37  ;;  %v4977_v48 = vpack.c.bf16 %v1756_v44, %v1755_v43  ;;  %v3098_v49 = vadd.f32 %v3097_v40, %v1755_v43  ;;  %v3329_v50 = vmul.f32 %v1755_v43, %v1755_v43 }
 0x12d   : > { %v3330_v52 = vmul.f32 %v1756_v44, %v1756_v44  ;;  %vm1303_vm9 = vcmp.ge.f32.partialorder %v1079_v42, 0.0  ;;  %v1534_v53 = vmul.f32 %v6006_v57, %v1079_v42  ;;  %v1757_v54 = vsel %vm1302_vm8, %v1078_v31, %v1533_v28 }
 0x12e   : > { %5408 = vst [vmem:[%s5589_s12 + $0x1d8] sm:$0xff] %v4977_v48   ;;  %v3099_v38 = vadd.f32 %v3098_v49, %v1756_v44  ;;  %v3552_v55 = vadd.f32 %v3551_v47, %v3329_v50  ;;  %v3331_v56 = vmul.f32 %v1757_v54, %v1757_v54  ;;  %v849_v58 = vmul.f32 %v5986_v36, %v4477_v32  ;;  %v5303_v44 = vld [vmem:[%s5543_s27 + $0x208] sm:$0xff]  }
 0x12f   : > { %v1758_v59 = vsel %vm1303_vm9, %v1079_v42, %v1534_v53  ;;  %v850_v60 = vmul.f32 %v5986_v36, %v4478_v45  ;;  %v4481_v61 = vunpack.c.l.bf16 %v5300_v51  ;;  %v4482_v62 = vunpack.c.h.bf16 %v5300_v51 }
 0x130   : > { %v3553_v1 = vadd.f32 %v3552_v55, %v3330_v52  ;;  %v4982_v0 = vpack.c.bf16 %v1758_v59, %v1757_v54  ;;  %v3100_v2 = vadd.f32 %v3099_v38, %v1757_v54  ;;  %v3332_v3 = vmul.f32 %v1758_v59, %v1758_v59 }
 0x131   : > { %v1080_v4 = vadd.f32 %v5997_v46, %v849_v58  ;;  %v1081_v5 = vadd.f32 %v5997_v46, %v850_v60  ;;  %v851_v6 = vmul.f32 %v5986_v36, %v4481_v61  ;;  %v852_v7 = vmul.f32 %v5986_v36, %v4482_v62 }
 0x132   : > { %5409 = vst [vmem:[%s5589_s12 + $0x1e0] sm:$0xff] %v4982_v0   ;;  %v3101_v8 = vadd.f32 %v3100_v2, %v1758_v59  ;;  %v3554_v10 = vadd.f32 %v3553_v1, %v3331_v56  ;;  %v4485_v11 = vunpack.c.l.bf16 %v5301_v63  ;;  %v4486_v12 = vunpack.c.h.bf16 %v5301_v63  ;;  %v5304_v59 = vld [vmem:[%s5543_s27 + $0x210] sm:$0xff]  }
 0x133   : > { %vm1304_vm10 = vcmp.ge.f32.partialorder %v1080_v4, 0.0  ;;  %vm1305_vm11 = vcmp.ge.f32.partialorder %v1081_v5, 0.0  ;;  %v1535_v14 = vmul.f32 %v6006_v57, %v1080_v4  ;;  %v1536_v15 = vmul.f32 %v6006_v57, %v1081_v5 }
 0x134   : > { %v3555_v9 = vadd.f32 %v3554_v10, %v3332_v3  ;;  %v1082_v16 = vadd.f32 %v5997_v46, %v851_v6  ;;  %v1083_v19 = vadd.f32 %v5997_v46, %v852_v7  ;;  %v853_v20 = vmul.f32 %v5986_v36, %v4485_v11 }
 0x135   : > { %v1759_v21 = vsel %vm1304_vm10, %v1080_v4, %v1535_v14  ;;  %v1760_v22 = vsel %vm1305_vm11, %v1081_v5, %v1536_v15  ;;  %v854_v23 = vmul.f32 %v5986_v36, %v4486_v12  ;;  %v4489_v18 = vunpack.c.l.bf16 %v5302_v13  ;;  %v5305_v15 = vld [vmem:[%s5543_s27 + $0x218] sm:$0xff]  }
 0x136   : > { %v4987_v24 = vpack.c.bf16 %v1760_v22, %v1759_v21  ;;  %v3102_v25 = vadd.f32 %v3101_v8, %v1759_v21  ;;  %v3333_v26 = vmul.f32 %v1759_v21, %v1759_v21  ;;  %v3334_v27 = vmul.f32 %v1760_v22, %v1760_v22 }
 0x137   : > { %vm1306_vm12 = vcmp.ge.f32.partialorder %v1082_v16, 0.0  ;;  %vm1307_vm13 = vcmp.ge.f32.partialorder %v1083_v19, 0.0  ;;  %v1537_v29 = vmul.f32 %v6006_v57, %v1082_v16  ;;  %v1538_v30 = vmul.f32 %v6006_v57, %v1083_v19 }
 0x138   : > { %5410 = vst [vmem:[%s5589_s12 + $0x1e8] sm:$0xff] %v4987_v24   ;;  %v3103_v31 = vadd.f32 %v3102_v25, %v1760_v22  ;;  %v3556_v32 = vadd.f32 %v3555_v9, %v3333_v26  ;;  %v1084_v33 = vadd.f32 %v5997_v46, %v853_v20  ;;  %v1085_v34 = vadd.f32 %v5997_v46, %v854_v23 }
 0x139   : > { %v1761_v35 = vsel %vm1306_vm12, %v1082_v16, %v1537_v29  ;;  %v1762_v37 = vsel %vm1307_vm13, %v1083_v19, %v1538_v30  ;;  %v4490_v17 = vunpack.c.h.bf16 %v5302_v13  ;;  %v855_v39 = vmul.f32 %v5986_v36, %v4489_v18 }
 0x13a   : > { %v3557_v40 = vadd.f32 %v3556_v32, %v3334_v27  ;;  %v4992_v41 = vpack.c.bf16 %v1762_v37, %v1761_v35  ;;  %v3104_v42 = vadd.f32 %v3103_v31, %v1761_v35  ;;  %v3335_v43 = vmul.f32 %v1761_v35, %v1761_v35  ;;  %v5306_v35 = vld [vmem:[%s5543_s27 + $0x220] sm:$0xff]  }
 0x13b   : > { %v3336_v28 = vmul.f32 %v1762_v37, %v1762_v37  ;;  %vm1308_vm14 = vcmp.ge.f32.partialorder %v1084_v33, 0.0  ;;  %vm1309_vm15 = vcmp.ge.f32.partialorder %v1085_v34, 0.0  ;;  %v1539_v45 = vmul.f32 %v6006_v57, %v1084_v33 }
 0x13c   : > { %5411 = vst [vmem:[%s5589_s12 + $0x1f0] sm:$0xff] %v4992_v41   ;;  %v3105_v47 = vadd.f32 %v3104_v42, %v1762_v37  ;;  %v3558_v48 = vadd.f32 %v3557_v40, %v3335_v43  ;;  %v1540_v49 = vmul.f32 %v6006_v57, %v1085_v34  ;;  %v856_v50 = vmul.f32 %v5986_v36, %v4490_v17  ;;  %v5307_v41 = vld [vmem:[%s5543_s27 + $0x228] sm:$0xff]  }
 0x13d   : > { %v1763_v51 = vsel %vm1308_vm14, %v1084_v33, %v1539_v45  ;;  %v1086_v52 = vadd.f32 %v5997_v46, %v855_v39  ;;  %v4493_v53 = vunpack.c.l.bf16 %v5303_v44  ;;  %v4494_v54 = vunpack.c.h.bf16 %v5303_v44 }
 0x13e   : > { %v3559_v38 = vadd.f32 %v3558_v48, %v3336_v28  ;;  %v1764_v55 = vsel %vm1309_vm15, %v1085_v34, %v1540_v49  ;;  %v3106_v56 = vadd.f32 %v3105_v47, %v1763_v51  ;;  %v3337_v58 = vmul.f32 %v1763_v51, %v1763_v51 }
 0x13f   : > { %v4997_v60 = vpack.c.bf16 %v1764_v55, %v1763_v51  ;;  %v3338_v61 = vmul.f32 %v1764_v55, %v1764_v55  ;;  %v1087_v62 = vadd.f32 %v5997_v46, %v856_v50  ;;  %vm1310_vm0 = vcmp.ge.f32.partialorder %v1086_v52, 0.0 }
 0x140   : > { %v3107_v63 = vadd.f32 %v3106_v56, %v1764_v55  ;;  %v3560_v1 = vadd.f32 %v3559_v38, %v3337_v58  ;;  %v1541_v0 = vmul.f32 %v6006_v57, %v1086_v52  ;;  %v857_v2 = vmul.f32 %v5986_v36, %v4493_v53 }
 0x141   : > { %5412 = vst [vmem:[%s5589_s12 + $0x1f8] sm:$0xff] %v4997_v60   ;;  %vm1311_vm1 = vcmp.ge.f32.partialorder %v1087_v62, 0.0  ;;  %v1542_v3 = vmul.f32 %v6006_v57, %v1087_v62  ;;  %v858_v4 = vmul.f32 %v5986_v36, %v4494_v54  ;;  %v4497_v5 = vunpack.c.l.bf16 %v5304_v59 }
 0x142   : > { %v3561_v6 = vadd.f32 %v3560_v1, %v3338_v61  ;;  %v1765_v7 = vsel %vm1310_vm0, %v1086_v52, %v1541_v0  ;;  %v1088_v8 = vadd.f32 %v5997_v46, %v857_v2  ;;  %v4498_v10 = vunpack.c.h.bf16 %v5304_v59 }
 0x143   : > { %v1766_v11 = vsel %vm1311_vm1, %v1087_v62, %v1542_v3  ;;  %v3108_v12 = vadd.f32 %v3107_v63, %v1765_v7  ;;  %v3339_v13 = vmul.f32 %v1765_v7, %v1765_v7  ;;  %v1089_v14 = vadd.f32 %v5997_v46, %v858_v4 }
 0x144   : > { %v5002_v9 = vpack.c.bf16 %v1766_v11, %v1765_v7  ;;  %v3340_v16 = vmul.f32 %v1766_v11, %v1766_v11  ;;  %vm1312_vm2 = vcmp.ge.f32.partialorder %v1088_v8, 0.0  ;;  %v1543_v19 = vmul.f32 %v6006_v57, %v1088_v8 }
 0x145   : > { %v3109_v20 = vadd.f32 %v3108_v12, %v1766_v11  ;;  %v3562_v21 = vadd.f32 %v3561_v6, %v3339_v13  ;;  %vm1313_vm3 = vcmp.ge.f32.partialorder %v1089_v14, 0.0  ;;  %v1544_v22 = vmul.f32 %v6006_v57, %v1089_v14 }
 0x146   : > { %5413 = vst [vmem:[%s5589_s12 + $0x200] sm:$0xff] %v5002_v9   ;;  %v1767_v23 = vsel %vm1312_vm2, %v1088_v8, %v1543_v19  ;;  %v859_v18 = vmul.f32 %v5986_v36, %v4497_v5  ;;  %v860_v24 = vmul.f32 %v5986_v36, %v4498_v10  ;;  %v4501_v25 = vunpack.c.l.bf16 %v5305_v15 }
 0x147   : > { %v3563_v26 = vadd.f32 %v3562_v21, %v3340_v16  ;;  %v1768_v27 = vsel %vm1313_vm3, %v1089_v14, %v1544_v22  ;;  %v3110_v29 = vadd.f32 %v3109_v20, %v1767_v23  ;;  %v3341_v30 = vmul.f32 %v1767_v23, %v1767_v23  ;;  %v5308_v14 = vld [vmem:[%s5543_s27 + $0x230] sm:$0xff]  }
 0x148   : > { %v5007_v31 = vpack.c.bf16 %v1768_v27, %v1767_v23  ;;  %v3342_v32 = vmul.f32 %v1768_v27, %v1768_v27  ;;  %v1090_v33 = vadd.f32 %v5997_v46, %v859_v18  ;;  %v1091_v34 = vadd.f32 %v5997_v46, %v860_v24 }
 0x149   : > { %v3111_v37 = vadd.f32 %v3110_v29, %v1768_v27  ;;  %v3564_v17 = vadd.f32 %v3563_v26, %v3341_v30  ;;  %v4502_v39 = vunpack.c.h.bf16 %v5305_v15  ;;  %v861_v40 = vmul.f32 %v5986_v36, %v4501_v25  ;;  %v5309_v26 = vld [vmem:[%s5543_s27 + $0x238] sm:$0xff]  }
 0x14a   : > { %5414 = vst [vmem:[%s5589_s12 + $0x208] sm:$0xff] %v5007_v31   ;;  %vm1314_vm4 = vcmp.ge.f32.partialorder %v1090_v33, 0.0  ;;  %vm1315_vm5 = vcmp.ge.f32.partialorder %v1091_v34, 0.0  ;;  %v1545_v42 = vmul.f32 %v6006_v57, %v1090_v33  ;;  %v1546_v43 = vmul.f32 %v6006_v57, %v1091_v34 }
 0x14b   : > { %v3565_v44 = vadd.f32 %v3564_v17, %v3342_v32  ;;  %v862_v28 = vmul.f32 %v5986_v36, %v4502_v39  ;;  %v1092_v45 = vadd.f32 %v5997_v46, %v861_v40  ;;  %v4505_v47 = vunpack.c.l.bf16 %v5306_v35  ;;  %v5310_v32 = vld [vmem:[%s5543_s27 + $0x240] sm:$0xff]  }
 0x14c   : > { %v1769_v48 = vsel %vm1314_vm4, %v1090_v33, %v1545_v42  ;;  %v1770_v49 = vsel %vm1315_vm5, %v1091_v34, %v1546_v43  ;;  %v4506_v50 = vunpack.c.h.bf16 %v5306_v35  ;;  %v4509_v51 = vunpack.c.l.bf16 %v5307_v41 }
 0x14d   : > { %v5012_v52 = vpack.c.bf16 %v1770_v49, %v1769_v48  ;;  %v3112_v53 = vadd.f32 %v3111_v37, %v1769_v48  ;;  %v3343_v54 = vmul.f32 %v1769_v48, %v1769_v48  ;;  %v3344_v38 = vmul.f32 %v1770_v49, %v1770_v49 }
 0x14e   : > { %v1093_v55 = vadd.f32 %v5997_v46, %v862_v28  ;;  %vm1316_vm6 = vcmp.ge.f32.partialorder %v1092_v45, 0.0  ;;  %v1547_v56 = vmul.f32 %v6006_v57, %v1092_v45  ;;  %v863_v58 = vmul.f32 %v5986_v36, %v4505_v47 }
 0x14f   : > { %5415 = vst [vmem:[%s5589_s12 + $0x210] sm:$0xff] %v5012_v52   ;;  %v3113_v59 = vadd.f32 %v3112_v53, %v1770_v49  ;;  %v3566_v60 = vadd.f32 %v3565_v44, %v3343_v54  ;;  %v864_v61 = vmul.f32 %v5986_v36, %v4506_v50  ;;  %v4510_v62 = vunpack.c.h.bf16 %v5307_v41 }
 0x150   : > { %vm1317_vm7 = vcmp.ge.f32.partialorder %v1093_v55, 0.0  ;;  %v1548_v63 = vmul.f32 %v6006_v57, %v1093_v55  ;;  %v1771_v1 = vsel %vm1316_vm6, %v1092_v45, %v1547_v56  ;;  %v1094_v0 = vadd.f32 %v5997_v46, %v863_v58 }
 0x151   : > { %v3567_v2 = vadd.f32 %v3566_v60, %v3344_v38  ;;  %v3114_v3 = vadd.f32 %v3113_v59, %v1771_v1  ;;  %v3345_v4 = vmul.f32 %v1771_v1, %v1771_v1  ;;  %v1095_v5 = vadd.f32 %v5997_v46, %v864_v61 }
 0x152   : > { %v1772_v6 = vsel %vm1317_vm7, %v1093_v55, %v1548_v63  ;;  %vm1318_vm8 = vcmp.ge.f32.partialorder %v1094_v0, 0.0  ;;  %v1549_v7 = vmul.f32 %v6006_v57, %v1094_v0  ;;  %v865_v8 = vmul.f32 %v5986_v36, %v4509_v51  ;;  %v5311_v55 = vld [vmem:[%s5543_s27 + $0x248] sm:$0xff]  }
 0x153   : > { %v5017_v10 = vpack.c.bf16 %v1772_v6, %v1771_v1  ;;  %v3115_v11 = vadd.f32 %v3114_v3, %v1772_v6  ;;  %v3346_v12 = vmul.f32 %v1772_v6, %v1772_v6  ;;  %v3568_v13 = vadd.f32 %v3567_v2, %v3345_v4 }
 0x154   : > { %vm1319_vm9 = vcmp.ge.f32.partialorder %v1095_v5, 0.0  ;;  %v1550_v15 = vmul.f32 %v6006_v57, %v1095_v5  ;;  %v1773_v9 = vsel %vm1318_vm8, %v1094_v0, %v1549_v7  ;;  %v866_v16 = vmul.f32 %v5986_v36, %v4510_v62 }
 0x155   : > { %5416 = vst [vmem:[%s5589_s12 + $0x218] sm:$0xff] %v5017_v10   ;;  %v3569_v19 = vadd.f32 %v3568_v13, %v3346_v12  ;;  %v3116_v20 = vadd.f32 %v3115_v11, %v1773_v9  ;;  %v3347_v21 = vmul.f32 %v1773_v9, %v1773_v9  ;;  %v1096_v22 = vadd.f32 %v5997_v46, %v865_v8 }
 0x156   : > { %v1774_v23 = vsel %vm1319_vm9, %v1095_v5, %v1550_v15  ;;  %v1097_v18 = vadd.f32 %v5997_v46, %v866_v16  ;;  %v4513_v24 = vunpack.c.l.bf16 %v5308_v14  ;;  %v4514_v25 = vunpack.c.h.bf16 %v5308_v14 }
 0x157   : > { %v5022_v27 = vpack.c.bf16 %v1774_v23, %v1773_v9  ;;  %v3117_v29 = vadd.f32 %v3116_v20, %v1774_v23  ;;  %v3348_v30 = vmul.f32 %v1774_v23, %v1774_v23  ;;  %v3570_v31 = vadd.f32 %v3569_v19, %v3347_v21 }
 0x158   : > { %vm1320_vm10 = vcmp.ge.f32.partialorder %v1096_v22, 0.0  ;;  %vm1321_vm11 = vcmp.ge.f32.partialorder %v1097_v18, 0.0  ;;  %v1551_v33 = vmul.f32 %v6006_v57, %v1096_v22  ;;  %v1552_v34 = vmul.f32 %v6006_v57, %v1097_v18 }
 0x159   : > { %5417 = vst [vmem:[%s5589_s12 + $0x220] sm:$0xff] %v5022_v27   ;;  %v3571_v35 = vadd.f32 %v3570_v31, %v3348_v30  ;;  %v867_v37 = vmul.f32 %v5986_v36, %v4513_v24  ;;  %v868_v17 = vmul.f32 %v5986_v36, %v4514_v25  ;;  %v4517_v39 = vunpack.c.l.bf16 %v5309_v26 }
 0x15a   : > { %v1775_v40 = vsel %vm1320_vm10, %v1096_v22, %v1551_v33  ;;  %v1776_v41 = vsel %vm1321_vm11, %v1097_v18, %v1552_v34  ;;  %v4518_v42 = vunpack.c.h.bf16 %v5309_v26  ;;  %v4521_v43 = vunpack.c.l.bf16 %v5310_v32  ;;  %v5312_v22 = vld [vmem:[%s5543_s27 + $0x250] sm:$0xff]   ;;  %v5313_v34 = vld [vmem:[%s5543_s27 + $0x258] sm:$0xff]  }
 0x15b   : > { %v5027_v44 = vpack.c.bf16 %v1776_v41, %v1775_v40  ;;  %v3118_v28 = vadd.f32 %v3117_v29, %v1775_v40  ;;  %v3349_v45 = vmul.f32 %v1775_v40, %v1775_v40  ;;  %v3350_v47 = vmul.f32 %v1776_v41, %v1776_v41 }
 0x15c   : > { %v1098_v48 = vadd.f32 %v5997_v46, %v867_v37  ;;  %v1099_v49 = vadd.f32 %v5997_v46, %v868_v17  ;;  %v869_v50 = vmul.f32 %v5986_v36, %v4517_v39  ;;  %v870_v51 = vmul.f32 %v5986_v36, %v4518_v42 }
 0x15d   : > { %5418 = vst [vmem:[%s5589_s12 + $0x228] sm:$0xff] %v5027_v44   ;;  %v3119_v52 = vadd.f32 %v3118_v28, %v1776_v41  ;;  %v3572_v53 = vadd.f32 %v3571_v35, %v3349_v45  ;;  %v4522_v54 = vunpack.c.h.bf16 %v5310_v32  ;;  %v871_v38 = vmul.f32 %v5986_v36, %v4521_v43 }
 0x15e   : > { %vm1322_vm12 = vcmp.ge.f32.partialorder %v1098_v48, 0.0  ;;  %vm1323_vm13 = vcmp.ge.f32.partialorder %v1099_v49, 0.0  ;;  %v1553_v56 = vmul.f32 %v6006_v57, %v1098_v48  ;;  %v1554_v58 = vmul.f32 %v6006_v57, %v1099_v49 }
 0x15f   : > { %v3573_v59 = vadd.f32 %v3572_v53, %v3350_v47  ;;  %v1100_v60 = vadd.f32 %v5997_v46, %v869_v50  ;;  %v1101_v61 = vadd.f32 %v5997_v46, %v870_v51  ;;  %v872_v62 = vmul.f32 %v5986_v36, %v4522_v54 }
 0x160   : > { %v1777_v63 = vsel %vm1322_vm12, %v1098_v48, %v1553_v56  ;;  %v1778_v1 = vsel %vm1323_vm13, %v1099_v49, %v1554_v58  ;;  %v1102_v0 = vadd.f32 %v5997_v46, %v871_v38  ;;  %v4525_v2 = vunpack.c.l.bf16 %v5311_v55  ;;  %v5314_v48 = vld [vmem:[%s5543_s27 + $0x260] sm:$0xff]  }
 0x161   : > { %v5032_v3 = vpack.c.bf16 %v1778_v1, %v1777_v63  ;;  %v3120_v4 = vadd.f32 %v3119_v52, %v1777_v63  ;;  %v3351_v5 = vmul.f32 %v1777_v63, %v1777_v63  ;;  %v3352_v6 = vmul.f32 %v1778_v1, %v1778_v1 }
 0x162   : > { %vm1324_vm14 = vcmp.ge.f32.partialorder %v1100_v60, 0.0  ;;  %vm1325_vm15 = vcmp.ge.f32.partialorder %v1101_v61, 0.0  ;;  %v1555_v7 = vmul.f32 %v6006_v57, %v1100_v60  ;;  %v1556_v8 = vmul.f32 %v6006_v57, %v1101_v61 }
 0x163   : > { %5419 = vst [vmem:[%s5589_s12 + $0x230] sm:$0xff] %v5032_v3   ;;  %v3121_v10 = vadd.f32 %v3120_v4, %v1778_v1  ;;  %v3574_v11 = vadd.f32 %v3573_v59, %v3351_v5  ;;  %v1103_v12 = vadd.f32 %v5997_v46, %v872_v62  ;;  %vm1326_vm0 = vcmp.ge.f32.partialorder %v1102_v0, 0.0 }
 0x164   : > { %v1779_v13 = vsel %vm1324_vm14, %v1100_v60, %v1555_v7  ;;  %v1780_v14 = vsel %vm1325_vm15, %v1101_v61, %v1556_v8  ;;  %v1557_v15 = vmul.f32 %v6006_v57, %v1102_v0  ;;  %v4526_v9 = vunpack.c.h.bf16 %v5311_v55 }
 0x165   : > { %v3575_v16 = vadd.f32 %v3574_v11, %v3352_v6  ;;  %v5037_v19 = vpack.c.bf16 %v1780_v14, %v1779_v13  ;;  %v3122_v20 = vadd.f32 %v3121_v10, %v1779_v13  ;;  %v3353_v21 = vmul.f32 %v1779_v13, %v1779_v13  ;;  %v5315_v13 = vld [vmem:[%s5543_s27 + $0x268] sm:$0xff]  }
 0x166   : > { %v3354_v23 = vmul.f32 %v1780_v14, %v1780_v14  ;;  %vm1327_vm1 = vcmp.ge.f32.partialorder %v1103_v12, 0.0  ;;  %v1558_v18 = vmul.f32 %v6006_v57, %v1103_v12  ;;  %v1781_v24 = vsel %vm1326_vm0, %v1102_v0, %v1557_v15  ;;  %v6220_v15 = vld [vmem:[%s6540_s3] ss:$0 sm:$0xff] }
 0x167   : > { %5420 = vst [vmem:[%s5589_s12 + $0x238] sm:$0xff] %v5037_v19   ;;  %v3123_v25 = vadd.f32 %v3122_v20, %v1780_v14  ;;  %v3576_v26 = vadd.f32 %v3575_v16, %v3353_v21  ;;  %v3355_v27 = vmul.f32 %v1781_v24, %v1781_v24  ;;  %v873_v29 = vmul.f32 %v5986_v36, %v4525_v2  ;;  %v6211_v2 = vld [vmem:[%s6539_s2] ss:$0 sm:$0xff] }
 0x168   : > { %v1782_v30 = vsel %vm1327_vm1, %v1103_v12, %v1558_v18  ;;  %v874_v31 = vmul.f32 %v5986_v36, %v4526_v9  ;;  %v4529_v32 = vunpack.c.l.bf16 %v5312_v22  ;;  %v4530_v33 = vunpack.c.h.bf16 %v5312_v22 }
 0x169   : > { %v3577_v35 = vadd.f32 %v3576_v26, %v3354_v23  ;;  %v5042_v37 = vpack.c.bf16 %v1782_v30, %v1781_v24  ;;  %v3124_v17 = vadd.f32 %v3123_v25, %v1781_v24  ;;  %v3356_v39 = vmul.f32 %v1782_v30, %v1782_v30 }
 0x16a   : > { %v1104_v40 = vadd.f32 %v5997_v46, %v873_v29  ;;  %v1105_v41 = vadd.f32 %v5997_v46, %v874_v31  ;;  %v875_v42 = vmul.f32 %v5986_v36, %v4529_v32  ;;  %v876_v43 = vmul.f32 %v5986_v36, %v4530_v33  ;;  %v6201_v36 = vld [vmem:[%s6538_s1] ss:$0 sm:$0xff] }
 0x16b   : > { %5421 = vst [vmem:[%s5589_s12 + $0x240] sm:$0xff] %v5042_v37   ;;  %v3125_v44 = vadd.f32 %v3124_v17, %v1782_v30  ;;  %v3578_v28 = vadd.f32 %v3577_v35, %v3355_v27  ;;  %v4533_v45 = vunpack.c.l.bf16 %v5313_v34  ;;  %v4534_v47 = vunpack.c.h.bf16 %v5313_v34  ;;  %v5316_v30 = vld [vmem:[%s5543_s27 + $0x270] sm:$0xff]  }
 0x16c   : > { %vm1328_vm2 = vcmp.ge.f32.partialorder %v1104_v40, 0.0  ;;  %vm1329_vm3 = vcmp.ge.f32.partialorder %v1105_v41, 0.0  ;;  %v1559_v49 = vmul.f32 %v6006_v57, %v1104_v40  ;;  %v1560_v50 = vmul.f32 %v6006_v57, %v1105_v41 }
 0x16d   : > { %v3579_v51 = vadd.f32 %v3578_v28, %v3356_v39  ;;  %v1106_v52 = vadd.f32 %v5997_v46, %v875_v42  ;;  %v1107_v53 = vadd.f32 %v5997_v46, %v876_v43  ;;  %v877_v54 = vmul.f32 %v6201_v36, %v4533_v45 }
 0x16e   : > { %v1783_v38 = vsel %vm1328_vm2, %v1104_v40, %v1559_v49  ;;  %v1784_v55 = vsel %vm1329_vm3, %v1105_v41, %v1560_v50  ;;  %v878_v56 = vmul.f32 %v6201_v36, %v4534_v47  ;;  %v4537_v58 = vunpack.c.l.bf16 %v5314_v48  ;;  %v5317_v50 = vld [vmem:[%s5543_s27 + $0x278] sm:$0xff]  }
 0x16f   : > { %v5047_v59 = vpack.c.bf16 %v1784_v55, %v1783_v38  ;;  %v3126_v60 = vadd.f32 %v3125_v44, %v1783_v38  ;;  %v3357_v61 = vmul.f32 %v1783_v38, %v1783_v38  ;;  %v3358_v62 = vmul.f32 %v1784_v55, %v1784_v55 }
 0x170   : > { %vm1330_vm4 = vcmp.ge.f32.partialorder %v1106_v52, 0.0  ;;  %vm1331_vm5 = vcmp.ge.f32.partialorder %v1107_v53, 0.0  ;;  %v1561_v46 = vmul.f32 %v6006_v57, %v1106_v52  ;;  %v1562_v63 = vmul.f32 %v6006_v57, %v1107_v53 }
 0x171   : > { %5422 = vst [vmem:[%s5589_s12 + $0x248] sm:$0xff] %v5047_v59   ;;  %v3127_v1 = vadd.f32 %v3126_v60, %v1784_v55  ;;  %v3580_v0 = vadd.f32 %v3579_v51, %v3357_v61  ;;  %v1108_v3 = vadd.f32 %v6211_v2, %v877_v54  ;;  %v1109_v4 = vadd.f32 %v6211_v2, %v878_v56 }
 0x172   : > { %v1785_v5 = vsel %vm1330_vm4, %v1106_v52, %v1561_v46  ;;  %v1786_v6 = vsel %vm1331_vm5, %v1107_v53, %v1562_v63  ;;  %v4538_v7 = vunpack.c.h.bf16 %v5314_v48  ;;  %v879_v8 = vmul.f32 %v6201_v36, %v4537_v58 }
 0x173   : > { %v3581_v10 = vadd.f32 %v3580_v0, %v3358_v62  ;;  %v5052_v57 = vpack.c.bf16 %v1786_v6, %v1785_v5  ;;  %v3128_v11 = vadd.f32 %v3127_v1, %v1785_v5  ;;  %v3359_v12 = vmul.f32 %v1785_v5, %v1785_v5  ;;  %v5318_v5 = vld [vmem:[%s5543_s27 + $0x280] sm:$0xff]  }
 0x174   : > { %v3360_v14 = vmul.f32 %v1786_v6, %v1786_v6  ;;  %vm1332_vm6 = vcmp.ge.f32.partialorder %v1108_v3, 0.0  ;;  %vm1333_vm7 = vcmp.ge.f32.partialorder %v1109_v4, 0.0  ;;  %v1563_v9 = vmul.f32 %v6220_v15, %v1108_v3 }
 0x175   : > { %5423 = vst [vmem:[%s5589_s12 + $0x250] sm:$0xff] %v5052_v57   ;;  %v3129_v16 = vadd.f32 %v3128_v11, %v1786_v6  ;;  %v3582_v19 = vadd.f32 %v3581_v10, %v3359_v12  ;;  %v1564_v20 = vmul.f32 %v6220_v15, %v1109_v4  ;;  %v880_v21 = vmul.f32 %v6201_v36, %v4538_v7  ;;  %v5319_v57 = vld [vmem:[%s5543_s27 + $0x288] sm:$0xff]  }
 0x176   : > { %v1787_v22 = vsel %vm1332_vm6, %v1108_v3, %v1563_v9  ;;  %v1110_v23 = vadd.f32 %v6211_v2, %v879_v8  ;;  %v4541_v18 = vunpack.c.l.bf16 %v5315_v13  ;;  %v4542_v24 = vunpack.c.h.bf16 %v5315_v13 }
 0x177   : > { %v3583_v25 = vadd.f32 %v3582_v19, %v3360_v14  ;;  %v1788_v26 = vsel %vm1333_vm7, %v1109_v4, %v1564_v20  ;;  %v3130_v27 = vadd.f32 %v3129_v16, %v1787_v22  ;;  %v3361_v29 = vmul.f32 %v1787_v22, %v1787_v22 }
 0x178   : > { %v5057_v31 = vpack.c.bf16 %v1788_v26, %v1787_v22  ;;  %v3362_v32 = vmul.f32 %v1788_v26, %v1788_v26  ;;  %v1111_v33 = vadd.f32 %v6211_v2, %v880_v21  ;;  %vm1334_vm8 = vcmp.ge.f32.partialorder %v1110_v23, 0.0 }
 0x179   : > { %v3131_v34 = vadd.f32 %v3130_v27, %v1788_v26  ;;  %v3584_v35 = vadd.f32 %v3583_v25, %v3361_v29  ;;  %v1565_v37 = vmul.f32 %v6220_v15, %v1110_v23  ;;  %v881_v17 = vmul.f32 %v6201_v36, %v4541_v18 }
 0x17a   : > { %5424 = vst [vmem:[%s5589_s12 + $0x258] sm:$0xff] %v5057_v31   ;;  %vm1335_vm9 = vcmp.ge.f32.partialorder %v1111_v33, 0.0  ;;  %v1566_v39 = vmul.f32 %v6220_v15, %v1111_v33  ;;  %v882_v40 = vmul.f32 %v6201_v36, %v4542_v24  ;;  %v4545_v41 = vunpack.c.l.bf16 %v5316_v30 }
 0x17b   : > { %v3585_v42 = vadd.f32 %v3584_v35, %v3362_v32  ;;  %v1789_v43 = vsel %vm1334_vm8, %v1110_v23, %v1565_v37  ;;  %v1112_v44 = vadd.f32 %v6211_v2, %v881_v17  ;;  %v4546_v28 = vunpack.c.h.bf16 %v5316_v30 }
 0x17c   : > { %v1790_v45 = vsel %vm1335_vm9, %v1111_v33, %v1566_v39  ;;  %v3132_v47 = vadd.f32 %v3131_v34, %v1789_v43  ;;  %v3363_v48 = vmul.f32 %v1789_v43, %v1789_v43  ;;  %v1113_v49 = vadd.f32 %v6211_v2, %v882_v40 }
 0x17d   : > { %v5062_v51 = vpack.c.bf16 %v1790_v45, %v1789_v43  ;;  %v3364_v52 = vmul.f32 %v1790_v45, %v1790_v45  ;;  %vm1336_vm10 = vcmp.ge.f32.partialorder %v1112_v44, 0.0  ;;  %v1567_v53 = vmul.f32 %v6220_v15, %v1112_v44 }
 0x17e   : > { %v3133_v54 = vadd.f32 %v3132_v47, %v1790_v45  ;;  %v3586_v38 = vadd.f32 %v3585_v42, %v3363_v48  ;;  %vm1337_vm11 = vcmp.ge.f32.partialorder %v1113_v49, 0.0  ;;  %v1568_v55 = vmul.f32 %v6220_v15, %v1113_v49 }
 0x17f   : > { %5425 = vst [vmem:[%s5589_s12 + $0x260] sm:$0xff] %v5062_v51   ;;  %v1791_v56 = vsel %vm1336_vm10, %v1112_v44, %v1567_v53  ;;  %v883_v58 = vmul.f32 %v6201_v36, %v4545_v41  ;;  %v884_v59 = vmul.f32 %v6201_v36, %v4546_v28  ;;  %v4549_v60 = vunpack.c.l.bf16 %v5317_v50 }
 0x180   : > { %v3587_v61 = vadd.f32 %v3586_v38, %v3364_v52  ;;  %v1792_v62 = vsel %vm1337_vm11, %v1113_v49, %v1568_v55  ;;  %v3134_v46 = vadd.f32 %v3133_v54, %v1791_v56  ;;  %v3365_v63 = vmul.f32 %v1791_v56, %v1791_v56  ;;  %v5320_v49 = vld [vmem:[%s5543_s27 + $0x290] sm:$0xff]  }
 0x181   : > { %v5067_v1 = vpack.c.bf16 %v1792_v62, %v1791_v56  ;;  %v3366_v0 = vmul.f32 %v1792_v62, %v1792_v62  ;;  %v1114_v3 = vadd.f32 %v6211_v2, %v883_v58  ;;  %v1115_v4 = vadd.f32 %v6211_v2, %v884_v59 }
 0x182   : > { %v3135_v6 = vadd.f32 %v3134_v46, %v1792_v62  ;;  %v3588_v7 = vadd.f32 %v3587_v61, %v3365_v63  ;;  %v4550_v8 = vunpack.c.h.bf16 %v5317_v50  ;;  %v885_v10 = vmul.f32 %v6201_v36, %v4549_v60  ;;  %v5321_v61 = vld [vmem:[%s5543_s27 + $0x298] sm:$0xff]  }
 0x183   : > { %5426 = vst [vmem:[%s5589_s12 + $0x268] sm:$0xff] %v5067_v1   ;;  %vm1338_vm12 = vcmp.ge.f32.partialorder %v1114_v3, 0.0  ;;  %vm1339_vm13 = vcmp.ge.f32.partialorder %v1115_v4, 0.0  ;;  %v1569_v11 = vmul.f32 %v6220_v15, %v1114_v3  ;;  %v1570_v12 = vmul.f32 %v6220_v15, %v1115_v4 }
 0x184   : > { %v3589_v13 = vadd.f32 %v3588_v7, %v3366_v0  ;;  %v886_v14 = vmul.f32 %v6201_v36, %v4550_v8  ;;  %v1116_v9 = vadd.f32 %v6211_v2, %v885_v10  ;;  %v4553_v16 = vunpack.c.l.bf16 %v5318_v5  ;;  %v5322_v0 = vld [vmem:[%s5543_s27 + $0x2a0] sm:$0xff]  }
 0x185   : > { %v1793_v19 = vsel %vm1338_vm12, %v1114_v3, %v1569_v11  ;;  %v1794_v20 = vsel %vm1339_vm13, %v1115_v4, %v1570_v12  ;;  %v4554_v21 = vunpack.c.h.bf16 %v5318_v5  ;;  %v4557_v22 = vunpack.c.l.bf16 %v5319_v57 }
 0x186   : > { %v5072_v23 = vpack.c.bf16 %v1794_v20, %v1793_v19  ;;  %v3136_v18 = vadd.f32 %v3135_v6, %v1793_v19  ;;  %v3367_v24 = vmul.f32 %v1793_v19, %v1793_v19  ;;  %v3368_v25 = vmul.f32 %v1794_v20, %v1794_v20 }
 0x187   : > { %v1117_v26 = vadd.f32 %v6211_v2, %v886_v14  ;;  %vm1340_vm14 = vcmp.ge.f32.partialorder %v1116_v9, 0.0  ;;  %v1571_v27 = vmul.f32 %v6220_v15, %v1116_v9  ;;  %v887_v29 = vmul.f32 %v6201_v36, %v4553_v16 }
 0x188   : > { %5427 = vst [vmem:[%s5589_s12 + $0x270] sm:$0xff] %v5072_v23   ;;  %v3137_v30 = vadd.f32 %v3136_v18, %v1794_v20  ;;  %v3590_v31 = vadd.f32 %v3589_v13, %v3367_v24  ;;  %v888_v32 = vmul.f32 %v6201_v36, %v4554_v21  ;;  %v4558_v33 = vunpack.c.h.bf16 %v5319_v57 }
 0x189   : > { %vm1341_vm15 = vcmp.ge.f32.partialorder %v1117_v26, 0.0  ;;  %v1572_v34 = vmul.f32 %v6220_v15, %v1117_v26  ;;  %v1795_v35 = vsel %vm1340_vm14, %v1116_v9, %v1571_v27  ;;  %v1118_v37 = vadd.f32 %v6211_v2, %v887_v29 }
 0x18a   : > { %v3591_v17 = vadd.f32 %v3590_v31, %v3368_v25  ;;  %v3138_v39 = vadd.f32 %v3137_v30, %v1795_v35  ;;  %v3369_v40 = vmul.f32 %v1795_v35, %v1795_v35  ;;  %v1119_v41 = vadd.f32 %v6211_v2, %v888_v32 }
 0x18b   : > { %v1796_v42 = vsel %vm1341_vm15, %v1117_v26, %v1572_v34  ;;  %vm1342_vm0 = vcmp.ge.f32.partialorder %v1118_v37, 0.0  ;;  %v1573_v43 = vmul.f32 %v6220_v15, %v1118_v37  ;;  %v889_v44 = vmul.f32 %v6201_v36, %v4557_v22  ;;  %v5323_v26 = vld [vmem:[%s5543_s27 + $0x2a8] sm:$0xff]  }
 0x18c   : > { %v5077_v28 = vpack.c.bf16 %v1796_v42, %v1795_v35  ;;  %v3139_v45 = vadd.f32 %v3138_v39, %v1796_v42  ;;  %v3370_v47 = vmul.f32 %v1796_v42, %v1796_v42  ;;  %v3592_v48 = vadd.f32 %v3591_v17, %v3369_v40 }
 0x18d   : > { %vm1343_vm1 = vcmp.ge.f32.partialorder %v1119_v41, 0.0  ;;  %v1574_v50 = vmul.f32 %v6220_v15, %v1119_v41  ;;  %v1797_v51 = vsel %vm1342_vm0, %v1118_v37, %v1573_v43  ;;  %v890_v52 = vmul.f32 %v6201_v36, %v4558_v33 }
 0x18e   : > { %5428 = vst [vmem:[%s5589_s12 + $0x278] sm:$0xff] %v5077_v28   ;;  %v3593_v53 = vadd.f32 %v3592_v48, %v3370_v47  ;;  %v3140_v54 = vadd.f32 %v3139_v45, %v1797_v51  ;;  %v3371_v38 = vmul.f32 %v1797_v51, %v1797_v51  ;;  %v1120_v55 = vadd.f32 %v6211_v2, %v889_v44 }
 0x18f   : > { %v1798_v56 = vsel %vm1343_vm1, %v1119_v41, %v1574_v50  ;;  %v1121_v58 = vadd.f32 %v6211_v2, %v890_v52  ;;  %v4561_v59 = vunpack.c.l.bf16 %v5320_v49  ;;  %v4562_v60 = vunpack.c.h.bf16 %v5320_v49 }
 0x190   : > { %v5082_v62 = vpack.c.bf16 %v1798_v56, %v1797_v51  ;;  %v3141_v46 = vadd.f32 %v3140_v54, %v1798_v56  ;;  %v3372_v63 = vmul.f32 %v1798_v56, %v1798_v56  ;;  %v3594_v1 = vadd.f32 %v3593_v53, %v3371_v38 }
 0x191   : > { %vm1344_vm2 = vcmp.ge.f32.partialorder %v1120_v55, 0.0  ;;  %vm1345_vm3 = vcmp.ge.f32.partialorder %v1121_v58, 0.0  ;;  %v1575_v3 = vmul.f32 %v6220_v15, %v1120_v55  ;;  %v1576_v4 = vmul.f32 %v6220_v15, %v1121_v58 }
 0x192   : > { %5429 = vst [vmem:[%s5589_s12 + $0x280] sm:$0xff] %v5082_v62   ;;  %v3595_v5 = vadd.f32 %v3594_v1, %v3372_v63  ;;  %v891_v6 = vmul.f32 %v6201_v36, %v4561_v59  ;;  %v892_v7 = vmul.f32 %v6201_v36, %v4562_v60  ;;  %v4565_v8 = vunpack.c.l.bf16 %v5321_v61 }
 0x193   : > { %v1799_v10 = vsel %vm1344_vm2, %v1120_v55, %v1575_v3  ;;  %v1800_v57 = vsel %vm1345_vm3, %v1121_v58, %v1576_v4  ;;  %v4566_v11 = vunpack.c.h.bf16 %v5321_v61  ;;  %v4569_v12 = vunpack.c.l.bf16 %v5322_v0  ;;  %v5324_v55 = vld [vmem:[%s5543_s27 + $0x2b0] sm:$0xff]   ;;  %v5325_v4 = vld [vmem:[%s5543_s27 + $0x2b8] sm:$0xff]  }
 0x194   : > { %v5087_v13 = vpack.c.bf16 %v1800_v57, %v1799_v10  ;;  %v3142_v14 = vadd.f32 %v3141_v46, %v1799_v10  ;;  %v3373_v9 = vmul.f32 %v1799_v10, %v1799_v10  ;;  %v3374_v16 = vmul.f32 %v1800_v57, %v1800_v57 }
 0x195   : > { %v1122_v19 = vadd.f32 %v6211_v2, %v891_v6  ;;  %v1123_v20 = vadd.f32 %v6211_v2, %v892_v7  ;;  %v893_v21 = vmul.f32 %v6201_v36, %v4565_v8  ;;  %v894_v22 = vmul.f32 %v6201_v36, %v4566_v11 }
 0x196   : > { %5430 = vst [vmem:[%s5589_s12 + $0x288] sm:$0xff] %v5087_v13   ;;  %v3143_v23 = vadd.f32 %v3142_v14, %v1800_v57  ;;  %v3596_v18 = vadd.f32 %v3595_v5, %v3373_v9  ;;  %v4570_v24 = vunpack.c.h.bf16 %v5322_v0  ;;  %v895_v25 = vmul.f32 %v6201_v36, %v4569_v12 }
 0x197   : > { %vm1346_vm4 = vcmp.ge.f32.partialorder %v1122_v19, 0.0  ;;  %vm1347_vm5 = vcmp.ge.f32.partialorder %v1123_v20, 0.0  ;;  %v1577_v27 = vmul.f32 %v6220_v15, %v1122_v19  ;;  %v1578_v29 = vmul.f32 %v6220_v15, %v1123_v20 }
 0x198   : > { %v3597_v30 = vadd.f32 %v3596_v18, %v3374_v16  ;;  %v1124_v31 = vadd.f32 %v6211_v2, %v893_v21  ;;  %v1125_v32 = vadd.f32 %v6211_v2, %v894_v22  ;;  %v896_v33 = vmul.f32 %v6201_v36, %v4570_v24 }
 0x199   : > { %v1801_v34 = vsel %vm1346_vm4, %v1122_v19, %v1577_v27  ;;  %v1802_v35 = vsel %vm1347_vm5, %v1123_v20, %v1578_v29  ;;  %v1126_v37 = vadd.f32 %v6211_v2, %v895_v25  ;;  %v4573_v17 = vunpack.c.l.bf16 %v5323_v26  ;;  %v5326_v19 = vld [vmem:[%s5543_s27 + $0x2c0] sm:$0xff]  }
 0x19a   : > { %v5092_v39 = vpack.c.bf16 %v1802_v35, %v1801_v34  ;;  %v3144_v40 = vadd.f32 %v3143_v23, %v1801_v34  ;;  %v3375_v41 = vmul.f32 %v1801_v34, %v1801_v34  ;;  %v3376_v42 = vmul.f32 %v1802_v35, %v1802_v35 }
 0x19b   : > { %vm1348_vm6 = vcmp.ge.f32.partialorder %v1124_v31, 0.0  ;;  %vm1349_vm7 = vcmp.ge.f32.partialorder %v1125_v32, 0.0  ;;  %v1579_v43 = vmul.f32 %v6220_v15, %v1124_v31  ;;  %v1580_v44 = vmul.f32 %v6220_v15, %v1125_v32 }
 0x19c   : > { %5431 = vst [vmem:[%s5589_s12 + $0x290] sm:$0xff] %v5092_v39   ;;  %v3145_v28 = vadd.f32 %v3144_v40, %v1802_v35  ;;  %v3598_v45 = vadd.f32 %v3597_v30, %v3375_v41  ;;  %v1127_v47 = vadd.f32 %v6211_v2, %v896_v33  ;;  %vm1350_vm8 = vcmp.ge.f32.partialorder %v1126_v37, 0.0 }
 0x19d   : > { %v1803_v48 = vsel %vm1348_vm6, %v1124_v31, %v1579_v43  ;;  %v1804_v49 = vsel %vm1349_vm7, %v1125_v32, %v1580_v44  ;;  %v1581_v50 = vmul.f32 %v6220_v15, %v1126_v37  ;;  %v4574_v51 = vunpack.c.h.bf16 %v5323_v26 }
 0x19e   : > { %v3599_v52 = vadd.f32 %v3598_v45, %v3376_v42  ;;  %v5097_v53 = vpack.c.bf16 %v1804_v49, %v1803_v48  ;;  %v3146_v54 = vadd.f32 %v3145_v28, %v1803_v48  ;;  %v3377_v38 = vmul.f32 %v1803_v48, %v1803_v48 }
 0x19f   : > { %v3378_v56 = vmul.f32 %v1804_v49, %v1804_v49  ;;  %vm1351_vm9 = vcmp.ge.f32.partialorder %v1127_v47, 0.0  ;;  %v1582_v58 = vmul.f32 %v6220_v15, %v1127_v47  ;;  %v1805_v59 = vsel %vm1350_vm8, %v1126_v37, %v1581_v50 }
 0x1a0   : > { %5432 = vst [vmem:[%s5589_s12 + $0x298] sm:$0xff] %v5097_v53   ;;  %v3147_v60 = vadd.f32 %v3146_v54, %v1804_v49  ;;  %v3600_v61 = vadd.f32 %v3599_v52, %v3377_v38  ;;  %v3379_v62 = vmul.f32 %v1805_v59, %v1805_v59  ;;  %v897_v46 = vmul.f32 %v6201_v36, %v4573_v17  ;;  %v5327_v49 = vld [vmem:[%s5543_s27 + $0x2c8] sm:$0xff]  }
 0x1a1   : > { %v1806_v63 = vsel %vm1351_vm9, %v1127_v47, %v1582_v58  ;;  %v898_v1 = vmul.f32 %v6201_v36, %v4574_v51  ;;  %v4577_v0 = vunpack.c.l.bf16 %v5324_v55  ;;  %v4578_v3 = vunpack.c.h.bf16 %v5324_v55 }
 0x1a2   : > { %v3601_v5 = vadd.f32 %v3600_v61, %v3378_v56  ;;  %v5102_v6 = vpack.c.bf16 %v1806_v63, %v1805_v59  ;;  %v3148_v7 = vadd.f32 %v3147_v60, %v1805_v59  ;;  %v3380_v8 = vmul.f32 %v1806_v63, %v1806_v63 }
 0x1a3   : > { %v1128_v10 = vadd.f32 %v6211_v2, %v897_v46  ;;  %v1129_v57 = vadd.f32 %v6211_v2, %v898_v1  ;;  %v899_v11 = vmul.f32 %v6201_v36, %v4577_v0  ;;  %v900_v12 = vmul.f32 %v6201_v36, %v4578_v3 }
 0x1a4   : > { %5433 = vst [vmem:[%s5589_s12 + $0x2a0] sm:$0xff] %v5102_v6   ;;  %v3149_v13 = vadd.f32 %v3148_v7, %v1806_v63  ;;  %v3602_v14 = vadd.f32 %v3601_v5, %v3379_v62  ;;  %v4581_v9 = vunpack.c.l.bf16 %v5325_v4  ;;  %v4582_v16 = vunpack.c.h.bf16 %v5325_v4  ;;  %v5328_v63 = vld [vmem:[%s5543_s27 + $0x2d0] sm:$0xff]  }
 0x1a5   : > { %vm1352_vm10 = vcmp.ge.f32.partialorder %v1128_v10, 0.0  ;;  %vm1353_vm11 = vcmp.ge.f32.partialorder %v1129_v57, 0.0  ;;  %v1583_v20 = vmul.f32 %v6220_v15, %v1128_v10  ;;  %v1584_v21 = vmul.f32 %v6220_v15, %v1129_v57 }
 0x1a6   : > { %v3603_v22 = vadd.f32 %v3602_v14, %v3380_v8  ;;  %v1130_v23 = vadd.f32 %v6211_v2, %v899_v11  ;;  %v1131_v18 = vadd.f32 %v6211_v2, %v900_v12  ;;  %v901_v24 = vmul.f32 %v6201_v36, %v4581_v9 }
 0x1a7   : > { %v1807_v25 = vsel %vm1352_vm10, %v1128_v10, %v1583_v20  ;;  %v1808_v26 = vsel %vm1353_vm11, %v1129_v57, %v1584_v21  ;;  %v902_v27 = vmul.f32 %v6201_v36, %v4582_v16  ;;  %v4585_v29 = vunpack.c.l.bf16 %v5326_v19  ;;  %v5329_v21 = vld [vmem:[%s5543_s27 + $0x2d8] sm:$0xff]  }
 0x1a8   : > { %v5107_v30 = vpack.c.bf16 %v1808_v26, %v1807_v25  ;;  %v3150_v31 = vadd.f32 %v3149_v13, %v1807_v25  ;;  %v3381_v32 = vmul.f32 %v1807_v25, %v1807_v25  ;;  %v3382_v33 = vmul.f32 %v1808_v26, %v1808_v26 }
 0x1a9   : > { %vm1354_vm12 = vcmp.ge.f32.partialorder %v1130_v23, 0.0  ;;  %vm1355_vm13 = vcmp.ge.f32.partialorder %v1131_v18, 0.0  ;;  %v1585_v34 = vmul.f32 %v6220_v15, %v1130_v23  ;;  %v1586_v35 = vmul.f32 %v6220_v15, %v1131_v18 }
 0x1aa   : > { %5434 = vst [vmem:[%s5589_s12 + $0x2a8] sm:$0xff] %v5107_v30   ;;  %v3151_v37 = vadd.f32 %v3150_v31, %v1808_v26  ;;  %v3604_v17 = vadd.f32 %v3603_v22, %v3381_v32  ;;  %v1132_v39 = vadd.f32 %v6211_v2, %v901_v24  ;;  %v1133_v40 = vadd.f32 %v6211_v2, %v902_v27 }
 0x1ab   : > { %v1809_v41 = vsel %vm1354_vm12, %v1130_v23, %v1585_v34  ;;  %v1810_v42 = vsel %vm1355_vm13, %v1131_v18, %v1586_v35  ;;  %v4586_v43 = vunpack.c.h.bf16 %v5326_v19  ;;  %v903_v44 = vmul.f32 %v6201_v36, %v4585_v29 }
 0x1ac   : > { %v3605_v28 = vadd.f32 %v3604_v17, %v3382_v33  ;;  %v5112_v45 = vpack.c.bf16 %v1810_v42, %v1809_v41  ;;  %v3152_v47 = vadd.f32 %v3151_v37, %v1809_v41  ;;  %v3383_v48 = vmul.f32 %v1809_v41, %v1809_v41  ;;  %v5330_v41 = vld [vmem:[%s5543_s27 + $0x2e0] sm:$0xff]  }
 0x1ad   : > { %v3384_v50 = vmul.f32 %v1810_v42, %v1810_v42  ;;  %vm1356_vm14 = vcmp.ge.f32.partialorder %v1132_v39, 0.0  ;;  %vm1357_vm15 = vcmp.ge.f32.partialorder %v1133_v40, 0.0  ;;  %v1587_v51 = vmul.f32 %v6220_v15, %v1132_v39 }
 0x1ae   : > { %5435 = vst [vmem:[%s5589_s12 + $0x2b0] sm:$0xff] %v5112_v45   ;;  %v3153_v52 = vadd.f32 %v3152_v47, %v1810_v42  ;;  %v3606_v53 = vadd.f32 %v3605_v28, %v3383_v48  ;;  %v1588_v54 = vmul.f32 %v6220_v15, %v1133_v40  ;;  %v904_v38 = vmul.f32 %v6201_v36, %v4586_v43  ;;  %v5331_v45 = vld [vmem:[%s5543_s27 + $0x2e8] sm:$0xff]  }
 0x1af   : > { %v1811_v55 = vsel %vm1356_vm14, %v1132_v39, %v1587_v51  ;;  %v1134_v56 = vadd.f32 %v6211_v2, %v903_v44  ;;  %v4589_v58 = vunpack.c.l.bf16 %v5327_v49  ;;  %v4590_v59 = vunpack.c.h.bf16 %v5327_v49 }
 0x1b0   : > { %v3607_v60 = vadd.f32 %v3606_v53, %v3384_v50  ;;  %v1812_v61 = vsel %vm1357_vm15, %v1133_v40, %v1588_v54  ;;  %v3154_v62 = vadd.f32 %v3153_v52, %v1811_v55  ;;  %v3385_v46 = vmul.f32 %v1811_v55, %v1811_v55 }
 0x1b1   : > { %v5117_v1 = vpack.c.bf16 %v1812_v61, %v1811_v55  ;;  %v3386_v0 = vmul.f32 %v1812_v61, %v1812_v61  ;;  %v1135_v3 = vadd.f32 %v6211_v2, %v904_v38  ;;  %vm1358_vm0 = vcmp.ge.f32.partialorder %v1134_v56, 0.0 }
 0x1b2   : > { %v3155_v4 = vadd.f32 %v3154_v62, %v1812_v61  ;;  %v3608_v5 = vadd.f32 %v3607_v60, %v3385_v46  ;;  %v1589_v6 = vmul.f32 %v6220_v15, %v1134_v56  ;;  %v905_v7 = vmul.f32 %v6201_v36, %v4589_v58 }
 0x1b3   : > { %5436 = vst [vmem:[%s5589_s12 + $0x2b8] sm:$0xff] %v5117_v1   ;;  %vm1359_vm1 = vcmp.ge.f32.partialorder %v1135_v3, 0.0  ;;  %v1590_v8 = vmul.f32 %v6220_v15, %v1135_v3  ;;  %v906_v10 = vmul.f32 %v6201_v36, %v4590_v59  ;;  %v4593_v57 = vunpack.c.l.bf16 %v5328_v63 }
 0x1b4   : > { %v3609_v11 = vadd.f32 %v3608_v5, %v3386_v0  ;;  %v1813_v12 = vsel %vm1358_vm0, %v1134_v56, %v1589_v6  ;;  %v1136_v13 = vadd.f32 %v6211_v2, %v905_v7  ;;  %v4594_v14 = vunpack.c.h.bf16 %v5328_v63 }
 0x1b5   : > { %v1814_v9 = vsel %vm1359_vm1, %v1135_v3, %v1590_v8  ;;  %v3156_v16 = vadd.f32 %v3155_v4, %v1813_v12  ;;  %v3387_v19 = vmul.f32 %v1813_v12, %v1813_v12  ;;  %v1137_v20 = vadd.f32 %v6211_v2, %v906_v10 }
 0x1b6   : > { %v5122_v22 = vpack.c.bf16 %v1814_v9, %v1813_v12  ;;  %v3388_v23 = vmul.f32 %v1814_v9, %v1814_v9  ;;  %vm1360_vm2 = vcmp.ge.f32.partialorder %v1136_v13, 0.0  ;;  %v1591_v18 = vmul.f32 %v6220_v15, %v1136_v13 }
 0x1b7   : > { %v3157_v24 = vadd.f32 %v3156_v16, %v1814_v9  ;;  %v3610_v25 = vadd.f32 %v3609_v11, %v3387_v19  ;;  %vm1361_vm3 = vcmp.ge.f32.partialorder %v1137_v20, 0.0  ;;  %v1592_v26 = vmul.f32 %v6220_v15, %v1137_v20 }
 0x1b8   : > { %5437 = vst [vmem:[%s5589_s12 + $0x2c0] sm:$0xff] %v5122_v22   ;;  %v1815_v27 = vsel %vm1360_vm2, %v1136_v13, %v1591_v18  ;;  %v907_v29 = vmul.f32 %v6201_v36, %v4593_v57  ;;  %v908_v30 = vmul.f32 %v6201_v36, %v4594_v14  ;;  %v4597_v31 = vunpack.c.l.bf16 %v5329_v21 }
 0x1b9   : > { %v3611_v32 = vadd.f32 %v3610_v25, %v3388_v23  ;;  %v1816_v33 = vsel %vm1361_vm3, %v1137_v20, %v1592_v26  ;;  %v3158_v34 = vadd.f32 %v3157_v24, %v1815_v27  ;;  %v3389_v35 = vmul.f32 %v1815_v27, %v1815_v27  ;;  %v5332_v20 = vld [vmem:[%s5543_s27 + $0x2f0] sm:$0xff]  }
 0x1ba   : > { %v5127_v37 = vpack.c.bf16 %v1816_v33, %v1815_v27  ;;  %v3390_v17 = vmul.f32 %v1816_v33, %v1816_v33  ;;  %v1138_v39 = vadd.f32 %v6211_v2, %v907_v29  ;;  %v1139_v40 = vadd.f32 %v6211_v2, %v908_v30 }
 0x1bb   : > { %v3159_v42 = vadd.f32 %v3158_v34, %v1816_v33  ;;  %v3612_v43 = vadd.f32 %v3611_v32, %v3389_v35  ;;  %v4598_v44 = vunpack.c.h.bf16 %v5329_v21  ;;  %v909_v28 = vmul.f32 %v6201_v36, %v4597_v31  ;;  %v5333_v32 = vld [vmem:[%s5543_s27 + $0x2f8] sm:$0xff]  }
 0x1bc   : > { %5438 = vst [vmem:[%s5589_s12 + $0x2c8] sm:$0xff] %v5127_v37   ;;  %vm1362_vm4 = vcmp.ge.f32.partialorder %v1138_v39, 0.0  ;;  %vm1363_vm5 = vcmp.ge.f32.partialorder %v1139_v40, 0.0  ;;  %v1593_v47 = vmul.f32 %v6220_v15, %v1138_v39  ;;  %v1594_v48 = vmul.f32 %v6220_v15, %v1139_v40 }
 0x1bd   : > { %v3613_v49 = vadd.f32 %v3612_v43, %v3390_v17  ;;  %v910_v50 = vmul.f32 %v6201_v36, %v4598_v44  ;;  %v1140_v51 = vadd.f32 %v6211_v2, %v909_v28  ;;  %v4601_v52 = vunpack.c.l.bf16 %v5330_v41  ;;  %v5334_v17 = vld [vmem:[%s5543_s27 + $0x300] sm:$0xff]  }
 0x1be   : > { %v1817_v53 = vsel %vm1362_vm4, %v1138_v39, %v1593_v47  ;;  %v1818_v54 = vsel %vm1363_vm5, %v1139_v40, %v1594_v48  ;;  %v4602_v38 = vunpack.c.h.bf16 %v5330_v41  ;;  %v4605_v55 = vunpack.c.l.bf16 %v5331_v45 }
 0x1bf   : > { %v5132_v56 = vpack.c.bf16 %v1818_v54, %v1817_v53  ;;  %v3160_v58 = vadd.f32 %v3159_v42, %v1817_v53  ;;  %v3391_v59 = vmul.f32 %v1817_v53, %v1817_v53  ;;  %v3392_v60 = vmul.f32 %v1818_v54, %v1818_v54 }
 0x1c0   : > { %v1141_v61 = vadd.f32 %v6211_v2, %v910_v50  ;;  %vm1364_vm6 = vcmp.ge.f32.partialorder %v1140_v51, 0.0  ;;  %v1595_v62 = vmul.f32 %v6220_v15, %v1140_v51  ;;  %v911_v46 = vmul.f32 %v6201_v36, %v4601_v52 }
 0x1c1   : > { %5439 = vst [vmem:[%s5589_s12 + $0x2d0] sm:$0xff] %v5132_v56   ;;  %v3161_v63 = vadd.f32 %v3160_v58, %v1818_v54  ;;  %v3614_v1 = vadd.f32 %v3613_v49, %v3391_v59  ;;  %v912_v0 = vmul.f32 %v6201_v36, %v4602_v38  ;;  %v4606_v3 = vunpack.c.h.bf16 %v5331_v45 }
 0x1c2   : > { %vm1365_vm7 = vcmp.ge.f32.partialorder %v1141_v61, 0.0  ;;  %v1596_v4 = vmul.f32 %v6220_v15, %v1141_v61  ;;  %v1819_v5 = vsel %vm1364_vm6, %v1140_v51, %v1595_v62  ;;  %v1142_v6 = vadd.f32 %v6211_v2, %v911_v46 }
 0x1c3   : > { %v3615_v7 = vadd.f32 %v3614_v1, %v3392_v60  ;;  %v3162_v8 = vadd.f32 %v3161_v63, %v1819_v5  ;;  %v3393_v10 = vmul.f32 %v1819_v5, %v1819_v5  ;;  %v1143_v57 = vadd.f32 %v6211_v2, %v912_v0 }
 0x1c4   : > { %v1820_v11 = vsel %vm1365_vm7, %v1141_v61, %v1596_v4  ;;  %vm1366_vm8 = vcmp.ge.f32.partialorder %v1142_v6, 0.0  ;;  %v1597_v12 = vmul.f32 %v6220_v15, %v1142_v6  ;;  %v913_v13 = vmul.f32 %v6201_v36, %v4605_v55  ;;  %v5335_v61 = vld [vmem:[%s5543_s27 + $0x308] sm:$0xff]  }
 0x1c5   : > { %v5137_v14 = vpack.c.bf16 %v1820_v11, %v1819_v5  ;;  %v3163_v9 = vadd.f32 %v3162_v8, %v1820_v11  ;;  %v3394_v16 = vmul.f32 %v1820_v11, %v1820_v11  ;;  %v3616_v19 = vadd.f32 %v3615_v7, %v3393_v10 }
 0x1c6   : > { %vm1367_vm9 = vcmp.ge.f32.partialorder %v1143_v57, 0.0  ;;  %v1598_v21 = vmul.f32 %v6220_v15, %v1143_v57  ;;  %v1821_v22 = vsel %vm1366_vm8, %v1142_v6, %v1597_v12  ;;  %v914_v23 = vmul.f32 %v6201_v36, %v4606_v3 }
 0x1c7   : > { %5440 = vst [vmem:[%s5589_s12 + $0x2d8] sm:$0xff] %v5137_v14   ;;  %v3617_v18 = vadd.f32 %v3616_v19, %v3394_v16  ;;  %v3164_v24 = vadd.f32 %v3163_v9, %v1821_v22  ;;  %v3395_v25 = vmul.f32 %v1821_v22, %v1821_v22  ;;  %v1144_v26 = vadd.f32 %v6211_v2, %v913_v13 }
 0x1c8   : > { %v1822_v27 = vsel %vm1367_vm9, %v1143_v57, %v1598_v21  ;;  %v1145_v29 = vadd.f32 %v6211_v2, %v914_v23  ;;  %v4609_v30 = vunpack.c.l.bf16 %v5332_v20  ;;  %v4610_v31 = vunpack.c.h.bf16 %v5332_v20 }
 0x1c9   : > { %v5142_v33 = vpack.c.bf16 %v1822_v27, %v1821_v22  ;;  %v3165_v34 = vadd.f32 %v3164_v24, %v1822_v27  ;;  %v3396_v35 = vmul.f32 %v1822_v27, %v1822_v27  ;;  %v3618_v37 = vadd.f32 %v3617_v18, %v3395_v25 }
 0x1ca   : > { %vm1368_vm10 = vcmp.ge.f32.partialorder %v1144_v26, 0.0  ;;  %vm1369_vm11 = vcmp.ge.f32.partialorder %v1145_v29, 0.0  ;;  %v1599_v39 = vmul.f32 %v6220_v15, %v1144_v26  ;;  %v1600_v40 = vmul.f32 %v6220_v15, %v1145_v29 }
 0x1cb   : > { %5441 = vst [vmem:[%s5589_s12 + $0x2e0] sm:$0xff] %v5142_v33   ;;  %v3619_v41 = vadd.f32 %v3618_v37, %v3396_v35  ;;  %v915_v42 = vmul.f32 %v6201_v36, %v4609_v30  ;;  %v916_v43 = vmul.f32 %v6201_v36, %v4610_v31  ;;  %v4613_v44 = vunpack.c.l.bf16 %v5333_v32 }
 0x1cc   : > { %v1823_v28 = vsel %vm1368_vm10, %v1144_v26, %v1599_v39  ;;  %v1824_v45 = vsel %vm1369_vm11, %v1145_v29, %v1600_v40  ;;  %v4614_v47 = vunpack.c.h.bf16 %v5333_v32  ;;  %v4617_v48 = vunpack.c.l.bf16 %v5334_v17  ;;  %v5336_v26 = vld [vmem:[%s5543_s27 + $0x310] sm:$0xff]   ;;  %v5337_v40 = vld [vmem:[%s5543_s27 + $0x318] sm:$0xff]  }
 0x1cd   : > { %v5147_v49 = vpack.c.bf16 %v1824_v45, %v1823_v28  ;;  %v3166_v50 = vadd.f32 %v3165_v34, %v1823_v28  ;;  %v3397_v51 = vmul.f32 %v1823_v28, %v1823_v28  ;;  %v3398_v52 = vmul.f32 %v1824_v45, %v1824_v45 }
 0x1ce   : > { %v1146_v53 = vadd.f32 %v6211_v2, %v915_v42  ;;  %v1147_v54 = vadd.f32 %v6211_v2, %v916_v43  ;;  %v917_v38 = vmul.f32 %v6201_v36, %v4613_v44  ;;  %v918_v55 = vmul.f32 %v6201_v36, %v4614_v47 }
 0x1cf   : > { %5442 = vst [vmem:[%s5589_s12 + $0x2e8] sm:$0xff] %v5147_v49   ;;  %v3167_v56 = vadd.f32 %v3166_v50, %v1824_v45  ;;  %v3620_v58 = vadd.f32 %v3619_v41, %v3397_v51  ;;  %v4618_v59 = vunpack.c.h.bf16 %v5334_v17  ;;  %v919_v60 = vmul.f32 %v6201_v36, %v4617_v48 }
 0x1d0   : > { %vm1370_vm12 = vcmp.ge.f32.partialorder %v1146_v53, 0.0  ;;  %vm1371_vm13 = vcmp.ge.f32.partialorder %v1147_v54, 0.0  ;;  %v1601_v62 = vmul.f32 %v6220_v15, %v1146_v53  ;;  %v1602_v46 = vmul.f32 %v6220_v15, %v1147_v54 }
 0x1d1   : > { %v3621_v63 = vadd.f32 %v3620_v58, %v3398_v52  ;;  %v1148_v1 = vadd.f32 %v6211_v2, %v917_v38  ;;  %v1149_v0 = vadd.f32 %v6211_v2, %v918_v55  ;;  %v920_v3 = vmul.f32 %v6201_v36, %v4618_v59 }
 0x1d2   : > { %v1825_v4 = vsel %vm1370_vm12, %v1146_v53, %v1601_v62  ;;  %v1826_v5 = vsel %vm1371_vm13, %v1147_v54, %v1602_v46  ;;  %v1150_v6 = vadd.f32 %v6211_v2, %v919_v60  ;;  %v4621_v7 = vunpack.c.l.bf16 %v5335_v61  ;;  %v5338_v53 = vld [vmem:[%s5543_s27 + $0x320] sm:$0xff]  }
 0x1d3   : > { %v5152_v8 = vpack.c.bf16 %v1826_v5, %v1825_v4  ;;  %v3168_v10 = vadd.f32 %v3167_v56, %v1825_v4  ;;  %v3399_v57 = vmul.f32 %v1825_v4, %v1825_v4  ;;  %v3400_v11 = vmul.f32 %v1826_v5, %v1826_v5 }
 0x1d4   : > { %vm1372_vm14 = vcmp.ge.f32.partialorder %v1148_v1, 0.0  ;;  %vm1373_vm15 = vcmp.ge.f32.partialorder %v1149_v0, 0.0  ;;  %v1603_v12 = vmul.f32 %v6220_v15, %v1148_v1  ;;  %v1604_v13 = vmul.f32 %v6220_v15, %v1149_v0 }
 0x1d5   : > { %5443 = vst [vmem:[%s5589_s12 + $0x2f0] sm:$0xff] %v5152_v8   ;;  %v3169_v14 = vadd.f32 %v3168_v10, %v1826_v5  ;;  %v3622_v9 = vadd.f32 %v3621_v63, %v3399_v57  ;;  %v1151_v16 = vadd.f32 %v6211_v2, %v920_v3  ;;  %vm1374_vm0 = vcmp.ge.f32.partialorder %v1150_v6, 0.0 }
 0x1d6   : > { %v1827_v19 = vsel %vm1372_vm14, %v1148_v1, %v1603_v12  ;;  %v1828_v20 = vsel %vm1373_vm15, %v1149_v0, %v1604_v13  ;;  %v1605_v21 = vmul.f32 %v6220_v15, %v1150_v6  ;;  %v4622_v22 = vunpack.c.h.bf16 %v5335_v61  ;;  %v6415_v12 = vld [vmem:[%s6538_s1] ss:$0 sm:$0xff] }
 0x1d7   : > { %v3623_v23 = vadd.f32 %v3622_v9, %v3400_v11  ;;  %v5157_v18 = vpack.c.bf16 %v1828_v20, %v1827_v19  ;;  %v3170_v24 = vadd.f32 %v3169_v14, %v1827_v19  ;;  %v3401_v25 = vmul.f32 %v1827_v19, %v1827_v19 }
 0x1d8   : > { %v3402_v27 = vmul.f32 %v1828_v20, %v1828_v20  ;;  %vm1375_vm1 = vcmp.ge.f32.partialorder %v1151_v16, 0.0  ;;  %v1606_v29 = vmul.f32 %v6220_v15, %v1151_v16  ;;  %v1829_v30 = vsel %vm1374_vm0, %v1150_v6, %v1605_v21 }
 0x1d9   : > { %5444 = vst [vmem:[%s5589_s12 + $0x2f8] sm:$0xff] %v5157_v18   ;;  %v3171_v31 = vadd.f32 %v3170_v24, %v1828_v20  ;;  %v3624_v32 = vadd.f32 %v3623_v23, %v3401_v25  ;;  %v3403_v33 = vmul.f32 %v1829_v30, %v1829_v30  ;;  %v921_v34 = vmul.f32 %v6201_v36, %v4621_v7  ;;  %v5339_v20 = vld [vmem:[%s5543_s27 + $0x328] sm:$0xff]  }
 0x1da   : > { %v1830_v35 = vsel %vm1375_vm1, %v1151_v16, %v1606_v29  ;;  %v922_v37 = vmul.f32 %v6201_v36, %v4622_v22  ;;  %v4625_v17 = vunpack.c.l.bf16 %v5336_v26  ;;  %v4626_v39 = vunpack.c.h.bf16 %v5336_v26  ;;  %v6426_v26 = vld [vmem:[%s6539_s2] ss:$0 sm:$0xff] }
 0x1db   : > { %v3625_v41 = vadd.f32 %v3624_v32, %v3402_v27  ;;  %v5162_v42 = vpack.c.bf16 %v1830_v35, %v1829_v30  ;;  %v3172_v43 = vadd.f32 %v3171_v31, %v1829_v30  ;;  %v3404_v44 = vmul.f32 %v1830_v35, %v1830_v35 }
 0x1dc   : > { %v1152_v28 = vadd.f32 %v6211_v2, %v921_v34  ;;  %v1153_v45 = vadd.f32 %v6211_v2, %v922_v37  ;;  %v923_v47 = vmul.f32 %v6201_v36, %v4625_v17  ;;  %v924_v48 = vmul.f32 %v6201_v36, %v4626_v39 }
 0x1dd   : > { %5445 = vst [vmem:[%s5589_s12 + $0x300] sm:$0xff] %v5162_v42   ;;  %v3173_v49 = vadd.f32 %v3172_v43, %v1830_v35  ;;  %v3626_v50 = vadd.f32 %v3625_v41, %v3403_v33  ;;  %v4629_v51 = vunpack.c.l.bf16 %v5337_v40  ;;  %v4630_v52 = vunpack.c.h.bf16 %v5337_v40  ;;  %v5340_v35 = vld [vmem:[%s5543_s27 + $0x330] sm:$0xff]   ;;  %v6434_v41 = vld [vmem:[%s6540_s3] ss:$0 sm:$0xff] }
 0x1de   : > { %vm1376_vm2 = vcmp.ge.f32.partialorder %v1152_v28, 0.0  ;;  %vm1377_vm3 = vcmp.ge.f32.partialorder %v1153_v45, 0.0  ;;  %v1607_v54 = vmul.f32 %v6220_v15, %v1152_v28  ;;  %v1608_v38 = vmul.f32 %v6220_v15, %v1153_v45 }
 0x1df   : > { %v3627_v55 = vadd.f32 %v3626_v50, %v3404_v44  ;;  %v1154_v56 = vadd.f32 %v6211_v2, %v923_v47  ;;  %v1155_v58 = vadd.f32 %v6211_v2, %v924_v48  ;;  %v925_v59 = vmul.f32 %v6201_v36, %v4629_v51 }
 0x1e0   : > { %v1831_v60 = vsel %vm1376_vm2, %v1152_v28, %v1607_v54  ;;  %v1832_v61 = vsel %vm1377_vm3, %v1153_v45, %v1608_v38  ;;  %v926_v62 = vmul.f32 %v6201_v36, %v4630_v52  ;;  %v4633_v46 = vunpack.c.l.bf16 %v5338_v53  ;;  %v5341_v38 = vld [vmem:[%s5543_s27 + $0x338] sm:$0xff]  }
 0x1e1   : > { %v5167_v63 = vpack.c.bf16 %v1832_v61, %v1831_v60  ;;  %v3174_v1 = vadd.f32 %v3173_v49, %v1831_v60  ;;  %v3405_v0 = vmul.f32 %v1831_v60, %v1831_v60  ;;  %v3406_v3 = vmul.f32 %v1832_v61, %v1832_v61 }
 0x1e2   : > { %vm1378_vm4 = vcmp.ge.f32.partialorder %v1154_v56, 0.0  ;;  %vm1379_vm5 = vcmp.ge.f32.partialorder %v1155_v58, 0.0  ;;  %v1609_v4 = vmul.f32 %v6220_v15, %v1154_v56  ;;  %v1610_v5 = vmul.f32 %v6220_v15, %v1155_v58 }
 0x1e3   : > { %5446 = vst [vmem:[%s5589_s12 + $0x308] sm:$0xff] %v5167_v63   ;;  %v3175_v6 = vadd.f32 %v3174_v1, %v1832_v61  ;;  %v3628_v7 = vadd.f32 %v3627_v55, %v3405_v0  ;;  %v1156_v8 = vadd.f32 %v6211_v2, %v925_v59  ;;  %v1157_v36 = vadd.f32 %v6211_v2, %v926_v62 }
 0x1e4   : > { %v1833_v10 = vsel %vm1378_vm4, %v1154_v56, %v1609_v4  ;;  %v1834_v57 = vsel %vm1379_vm5, %v1155_v58, %v1610_v5  ;;  %v4634_v11 = vunpack.c.h.bf16 %v5338_v53  ;;  %v927_v13 = vmul.f32 %v6415_v12, %v4633_v46 }
 0x1e5   : > { %v3629_v14 = vadd.f32 %v3628_v7, %v3406_v3  ;;  %v5172_v9 = vpack.c.bf16 %v1834_v57, %v1833_v10  ;;  %v3176_v16 = vadd.f32 %v3175_v6, %v1833_v10  ;;  %v3407_v19 = vmul.f32 %v1833_v10, %v1833_v10  ;;  %v5342_v10 = vld [vmem:[%s5543_s27 + $0x340] sm:$0xff]  }
 0x1e6   : > { %v3408_v21 = vmul.f32 %v1834_v57, %v1834_v57  ;;  %vm1380_vm6 = vcmp.ge.f32.partialorder %v1156_v8, 0.0  ;;  %vm1381_vm7 = vcmp.ge.f32.partialorder %v1157_v36, 0.0  ;;  %v1611_v2 = vmul.f32 %v6220_v15, %v1156_v8 }
 0x1e7   : > { %5447 = vst [vmem:[%s5589_s12 + $0x310] sm:$0xff] %v5172_v9   ;;  %v3177_v22 = vadd.f32 %v3176_v16, %v1834_v57  ;;  %v3630_v23 = vadd.f32 %v3629_v14, %v3407_v19  ;;  %v1612_v18 = vmul.f32 %v6220_v15, %v1157_v36  ;;  %v928_v24 = vmul.f32 %v6415_v12, %v4634_v11  ;;  %v5343_v9 = vld [vmem:[%s5543_s27 + $0x348] sm:$0xff]  }
 0x1e8   : > { %v1835_v25 = vsel %vm1380_vm6, %v1156_v8, %v1611_v2  ;;  %v1158_v27 = vadd.f32 %v6426_v26, %v927_v13  ;;  %v4637_v29 = vunpack.c.l.bf16 %v5339_v20  ;;  %v4638_v30 = vunpack.c.h.bf16 %v5339_v20 }
 0x1e9   : > { %v3631_v31 = vadd.f32 %v3630_v23, %v3408_v21  ;;  %v1836_v32 = vsel %vm1381_vm7, %v1157_v36, %v1612_v18  ;;  %v3178_v33 = vadd.f32 %v3177_v22, %v1835_v25  ;;  %v3409_v34 = vmul.f32 %v1835_v25, %v1835_v25 }
 0x1ea   : > { %v5177_v37 = vpack.c.bf16 %v1836_v32, %v1835_v25  ;;  %v3410_v15 = vmul.f32 %v1836_v32, %v1836_v32  ;;  %v1159_v17 = vadd.f32 %v6426_v26, %v928_v24  ;;  %vm1382_vm8 = vcmp.ge.f32.partialorder %v1158_v27, 0.0 }
 0x1eb   : > { %v3179_v39 = vadd.f32 %v3178_v33, %v1836_v32  ;;  %v3632_v40 = vadd.f32 %v3631_v31, %v3409_v34  ;;  %v1613_v42 = vmul.f32 %v6434_v41, %v1158_v27  ;;  %v929_v43 = vmul.f32 %v6415_v12, %v4637_v29 }
 0x1ec   : > { %5448 = vst [vmem:[%s5589_s12 + $0x318] sm:$0xff] %v5177_v37   ;;  %vm1383_vm9 = vcmp.ge.f32.partialorder %v1159_v17, 0.0  ;;  %v1614_v44 = vmul.f32 %v6434_v41, %v1159_v17  ;;  %v930_v28 = vmul.f32 %v6415_v12, %v4638_v30  ;;  %v4641_v45 = vunpack.c.l.bf16 %v5340_v35 }
 0x1ed   : > { %v3633_v47 = vadd.f32 %v3632_v40, %v3410_v15  ;;  %v1837_v48 = vsel %vm1382_vm8, %v1158_v27, %v1613_v42  ;;  %v1160_v49 = vadd.f32 %v6426_v26, %v929_v43  ;;  %v4642_v50 = vunpack.c.h.bf16 %v5340_v35 }
 0x1ee   : > { %v1838_v51 = vsel %vm1383_vm9, %v1159_v17, %v1614_v44  ;;  %v3180_v52 = vadd.f32 %v3179_v39, %v1837_v48  ;;  %v3411_v53 = vmul.f32 %v1837_v48, %v1837_v48  ;;  %v1161_v54 = vadd.f32 %v6426_v26, %v930_v28 }
 0x1ef   : > { %v5182_v55 = vpack.c.bf16 %v1838_v51, %v1837_v48  ;;  %v3412_v56 = vmul.f32 %v1838_v51, %v1838_v51  ;;  %vm1384_vm10 = vcmp.ge.f32.partialorder %v1160_v49, 0.0  ;;  %v1615_v58 = vmul.f32 %v6434_v41, %v1160_v49 }
 0x1f0   : > { %v3181_v59 = vadd.f32 %v3180_v52, %v1838_v51  ;;  %v3634_v60 = vadd.f32 %v3633_v47, %v3411_v53  ;;  %vm1385_vm11 = vcmp.ge.f32.partialorder %v1161_v54, 0.0  ;;  %v1616_v61 = vmul.f32 %v6434_v41, %v1161_v54 }
 0x1f1   : > { %5449 = vst [vmem:[%s5589_s12 + $0x320] sm:$0xff] %v5182_v55   ;;  %v1839_v62 = vsel %vm1384_vm10, %v1160_v49, %v1615_v58  ;;  %v931_v46 = vmul.f32 %v6415_v12, %v4641_v45  ;;  %v932_v63 = vmul.f32 %v6415_v12, %v4642_v50  ;;  %v4645_v1 = vunpack.c.l.bf16 %v5341_v38 }
 0x1f2   : > { %v3635_v0 = vadd.f32 %v3634_v60, %v3412_v56  ;;  %v1840_v3 = vsel %vm1385_vm11, %v1161_v54, %v1616_v61  ;;  %v3182_v4 = vadd.f32 %v3181_v59, %v1839_v62  ;;  %v3413_v5 = vmul.f32 %v1839_v62, %v1839_v62  ;;  %v5344_v54 = vld [vmem:[%s5543_s27 + $0x350] sm:$0xff]  }
 0x1f3   : > { %v5187_v6 = vpack.c.bf16 %v1840_v3, %v1839_v62  ;;  %v3414_v7 = vmul.f32 %v1840_v3, %v1840_v3  ;;  %v1162_v8 = vadd.f32 %v6426_v26, %v931_v46  ;;  %v1163_v36 = vadd.f32 %v6426_v26, %v932_v63 }
 0x1f4   : > { %v3183_v57 = vadd.f32 %v3182_v4, %v1840_v3  ;;  %v3636_v11 = vadd.f32 %v3635_v0, %v3413_v5  ;;  %v4646_v13 = vunpack.c.h.bf16 %v5341_v38  ;;  %v933_v14 = vmul.f32 %v6415_v12, %v4645_v1  ;;  %v5345_v0 = vld [vmem:[%s5543_s27 + $0x358] sm:$0xff]  }
 0x1f5   : > { %5450 = vst [vmem:[%s5589_s12 + $0x328] sm:$0xff] %v5187_v6   ;;  %vm1386_vm12 = vcmp.ge.f32.partialorder %v1162_v8, 0.0  ;;  %vm1387_vm13 = vcmp.ge.f32.partialorder %v1163_v36, 0.0  ;;  %v1617_v16 = vmul.f32 %v6434_v41, %v1162_v8  ;;  %v1618_v19 = vmul.f32 %v6434_v41, %v1163_v36 }
 0x1f6   : > { %v3637_v20 = vadd.f32 %v3636_v11, %v3414_v7  ;;  %v934_v21 = vmul.f32 %v6415_v12, %v4646_v13  ;;  %v1164_v2 = vadd.f32 %v6426_v26, %v933_v14  ;;  %v4649_v22 = vunpack.c.l.bf16 %v5342_v10  ;;  %v5346_v7 = vld [vmem:[%s5543_s27 + $0x360] sm:$0xff]  }
 0x1f7   : > { %v1841_v23 = vsel %vm1386_vm12, %v1162_v8, %v1617_v16  ;;  %v1842_v18 = vsel %vm1387_vm13, %v1163_v36, %v1618_v19  ;;  %v4650_v24 = vunpack.c.h.bf16 %v5342_v10  ;;  %v4653_v25 = vunpack.c.l.bf16 %v5343_v9 }
 0x1f8   : > { %v5192_v27 = vpack.c.bf16 %v1842_v18, %v1841_v23  ;;  %v3184_v29 = vadd.f32 %v3183_v57, %v1841_v23  ;;  %v3415_v30 = vmul.f32 %v1841_v23, %v1841_v23  ;;  %v3416_v31 = vmul.f32 %v1842_v18, %v1842_v18 }
 0x1f9   : > { %v1165_v32 = vadd.f32 %v6426_v26, %v934_v21  ;;  %vm1388_vm14 = vcmp.ge.f32.partialorder %v1164_v2, 0.0  ;;  %v1619_v33 = vmul.f32 %v6434_v41, %v1164_v2  ;;  %v935_v34 = vmul.f32 %v6415_v12, %v4649_v22 }
 0x1fa   : > { %5451 = vst [vmem:[%s5589_s12 + $0x330] sm:$0xff] %v5192_v27   ;;  %v3185_v35 = vadd.f32 %v3184_v29, %v1842_v18  ;;  %v3638_v37 = vadd.f32 %v3637_v20, %v3415_v30  ;;  %v936_v15 = vmul.f32 %v6415_v12, %v4650_v24  ;;  %v4654_v17 = vunpack.c.h.bf16 %v5343_v9 }
 0x1fb   : > { %vm1389_vm15 = vcmp.ge.f32.partialorder %v1165_v32, 0.0  ;;  %v1620_v39 = vmul.f32 %v6434_v41, %v1165_v32  ;;  %v1843_v40 = vsel %vm1388_vm14, %v1164_v2, %v1619_v33  ;;  %v1166_v42 = vadd.f32 %v6426_v26, %v935_v34 }
 0x1fc   : > { %v3639_v43 = vadd.f32 %v3638_v37, %v3416_v31  ;;  %v3186_v44 = vadd.f32 %v3185_v35, %v1843_v40  ;;  %v3417_v28 = vmul.f32 %v1843_v40, %v1843_v40  ;;  %v1167_v45 = vadd.f32 %v6426_v26, %v936_v15 }
 0x1fd   : > { %v1844_v47 = vsel %vm1389_vm15, %v1165_v32, %v1620_v39  ;;  %vm1390_vm0 = vcmp.ge.f32.partialorder %v1166_v42, 0.0  ;;  %v1621_v48 = vmul.f32 %v6434_v41, %v1166_v42  ;;  %v937_v49 = vmul.f32 %v6415_v12, %v4653_v25  ;;  %v5347_v32 = vld [vmem:[%s5543_s27 + $0x368] sm:$0xff]  }
 0x1fe   : > { %v5197_v50 = vpack.c.bf16 %v1844_v47, %v1843_v40  ;;  %v3187_v51 = vadd.f32 %v3186_v44, %v1844_v47  ;;  %v3418_v52 = vmul.f32 %v1844_v47, %v1844_v47  ;;  %v3640_v53 = vadd.f32 %v3639_v43, %v3417_v28 }
 0x1ff   : > { %vm1391_vm1 = vcmp.ge.f32.partialorder %v1167_v45, 0.0  ;;  %v1622_v38 = vmul.f32 %v6434_v41, %v1167_v45  ;;  %v1845_v55 = vsel %vm1390_vm0, %v1166_v42, %v1621_v48  ;;  %v938_v56 = vmul.f32 %v6415_v12, %v4654_v17 }
 0x200   : > { %5452 = vst [vmem:[%s5589_s12 + $0x338] sm:$0xff] %v5197_v50   ;;  %v3641_v58 = vadd.f32 %v3640_v53, %v3418_v52  ;;  %v3188_v59 = vadd.f32 %v3187_v51, %v1845_v55  ;;  %v3419_v60 = vmul.f32 %v1845_v55, %v1845_v55  ;;  %v1168_v61 = vadd.f32 %v6426_v26, %v937_v49 }
 0x201   : > { %v1846_v62 = vsel %vm1391_vm1, %v1167_v45, %v1622_v38  ;;  %v1169_v46 = vadd.f32 %v6426_v26, %v938_v56  ;;  %v4657_v63 = vunpack.c.l.bf16 %v5344_v54  ;;  %v4658_v1 = vunpack.c.h.bf16 %v5344_v54 }
 0x202   : > { %v5202_v3 = vpack.c.bf16 %v1846_v62, %v1845_v55  ;;  %v3189_v4 = vadd.f32 %v3188_v59, %v1846_v62  ;;  %v3420_v5 = vmul.f32 %v1846_v62, %v1846_v62  ;;  %v3642_v6 = vadd.f32 %v3641_v58, %v3419_v60 }
 0x203   : > { %vm1392_vm2 = vcmp.ge.f32.partialorder %v1168_v61, 0.0  ;;  %vm1393_vm3 = vcmp.ge.f32.partialorder %v1169_v46, 0.0  ;;  %v1623_v8 = vmul.f32 %v6434_v41, %v1168_v61  ;;  %v1624_v36 = vmul.f32 %v6434_v41, %v1169_v46 }
 0x204   : > { %5453 = vst [vmem:[%s5589_s12 + $0x340] sm:$0xff] %v5202_v3   ;;  %v3643_v10 = vadd.f32 %v3642_v6, %v3420_v5  ;;  %v939_v57 = vmul.f32 %v6415_v12, %v4657_v63  ;;  %v940_v11 = vmul.f32 %v6415_v12, %v4658_v1  ;;  %v4661_v13 = vunpack.c.l.bf16 %v5345_v0 }
 0x205   : > { %v1847_v14 = vsel %vm1392_vm2, %v1168_v61, %v1623_v8  ;;  %v1848_v9 = vsel %vm1393_vm3, %v1169_v46, %v1624_v36  ;;  %v4662_v16 = vunpack.c.h.bf16 %v5345_v0  ;;  %v4665_v19 = vunpack.c.l.bf16 %v5346_v7  ;;  %v5348_v61 = vld [vmem:[%s5543_s27 + $0x370] sm:$0xff]   ;;  %v5349_v36 = vld [vmem:[%s5543_s27 + $0x378] sm:$0xff]  }
 0x206   : > { %v5207_v20 = vpack.c.bf16 %v1848_v9, %v1847_v14  ;;  %v3190_v21 = vadd.f32 %v3189_v4, %v1847_v14  ;;  %v3421_v2 = vmul.f32 %v1847_v14, %v1847_v14  ;;  %v3422_v22 = vmul.f32 %v1848_v9, %v1848_v9 }
 0x207   : > { %v1170_v23 = vadd.f32 %v6426_v26, %v939_v57  ;;  %v1171_v18 = vadd.f32 %v6426_v26, %v940_v11  ;;  %v941_v24 = vmul.f32 %v6415_v12, %v4661_v13  ;;  %v942_v25 = vmul.f32 %v6415_v12, %v4662_v16 }
 0x208   : > { %5454 = vst [vmem:[%s5589_s12 + $0x348] sm:$0xff] %v5207_v20   ;;  %v3191_v27 = vadd.f32 %v3190_v21, %v1848_v9  ;;  %v3644_v29 = vadd.f32 %v3643_v10, %v3421_v2  ;;  %v4666_v30 = vunpack.c.h.bf16 %v5346_v7  ;;  %v943_v31 = vmul.f32 %v6415_v12, %v4665_v19 }
 0x209   : > { %vm1394_vm4 = vcmp.ge.f32.partialorder %v1170_v23, 0.0  ;;  %vm1395_vm5 = vcmp.ge.f32.partialorder %v1171_v18, 0.0  ;;  %v1625_v33 = vmul.f32 %v6434_v41, %v1170_v23  ;;  %v1626_v34 = vmul.f32 %v6434_v41, %v1171_v18 }
 0x20a   : > { %v3645_v35 = vadd.f32 %v3644_v29, %v3422_v22  ;;  %v1172_v37 = vadd.f32 %v6426_v26, %v941_v24  ;;  %v1173_v15 = vadd.f32 %v6426_v26, %v942_v25  ;;  %v944_v17 = vmul.f32 %v6415_v12, %v4666_v30 }
 0x20b   : > { %v1849_v39 = vsel %vm1394_vm4, %v1170_v23, %v1625_v33  ;;  %v1850_v40 = vsel %vm1395_vm5, %v1171_v18, %v1626_v34  ;;  %v1174_v42 = vadd.f32 %v6426_v26, %v943_v31  ;;  %v4669_v43 = vunpack.c.l.bf16 %v5347_v32 }
 0x20c   : > { %v5212_v44 = vpack.c.bf16 %v1850_v40, %v1849_v39  ;;  %v3192_v28 = vadd.f32 %v3191_v27, %v1849_v39  ;;  %v3423_v45 = vmul.f32 %v1849_v39, %v1849_v39  ;;  %v3424_v47 = vmul.f32 %v1850_v40, %v1850_v40 }
 0x20d   : > { %vm1396_vm6 = vcmp.ge.f32.partialorder %v1172_v37, 0.0  ;;  %vm1397_vm7 = vcmp.ge.f32.partialorder %v1173_v15, 0.0  ;;  %v1627_v48 = vmul.f32 %v6434_v41, %v1172_v37  ;;  %v1628_v49 = vmul.f32 %v6434_v41, %v1173_v15 }
 0x20e   : > { %5455 = vst [vmem:[%s5589_s12 + $0x350] sm:$0xff] %v5212_v44   ;;  %v3193_v50 = vadd.f32 %v3192_v28, %v1850_v40  ;;  %v3646_v51 = vadd.f32 %v3645_v35, %v3423_v45  ;;  %v1175_v52 = vadd.f32 %v6426_v26, %v944_v17  ;;  %vm1398_vm8 = vcmp.ge.f32.partialorder %v1174_v42, 0.0 }
 0x20f   : > { %v1851_v53 = vsel %vm1396_vm6, %v1172_v37, %v1627_v48  ;;  %v1852_v54 = vsel %vm1397_vm7, %v1173_v15, %v1628_v49  ;;  %v1629_v38 = vmul.f32 %v6434_v41, %v1174_v42  ;;  %v4670_v55 = vunpack.c.h.bf16 %v5347_v32 }
 0x210   : > { %v3647_v56 = vadd.f32 %v3646_v51, %v3424_v47  ;;  %v5217_v58 = vpack.c.bf16 %v1852_v54, %v1851_v53  ;;  %v3194_v59 = vadd.f32 %v3193_v50, %v1851_v53  ;;  %v3425_v60 = vmul.f32 %v1851_v53, %v1851_v53 }
 0x211   : > { %v3426_v62 = vmul.f32 %v1852_v54, %v1852_v54  ;;  %vm1399_vm9 = vcmp.ge.f32.partialorder %v1175_v52, 0.0  ;;  %v1630_v46 = vmul.f32 %v6434_v41, %v1175_v52  ;;  %v1853_v63 = vsel %vm1398_vm8, %v1174_v42, %v1629_v38 }
 0x212   : > { %5456 = vst [vmem:[%s5589_s12 + $0x358] sm:$0xff] %v5217_v58   ;;  %v3195_v1 = vadd.f32 %v3194_v59, %v1852_v54  ;;  %v3648_v0 = vadd.f32 %v3647_v56, %v3425_v60  ;;  %v3427_v3 = vmul.f32 %v1853_v63, %v1853_v63  ;;  %v945_v4 = vmul.f32 %v6415_v12, %v4669_v43 }
 0x213   : > { %v1854_v5 = vsel %vm1399_vm9, %v1175_v52, %v1630_v46  ;;  %v946_v6 = vmul.f32 %v6415_v12, %v4670_v55  ;;  %v4673_v7 = vunpack.c.l.bf16 %v5348_v61  ;;  %v4674_v8 = vunpack.c.h.bf16 %v5348_v61 }
 0x214   : > { %v3649_v10 = vadd.f32 %v3648_v0, %v3426_v62  ;;  %v5222_v57 = vpack.c.bf16 %v1854_v5, %v1853_v63  ;;  %v3196_v11 = vadd.f32 %v3195_v1, %v1853_v63  ;;  %v3428_v13 = vmul.f32 %v1854_v5, %v1854_v5 }
 0x215   : > { %v1176_v14 = vadd.f32 %v6426_v26, %v945_v4  ;;  %v1177_v9 = vadd.f32 %v6426_v26, %v946_v6  ;;  %v947_v16 = vmul.f32 %v6415_v12, %v4673_v7  ;;  %v948_v19 = vmul.f32 %v6415_v12, %v4674_v8 }
 0x216   : > { %5457 = vst [vmem:[%s5589_s12 + $0x360] sm:$0xff] %v5222_v57   ;;  %v3197_v20 = vadd.f32 %v3196_v11, %v1854_v5  ;;  %v3650_v21 = vadd.f32 %v3649_v10, %v3427_v3  ;;  %v4677_v2 = vunpack.c.l.bf16 %v5349_v36  ;;  %v4678_v22 = vunpack.c.h.bf16 %v5349_v36 }
 0x217   : > { %vm1400_vm10 = vcmp.ge.f32.partialorder %v1176_v14, 0.0  ;;  %vm1401_vm11 = vcmp.ge.f32.partialorder %v1177_v9, 0.0  ;;  %v1631_v23 = vmul.f32 %v6434_v41, %v1176_v14  ;;  %v1632_v18 = vmul.f32 %v6434_v41, %v1177_v9 }
 0x218   : > { %v3651_v24 = vadd.f32 %v3650_v21, %v3428_v13  ;;  %v1178_v25 = vadd.f32 %v6426_v26, %v947_v16  ;;  %v1179_v27 = vadd.f32 %v6426_v26, %v948_v19  ;;  %v949_v29 = vmul.f32 %v6415_v12, %v4677_v2 }
 0x219   : > { %v1855_v30 = vsel %vm1400_vm10, %v1176_v14, %v1631_v23  ;;  %v1856_v31 = vsel %vm1401_vm11, %v1177_v9, %v1632_v18  ;;  %v950_v32 = vmul.f32 %v6415_v12, %v4678_v22 }
 0x21a   : > { %v5227_v33 = vpack.c.bf16 %v1856_v31, %v1855_v30  ;;  %v3198_v34 = vadd.f32 %v3197_v20, %v1855_v30  ;;  %v3429_v35 = vmul.f32 %v1855_v30, %v1855_v30  ;;  %v3430_v37 = vmul.f32 %v1856_v31, %v1856_v31 }
 0x21b   : > { %vm1402_vm12 = vcmp.ge.f32.partialorder %v1178_v25, 0.0  ;;  %vm1403_vm13 = vcmp.ge.f32.partialorder %v1179_v27, 0.0  ;;  %v1633_v15 = vmul.f32 %v6434_v41, %v1178_v25  ;;  %v1634_v17 = vmul.f32 %v6434_v41, %v1179_v27 }
 0x21c   : > { %5458 = vst [vmem:[%s5589_s12 + $0x368] sm:$0xff] %v5227_v33   ;;  %v3199_v39 = vadd.f32 %v3198_v34, %v1856_v31  ;;  %v3652_v40 = vadd.f32 %v3651_v24, %v3429_v35  ;;  %v1180_v42 = vadd.f32 %v6426_v26, %v949_v29  ;;  %v1181_v43 = vadd.f32 %v6426_v26, %v950_v32 }
 0x21d   : > { %v1857_v44 = vsel %vm1402_vm12, %v1178_v25, %v1633_v15  ;;  %v1858_v12 = vsel %vm1403_vm13, %v1179_v27, %v1634_v17 }
 0x21e   : > { %v3653_v28 = vadd.f32 %v3652_v40, %v3430_v37  ;;  %v5232_v45 = vpack.c.bf16 %v1858_v12, %v1857_v44  ;;  %v3200_v47 = vadd.f32 %v3199_v39, %v1857_v44  ;;  %v3431_v48 = vmul.f32 %v1857_v44, %v1857_v44 }
 0x21f   : > { %v3432_v49 = vmul.f32 %v1858_v12, %v1858_v12  ;;  %vm1404_vm14 = vcmp.ge.f32.partialorder %v1180_v42, 0.0  ;;  %vm1405_vm15 = vcmp.ge.f32.partialorder %v1181_v43, 0.0  ;;  %v1635_v50 = vmul.f32 %v6434_v41, %v1180_v42 }
 0x220   : > { %5459 = vst [vmem:[%s5589_s12 + $0x370] sm:$0xff] %v5232_v45   ;;  %v3201_v51 = vadd.f32 %v3200_v47, %v1858_v12  ;;  %v3654_v52 = vadd.f32 %v3653_v28, %v3431_v48  ;;  %v1636_v53 = vmul.f32 %v6434_v41, %v1181_v43 }
 0x221   : > { %v1859_v54 = vsel %vm1404_vm14, %v1180_v42, %v1635_v50 }
 0x222   : > { %v3655_v26 = vadd.f32 %v3654_v52, %v3432_v49  ;;  %v1860_v38 = vsel %vm1405_vm15, %v1181_v43, %v1636_v53  ;;  %v3202_v55 = vadd.f32 %v3201_v51, %v1859_v54  ;;  %v3433_v56 = vmul.f32 %v1859_v54, %v1859_v54 }
 0x223   : > { %v5237_v58 = vpack.c.bf16 %v1860_v38, %v1859_v54  ;;  %v3434_v59 = vmul.f32 %v1860_v38, %v1860_v38 }
 0x224   : > { %v3203_v60 = vadd.f32 %v3202_v55, %v1860_v38  ;;  %v3656_v61 = vadd.f32 %v3655_v26, %v3433_v56 }
 0x225   : > { %5460 = vst [vmem:[%s5589_s12 + $0x378] sm:$0xff] %v5237_v58  }
 0x226   : > { %v3204_v62 = vrot.slane %v3203_v60, 4  ;;  %v3657_v46 = vadd.f32 %v3656_v61, %v3434_v59 }
 0x228   : > { %v3205_v63 = vadd.f32 %v3204_v62, %v3203_v60  ;;  %v3658_v1 = vrot.slane %v3657_v46, 4 }
 0x22a   : > { %v3206_v0 = vrot.slane %v3205_v63, 2  ;;  %v3659_v3 = vadd.f32 %v3658_v1, %v3657_v46 }
 0x22c   : > { %v3207_v41 = vadd.f32 %v3206_v0, %v3205_v63  ;;  %v3660_v4 = vrot.slane %v3659_v3, 2 }
 0x22e   : > { %v3208_v5 = vrot.slane %v3207_v41, 1  ;;  %v3661_v6 = vadd.f32 %v3660_v4, %v3659_v3 }
 0x230   : > { %v3209_v7 = vadd.f32 %v3208_v5, %v3207_v41  ;;  %v3662_v8 = vrot.slane %v3661_v6, 1 }
 0x232   : > { %3210 = vst [vmem:[%s268_s18] sm:$0x1] %v3209_v7  ;;  %v3663_v36 = vadd.f32 %v3662_v8, %v3661_v6 }
 0x234   : > { %3664 = vst [vmem:[%s271_s20] sm:$0x1] %v3663_v36 }
 0x235 PF: > { %s17_s21 = sadd.s32 1, %s5487_s21  }
 0x236   : > { %p14_p5 = scmp.ge.s32.totalorder %s17_s21, 9  }
 0x238   :  { %16 = sbr.rel (!%p14_p5) target bundleno = 1 (0x1), region = 90 }

</bundles_post_ra>
